<compile_context>
chip_gen: v5e
topology: v5e:2x2
jax: 0.10.0
libtpu: 0.0.40
codegen_flags: <defaults>
</compile_context>

<pallas_src>
import functools
import math

import jax
import jax.numpy as jnp
from jax import lax
from jax.experimental import pallas as pl
from jax.experimental.pallas import tpu as pltpu


# ------------------------------------------------------------------ config
CFG = dict(
    img_size=64,        # -> z_img = 8
    token_length=64,    # -> z_txt = 8
    z_img=8,
    z_txt=8,
    cb_dim=32,
    num_codebook=16,
    step2_cb_dim=32,
    bert_layers=1,      # args.x_bert_vqvae_bert_layer
    bert_heads=1,       # cb_dim < 128 -> num_attention_heads = 1 (per spec)
    bert_ffn=512,       # cb_dim < 128 -> intermediate_size = 512 (per spec)
    gpt_layers=2,       # args.decoder_num_layers
    gpt_heads=2,        # args.decoder_num_attn_heads
    txt_vocab=100,
    txt_emb_dim=16,
)

LANE = 128
NEG_INF = -1e30
BIG = 1e30


# ------------------------------------------------------------------ fused kernel
def _fused_prior_kernel(imgp_ref, tep_ref, ww_ref, wn_ref, bw_ref, fn_ref, out_ref, *,
                        layout, n_bert, n_gpt, bert_heads, gpt_heads,
                        num_codebook, n_img_tok, seq_gpt):
    f32, bf16 = jnp.float32, jnp.bfloat16

    def _sl(ref, table, name):
        r0, rows, cols = table[name]          # static python ints -> zero-cost ref slices
        return ref[r0:r0 + rows, 0:cols]

    WW = lambda n: _sl(ww_ref, layout["ww"], n)   # bf16 matmul weights, wide (>=128) lanes
    WN = lambda n: _sl(wn_ref, layout["wn"], n)   # bf16 matmul weights, 32-lane outputs
    BW = lambda n: _sl(bw_ref, layout["bw"], n)   # f32 wide biases + padded ||cb||^2
    FN = lambda n: _sl(fn_ref, layout["fn"], n)   # f32 narrow params (LN, biases, tables)

    def mmb(a, b):       # bf16 operands, f32 accumulation on the MXU
        return jnp.dot(a.astype(bf16), b.astype(bf16), preferred_element_type=f32)

    def mmb_nt(a, b):    # a @ b.T, bf16 operands, f32 accumulation
        return lax.dot_general(a.astype(bf16), b.astype(bf16),
                               (((1,), (1,)), ((), ())), preferred_element_type=f32)

    def mm32(a, b):      # exact f32 matmul (one-hot embedding lookup)
        return jnp.dot(a, b, preferred_element_type=f32)

    def mm32_nt(a, b):   # exact f32 a @ b.T (VQ cross term, tied LM head)
        return lax.dot_general(a, b, (((1,), (1,)), ((), ())), preferred_element_type=f32)

    def layernorm(x, g, b, eps):
        mu = jnp.mean(x, axis=-1, keepdims=True)
        xc = x - mu
        var = jnp.mean(xc * xc, axis=-1, keepdims=True)
        return xc * lax.rsqrt(var + eps) * g + b

    def gelu(x):
        # TODO(synk): HF BERT uses exact erf-GELU; tanh approximation used (GPT-2 is tanh).
        return 0.5 * x * (1.0 + jnp.tanh(0.7978845608028654 * (x + 0.044715 * x * x * x)))

    def softmax_attn(s):  # attention-only softmax: approx reciprocal goes to the EUP slot
        s = s - jnp.max(s, axis=-1, keepdims=True)
        p = jnp.exp(s)
        return p * pl.reciprocal(jnp.sum(p, axis=-1, keepdims=True), approx=True)

    def mha(x, wqkv, bqkv, wo_pack, heads, attn_bias=None):
        # wqkv packs each q/k/v head on its own zero-padded 128-lane tile (q pre-scaled);
        # wo_pack is (heads*128, D) with zero rows on the padded lanes -> one merged
        # output projection instead of `heads` tiny matmuls.
        qkv = mmb(x, wqkv) + bqkv                         # (S, 3*H*128) f32
        outs = []
        for hh in range(heads):
            q = qkv[:, (0 * heads + hh) * LANE:(0 * heads + hh + 1) * LANE]
            k = qkv[:, (1 * heads + hh) * LANE:(1 * heads + hh + 1) * LANE]
            v = qkv[:, (2 * heads + hh) * LANE:(2 * heads + hh + 1) * LANE]
            s = mmb_nt(q, k)                              # zero pad lanes contribute 0
            if attn_bias is not None:
                s = s + attn_bias
            outs.append(mmb(softmax_attn(s), v))          # (S, 128), pad lanes stay 0
        o_cat = outs[0] if heads == 1 else jnp.concatenate(outs, axis=1)   # lane-aligned
        return mmb(o_cat, wo_pack)                        # single merged projection

    # ---------------- encoder stand-ins (linear patch projections) ----------------
    ri = mmb(imgp_ref[...], WN("img_w")) + FN("img_b")    # (64, D) image tokens
    rt = mmb(tep_ref[...], WN("txt_w")) + FN("txt_b")     # (8, D)  text tokens
    h = jnp.concatenate([ri, rt], axis=0)                 # (72, D)

    # ---------------- BERT encoder (post-LN) ----------------
    for li in range(n_bert):
        p = f"bert{li}_"
        a = mha(h, WW(p + "wqkv"), BW(p + "bqkv"), WN(p + "wo"), bert_heads) + FN(p + "bo")
        h = layernorm(h + a, FN(p + "ln1_g"), FN(p + "ln1_b"), 1e-12)
        f = mmb(gelu(mmb(h, WW(p + "w1")) + BW(p + "b1")), WN(p + "w2")) + FN(p + "b2")
        h = layernorm(h + f, FN(p + "ln2_g"), FN(p + "ln2_b"), 1e-12)

    z = h[0:n_img_tok, :]                                 # (64, D) image tokens only

    # ---------------- VQ nearest-code search (f32, lane-dense over 128 padded codes) ----
    cb = FN("cb_pad")                                     # (128, D), rows >= K are zero
    cb_sq = BW("cb_sq")                                   # (1, 128), lanes >= K are +BIG
    d = (jnp.sum(z * z, axis=1, keepdims=True) + cb_sq
         - 2.0 * mm32_nt(z, cb))                          # (64, 128) squared distances
    dmin = jnp.min(d, axis=1, keepdims=True)
    lane_i = lax.broadcasted_iota(jnp.int32, (n_img_tok, LANE), 1)
    code = jnp.min(jnp.where(d <= dmin, lane_i, LANE), axis=1, keepdims=True)  # first argmin
    codes_oh = (lane_i == code).astype(f32)               # (64, 128) one-hot codes

    # ---------------- GPT-2 prior (pre-LN, tied LM head) ----------------
    wte = FN("wte_pad")                                   # (128, G) vocab padded to 128
    g_codes = mm32(codes_oh, wte)                         # (64, G) exact code embeddings
    g = jnp.concatenate([FN("sos_emb"), g_codes], axis=0) + FN("wpe")   # (65, G)

    rowC = lax.broadcasted_iota(jnp.int32, (seq_gpt, seq_gpt), 0)
    colC = lax.broadcasted_iota(jnp.int32, (seq_gpt, seq_gpt), 1)
    causal_bias = jnp.where(colC <= rowC, 0.0, NEG_INF).astype(f32)     # built once, reused

    for li in range(n_gpt):
        p = f"gpt{li}_"
        x = layernorm(g, FN(p + "ln1_g"), FN(p + "ln1_b"), 1e-5)
        a = mha(x, WW(p + "wqkv"), BW(p + "bqkv"), WN(p + "wpr"), gpt_heads,
                attn_bias=causal_bias) + FN(p + "bpr")
        g = g + a
        x = layernorm(g, FN(p + "ln2_g"), FN(p + "ln2_b"), 1e-5)
        m = mmb(gelu(mmb(x, WW(p + "wfc")) + BW(p + "bfc")), WN(p + "wmp")) + FN(p + "bmp")
        g = g + m

    gf = layernorm(g, FN("lnf_g"), FN("lnf_b"), 1e-5)
    logits = mm32_nt(gf, wte)                             # (65, 128); padded vocab lanes = 0

    # ---------------- shifted CE loss + code-matching accuracy ----------------
    V = num_codebook + 1
    sl_log = logits[0:seq_gpt - 1, :]                     # (64, 128) shift_logits
    sl_log = jnp.where(lane_i < V, sl_log, NEG_INF)       # mask padded vocab lanes
    mx = jnp.max(sl_log, axis=-1, keepdims=True)
    lse = mx + jnp.log(jnp.sum(jnp.exp(sl_log - mx), axis=-1, keepdims=True))
    logp = sl_log - lse
    nll_sum = -jnp.sum(logp * codes_oh)                   # labels = shifted codes (one-hot)
    pmax = jnp.max(logp, axis=-1, keepdims=True)
    pred = jnp.min(jnp.where(logp >= pmax, lane_i, LANE), axis=1, keepdims=True)
    n_correct = jnp.sum((pred == code).astype(f32))

    lane8 = lax.broadcasted_iota(jnp.int32, (8, LANE), 1)  # one packed stats tile
    out_ref[0] = jnp.where(lane8 == 0, nll_sum,
                           jnp.where(lane8 == 1, n_correct, 0.0)).astype(f32)


# ------------------------------------------------------------------ weight packing helpers
def _round_up(x, m):
    return ((x + m - 1) // m) * m


class _Slab:
    """Row-stack 2-D params into one DMA slab; record (row0, rows, cols) per entry."""

    def __init__(self, width, dtype, align):
        self.width, self.dtype, self.align = width, dtype, align
        self.rows = 0
        self.entries = {}
        self._parts = []

    def add(self, name, arr):
        arr = jnp.asarray(arr, jnp.float32)
        if arr.ndim == 1:
            arr = arr[None, :]
        r, c = arr.shape
        assert c <= self.width, (name, c, self.width)
        start = _round_up(self.rows, self.align) if r > 1 else self.rows
        self.entries[name] = (start, r, c)
        self._parts.append((start, arr))
        self.rows = start + r

    def build(self):
        total = max(_round_up(self.rows, self.align), self.align)
        buf = jnp.zeros((total, self.width), jnp.float32)
        for r0, arr in self._parts:
            buf = buf.at[r0:r0 + arr.shape[0], 0:arr.shape[1]].set(arr)
        return buf.astype(self.dtype)


def _pack_qkv(wq, wk, wv, bq, bk, bv, heads, q_scale):
    """Each q/k/v head slice goes on its own zero-padded 128-lane tile; the attention
    scale is folded into the q weights/bias at init."""
    in_dim, model_dim = wq.shape
    dh = model_dim // heads
    W = jnp.zeros((in_dim, 3 * heads * LANE), jnp.float32)
    b = jnp.zeros((1, 3 * heads * LANE), jnp.float32)
    for t, (wm, bm) in enumerate(((wq * q_scale, bq * q_scale), (wk, bk), (wv, bv))):
        for hh in range(heads):
            pi = t * heads + hh
            W = W.at[:, pi * LANE:pi * LANE + dh].set(wm[:, hh * dh:(hh + 1) * dh])
            b = b.at[:, pi * LANE:pi * LANE + dh].set(bm[hh * dh:(hh + 1) * dh])
    return W, b


def _pack_out_proj(wo, heads):
    """(model_dim, out) head-ordered rows -> (heads*128, out) with zero pad rows, matching
    the 128-lane-padded per-head attention outputs (single merged projection matmul)."""
    model_dim, out_dim = wo.shape
    dh = model_dim // heads
    Wp = jnp.zeros((heads * LANE, out_dim), jnp.float32)
    for hh in range(heads):
        Wp = Wp.at[hh * LANE:hh * LANE + dh, :].set(wo[hh * dh:(hh + 1) * dh, :])
    return Wp


# ------------------------------------------------------------------ deterministic params
def init_params(key, cfg):
    D, G = cfg["cb_dim"], cfg["step2_cb_dim"]
    P = cfg["img_size"] // cfg["z_img"]
    Tp = cfg["token_length"] // cfg["z_txt"]
    keys = iter(jax.random.split(key, 256))

    def nrm(shape, scale=0.02):
        return scale * jax.random.normal(next(keys), shape, jnp.float32)

    raw = dict(
        img_w=nrm((3 * P * P, D)), img_b=jnp.zeros((1, D), jnp.float32),
        txt_emb=nrm((cfg["txt_vocab"], cfg["txt_emb_dim"])),
        txt_w=nrm((Tp * cfg["txt_emb_dim"], D)), txt_b=jnp.zeros((1, D), jnp.float32),
        codebook=nrm((cfg["num_codebook"], D), scale=1.0),
        wte=nrm((cfg["num_codebook"] + 1, G)),
        wpe=nrm((cfg["z_img"] ** 2 + 1, G)),
        lnf_g=jnp.ones((1, G), jnp.float32), lnf_b=jnp.zeros((1, G), jnp.float32),
    )
    bert = []
    for _ in range(cfg["bert_layers"]):
        bert.append(dict(
            wq=nrm((D, D)), wk=nrm((D, D)), wv=nrm((D, D)),
            bq=jnp.zeros((D,), jnp.float32), bk=jnp.zeros((D,), jnp.float32),
            bv=jnp.zeros((D,), jnp.float32),
            wo=nrm((D, D)), bo=jnp.zeros((1, D), jnp.float32),
            ln1_g=jnp.ones((1, D), jnp.float32), ln1_b=jnp.zeros((1, D), jnp.float32),
            w1=nrm((D, cfg["bert_ffn"])), b1=jnp.zeros((1, cfg["bert_ffn"]), jnp.float32),
            w2=nrm((cfg["bert_ffn"], D)), b2=jnp.zeros((1, D), jnp.float32),
            ln2_g=jnp.ones((1, D), jnp.float32), ln2_b=jnp.zeros((1, D), jnp.float32)))
    raw["bert"] = bert
    gpt = []
    for _ in range(cfg["gpt_layers"]):
        w_attn = nrm((G, 3 * G))
        b_attn = jnp.zeros((3 * G,), jnp.float32)
        gpt.append(dict(
            ln1_g=jnp.ones((1, G), jnp.float32), ln1_b=jnp.zeros((1, G), jnp.float32),
            wq=w_attn[:, :G], wk=w_attn[:, G:2 * G], wv=w_attn[:, 2 * G:],
            bq=b_attn[:G], bk=b_attn[G:2 * G], bv=b_attn[2 * G:],
            w_proj=nrm((G, G)), b_proj=jnp.zeros((1, G), jnp.float32),
            ln2_g=jnp.ones((1, G), jnp.float32), ln2_b=jnp.zeros((1, G), jnp.float32),
            w_fc=nrm((G, 4 * G)), b_fc=jnp.zeros((1, 4 * G), jnp.float32),
            w_mp=nrm((4 * G, G)), b_mp=jnp.zeros((1, G), jnp.float32)))
    raw["gpt"] = gpt
    return raw


def pack_params(raw, cfg):
    D, G = cfg["cb_dim"], cfg["step2_cb_dim"]
    Hb, Hg = cfg["bert_heads"], cfg["gpt_heads"]
    K = cfg["num_codebook"]
    assert D == G, "narrow slabs assume cb_dim == step2_cb_dim"
    wide_w = max(3 * Hb * LANE, cfg["bert_ffn"], 3 * Hg * LANE, 4 * G, LANE)

    ww = _Slab(wide_w, jnp.bfloat16, 16)   # bf16 matmul weights, 128-multiple widths
    wn = _Slab(D, jnp.bfloat16, 16)        # bf16 matmul weights projecting to 32 lanes
    bw = _Slab(wide_w, jnp.float32, 8)     # f32 wide biases + padded ||cb||^2
    fn = _Slab(D, jnp.float32, 8)          # f32 narrow params (LN, biases, tables)

    wn.add("img_w", raw["img_w"]); fn.add("img_b", raw["img_b"])
    wn.add("txt_w", raw["txt_w"]); fn.add("txt_b", raw["txt_b"])

    dh_b = D // Hb
    for i, lp in enumerate(raw["bert"]):
        p = f"bert{i}_"
        wqkv, bqkv = _pack_qkv(lp["wq"], lp["wk"], lp["wv"], lp["bq"], lp["bk"], lp["bv"],
                               Hb, 1.0 / math.sqrt(dh_b))
        ww.add(p + "wqkv", wqkv); bw.add(p + "bqkv", bqkv)
        wn.add(p + "wo", _pack_out_proj(lp["wo"], Hb)); fn.add(p + "bo", lp["bo"])
        fn.add(p + "ln1_g", lp["ln1_g"]); fn.add(p + "ln1_b", lp["ln1_b"])
        ww.add(p + "w1", lp["w1"]); bw.add(p + "b1", lp["b1"])
        wn.add(p + "w2", lp["w2"]); fn.add(p + "b2", lp["b2"])
        fn.add(p + "ln2_g", lp["ln2_g"]); fn.add(p + "ln2_b", lp["ln2_b"])

    cb = raw["codebook"]
    cb_pad = jnp.zeros((LANE, D), jnp.float32).at[:K].set(cb)
    cb_sq = jnp.full((1, LANE), BIG, jnp.float32).at[0, :K].set(jnp.sum(cb * cb, axis=1))
    fn.add("cb_pad", cb_pad); bw.add("cb_sq", cb_sq)

    wte_pad = jnp.zeros((LANE, G), jnp.float32).at[:K + 1].set(raw["wte"])
    fn.add("wte_pad", wte_pad)
    fn.add("sos_emb", raw["wte"][K:K + 1])
    fn.add("wpe", raw["wpe"])

    dh_g = G // Hg
    for i, lp in enumerate(raw["gpt"]):
        p = f"gpt{i}_"
        fn.add(p + "ln1_g", lp["ln1_g"]); fn.add(p + "ln1_b", lp["ln1_b"])
        wqkv, bqkv = _pack_qkv(lp["wq"], lp["wk"], lp["wv"], lp["bq"], lp["bk"], lp["bv"],
                               Hg, 1.0 / math.sqrt(dh_g))
        ww.add(p + "wqkv", wqkv); bw.add(p + "bqkv", bqkv)
        wn.add(p + "wpr", _pack_out_proj(lp["w_proj"], Hg)); fn.add(p + "bpr", lp["b_proj"])
        fn.add(p + "ln2_g", lp["ln2_g"]); fn.add(p + "ln2_b", lp["ln2_b"])
        ww.add(p + "wfc", lp["w_fc"]); bw.add(p + "bfc", lp["b_fc"])
        wn.add(p + "wmp", lp["w_mp"]); fn.add(p + "bmp", lp["b_mp"])

    fn.add("lnf_g", raw["lnf_g"]); fn.add("lnf_b", raw["lnf_b"])

    weights = dict(txt_emb=raw["txt_emb"], ww=ww.build(), wn=wn.build(),
                   bw=bw.build(), fn=fn.build())
    layout = dict(ww=ww.entries, wn=wn.entries, bw=bw.entries, fn=fn.entries)
    return weights, layout


# ------------------------------------------------------------------ forward (glue + kernel)
def transformer_prior_forward(weights, layout, img, input_ids):
    cfg = CFG
    B = img.shape[0]
    z_img, z_txt = cfg["z_img"], cfg["z_txt"]
    P = cfg["img_size"] // z_img
    Tp = cfg["token_length"] // z_txt
    n_tok = z_img * z_img
    Sg = n_tok + 1

    # Img_2D_CNN stand-in front half: stride-8 patchify (projection runs in-kernel).
    x = img.reshape(B, 3, z_img, P, z_img, P).transpose(0, 2, 4, 1, 3, 5)
    imgp = x.reshape(B * n_tok, 3 * P * P)                            # (B*64, 192)
    # Txt_1D_CNN stand-in front half: token-embedding gather + temporal patchify.
    tep = weights["txt_emb"][input_ids].reshape(B * z_txt, Tp * cfg["txt_emb_dim"])

    ww, wn, bw, fn = weights["ww"], weights["wn"], weights["bw"], weights["fn"]

    kern = functools.partial(
        _fused_prior_kernel, layout=layout,
        n_bert=cfg["bert_layers"], n_gpt=cfg["gpt_layers"],
        bert_heads=cfg["bert_heads"], gpt_heads=cfg["gpt_heads"],
        num_codebook=cfg["num_codebook"], n_img_tok=n_tok, seq_gpt=Sg)

    in_specs = [
        pl.BlockSpec((n_tok, 3 * P * P), lambda b: (b, 0)),
        pl.BlockSpec((z_txt, Tp * cfg["txt_emb_dim"]), lambda b: (b, 0)),
        pl.BlockSpec(ww.shape, lambda b: (0, 0)),     # weight slabs: grid-invariant,
        pl.BlockSpec(wn.shape, lambda b: (0, 0)),     # fetched once, resident in VMEM
        pl.BlockSpec(bw.shape, lambda b: (0, 0)),
        pl.BlockSpec(fn.shape, lambda b: (0, 0)),
    ]
    out_specs = pl.BlockSpec((1, 8, LANE), lambda b: (b, 0, 0))
    out_shape = jax.ShapeDtypeStruct((B, 8, LANE), jnp.float32)

    # TODO(synk): for large batches, block several items per grid step (BB*64 rows) to
    # amortize per-step overhead; with B=2 grid=(B,) already fills both v7x TensorCores.
    stats = pl.pallas_call(
        kern, grid=(B,), in_specs=in_specs, out_specs=out_specs, out_shape=out_shape,
        compiler_params=pltpu.CompilerParams(dimension_semantics=("parallel",)),
    )(imgp, tep, ww, wn, bw, fn)

    denom = B * n_tok
    loss = jnp.sum(stats[:, 0, 0]) / denom
    acc = jnp.sum(stats[:, 0, 1]) / denom * 100.0
    return {"total_loss": loss, "step2_code_matching_acc": acc}


# ------------------------------------------------------------------ main
if __name__ == "__main__":
    key = jax.random.PRNGKey(0)
    k_param, k_img, k_txt = jax.random.split(key, 3)

    raw = init_params(k_param, CFG)
    weights, layout = pack_params(raw, CFG)

    img = jax.random.normal(k_img, (2, 3, CFG["img_size"], CFG["img_size"]), jnp.float32)
    input_ids = jax.random.randint(k_txt, (2, CFG["token_length"]), 0, CFG["txt_vocab"],
                                   jnp.int32)

    fwd = jax.jit(lambda w, i, t: transformer_prior_forward(w, layout, i, t))
    losses = fwd(weights, img, input_ids)
    jax.block_until_ready(losses)
    print("KERNEL_OK")
</pallas_src>

<mosaic_0001>
module attributes {stable_mosaic.version = 11 : i64} {
  func.func @_fused_prior_kernel(%arg0: i32, %arg1: memref<64x192xf32, #tpu.memory_space<vmem>>, %arg2: memref<8x128xf32, #tpu.memory_space<vmem>>, %arg3: memref<192x768xbf16, #tpu.memory_space<vmem>>, %arg4: memref<1728x32xbf16, #tpu.memory_space<vmem>>, %arg5: memref<8x768xf32, #tpu.memory_space<vmem>>, %arg6: memref<352x32xf32, #tpu.memory_space<vmem>>, %arg7: memref<1x8x128xf32, #tpu.memory_space<vmem>>) attributes {dimension_semantics = [#tpu.dimension_semantics<parallel>], iteration_bounds = array<i64: 2>, scalar_prefetch = 0 : i64, scratch_operands = 0 : i64, tpu.core_type = #tpu.core_type<tc>, window_params = [{transform_indices = @transform_0, window_bounds = array<i64: 64, 192>}, {transform_indices = @transform_1, window_bounds = array<i64: 8, 128>}, {pipeline_mode = #tpu.pipeline_mode<synchronous>, transform_indices = @transform_2, window_bounds = array<i64: 192, 768>}, {pipeline_mode = #tpu.pipeline_mode<synchronous>, transform_indices = @transform_3, window_bounds = array<i64: 1728, 32>}, {pipeline_mode = #tpu.pipeline_mode<synchronous>, transform_indices = @transform_4, window_bounds = array<i64: 8, 768>}, {pipeline_mode = #tpu.pipeline_mode<synchronous>, transform_indices = @transform_5, window_bounds = array<i64: 352, 32>}, {transform_indices = @transform_6, window_bounds = array<i64: 1, 8, 128>}]} {
    %c0 = arith.constant 0 : index
    %c0_0 = arith.constant 0 : index
    %0 = vector.load %arg1[%c0, %c0_0] : memref<64x192xf32, #tpu.memory_space<vmem>>, vector<64x192xf32>
    %c0_1 = arith.constant 0 : index
    %c0_2 = arith.constant 0 : index
    %1 = vector.load %arg4[%c0_1, %c0_2] : memref<1728x32xbf16, #tpu.memory_space<vmem>>, vector<192x32xbf16>
    %2 = arith.truncf %0 : vector<64x192xf32> to vector<64x192xbf16>
    %cst = arith.constant dense<0.000000e+00> : vector<64x32xf32>
    %3 = tpu.matmul %2, %1, %cst {dimension_numbers = #tpu.dot_dimension_numbers<[1], [0], [0], [1], [0, 0, 1, 1], [], []>} : vector<64x192xbf16>, vector<192x32xbf16>, vector<64x32xf32> -> vector<64x32xf32>
    %c0_3 = arith.constant 0 : index
    %c0_4 = arith.constant 0 : index
    %4 = vector.load %arg6[%c0_3, %c0_4] : memref<352x32xf32, #tpu.memory_space<vmem>>, vector<1x32xf32>
    %5 = vector.broadcast %4 : vector<1x32xf32> to vector<64x32xf32>
    %6 = arith.addf %3, %5 : vector<64x32xf32>
    %c0_5 = arith.constant 0 : index
    %c0_6 = arith.constant 0 : index
    %7 = vector.load %arg2[%c0_5, %c0_6] : memref<8x128xf32, #tpu.memory_space<vmem>>, vector<8x128xf32>
    %c192 = arith.constant 192 : index
    %c0_7 = arith.constant 0 : index
    %8 = vector.load %arg4[%c192, %c0_7] : memref<1728x32xbf16, #tpu.memory_space<vmem>>, vector<128x32xbf16>
    %9 = arith.truncf %7 : vector<8x128xf32> to vector<8x128xbf16>
    %cst_8 = arith.constant dense<0.000000e+00> : vector<8x32xf32>
    %10 = tpu.matmul %9, %8, %cst_8 {dimension_numbers = #tpu.dot_dimension_numbers<[1], [0], [0], [1], [0, 0, 1, 1], [], []>} : vector<8x128xbf16>, vector<128x32xbf16>, vector<8x32xf32> -> vector<8x32xf32>
    %c1 = arith.constant 1 : index
    %c0_9 = arith.constant 0 : index
    %11 = vector.load %arg6[%c1, %c0_9] : memref<352x32xf32, #tpu.memory_space<vmem>>, vector<1x32xf32>
    %12 = vector.broadcast %11 : vector<1x32xf32> to vector<8x32xf32>
    %13 = arith.addf %10, %12 : vector<8x32xf32>
    %14 = tpu.concatenate %6, %13 in 0 : vector<64x32xf32>, vector<8x32xf32> -> vector<72x32xf32>
    %c0_10 = arith.constant 0 : index
    %c0_11 = arith.constant 0 : index
    %15 = vector.load %arg3[%c0_10, %c0_11] : memref<192x768xbf16, #tpu.memory_space<vmem>>, vector<32x384xbf16>
    %c0_12 = arith.constant 0 : index
    %c0_13 = arith.constant 0 : index
    %16 = vector.load %arg5[%c0_12, %c0_13] : memref<8x768xf32, #tpu.memory_space<vmem>>, vector<1x384xf32>
    %c320 = arith.constant 320 : index
    %c0_14 = arith.constant 0 : index
    %17 = vector.load %arg4[%c320, %c0_14] : memref<1728x32xbf16, #tpu.memory_space<vmem>>, vector<128x32xbf16>
    %18 = arith.truncf %14 : vector<72x32xf32> to vector<72x32xbf16>
    %cst_15 = arith.constant dense<0.000000e+00> : vector<72x384xf32>
    %19 = tpu.matmul %18, %15, %cst_15 {dimension_numbers = #tpu.dot_dimension_numbers<[1], [0], [0], [1], [0, 0, 1, 1], [], []>} : vector<72x32xbf16>, vector<32x384xbf16>, vector<72x384xf32> -> vector<72x384xf32>
    %20 = vector.broadcast %16 : vector<1x384xf32> to vector<72x384xf32>
    %21 = arith.addf %19, %20 : vector<72x384xf32>
    %22 = vector.extract_strided_slice %21 {offsets = [0, 0], sizes = [72, 128], strides = [1, 1]} : vector<72x384xf32> to vector<72x128xf32>
    %23 = vector.extract_strided_slice %21 {offsets = [0, 128], sizes = [72, 128], strides = [1, 1]} : vector<72x384xf32> to vector<72x128xf32>
    %24 = vector.extract_strided_slice %21 {offsets = [0, 256], sizes = [72, 128], strides = [1, 1]} : vector<72x384xf32> to vector<72x128xf32>
    %25 = arith.truncf %22 : vector<72x128xf32> to vector<72x128xbf16>
    %26 = arith.truncf %23 : vector<72x128xf32> to vector<72x128xbf16>
    %cst_16 = arith.constant dense<0.000000e+00> : vector<72x72xf32>
    %27 = tpu.matmul %25, %26, %cst_16 {dimension_numbers = #tpu.dot_dimension_numbers<[1], [1], [0], [0], [0, 0, 1, 0], [], []>} : vector<72x128xbf16>, vector<72x128xbf16>, vector<72x72xf32> -> vector<72x72xf32>
    %cst_17 = arith.constant dense<0xFF800000> : vector<72xf32>
    %28 = vector.multi_reduction <maximumf>, %27, %cst_17 [1] : vector<72x72xf32> to vector<72xf32>
    %29 = vector.shape_cast %28 : vector<72xf32> to vector<72x1xf32>
    %30 = vector.broadcast %29 : vector<72x1xf32> to vector<72x72xf32>
    %31 = arith.subf %27, %30 : vector<72x72xf32>
    %32 = math.exp %31 : vector<72x72xf32>
    %cst_18 = arith.constant dense<0.000000e+00> : vector<72xf32>
    %33 = vector.multi_reduction <add>, %32, %cst_18 [1] : vector<72x72xf32> to vector<72xf32>
    %34 = vector.shape_cast %33 : vector<72xf32> to vector<72x1xf32>
    %35 = tpu.reciprocal %34 {approx = true} : vector<72x1xf32> -> vector<72x1xf32>
    %36 = vector.broadcast %35 : vector<72x1xf32> to vector<72x72xf32>
    %37 = arith.mulf %32, %36 : vector<72x72xf32>
    %38 = arith.truncf %37 : vector<72x72xf32> to vector<72x72xbf16>
    %39 = arith.truncf %24 : vector<72x128xf32> to vector<72x128xbf16>
    %cst_19 = arith.constant dense<0.000000e+00> : vector<72x128xf32>
    %40 = tpu.matmul %38, %39, %cst_19 {dimension_numbers = #tpu.dot_dimension_numbers<[1], [0], [0], [1], [0, 0, 1, 1], [], []>} : vector<72x72xbf16>, vector<72x128xbf16>, vector<72x128xf32> -> vector<72x128xf32>
    %41 = arith.truncf %40 : vector<72x128xf32> to vector<72x128xbf16>
    %cst_20 = arith.constant dense<0.000000e+00> : vector<72x32xf32>
    %42 = tpu.matmul %41, %17, %cst_20 {dimension_numbers = #tpu.dot_dimension_numbers<[1], [0], [0], [1], [0, 0, 1, 1], [], []>} : vector<72x128xbf16>, vector<128x32xbf16>, vector<72x32xf32> -> vector<72x32xf32>
    %c2 = arith.constant 2 : index
    %c0_21 = arith.constant 0 : index
    %43 = vector.load %arg6[%c2, %c0_21] : memref<352x32xf32, #tpu.memory_space<vmem>>, vector<1x32xf32>
    %44 = vector.broadcast %43 : vector<1x32xf32> to vector<72x32xf32>
    %45 = arith.addf %42, %44 : vector<72x32xf32>
    %46 = arith.addf %14, %45 : vector<72x32xf32>
    %c3 = arith.constant 3 : index
    %c0_22 = arith.constant 0 : index
    %47 = vector.load %arg6[%c3, %c0_22] : memref<352x32xf32, #tpu.memory_space<vmem>>, vector<1x32xf32>
    %c4 = arith.constant 4 : index
    %c0_23 = arith.constant 0 : index
    %48 = vector.load %arg6[%c4, %c0_23] : memref<352x32xf32, #tpu.memory_space<vmem>>, vector<1x32xf32>
    %cst_24 = arith.constant dense<0.000000e+00> : vector<72xf32>
    %49 = vector.multi_reduction <add>, %46, %cst_24 [1] : vector<72x32xf32> to vector<72xf32>
    %50 = vector.shape_cast %49 : vector<72xf32> to vector<72x1xf32>
    %cst_25 = arith.constant 3.200000e+01 : f32
    %51 = vector.broadcast %cst_25 : f32 to vector<72x1xf32>
    %52 = arith.divf %50, %51 : vector<72x1xf32>
    %53 = vector.broadcast %52 : vector<72x1xf32> to vector<72x32xf32>
    %54 = arith.subf %46, %53 : vector<72x32xf32>
    %55 = arith.mulf %54, %54 : vector<72x32xf32>
    %cst_26 = arith.constant dense<0.000000e+00> : vector<72xf32>
    %56 = vector.multi_reduction <add>, %55, %cst_26 [1] : vector<72x32xf32> to vector<72xf32>
    %57 = vector.shape_cast %56 : vector<72xf32> to vector<72x1xf32>
    %cst_27 = arith.constant 3.200000e+01 : f32
    %58 = vector.broadcast %cst_27 : f32 to vector<72x1xf32>
    %59 = arith.divf %57, %58 : vector<72x1xf32>
    %cst_28 = arith.constant 9.99999996E-13 : f32
    %60 = vector.broadcast %cst_28 : f32 to vector<72x1xf32>
    %61 = arith.addf %59, %60 : vector<72x1xf32>
    %62 = math.rsqrt %61 : vector<72x1xf32>
    %63 = vector.broadcast %62 : vector<72x1xf32> to vector<72x32xf32>
    %64 = arith.mulf %54, %63 : vector<72x32xf32>
    %65 = vector.broadcast %47 : vector<1x32xf32> to vector<72x32xf32>
    %66 = arith.mulf %64, %65 : vector<72x32xf32>
    %67 = vector.broadcast %48 : vector<1x32xf32> to vector<72x32xf32>
    %68 = arith.addf %66, %67 : vector<72x32xf32>
    %c32 = arith.constant 32 : index
    %c0_29 = arith.constant 0 : index
    %69 = vector.load %arg3[%c32, %c0_29] : memref<192x768xbf16, #tpu.memory_space<vmem>>, vector<32x512xbf16>
    %70 = arith.truncf %68 : vector<72x32xf32> to vector<72x32xbf16>
    %cst_30 = arith.constant dense<0.000000e+00> : vector<72x512xf32>
    %71 = tpu.matmul %70, %69, %cst_30 {dimension_numbers = #tpu.dot_dimension_numbers<[1], [0], [0], [1], [0, 0, 1, 1], [], []>} : vector<72x32xbf16>, vector<32x512xbf16>, vector<72x512xf32> -> vector<72x512xf32>
    %c1_31 = arith.constant 1 : index
    %c0_32 = arith.constant 0 : index
    %72 = vector.load %arg5[%c1_31, %c0_32] : memref<8x768xf32, #tpu.memory_space<vmem>>, vector<1x512xf32>
    %73 = vector.broadcast %72 : vector<1x512xf32> to vector<72x512xf32>
    %74 = arith.addf %71, %73 : vector<72x512xf32>
    %cst_33 = arith.constant 5.000000e-01 : f32
    %75 = vector.broadcast %cst_33 : f32 to vector<72x512xf32>
    %76 = arith.mulf %75, %74 : vector<72x512xf32>
    %cst_34 = arith.constant 4.471500e-02 : f32
    %77 = vector.broadcast %cst_34 : f32 to vector<72x512xf32>
    %78 = arith.mulf %77, %74 : vector<72x512xf32>
    %79 = arith.mulf %78, %74 : vector<72x512xf32>
    %80 = arith.mulf %79, %74 : vector<72x512xf32>
    %81 = arith.addf %74, %80 : vector<72x512xf32>
    %cst_35 = arith.constant 0.797884583 : f32
    %82 = vector.broadcast %cst_35 : f32 to vector<72x512xf32>
    %83 = arith.mulf %82, %81 : vector<72x512xf32>
    %84 = math.tanh %83 : vector<72x512xf32>
    %cst_36 = arith.constant 1.000000e+00 : f32
    %85 = vector.broadcast %cst_36 : f32 to vector<72x512xf32>
    %86 = arith.addf %85, %84 : vector<72x512xf32>
    %87 = arith.mulf %76, %86 : vector<72x512xf32>
    %c448 = arith.constant 448 : index
    %c0_37 = arith.constant 0 : index
    %88 = vector.load %arg4[%c448, %c0_37] : memref<1728x32xbf16, #tpu.memory_space<vmem>>, vector<512x32xbf16>
    %89 = arith.truncf %87 : vector<72x512xf32> to vector<72x512xbf16>
    %cst_38 = arith.constant dense<0.000000e+00> : vector<72x32xf32>
    %90 = tpu.matmul %89, %88, %cst_38 {dimension_numbers = #tpu.dot_dimension_numbers<[1], [0], [0], [1], [0, 0, 1, 1], [], []>} : vector<72x512xbf16>, vector<512x32xbf16>, vector<72x32xf32> -> vector<72x32xf32>
    %c5 = arith.constant 5 : index
    %c0_39 = arith.constant 0 : index
    %91 = vector.load %arg6[%c5, %c0_39] : memref<352x32xf32, #tpu.memory_space<vmem>>, vector<1x32xf32>
    %92 = vector.broadcast %91 : vector<1x32xf32> to vector<72x32xf32>
    %93 = arith.addf %90, %92 : vector<72x32xf32>
    %94 = arith.addf %68, %93 : vector<72x32xf32>
    %c6 = arith.constant 6 : index
    %c0_40 = arith.constant 0 : index
    %95 = vector.load %arg6[%c6, %c0_40] : memref<352x32xf32, #tpu.memory_space<vmem>>, vector<1x32xf32>
    %c7 = arith.constant 7 : index
    %c0_41 = arith.constant 0 : index
    %96 = vector.load %arg6[%c7, %c0_41] : memref<352x32xf32, #tpu.memory_space<vmem>>, vector<1x32xf32>
    %cst_42 = arith.constant dense<0.000000e+00> : vector<72xf32>
    %97 = vector.multi_reduction <add>, %94, %cst_42 [1] : vector<72x32xf32> to vector<72xf32>
    %98 = vector.shape_cast %97 : vector<72xf32> to vector<72x1xf32>
    %cst_43 = arith.constant 3.200000e+01 : f32
    %99 = vector.broadcast %cst_43 : f32 to vector<72x1xf32>
    %100 = arith.divf %98, %99 : vector<72x1xf32>
    %101 = vector.broadcast %100 : vector<72x1xf32> to vector<72x32xf32>
    %102 = arith.subf %94, %101 : vector<72x32xf32>
    %103 = arith.mulf %102, %102 : vector<72x32xf32>
    %cst_44 = arith.constant dense<0.000000e+00> : vector<72xf32>
    %104 = vector.multi_reduction <add>, %103, %cst_44 [1] : vector<72x32xf32> to vector<72xf32>
    %105 = vector.shape_cast %104 : vector<72xf32> to vector<72x1xf32>
    %cst_45 = arith.constant 3.200000e+01 : f32
    %106 = vector.broadcast %cst_45 : f32 to vector<72x1xf32>
    %107 = arith.divf %105, %106 : vector<72x1xf32>
    %cst_46 = arith.constant 9.99999996E-13 : f32
    %108 = vector.broadcast %cst_46 : f32 to vector<72x1xf32>
    %109 = arith.addf %107, %108 : vector<72x1xf32>
    %110 = math.rsqrt %109 : vector<72x1xf32>
    %111 = vector.broadcast %110 : vector<72x1xf32> to vector<72x32xf32>
    %112 = arith.mulf %102, %111 : vector<72x32xf32>
    %113 = vector.broadcast %95 : vector<1x32xf32> to vector<72x32xf32>
    %114 = arith.mulf %112, %113 : vector<72x32xf32>
    %115 = vector.broadcast %96 : vector<1x32xf32> to vector<72x32xf32>
    %116 = arith.addf %114, %115 : vector<72x32xf32>
    %117 = vector.extract_strided_slice %116 {offsets = [0, 0], sizes = [64, 32], strides = [1, 1]} : vector<72x32xf32> to vector<64x32xf32>
    %c8 = arith.constant 8 : index
    %c0_47 = arith.constant 0 : index
    %118 = vector.load %arg6[%c8, %c0_47] : memref<352x32xf32, #tpu.memory_space<vmem>>, vector<128x32xf32>
    %c2_48 = arith.constant 2 : index
    %c0_49 = arith.constant 0 : index
    %119 = vector.load %arg5[%c2_48, %c0_49] : memref<8x768xf32, #tpu.memory_space<vmem>>, vector<1x128xf32>
    %120 = arith.mulf %117, %117 : vector<64x32xf32>
    %cst_50 = arith.constant dense<0.000000e+00> : vector<64xf32>
    %121 = vector.multi_reduction <add>, %120, %cst_50 [1] : vector<64x32xf32> to vector<64xf32>
    %122 = vector.shape_cast %121 : vector<64xf32> to vector<64x1xf32>
    %123 = vector.broadcast %122 : vector<64x1xf32> to vector<64x128xf32>
    %124 = vector.broadcast %119 : vector<1x128xf32> to vector<64x128xf32>
    %125 = arith.addf %123, %124 : vector<64x128xf32>
    %cst_51 = arith.constant dense<0.000000e+00> : vector<64x128xf32>
    %126 = tpu.matmul %117, %118, %cst_51 {dimension_numbers = #tpu.dot_dimension_numbers<[1], [1], [0], [0], [0, 0, 1, 0], [], []>} : vector<64x32xf32>, vector<128x32xf32>, vector<64x128xf32> -> vector<64x128xf32>
    %cst_52 = arith.constant 2.000000e+00 : f32
    %127 = vector.broadcast %cst_52 : f32 to vector<64x128xf32>
    %128 = arith.mulf %127, %126 : vector<64x128xf32>
    %129 = arith.subf %125, %128 : vector<64x128xf32>
    %cst_53 = arith.constant dense<0x7F800000> : vector<64xf32>
    %130 = vector.multi_reduction <minimumf>, %129, %cst_53 [1] : vector<64x128xf32> to vector<64xf32>
    %131 = vector.shape_cast %130 : vector<64xf32> to vector<64x1xf32>
    %132 = tpu.iota {dimensions = array<i32: 1>} : vector<64x128xi32>
    %133 = vector.broadcast %131 : vector<64x1xf32> to vector<64x128xf32>
    %134 = arith.cmpf ole, %129, %133 : vector<64x128xf32>
    %c128_i32 = arith.constant 128 : i32
    %135 = vector.broadcast %c128_i32 : i32 to vector<64x128xi32>
    %136 = arith.select %134, %132, %135 : vector<64x128xi1>, vector<64x128xi32>
    %cst_54 = arith.constant dense<2147483647> : vector<64xi32>
    %137 = vector.multi_reduction <minsi>, %136, %cst_54 [1] : vector<64x128xi32> to vector<64xi32>
    %138 = vector.shape_cast %137 : vector<64xi32> to vector<64x1xi32>
    %139 = vector.broadcast %138 : vector<64x1xi32> to vector<64x128xi32>
    %140 = arith.cmpi eq, %132, %139 : vector<64x128xi32>
    %141 = arith.extui %140 : vector<64x128xi1> to vector<64x128xi32>
    %142 = arith.sitofp %141 : vector<64x128xi32> to vector<64x128xf32>
    %c136 = arith.constant 136 : index
    %c0_55 = arith.constant 0 : index
    %143 = vector.load %arg6[%c136, %c0_55] : memref<352x32xf32, #tpu.memory_space<vmem>>, vector<128x32xf32>
    %cst_56 = arith.constant dense<0.000000e+00> : vector<64x32xf32>
    %144 = tpu.matmul %142, %143, %cst_56 {dimension_numbers = #tpu.dot_dimension_numbers<[1], [0], [0], [1], [0, 0, 1, 1], [], []>} : vector<64x128xf32>, vector<128x32xf32>, vector<64x32xf32> -> vector<64x32xf32>
    %c264 = arith.constant 264 : index
    %c0_57 = arith.constant 0 : index
    %145 = vector.load %arg6[%c264, %c0_57] : memref<352x32xf32, #tpu.memory_space<vmem>>, vector<1x32xf32>
    %146 = tpu.concatenate %145, %144 in 0 : vector<1x32xf32>, vector<64x32xf32> -> vector<65x32xf32>
    %c272 = arith.constant 272 : index
    %c0_58 = arith.constant 0 : index
    %147 = vector.load %arg6[%c272, %c0_58] : memref<352x32xf32, #tpu.memory_space<vmem>>, vector<65x32xf32>
    %148 = arith.addf %146, %147 : vector<65x32xf32>
    %149 = tpu.iota {dimensions = array<i32: 0>} : vector<65x65xi32>
    %150 = tpu.iota {dimensions = array<i32: 1>} : vector<65x65xi32>
    %151 = arith.cmpi sle, %150, %149 : vector<65x65xi32>
    %cst_59 = arith.constant 0.000000e+00 : f32
    %cst_60 = arith.constant -1.000000e+30 : f32
    %152 = vector.broadcast %cst_59 : f32 to vector<65x65xf32>
    %153 = vector.broadcast %cst_60 : f32 to vector<65x65xf32>
    %154 = arith.select %151, %152, %153 : vector<65x65xi1>, vector<65x65xf32>
    %c337 = arith.constant 337 : index
    %c0_61 = arith.constant 0 : index
    %155 = vector.load %arg6[%c337, %c0_61] : memref<352x32xf32, #tpu.memory_space<vmem>>, vector<1x32xf32>
    %c338 = arith.constant 338 : index
    %c0_62 = arith.constant 0 : index
    %156 = vector.load %arg6[%c338, %c0_62] : memref<352x32xf32, #tpu.memory_space<vmem>>, vector<1x32xf32>
    %cst_63 = arith.constant dense<0.000000e+00> : vector<65xf32>
    %157 = vector.multi_reduction <add>, %148, %cst_63 [1] : vector<65x32xf32> to vector<65xf32>
    %158 = vector.shape_cast %157 : vector<65xf32> to vector<65x1xf32>
    %cst_64 = arith.constant 3.200000e+01 : f32
    %159 = vector.broadcast %cst_64 : f32 to vector<65x1xf32>
    %160 = arith.divf %158, %159 : vector<65x1xf32>
    %161 = vector.broadcast %160 : vector<65x1xf32> to vector<65x32xf32>
    %162 = arith.subf %148, %161 : vector<65x32xf32>
    %163 = arith.mulf %162, %162 : vector<65x32xf32>
    %cst_65 = arith.constant dense<0.000000e+00> : vector<65xf32>
    %164 = vector.multi_reduction <add>, %163, %cst_65 [1] : vector<65x32xf32> to vector<65xf32>
    %165 = vector.shape_cast %164 : vector<65xf32> to vector<65x1xf32>
    %cst_66 = arith.constant 3.200000e+01 : f32
    %166 = vector.broadcast %cst_66 : f32 to vector<65x1xf32>
    %167 = arith.divf %165, %166 : vector<65x1xf32>
    %cst_67 = arith.constant 9.99999974E-6 : f32
    %168 = vector.broadcast %cst_67 : f32 to vector<65x1xf32>
    %169 = arith.addf %167, %168 : vector<65x1xf32>
    %170 = math.rsqrt %169 : vector<65x1xf32>
    %171 = vector.broadcast %170 : vector<65x1xf32> to vector<65x32xf32>
    %172 = arith.mulf %162, %171 : vector<65x32xf32>
    %173 = vector.broadcast %155 : vector<1x32xf32> to vector<65x32xf32>
    %174 = arith.mulf %172, %173 : vector<65x32xf32>
    %175 = vector.broadcast %156 : vector<1x32xf32> to vector<65x32xf32>
    %176 = arith.addf %174, %175 : vector<65x32xf32>
    %c64 = arith.constant 64 : index
    %c0_68 = arith.constant 0 : index
    %177 = vector.load %arg3[%c64, %c0_68] : memref<192x768xbf16, #tpu.memory_space<vmem>>, vector<32x768xbf16>
    %c3_69 = arith.constant 3 : index
    %c0_70 = arith.constant 0 : index
    %178 = vector.load %arg5[%c3_69, %c0_70] : memref<8x768xf32, #tpu.memory_space<vmem>>, vector<1x768xf32>
    %c960 = arith.constant 960 : index
    %c0_71 = arith.constant 0 : index
    %179 = vector.load %arg4[%c960, %c0_71] : memref<1728x32xbf16, #tpu.memory_space<vmem>>, vector<256x32xbf16>
    %180 = arith.truncf %176 : vector<65x32xf32> to vector<65x32xbf16>
    %cst_72 = arith.constant dense<0.000000e+00> : vector<65x768xf32>
    %181 = tpu.matmul %180, %177, %cst_72 {dimension_numbers = #tpu.dot_dimension_numbers<[1], [0], [0], [1], [0, 0, 1, 1], [], []>} : vector<65x32xbf16>, vector<32x768xbf16>, vector<65x768xf32> -> vector<65x768xf32>
    %182 = vector.broadcast %178 : vector<1x768xf32> to vector<65x768xf32>
    %183 = arith.addf %181, %182 : vector<65x768xf32>
    %184 = vector.extract_strided_slice %183 {offsets = [0, 0], sizes = [65, 128], strides = [1, 1]} : vector<65x768xf32> to vector<65x128xf32>
    %185 = vector.extract_strided_slice %183 {offsets = [0, 256], sizes = [65, 128], strides = [1, 1]} : vector<65x768xf32> to vector<65x128xf32>
    %186 = vector.extract_strided_slice %183 {offsets = [0, 512], sizes = [65, 128], strides = [1, 1]} : vector<65x768xf32> to vector<65x128xf32>
    %187 = arith.truncf %184 : vector<65x128xf32> to vector<65x128xbf16>
    %188 = arith.truncf %185 : vector<65x128xf32> to vector<65x128xbf16>
    %cst_73 = arith.constant dense<0.000000e+00> : vector<65x65xf32>
    %189 = tpu.matmul %187, %188, %cst_73 {dimension_numbers = #tpu.dot_dimension_numbers<[1], [1], [0], [0], [0, 0, 1, 0], [], []>} : vector<65x128xbf16>, vector<65x128xbf16>, vector<65x65xf32> -> vector<65x65xf32>
    %190 = arith.addf %189, %154 : vector<65x65xf32>
    %cst_74 = arith.constant dense<0xFF800000> : vector<65xf32>
    %191 = vector.multi_reduction <maximumf>, %190, %cst_74 [1] : vector<65x65xf32> to vector<65xf32>
    %192 = vector.shape_cast %191 : vector<65xf32> to vector<65x1xf32>
    %193 = vector.broadcast %192 : vector<65x1xf32> to vector<65x65xf32>
    %194 = arith.subf %190, %193 : vector<65x65xf32>
    %195 = math.exp %194 : vector<65x65xf32>
    %cst_75 = arith.constant dense<0.000000e+00> : vector<65xf32>
    %196 = vector.multi_reduction <add>, %195, %cst_75 [1] : vector<65x65xf32> to vector<65xf32>
    %197 = vector.shape_cast %196 : vector<65xf32> to vector<65x1xf32>
    %198 = tpu.reciprocal %197 {approx = true} : vector<65x1xf32> -> vector<65x1xf32>
    %199 = vector.broadcast %198 : vector<65x1xf32> to vector<65x65xf32>
    %200 = arith.mulf %195, %199 : vector<65x65xf32>
    %201 = arith.truncf %200 : vector<65x65xf32> to vector<65x65xbf16>
    %202 = arith.truncf %186 : vector<65x128xf32> to vector<65x128xbf16>
    %cst_76 = arith.constant dense<0.000000e+00> : vector<65x128xf32>
    %203 = tpu.matmul %201, %202, %cst_76 {dimension_numbers = #tpu.dot_dimension_numbers<[1], [0], [0], [1], [0, 0, 1, 1], [], []>} : vector<65x65xbf16>, vector<65x128xbf16>, vector<65x128xf32> -> vector<65x128xf32>
    %204 = vector.extract_strided_slice %183 {offsets = [0, 128], sizes = [65, 128], strides = [1, 1]} : vector<65x768xf32> to vector<65x128xf32>
    %205 = vector.extract_strided_slice %183 {offsets = [0, 384], sizes = [65, 128], strides = [1, 1]} : vector<65x768xf32> to vector<65x128xf32>
    %206 = vector.extract_strided_slice %183 {offsets = [0, 640], sizes = [65, 128], strides = [1, 1]} : vector<65x768xf32> to vector<65x128xf32>
    %207 = arith.truncf %204 : vector<65x128xf32> to vector<65x128xbf16>
    %208 = arith.truncf %205 : vector<65x128xf32> to vector<65x128xbf16>
    %cst_77 = arith.constant dense<0.000000e+00> : vector<65x65xf32>
    %209 = tpu.matmul %207, %208, %cst_77 {dimension_numbers = #tpu.dot_dimension_numbers<[1], [1], [0], [0], [0, 0, 1, 0], [], []>} : vector<65x128xbf16>, vector<65x128xbf16>, vector<65x65xf32> -> vector<65x65xf32>
    %210 = arith.addf %209, %154 : vector<65x65xf32>
    %cst_78 = arith.constant dense<0xFF800000> : vector<65xf32>
    %211 = vector.multi_reduction <maximumf>, %210, %cst_78 [1] : vector<65x65xf32> to vector<65xf32>
    %212 = vector.shape_cast %211 : vector<65xf32> to vector<65x1xf32>
    %213 = vector.broadcast %212 : vector<65x1xf32> to vector<65x65xf32>
    %214 = arith.subf %210, %213 : vector<65x65xf32>
    %215 = math.exp %214 : vector<65x65xf32>
    %cst_79 = arith.constant dense<0.000000e+00> : vector<65xf32>
    %216 = vector.multi_reduction <add>, %215, %cst_79 [1] : vector<65x65xf32> to vector<65xf32>
    %217 = vector.shape_cast %216 : vector<65xf32> to vector<65x1xf32>
    %218 = tpu.reciprocal %217 {approx = true} : vector<65x1xf32> -> vector<65x1xf32>
    %219 = vector.broadcast %218 : vector<65x1xf32> to vector<65x65xf32>
    %220 = arith.mulf %215, %219 : vector<65x65xf32>
    %221 = arith.truncf %220 : vector<65x65xf32> to vector<65x65xbf16>
    %222 = arith.truncf %206 : vector<65x128xf32> to vector<65x128xbf16>
    %cst_80 = arith.constant dense<0.000000e+00> : vector<65x128xf32>
    %223 = tpu.matmul %221, %222, %cst_80 {dimension_numbers = #tpu.dot_dimension_numbers<[1], [0], [0], [1], [0, 0, 1, 1], [], []>} : vector<65x65xbf16>, vector<65x128xbf16>, vector<65x128xf32> -> vector<65x128xf32>
    %224 = tpu.concatenate %203, %223 in 1 : vector<65x128xf32>, vector<65x128xf32> -> vector<65x256xf32>
    %225 = arith.truncf %224 : vector<65x256xf32> to vector<65x256xbf16>
    %cst_81 = arith.constant dense<0.000000e+00> : vector<65x32xf32>
    %226 = tpu.matmul %225, %179, %cst_81 {dimension_numbers = #tpu.dot_dimension_numbers<[1], [0], [0], [1], [0, 0, 1, 1], [], []>} : vector<65x256xbf16>, vector<256x32xbf16>, vector<65x32xf32> -> vector<65x32xf32>
    %c339 = arith.constant 339 : index
    %c0_82 = arith.constant 0 : index
    %227 = vector.load %arg6[%c339, %c0_82] : memref<352x32xf32, #tpu.memory_space<vmem>>, vector<1x32xf32>
    %228 = vector.broadcast %227 : vector<1x32xf32> to vector<65x32xf32>
    %229 = arith.addf %226, %228 : vector<65x32xf32>
    %230 = arith.addf %148, %229 : vector<65x32xf32>
    %c340 = arith.constant 340 : index
    %c0_83 = arith.constant 0 : index
    %231 = vector.load %arg6[%c340, %c0_83] : memref<352x32xf32, #tpu.memory_space<vmem>>, vector<1x32xf32>
    %c341 = arith.constant 341 : index
    %c0_84 = arith.constant 0 : index
    %232 = vector.load %arg6[%c341, %c0_84] : memref<352x32xf32, #tpu.memory_space<vmem>>, vector<1x32xf32>
    %cst_85 = arith.constant dense<0.000000e+00> : vector<65xf32>
    %233 = vector.multi_reduction <add>, %230, %cst_85 [1] : vector<65x32xf32> to vector<65xf32>
    %234 = vector.shape_cast %233 : vector<65xf32> to vector<65x1xf32>
    %cst_86 = arith.constant 3.200000e+01 : f32
    %235 = vector.broadcast %cst_86 : f32 to vector<65x1xf32>
    %236 = arith.divf %234, %235 : vector<65x1xf32>
    %237 = vector.broadcast %236 : vector<65x1xf32> to vector<65x32xf32>
    %238 = arith.subf %230, %237 : vector<65x32xf32>
    %239 = arith.mulf %238, %238 : vector<65x32xf32>
    %cst_87 = arith.constant dense<0.000000e+00> : vector<65xf32>
    %240 = vector.multi_reduction <add>, %239, %cst_87 [1] : vector<65x32xf32> to vector<65xf32>
    %241 = vector.shape_cast %240 : vector<65xf32> to vector<65x1xf32>
    %cst_88 = arith.constant 3.200000e+01 : f32
    %242 = vector.broadcast %cst_88 : f32 to vector<65x1xf32>
    %243 = arith.divf %241, %242 : vector<65x1xf32>
    %cst_89 = arith.constant 9.99999974E-6 : f32
    %244 = vector.broadcast %cst_89 : f32 to vector<65x1xf32>
    %245 = arith.addf %243, %244 : vector<65x1xf32>
    %246 = math.rsqrt %245 : vector<65x1xf32>
    %247 = vector.broadcast %246 : vector<65x1xf32> to vector<65x32xf32>
    %248 = arith.mulf %238, %247 : vector<65x32xf32>
    %249 = vector.broadcast %231 : vector<1x32xf32> to vector<65x32xf32>
    %250 = arith.mulf %248, %249 : vector<65x32xf32>
    %251 = vector.broadcast %232 : vector<1x32xf32> to vector<65x32xf32>
    %252 = arith.addf %250, %251 : vector<65x32xf32>
    %c96 = arith.constant 96 : index
    %c0_90 = arith.constant 0 : index
    %253 = vector.load %arg3[%c96, %c0_90] : memref<192x768xbf16, #tpu.memory_space<vmem>>, vector<32x128xbf16>
    %254 = arith.truncf %252 : vector<65x32xf32> to vector<65x32xbf16>
    %cst_91 = arith.constant dense<0.000000e+00> : vector<65x128xf32>
    %255 = tpu.matmul %254, %253, %cst_91 {dimension_numbers = #tpu.dot_dimension_numbers<[1], [0], [0], [1], [0, 0, 1, 1], [], []>} : vector<65x32xbf16>, vector<32x128xbf16>, vector<65x128xf32> -> vector<65x128xf32>
    %c4_92 = arith.constant 4 : index
    %c0_93 = arith.constant 0 : index
    %256 = vector.load %arg5[%c4_92, %c0_93] : memref<8x768xf32, #tpu.memory_space<vmem>>, vector<1x128xf32>
    %257 = vector.broadcast %256 : vector<1x128xf32> to vector<65x128xf32>
    %258 = arith.addf %255, %257 : vector<65x128xf32>
    %cst_94 = arith.constant 5.000000e-01 : f32
    %259 = vector.broadcast %cst_94 : f32 to vector<65x128xf32>
    %260 = arith.mulf %259, %258 : vector<65x128xf32>
    %cst_95 = arith.constant 4.471500e-02 : f32
    %261 = vector.broadcast %cst_95 : f32 to vector<65x128xf32>
    %262 = arith.mulf %261, %258 : vector<65x128xf32>
    %263 = arith.mulf %262, %258 : vector<65x128xf32>
    %264 = arith.mulf %263, %258 : vector<65x128xf32>
    %265 = arith.addf %258, %264 : vector<65x128xf32>
    %cst_96 = arith.constant 0.797884583 : f32
    %266 = vector.broadcast %cst_96 : f32 to vector<65x128xf32>
    %267 = arith.mulf %266, %265 : vector<65x128xf32>
    %268 = math.tanh %267 : vector<65x128xf32>
    %cst_97 = arith.constant 1.000000e+00 : f32
    %269 = vector.broadcast %cst_97 : f32 to vector<65x128xf32>
    %270 = arith.addf %269, %268 : vector<65x128xf32>
    %271 = arith.mulf %260, %270 : vector<65x128xf32>
    %c1216 = arith.constant 1216 : index
    %c0_98 = arith.constant 0 : index
    %272 = vector.load %arg4[%c1216, %c0_98] : memref<1728x32xbf16, #tpu.memory_space<vmem>>, vector<128x32xbf16>
    %273 = arith.truncf %271 : vector<65x128xf32> to vector<65x128xbf16>
    %cst_99 = arith.constant dense<0.000000e+00> : vector<65x32xf32>
    %274 = tpu.matmul %273, %272, %cst_99 {dimension_numbers = #tpu.dot_dimension_numbers<[1], [0], [0], [1], [0, 0, 1, 1], [], []>} : vector<65x128xbf16>, vector<128x32xbf16>, vector<65x32xf32> -> vector<65x32xf32>
    %c342 = arith.constant 342 : index
    %c0_100 = arith.constant 0 : index
    %275 = vector.load %arg6[%c342, %c0_100] : memref<352x32xf32, #tpu.memory_space<vmem>>, vector<1x32xf32>
    %276 = vector.broadcast %275 : vector<1x32xf32> to vector<65x32xf32>
    %277 = arith.addf %274, %276 : vector<65x32xf32>
    %278 = arith.addf %230, %277 : vector<65x32xf32>
    %c343 = arith.constant 343 : index
    %c0_101 = arith.constant 0 : index
    %279 = vector.load %arg6[%c343, %c0_101] : memref<352x32xf32, #tpu.memory_space<vmem>>, vector<1x32xf32>
    %c344 = arith.constant 344 : index
    %c0_102 = arith.constant 0 : index
    %280 = vector.load %arg6[%c344, %c0_102] : memref<352x32xf32, #tpu.memory_space<vmem>>, vector<1x32xf32>
    %cst_103 = arith.constant dense<0.000000e+00> : vector<65xf32>
    %281 = vector.multi_reduction <add>, %278, %cst_103 [1] : vector<65x32xf32> to vector<65xf32>
    %282 = vector.shape_cast %281 : vector<65xf32> to vector<65x1xf32>
    %cst_104 = arith.constant 3.200000e+01 : f32
    %283 = vector.broadcast %cst_104 : f32 to vector<65x1xf32>
    %284 = arith.divf %282, %283 : vector<65x1xf32>
    %285 = vector.broadcast %284 : vector<65x1xf32> to vector<65x32xf32>
    %286 = arith.subf %278, %285 : vector<65x32xf32>
    %287 = arith.mulf %286, %286 : vector<65x32xf32>
    %cst_105 = arith.constant dense<0.000000e+00> : vector<65xf32>
    %288 = vector.multi_reduction <add>, %287, %cst_105 [1] : vector<65x32xf32> to vector<65xf32>
    %289 = vector.shape_cast %288 : vector<65xf32> to vector<65x1xf32>
    %cst_106 = arith.constant 3.200000e+01 : f32
    %290 = vector.broadcast %cst_106 : f32 to vector<65x1xf32>
    %291 = arith.divf %289, %290 : vector<65x1xf32>
    %cst_107 = arith.constant 9.99999974E-6 : f32
    %292 = vector.broadcast %cst_107 : f32 to vector<65x1xf32>
    %293 = arith.addf %291, %292 : vector<65x1xf32>
    %294 = math.rsqrt %293 : vector<65x1xf32>
    %295 = vector.broadcast %294 : vector<65x1xf32> to vector<65x32xf32>
    %296 = arith.mulf %286, %295 : vector<65x32xf32>
    %297 = vector.broadcast %279 : vector<1x32xf32> to vector<65x32xf32>
    %298 = arith.mulf %296, %297 : vector<65x32xf32>
    %299 = vector.broadcast %280 : vector<1x32xf32> to vector<65x32xf32>
    %300 = arith.addf %298, %299 : vector<65x32xf32>
    %c128 = arith.constant 128 : index
    %c0_108 = arith.constant 0 : index
    %301 = vector.load %arg3[%c128, %c0_108] : memref<192x768xbf16, #tpu.memory_space<vmem>>, vector<32x768xbf16>
    %c5_109 = arith.constant 5 : index
    %c0_110 = arith.constant 0 : index
    %302 = vector.load %arg5[%c5_109, %c0_110] : memref<8x768xf32, #tpu.memory_space<vmem>>, vector<1x768xf32>
    %c1344 = arith.constant 1344 : index
    %c0_111 = arith.constant 0 : index
    %303 = vector.load %arg4[%c1344, %c0_111] : memref<1728x32xbf16, #tpu.memory_space<vmem>>, vector<256x32xbf16>
    %304 = arith.truncf %300 : vector<65x32xf32> to vector<65x32xbf16>
    %cst_112 = arith.constant dense<0.000000e+00> : vector<65x768xf32>
    %305 = tpu.matmul %304, %301, %cst_112 {dimension_numbers = #tpu.dot_dimension_numbers<[1], [0], [0], [1], [0, 0, 1, 1], [], []>} : vector<65x32xbf16>, vector<32x768xbf16>, vector<65x768xf32> -> vector<65x768xf32>
    %306 = vector.broadcast %302 : vector<1x768xf32> to vector<65x768xf32>
    %307 = arith.addf %305, %306 : vector<65x768xf32>
    %308 = vector.extract_strided_slice %307 {offsets = [0, 0], sizes = [65, 128], strides = [1, 1]} : vector<65x768xf32> to vector<65x128xf32>
    %309 = vector.extract_strided_slice %307 {offsets = [0, 256], sizes = [65, 128], strides = [1, 1]} : vector<65x768xf32> to vector<65x128xf32>
    %310 = vector.extract_strided_slice %307 {offsets = [0, 512], sizes = [65, 128], strides = [1, 1]} : vector<65x768xf32> to vector<65x128xf32>
    %311 = arith.truncf %308 : vector<65x128xf32> to vector<65x128xbf16>
    %312 = arith.truncf %309 : vector<65x128xf32> to vector<65x128xbf16>
    %cst_113 = arith.constant dense<0.000000e+00> : vector<65x65xf32>
    %313 = tpu.matmul %311, %312, %cst_113 {dimension_numbers = #tpu.dot_dimension_numbers<[1], [1], [0], [0], [0, 0, 1, 0], [], []>} : vector<65x128xbf16>, vector<65x128xbf16>, vector<65x65xf32> -> vector<65x65xf32>
    %314 = arith.addf %313, %154 : vector<65x65xf32>
    %cst_114 = arith.constant dense<0xFF800000> : vector<65xf32>
    %315 = vector.multi_reduction <maximumf>, %314, %cst_114 [1] : vector<65x65xf32> to vector<65xf32>
    %316 = vector.shape_cast %315 : vector<65xf32> to vector<65x1xf32>
    %317 = vector.broadcast %316 : vector<65x1xf32> to vector<65x65xf32>
    %318 = arith.subf %314, %317 : vector<65x65xf32>
    %319 = math.exp %318 : vector<65x65xf32>
    %cst_115 = arith.constant dense<0.000000e+00> : vector<65xf32>
    %320 = vector.multi_reduction <add>, %319, %cst_115 [1] : vector<65x65xf32> to vector<65xf32>
    %321 = vector.shape_cast %320 : vector<65xf32> to vector<65x1xf32>
    %322 = tpu.reciprocal %321 {approx = true} : vector<65x1xf32> -> vector<65x1xf32>
    %323 = vector.broadcast %322 : vector<65x1xf32> to vector<65x65xf32>
    %324 = arith.mulf %319, %323 : vector<65x65xf32>
    %325 = arith.truncf %324 : vector<65x65xf32> to vector<65x65xbf16>
    %326 = arith.truncf %310 : vector<65x128xf32> to vector<65x128xbf16>
    %cst_116 = arith.constant dense<0.000000e+00> : vector<65x128xf32>
    %327 = tpu.matmul %325, %326, %cst_116 {dimension_numbers = #tpu.dot_dimension_numbers<[1], [0], [0], [1], [0, 0, 1, 1], [], []>} : vector<65x65xbf16>, vector<65x128xbf16>, vector<65x128xf32> -> vector<65x128xf32>
    %328 = vector.extract_strided_slice %307 {offsets = [0, 128], sizes = [65, 128], strides = [1, 1]} : vector<65x768xf32> to vector<65x128xf32>
    %329 = vector.extract_strided_slice %307 {offsets = [0, 384], sizes = [65, 128], strides = [1, 1]} : vector<65x768xf32> to vector<65x128xf32>
    %330 = vector.extract_strided_slice %307 {offsets = [0, 640], sizes = [65, 128], strides = [1, 1]} : vector<65x768xf32> to vector<65x128xf32>
    %331 = arith.truncf %328 : vector<65x128xf32> to vector<65x128xbf16>
    %332 = arith.truncf %329 : vector<65x128xf32> to vector<65x128xbf16>
    %cst_117 = arith.constant dense<0.000000e+00> : vector<65x65xf32>
    %333 = tpu.matmul %331, %332, %cst_117 {dimension_numbers = #tpu.dot_dimension_numbers<[1], [1], [0], [0], [0, 0, 1, 0], [], []>} : vector<65x128xbf16>, vector<65x128xbf16>, vector<65x65xf32> -> vector<65x65xf32>
    %334 = arith.addf %333, %154 : vector<65x65xf32>
    %cst_118 = arith.constant dense<0xFF800000> : vector<65xf32>
    %335 = vector.multi_reduction <maximumf>, %334, %cst_118 [1] : vector<65x65xf32> to vector<65xf32>
    %336 = vector.shape_cast %335 : vector<65xf32> to vector<65x1xf32>
    %337 = vector.broadcast %336 : vector<65x1xf32> to vector<65x65xf32>
    %338 = arith.subf %334, %337 : vector<65x65xf32>
    %339 = math.exp %338 : vector<65x65xf32>
    %cst_119 = arith.constant dense<0.000000e+00> : vector<65xf32>
    %340 = vector.multi_reduction <add>, %339, %cst_119 [1] : vector<65x65xf32> to vector<65xf32>
    %341 = vector.shape_cast %340 : vector<65xf32> to vector<65x1xf32>
    %342 = tpu.reciprocal %341 {approx = true} : vector<65x1xf32> -> vector<65x1xf32>
    %343 = vector.broadcast %342 : vector<65x1xf32> to vector<65x65xf32>
    %344 = arith.mulf %339, %343 : vector<65x65xf32>
    %345 = arith.truncf %344 : vector<65x65xf32> to vector<65x65xbf16>
    %346 = arith.truncf %330 : vector<65x128xf32> to vector<65x128xbf16>
    %cst_120 = arith.constant dense<0.000000e+00> : vector<65x128xf32>
    %347 = tpu.matmul %345, %346, %cst_120 {dimension_numbers = #tpu.dot_dimension_numbers<[1], [0], [0], [1], [0, 0, 1, 1], [], []>} : vector<65x65xbf16>, vector<65x128xbf16>, vector<65x128xf32> -> vector<65x128xf32>
    %348 = tpu.concatenate %327, %347 in 1 : vector<65x128xf32>, vector<65x128xf32> -> vector<65x256xf32>
    %349 = arith.truncf %348 : vector<65x256xf32> to vector<65x256xbf16>
    %cst_121 = arith.constant dense<0.000000e+00> : vector<65x32xf32>
    %350 = tpu.matmul %349, %303, %cst_121 {dimension_numbers = #tpu.dot_dimension_numbers<[1], [0], [0], [1], [0, 0, 1, 1], [], []>} : vector<65x256xbf16>, vector<256x32xbf16>, vector<65x32xf32> -> vector<65x32xf32>
    %c345 = arith.constant 345 : index
    %c0_122 = arith.constant 0 : index
    %351 = vector.load %arg6[%c345, %c0_122] : memref<352x32xf32, #tpu.memory_space<vmem>>, vector<1x32xf32>
    %352 = vector.broadcast %351 : vector<1x32xf32> to vector<65x32xf32>
    %353 = arith.addf %350, %352 : vector<65x32xf32>
    %354 = arith.addf %278, %353 : vector<65x32xf32>
    %c346 = arith.constant 346 : index
    %c0_123 = arith.constant 0 : index
    %355 = vector.load %arg6[%c346, %c0_123] : memref<352x32xf32, #tpu.memory_space<vmem>>, vector<1x32xf32>
    %c347 = arith.constant 347 : index
    %c0_124 = arith.constant 0 : index
    %356 = vector.load %arg6[%c347, %c0_124] : memref<352x32xf32, #tpu.memory_space<vmem>>, vector<1x32xf32>
    %cst_125 = arith.constant dense<0.000000e+00> : vector<65xf32>
    %357 = vector.multi_reduction <add>, %354, %cst_125 [1] : vector<65x32xf32> to vector<65xf32>
    %358 = vector.shape_cast %357 : vector<65xf32> to vector<65x1xf32>
    %cst_126 = arith.constant 3.200000e+01 : f32
    %359 = vector.broadcast %cst_126 : f32 to vector<65x1xf32>
    %360 = arith.divf %358, %359 : vector<65x1xf32>
    %361 = vector.broadcast %360 : vector<65x1xf32> to vector<65x32xf32>
    %362 = arith.subf %354, %361 : vector<65x32xf32>
    %363 = arith.mulf %362, %362 : vector<65x32xf32>
    %cst_127 = arith.constant dense<0.000000e+00> : vector<65xf32>
    %364 = vector.multi_reduction <add>, %363, %cst_127 [1] : vector<65x32xf32> to vector<65xf32>
    %365 = vector.shape_cast %364 : vector<65xf32> to vector<65x1xf32>
    %cst_128 = arith.constant 3.200000e+01 : f32
    %366 = vector.broadcast %cst_128 : f32 to vector<65x1xf32>
    %367 = arith.divf %365, %366 : vector<65x1xf32>
    %cst_129 = arith.constant 9.99999974E-6 : f32
    %368 = vector.broadcast %cst_129 : f32 to vector<65x1xf32>
    %369 = arith.addf %367, %368 : vector<65x1xf32>
    %370 = math.rsqrt %369 : vector<65x1xf32>
    %371 = vector.broadcast %370 : vector<65x1xf32> to vector<65x32xf32>
    %372 = arith.mulf %362, %371 : vector<65x32xf32>
    %373 = vector.broadcast %355 : vector<1x32xf32> to vector<65x32xf32>
    %374 = arith.mulf %372, %373 : vector<65x32xf32>
    %375 = vector.broadcast %356 : vector<1x32xf32> to vector<65x32xf32>
    %376 = arith.addf %374, %375 : vector<65x32xf32>
    %c160 = arith.constant 160 : index
    %c0_130 = arith.constant 0 : index
    %377 = vector.load %arg3[%c160, %c0_130] : memref<192x768xbf16, #tpu.memory_space<vmem>>, vector<32x128xbf16>
    %378 = arith.truncf %376 : vector<65x32xf32> to vector<65x32xbf16>
    %cst_131 = arith.constant dense<0.000000e+00> : vector<65x128xf32>
    %379 = tpu.matmul %378, %377, %cst_131 {dimension_numbers = #tpu.dot_dimension_numbers<[1], [0], [0], [1], [0, 0, 1, 1], [], []>} : vector<65x32xbf16>, vector<32x128xbf16>, vector<65x128xf32> -> vector<65x128xf32>
    %c6_132 = arith.constant 6 : index
    %c0_133 = arith.constant 0 : index
    %380 = vector.load %arg5[%c6_132, %c0_133] : memref<8x768xf32, #tpu.memory_space<vmem>>, vector<1x128xf32>
    %381 = vector.broadcast %380 : vector<1x128xf32> to vector<65x128xf32>
    %382 = arith.addf %379, %381 : vector<65x128xf32>
    %cst_134 = arith.constant 5.000000e-01 : f32
    %383 = vector.broadcast %cst_134 : f32 to vector<65x128xf32>
    %384 = arith.mulf %383, %382 : vector<65x128xf32>
    %cst_135 = arith.constant 4.471500e-02 : f32
    %385 = vector.broadcast %cst_135 : f32 to vector<65x128xf32>
    %386 = arith.mulf %385, %382 : vector<65x128xf32>
    %387 = arith.mulf %386, %382 : vector<65x128xf32>
    %388 = arith.mulf %387, %382 : vector<65x128xf32>
    %389 = arith.addf %382, %388 : vector<65x128xf32>
    %cst_136 = arith.constant 0.797884583 : f32
    %390 = vector.broadcast %cst_136 : f32 to vector<65x128xf32>
    %391 = arith.mulf %390, %389 : vector<65x128xf32>
    %392 = math.tanh %391 : vector<65x128xf32>
    %cst_137 = arith.constant 1.000000e+00 : f32
    %393 = vector.broadcast %cst_137 : f32 to vector<65x128xf32>
    %394 = arith.addf %393, %392 : vector<65x128xf32>
    %395 = arith.mulf %384, %394 : vector<65x128xf32>
    %c1600 = arith.constant 1600 : index
    %c0_138 = arith.constant 0 : index
    %396 = vector.load %arg4[%c1600, %c0_138] : memref<1728x32xbf16, #tpu.memory_space<vmem>>, vector<128x32xbf16>
    %397 = arith.truncf %395 : vector<65x128xf32> to vector<65x128xbf16>
    %cst_139 = arith.constant dense<0.000000e+00> : vector<65x32xf32>
    %398 = tpu.matmul %397, %396, %cst_139 {dimension_numbers = #tpu.dot_dimension_numbers<[1], [0], [0], [1], [0, 0, 1, 1], [], []>} : vector<65x128xbf16>, vector<128x32xbf16>, vector<65x32xf32> -> vector<65x32xf32>
    %c348 = arith.constant 348 : index
    %c0_140 = arith.constant 0 : index
    %399 = vector.load %arg6[%c348, %c0_140] : memref<352x32xf32, #tpu.memory_space<vmem>>, vector<1x32xf32>
    %400 = vector.broadcast %399 : vector<1x32xf32> to vector<65x32xf32>
    %401 = arith.addf %398, %400 : vector<65x32xf32>
    %402 = arith.addf %354, %401 : vector<65x32xf32>
    %c349 = arith.constant 349 : index
    %c0_141 = arith.constant 0 : index
    %403 = vector.load %arg6[%c349, %c0_141] : memref<352x32xf32, #tpu.memory_space<vmem>>, vector<1x32xf32>
    %c350 = arith.constant 350 : index
    %c0_142 = arith.constant 0 : index
    %404 = vector.load %arg6[%c350, %c0_142] : memref<352x32xf32, #tpu.memory_space<vmem>>, vector<1x32xf32>
    %cst_143 = arith.constant dense<0.000000e+00> : vector<65xf32>
    %405 = vector.multi_reduction <add>, %402, %cst_143 [1] : vector<65x32xf32> to vector<65xf32>
    %406 = vector.shape_cast %405 : vector<65xf32> to vector<65x1xf32>
    %cst_144 = arith.constant 3.200000e+01 : f32
    %407 = vector.broadcast %cst_144 : f32 to vector<65x1xf32>
    %408 = arith.divf %406, %407 : vector<65x1xf32>
    %409 = vector.broadcast %408 : vector<65x1xf32> to vector<65x32xf32>
    %410 = arith.subf %402, %409 : vector<65x32xf32>
    %411 = arith.mulf %410, %410 : vector<65x32xf32>
    %cst_145 = arith.constant dense<0.000000e+00> : vector<65xf32>
    %412 = vector.multi_reduction <add>, %411, %cst_145 [1] : vector<65x32xf32> to vector<65xf32>
    %413 = vector.shape_cast %412 : vector<65xf32> to vector<65x1xf32>
    %cst_146 = arith.constant 3.200000e+01 : f32
    %414 = vector.broadcast %cst_146 : f32 to vector<65x1xf32>
    %415 = arith.divf %413, %414 : vector<65x1xf32>
    %cst_147 = arith.constant 9.99999974E-6 : f32
    %416 = vector.broadcast %cst_147 : f32 to vector<65x1xf32>
    %417 = arith.addf %415, %416 : vector<65x1xf32>
    %418 = math.rsqrt %417 : vector<65x1xf32>
    %419 = vector.broadcast %418 : vector<65x1xf32> to vector<65x32xf32>
    %420 = arith.mulf %410, %419 : vector<65x32xf32>
    %421 = vector.broadcast %403 : vector<1x32xf32> to vector<65x32xf32>
    %422 = arith.mulf %420, %421 : vector<65x32xf32>
    %423 = vector.broadcast %404 : vector<1x32xf32> to vector<65x32xf32>
    %424 = arith.addf %422, %423 : vector<65x32xf32>
    %cst_148 = arith.constant dense<0.000000e+00> : vector<65x128xf32>
    %425 = tpu.matmul %424, %143, %cst_148 {dimension_numbers = #tpu.dot_dimension_numbers<[1], [1], [0], [0], [0, 0, 1, 0], [], []>} : vector<65x32xf32>, vector<128x32xf32>, vector<65x128xf32> -> vector<65x128xf32>
    %426 = vector.extract_strided_slice %425 {offsets = [0, 0], sizes = [64, 128], strides = [1, 1]} : vector<65x128xf32> to vector<64x128xf32>
    %c17_i32 = arith.constant 17 : i32
    %427 = vector.broadcast %c17_i32 : i32 to vector<64x128xi32>
    %428 = arith.cmpi slt, %132, %427 : vector<64x128xi32>
    %cst_149 = arith.constant -1.000000e+30 : f32
    %429 = vector.broadcast %cst_149 : f32 to vector<64x128xf32>
    %430 = arith.select %428, %426, %429 : vector<64x128xi1>, vector<64x128xf32>
    %cst_150 = arith.constant dense<0xFF800000> : vector<64xf32>
    %431 = vector.multi_reduction <maximumf>, %430, %cst_150 [1] : vector<64x128xf32> to vector<64xf32>
    %432 = vector.shape_cast %431 : vector<64xf32> to vector<64x1xf32>
    %433 = vector.broadcast %432 : vector<64x1xf32> to vector<64x128xf32>
    %434 = arith.subf %430, %433 : vector<64x128xf32>
    %435 = math.exp %434 : vector<64x128xf32>
    %cst_151 = arith.constant dense<0.000000e+00> : vector<64xf32>
    %436 = vector.multi_reduction <add>, %435, %cst_151 [1] : vector<64x128xf32> to vector<64xf32>
    %437 = vector.shape_cast %436 : vector<64xf32> to vector<64x1xf32>
    %438 = math.log %437 : vector<64x1xf32>
    %439 = arith.addf %432, %438 : vector<64x1xf32>
    %440 = vector.broadcast %439 : vector<64x1xf32> to vector<64x128xf32>
    %441 = arith.subf %430, %440 : vector<64x128xf32>
    %442 = arith.mulf %441, %142 : vector<64x128xf32>
    %443 = vector.shape_cast %442 : vector<64x128xf32> to vector<1x64x128xf32>
    %cst_152 = arith.constant dense<0.000000e+00> : vector<1xf32>
    %444 = vector.multi_reduction <add>, %443, %cst_152 [1, 2] : vector<1x64x128xf32> to vector<1xf32>
    %445 = vector.shape_cast %444 : vector<1xf32> to vector<1x1x1xf32>
    %446 = vector.extract %445[0, 0, 0] : f32 from vector<1x1x1xf32>
    %cst_153 = arith.constant 0.000000e+00 : f32
    %447 = arith.subf %cst_153, %446 : f32
    %cst_154 = arith.constant dense<0xFF800000> : vector<64xf32>
    %448 = vector.multi_reduction <maximumf>, %441, %cst_154 [1] : vector<64x128xf32> to vector<64xf32>
    %449 = vector.shape_cast %448 : vector<64xf32> to vector<64x1xf32>
    %450 = vector.broadcast %449 : vector<64x1xf32> to vector<64x128xf32>
    %451 = arith.cmpf oge, %441, %450 : vector<64x128xf32>
    %c128_i32_155 = arith.constant 128 : i32
    %452 = vector.broadcast %c128_i32_155 : i32 to vector<64x128xi32>
    %453 = arith.select %451, %132, %452 : vector<64x128xi1>, vector<64x128xi32>
    %cst_156 = arith.constant dense<2147483647> : vector<64xi32>
    %454 = vector.multi_reduction <minsi>, %453, %cst_156 [1] : vector<64x128xi32> to vector<64xi32>
    %455 = vector.shape_cast %454 : vector<64xi32> to vector<64x1xi32>
    %456 = arith.cmpi eq, %455, %138 : vector<64x1xi32>
    %457 = arith.extui %456 : vector<64x1xi1> to vector<64x1xi32>
    %458 = arith.sitofp %457 : vector<64x1xi32> to vector<64x1xf32>
    %459 = vector.shape_cast %458 : vector<64x1xf32> to vector<1x64x1xf32>
    %cst_157 = arith.constant dense<0.000000e+00> : vector<1xf32>
    %460 = vector.multi_reduction <add>, %459, %cst_157 [1, 2] : vector<1x64x1xf32> to vector<1xf32>
    %461 = vector.shape_cast %460 : vector<1xf32> to vector<1x1x1xf32>
    %462 = vector.extract %461[0, 0, 0] : f32 from vector<1x1x1xf32>
    %463 = tpu.iota {dimensions = array<i32: 1>} : vector<8x128xi32>
    %c0_i32 = arith.constant 0 : i32
    %464 = vector.broadcast %c0_i32 : i32 to vector<8x128xi32>
    %465 = arith.cmpi eq, %463, %464 : vector<8x128xi32>
    %c1_i32 = arith.constant 1 : i32
    %466 = vector.broadcast %c1_i32 : i32 to vector<8x128xi32>
    %467 = arith.cmpi eq, %463, %466 : vector<8x128xi32>
    %cst_158 = arith.constant 0.000000e+00 : f32
    %468 = vector.broadcast %462 : f32 to vector<8x128xf32>
    %469 = vector.broadcast %cst_158 : f32 to vector<8x128xf32>
    %470 = arith.select %467, %468, %469 : vector<8x128xi1>, vector<8x128xf32>
    %471 = vector.broadcast %447 : f32 to vector<8x128xf32>
    %472 = arith.select %465, %471, %470 : vector<8x128xi1>, vector<8x128xf32>
    %c0_159 = arith.constant 0 : index
    %c0_160 = arith.constant 0 : index
    %c0_161 = arith.constant 0 : index
    %473 = vector.load %arg7[%c0_159, %c0_160, %c0_161] : memref<1x8x128xf32, #tpu.memory_space<vmem>>, vector<1x8x128xf32>
    %474 = vector.shape_cast %473 : vector<1x8x128xf32> to vector<8x128xf32>
    %475 = vector.shape_cast %472 : vector<8x128xf32> to vector<1x8x128xf32>
    tpu.vector_store %arg7[%c0_159, %c0_160, %c0_161], %475 {strides = array<i32>} : memref<1x8x128xf32, #tpu.memory_space<vmem>>, vector<1x8x128xf32>,
    return
  }
  func.func @transform_0(%arg0: i32) -> (i32, i32) {
    %c0_i32 = arith.constant 0 : i32
    %c0_i32_0 = arith.constant 0 : i32
    return %arg0, %c0_i32 : i32, i32
  }
  func.func @transform_1(%arg0: i32) -> (i32, i32) {
    %c0_i32 = arith.constant 0 : i32
    %c0_i32_0 = arith.constant 0 : i32
    return %arg0, %c0_i32 : i32, i32
  }
  func.func @transform_2(%arg0: i32) -> (i32, i32) {
    %c0_i32 = arith.constant 0 : i32
    %c0_i32_0 = arith.constant 0 : i32
    %c0_i32_1 = arith.constant 0 : i32
    return %c0_i32, %c0_i32_0 : i32, i32
  }
  func.func @transform_3(%arg0: i32) -> (i32, i32) {
    %c0_i32 = arith.constant 0 : i32
    %c0_i32_0 = arith.constant 0 : i32
    %c0_i32_1 = arith.constant 0 : i32
    return %c0_i32, %c0_i32_0 : i32, i32
  }
  func.func @transform_4(%arg0: i32) -> (i32, i32) {
    %c0_i32 = arith.constant 0 : i32
    %c0_i32_0 = arith.constant 0 : i32
    %c0_i32_1 = arith.constant 0 : i32
    return %c0_i32, %c0_i32_0 : i32, i32
  }
  func.func @transform_5(%arg0: i32) -> (i32, i32) {
    %c0_i32 = arith.constant 0 : i32
    %c0_i32_0 = arith.constant 0 : i32
    %c0_i32_1 = arith.constant 0 : i32
    return %c0_i32, %c0_i32_0 : i32, i32
  }
  func.func @transform_6(%arg0: i32) -> (i32, i32, i32) {
    %c0_i32 = arith.constant 0 : i32
    %c0_i32_0 = arith.constant 0 : i32
    %c0_i32_1 = arith.constant 0 : i32
    return %arg0, %c0_i32, %c0_i32_0 : i32, i32, i32
  }
}

</mosaic_0001>

<bundles_post_ra>
// kernel: _lambda_.1
= control target key start
LH: loop header
LB: loop body
LE: loop exit
PB: predicated region body
PF: predicated region fallthrough
CT: control target
= control target key end

     0   :  { %s8419_s21 = smov 0   ;;  %s12120_s0 = inlined_call_operand.vmem [shape: f32[128,192], index: 0, kind: input, shape index: {}]   ;;  %s12121_s1 = inlined_call_operand.vmem [shape: f32[16,128], index: 1, kind: input, shape index: {}]   ;;  %s12122_s2 = inlined_call_operand.vmem [shape: bf16[192,768], index: 2, kind: input, shape index: {}]   ;;  %s12123_s3 = inlined_call_operand.vmem [shape: bf16[1728,32], index: 3, kind: input, shape index: {}]   ;;  %s12124_s4 = inlined_call_operand.vmem [shape: f32[8,768], index: 4, kind: input, shape index: {}]   ;;  %s12125_s5 = inlined_call_operand.vmem [shape: f32[352,32], index: 5, kind: input, shape index: {}]   ;;  %s12126_s6 = inlined_call_operand.vmem [shape: f32[2,8,128], index: 6, kind: output, shape index: {}]  }
   0x1 LB: > { %s8425_s22 = sadd.s32 4294967295, %s8377_s21   ;;  %p6897_p0 = scmp.ge.s32.totalorder %s8377_s21, 1  ;;  %s8377_s21 = sphi %s8419_s21, %s16_s21  }
   0x2   : > { %p223_p1 = scmp.lt.s32.totalorder %s8377_s21, 3 }
   0x4   : > { %p224_p2 = pnand %p6897_p0, %p223_p1 }
   0x6   : > { %227 = sbr.rel (%p224_p2) target bundleno = 7796 (0x1e74), region = 44 }
   0xb   : > { %v7725_v0 = vld [vmem:[%s12123_s3 + $0x38] sm:$0xff]  ;;  %s6898_s25 = sshll.u32 %s8425_s22, 3  ;;  %v7724_v2 = vld [vmem:[%s12123_s3 + $0x30] sm:$0xff]  ;;  %v7723_v4 = vld [vmem:[%s12123_s3 + $0x28] sm:$0xff]  ;;  %vm395_vm0 = vcmask 523264   ;;  %p264_p4 = scmp.lt.s32.totalorder %s8425_s22, 1 }
   0xc   : > { %v7729_v1 = vld [vmem:[%s12123_s3 + $0x58] sm:$0xff]  ;;  %p258_p3 = scmp.lt.s32.totalorder %s6898_s25, 15  ;;  %408 = vmatpush.bf16.msra.mxu0 %v7725_v0  ;;  %v7728_v3 = vld [vmem:[%s12123_s3 + $0x50] sm:$0xff]  ;;  %v7727_v5 = vld [vmem:[%s12123_s3 + $0x48] sm:$0xff]  ;;  %vm616_vm1 = vcmask 261120   ;;  %vm899_vm2 = vcmask 1043456  }
   0xd   : > { %441 = vmatpush.bf16.msra.mxu1 %v7729_v1  ;;  %v7722_v6 = vld [vmem:[%s12123_s3 + $0x20] sm:$0xff]  ;;  %v7721_v10 = vld [vmem:[%s12123_s3 + $0x18] sm:$0xff]  ;;  %v7720_v12 = vld [vmem:[%s12123_s3 + $0x10] sm:$0xff]  ;;  %s12225_s22 = smov (!%p264_p4, %s8425_s22), 1  ;;  %vm774_vm3 = vcmask 588800  }
   0xe   : > { %s12223_s25 = smov (!%p258_p3, %s6898_s25), 15  ;;  %v7726_v7 = vld [vmem:[%s12123_s3 + $0x40] sm:$0xff]  ;;  %v7737_v13 = vld [vmem:[%s12123_s3 + $0x98] sm:$0xff]  ;;  %v7719_v14 = vld [vmem:[%s12123_s3 + $0x8] sm:$0xff]  ;;  %s6901_s19 = sshll.u32 %s12225_s22, 3 }
   0xf   : > { %s7717_s10 = sshll.u32 %s12223_s25, 4  ;;  %534 = vmatpush.bf16.msra.mxu2 %v7737_v13  ;;  %v7718_v15 = vld [vmem:[%s12123_s3] sm:$0xff]  ;;  %v7736_v22 = vld [vmem:[%s12123_s3 + $0x90] sm:$0xff]  ;;  %v7735_v23 = vld [vmem:[%s12123_s3 + $0x88] sm:$0xff]  ;;  %s267_s26 = scalar_lea.vmem %s12121_s1, %s6901_s19 }
  0x10   : > { %409 = vmatpush.bf16.msra.mxu0 %v7724_v2  ;;  %s8448_s13 = scalar_lea.vmem %s12120_s0, %s7717_s10  ;;  %v7734_v24 = vld [vmem:[%s12123_s3 + $0x80] sm:$0xff]  ;;  %v7733_v27 = vld [vmem:[%s12123_s3 + $0x78] sm:$0xff]  ;;  %v7732_v32 = vld [vmem:[%s12123_s3 + $0x70] sm:$0xff]  ;;  %s271_s7 = scalar_lea.vmem %s12126_s6, %s6901_s19 }
  0x11   : > { %442 = vmatpush.bf16.msra.mxu1 %v7728_v3  ;;  %v274_v8 = vld [vmem:[%s8448_s13 + $0x8] sm:$0xff]  ;;  %v276_v9 = vld [vmem:[%s8448_s13 + $0x18] sm:$0xff]  ;;  %v273_v16 = vld [vmem:[%s8448_s13] sm:$0xff] }
  0x12   : > { %v314_v11 = vpack.c.bf16 %v276_v9, %v274_v8  ;;  %v275_v17 = vld [vmem:[%s8448_s13 + $0x10] sm:$0xff]  ;;  %v278_v18 = vld [vmem:[%s8448_s13 + $0x28] sm:$0xff]  ;;  %v280_v19 = vld [vmem:[%s8448_s13 + $0x38] sm:$0xff] }
  0x13   : > { %v313_v20 = vpack.c.bf16 %v275_v17, %v273_v16  ;;  %v316_v21 = vpack.c.bf16 %v280_v19, %v278_v18  ;;  %535 = vmatpush.bf16.msra.mxu2 %v7736_v22  ;;  %v277_v25 = vld [vmem:[%s8448_s13 + $0x20] sm:$0xff]  ;;  %v279_v26 = vld [vmem:[%s8448_s13 + $0x30] sm:$0xff]  ;;  %v282_v28 = vld [vmem:[%s8448_s13 + $0x48] sm:$0xff] }
  0x14   : > { %410 = vmatpush.bf16.msra.mxu0 %v7723_v4  ;;  %v284_v29 = vld [vmem:[%s8448_s13 + $0x58] sm:$0xff]  ;;  %v315_v30 = vpack.c.bf16 %v279_v26, %v277_v25  ;;  %v7731_v33 = vld [vmem:[%s12123_s3 + $0x68] sm:$0xff]  ;;  %v7730_v34 = vld [vmem:[%s12123_s3 + $0x60] sm:$0xff] }
  0x15   : > { %443 = vmatpush.bf16.msra.mxu1 %v7727_v5  ;;  %v318_v31 = vpack.c.bf16 %v284_v29, %v282_v28  ;;  %v466_v35 = vld [vmem:[%s267_s26] sm:$0xff]  ;;  %v283_v38 = vld [vmem:[%s8448_s13 + $0x50] sm:$0xff]  ;;  %v286_v39 = vld [vmem:[%s8448_s13 + $0x68] sm:$0xff] }
  0x16   : > { %v483_v36 = vpack.c.bf16 %v466_v35, %v466_v35  ;;  %v281_v37 = vld [vmem:[%s8448_s13 + $0x40] sm:$0xff]  ;;  %v288_v40 = vld [vmem:[%s8448_s13 + $0x78] sm:$0xff]  ;;  %v287_v44 = vld [vmem:[%s8448_s13 + $0x70] sm:$0xff] }
  0x17   : > { %536 = vmatpush.bf16.msra.mxu2 %v7735_v23  ;;  %v317_v41 = vpack.c.bf16 %v283_v38, %v281_v37  ;;  %v320_v42 = vpack.c.bf16 %v288_v40, %v286_v39  ;;  %v285_v43 = vld [vmem:[%s8448_s13 + $0x60] sm:$0xff]  ;;  %v7001_v46 = vld [vmem:[%s12122_s2 + $0x30] sm:$0xf]  ;;  %v7742_v47 = vld [vmem:[%s12122_s2 + $0x44] sm:$0xf0] }
  0x18   : > { %411 = vmatpush.bf16.msra.mxu0 %v7722_v6  ;;  %v319_v45 = vpack.c.bf16 %v287_v44, %v285_v43  ;;  %v7741_v48 = vld [vmem:[%s12122_s2 + $0x34] sm:$0xf]  ;;  %v7002_v49 = vor.u32 %v7742_v47, %v7001_v46  ;;  %v7003_v50 = vld [vmem:[%s12122_s2 + $0x48] sm:$0xf0]  ;;  %v7009_v51 = vld [vmem:[%s12122_s2 + $0x38] sm:$0xf] }
  0x19   : > { %444 = vmatpush.bf16.msra.mxu1 %v7726_v7  ;;  %v7743_v52 = vld [vmem:[%s12122_s2 + $0x4c] sm:$0xf0]  ;;  %v7006_v53 = vor.u32 %v7741_v48, %v7003_v50  ;;  %v6989_v55 = vld [vmem:[%s12122_s2] sm:$0xf]  ;;  %v7739_v56 = vld [vmem:[%s12122_s2 + $0x14] sm:$0xf0] }
  0x1a   : > { %v7010_v54 = vor.u32 %v7743_v52, %v7009_v51  ;;  %638 = vmatpush.bf16.msra.mxu3 %v7002_v49  ;;  %v7738_v57 = vld [vmem:[%s12122_s2 + $0x4] sm:$0xf]  ;;  %v6990_v58 = vor.u32 %v7739_v56, %v6989_v55  ;;  %v6991_v59 = vld [vmem:[%s12122_s2 + $0x18] sm:$0xf0]  ;;  %v6997_v60 = vld [vmem:[%s12122_s2 + $0x8] sm:$0xf] }
  0x1b   : > { %537 = vmatpush.bf16.msra.mxu2 %v7734_v24  ;;  %v7740_v61 = vld [vmem:[%s12122_s2 + $0x1c] sm:$0xf0]  ;;  %v6994_v62 = vor.u32 %v7738_v57, %v6991_v59 }
  0x1c   : > { %412 = vmatpush.bf16.msra.mxu0 %v7721_v10  ;;  %6951 = vmatmul.msk.bf16.vlgmr.msra.gmra.mxu1 %vm395_vm0, %v314_v11  ;;  %v6998_v63 = vor.u32 %v7740_v61, %v6997_v60  ;;  %v7887_v3 = vld [vmem:[%s12125_s5] ss:$0 sm:$0xff]  ;;  %v7888_v39 = vld [vmem:[%s12125_s5 + $0x1] ss:$0 sm:$0xff] }
  0x1d   : > { %704 = vmatpush.bf16.msrb.mxu1 %v7010_v54 }
  0x1e   : > { %639 = vmatpush.bf16.msra.mxu3 %v6990_v58 }
  0x1f   : > { %538 = vmatpush.bf16.msra.mxu2 %v7733_v27 }
  0x20   : > { %413 = vmatpush.bf16.msra.mxu0 %v7720_v12 }
  0x21   : > { %705 = vmatpush.bf16.msrb.mxu1 %v6998_v63 }
  0x23   : > { %539 = vmatpush.bf16.msra.mxu2 %v7732_v32 }
  0x24   : > { %414 = vmatpush.bf16.msra.mxu0 %v7719_v14 }
  0x27   : > { %540 = vmatpush.bf16.msra.mxu2 %v7731_v33 }
  0x28   : > { %415 = vmatpush.bf16.msra.mxu0 %v7718_v15 }
  0x2b   : > { %416 = vmatmul.bf16.vlgmr.msra.gmra.mxu0 %v313_v20  ;;  %541 = vmatpush.bf16.msra.mxu2 %v7730_v34 }
  0x2c   : > { %6952 = vmatmul.msk.bf16.gmra.mxu1 %vm395_vm0, %v316_v21 }
  0x2e   : > { %542 = vmatmul.bf16.vlgmr.msra.gmra.mxu2 %v483_v36 }
  0x2f   : > { %671 = vmatpush.bf16.msrb.mxu2 %v7006_v53 }
  0x33   : > { %672 = vmatpush.bf16.msrb.mxu2 %v6994_v62 }
  0x3b   : > { %421 = vmatmul.bf16.gmra.mxu0 %v315_v30 }
  0x3c   : > { %6953 = vmatmul.msk.bf16.gmra.mxu1 %vm395_vm0, %v318_v31 }
  0x4b   : > { %426 = vmatmul.bf16.gmra.mxu0 %v317_v41 }
  0x4c   : > { %6954 = vmatmul.msk.bf16.gmra.mxu1 %vm395_vm0, %v320_v42 }
  0x5b   : > { %431 = vmatmul.bf16.gmra.mxu0 %v319_v45 }
  0x99   : > { %v446_v0 = vpop.f32.mrf.mxu1 }
  0xa1   : > { %v448_v1 = vpop.f32.mrf.mxu1 }
  0xa8   : > { %v417_v2 = vpop.f32.mrf.mxu0 }
  0xa9   : > { %v418_v4 = vadd.f32 %v7887_v3, %v417_v2  ;;  %v451_v6 = vpop.f32.mrf.mxu1 }
  0xab   : > { %v8564_v8 = vadd.f32 %v446_v0, %v418_v4  ;;  %v555_v0 = vld [vmem:[%s12124_s4] ss:$8 sm:$0x7] }
  0xb0   : > { %v419_v5 = vpop.f32.mrf.mxu0 }
  0xb1   : > { %v420_v7 = vadd.f32 %v7887_v3, %v419_v5  ;;  %v453_v12 = vpop.f32.mrf.mxu1  ;;  %v543_v21 = vpop.f32.mrf.mxu2 }
  0xb2   : > { %v8603_v40 = vadd.f32 %v7888_v39, %v543_v21 }
  0xb3   : > { %v8566_v9 = vadd.f32 %v448_v1, %v420_v7  ;;  %v578_v7 = vperm.slane %v555_v0, 0 }
  0xb4   : > { %v576_v41 = vpack.c.bf16 %v8603_v40, %v8603_v40 }
  0xb5   : > { %v572_v10 = vpack.c.bf16 %v8566_v9, %v8564_v8 }
  0xb7   : > { %7011 = vmatmul.msk.bf16.vlgmr.msra.gmra.mxu3 %vm616_vm1, %v572_v10  ;;  %7016 = vmatmul.msk.bf16.vlgmr.msrb.gmra.mxu2 %vm616_vm1, %v572_v10 }
  0xb8   : > { %7021 = vmatmul.msk.bf16.vlgmr.msrb.gmra.mxu1 %vm616_vm1, %v572_v10  ;;  %v422_v11 = vpop.f32.mrf.mxu0  ;;  %v579_v10 = vperm.slane %v555_v0, 1 }
  0xb9   : > { %v423_v13 = vadd.f32 %v7887_v3, %v422_v11  ;;  %v456_v18 = vpop.f32.mrf.mxu1  ;;  %v545_v26 = vpop.f32.mrf.mxu2 }
  0xbb   : > { %v8573_v16 = vadd.f32 %v451_v6, %v423_v13 }
  0xc0   : > { %v424_v14 = vpop.f32.mrf.mxu0 }
  0xc1   : > { %v425_v15 = vadd.f32 %v7887_v3, %v424_v14  ;;  %v458_v22 = vpop.f32.mrf.mxu1 }
  0xc3   : > { %v8575_v17 = vadd.f32 %v453_v12, %v425_v15 }
  0xc5   : > { %v573_v19 = vpack.c.bf16 %v8575_v17, %v8573_v16 }
  0xc7   : > { %7012 = vmatmul.msk.bf16.gmra.mxu3 %vm616_vm1, %v573_v19  ;;  %7017 = vmatmul.msk.bf16.gmra.mxu2 %vm616_vm1, %v573_v19 }
  0xc8   : > { %7022 = vmatmul.msk.bf16.gmra.mxu1 %vm616_vm1, %v573_v19  ;;  %v427_v20 = vpop.f32.mrf.mxu0 }
  0xc9   : > { %v428_v23 = vadd.f32 %v7887_v3, %v427_v20  ;;  %v461_v30 = vpop.f32.mrf.mxu1 }
  0xcb   : > { %v8582_v27 = vadd.f32 %v456_v18, %v428_v23 }
  0xd0   : > { %v429_v24 = vpop.f32.mrf.mxu0 }
  0xd1   : > { %v430_v25 = vadd.f32 %v7887_v3, %v429_v24  ;;  %v463_v35 = vpop.f32.mrf.mxu1 }
  0xd3   : > { %v8584_v28 = vadd.f32 %v458_v22, %v430_v25 }
  0xd5   : > { %v574_v29 = vpack.c.bf16 %v8584_v28, %v8582_v27 }
  0xd7   : > { %7013 = vmatmul.msk.bf16.gmra.mxu3 %vm616_vm1, %v574_v29  ;;  %7018 = vmatmul.msk.bf16.gmra.mxu2 %vm616_vm1, %v574_v29 }
  0xd8   : > { %7023 = vmatmul.msk.bf16.gmra.mxu1 %vm616_vm1, %v574_v29  ;;  %v432_v31 = vpop.f32.mrf.mxu0 }
  0xd9   : > { %v433_v32 = vadd.f32 %v7887_v3, %v432_v31 }
  0xdb   : > { %v8591_v36 = vadd.f32 %v461_v30, %v433_v32 }
  0xe0   : > { %v434_v33 = vpop.f32.mrf.mxu0 }
  0xe1   : > { %v435_v34 = vadd.f32 %v7887_v3, %v434_v33  ;;  %v580_v3 = vperm.slane %v555_v0, 2 }
  0xe3   : > { %v8593_v37 = vadd.f32 %v463_v35, %v435_v34 }
  0xe5   : > { %v575_v38 = vpack.c.bf16 %v8593_v37, %v8591_v36 }
  0xe7   : > { %7014 = vmatmul.msk.bf16.gmra.mxu3 %vm616_vm1, %v575_v38  ;;  %7019 = vmatmul.msk.bf16.gmra.mxu2 %vm616_vm1, %v575_v38 }
  0xe8   : > { %7024 = vmatmul.msk.bf16.gmra.mxu1 %vm616_vm1, %v575_v38 }
  0xf7   : > { %7015 = vmatmul.msk.bf16.gmra.mxu3 %vm616_vm1, %v576_v41  ;;  %7020 = vmatmul.msk.bf16.gmra.mxu2 %vm616_vm1, %v576_v41 }
  0xf8   : > { %7025 = vmatmul.msk.bf16.gmra.mxu1 %vm616_vm1, %v576_v41 }
 0x135   : > { %v707_v42 = vpop.f32.mrf.mxu1 }
 0x136   : > { %v708_v39 = vadd.f32 %v707_v42, %v580_v3 }
 0x13a   : > { %v8610_v43 = vpop.f32.mrf.mxu3  ;;  %v8612_v44 = vpop.f32.mrf.mxu2 }
 0x13d   : > { %v709_v45 = vpop.f32.mrf.mxu1 }
 0x13e   : > { %v710_v34 = vadd.f32 %v709_v45, %v580_v3 }
 0x142   : > { %v8614_v46 = vpop.f32.mrf.mxu3  ;;  %v8616_v47 = vpop.f32.mrf.mxu2 }
 0x143   : > { %v644_v42 = vadd.f32 %v8614_v46, %v578_v7 }
 0x145   : > { %v712_v48 = vpop.f32.mrf.mxu1 }
 0x146   : > { %v713_v32 = vadd.f32 %v712_v48, %v580_v3  ;;  %v677_v48 = vadd.f32 %v8616_v47, %v579_v10 }
 0x14a   : > { %v8618_v49 = vpop.f32.mrf.mxu3  ;;  %v679_v50 = vpop.f32.mrf.mxu2 }
 0x14d   : > { %v714_v51 = vpop.f32.mrf.mxu1 }
 0x14e   : > { %v715_v25 = vadd.f32 %v714_v51, %v580_v3 }
 0x150   : > { %v880_v35 = vpack.c.bf16 %v715_v25, %v713_v32 }
 0x152   : > { %v8620_v52 = vpop.f32.mrf.mxu3  ;;  %v681_v53 = vpop.f32.mrf.mxu2 }
 0x153   : > { %v682_v51 = vadd.f32 %v681_v53, %v579_v10 }
 0x155   : > { %v717_v54 = vpop.f32.mrf.mxu1 }
 0x156   : > { %v718_v24 = vadd.f32 %v717_v54, %v580_v3 }
 0x15a   : > { %v8622_v55 = vpop.f32.mrf.mxu3  ;;  %v684_v56 = vpop.f32.mrf.mxu2 }
 0x15b   : > { %v652_v47 = vadd.f32 %v8622_v55, %v578_v7 }
 0x15d   : > { %v719_v57 = vpop.f32.mrf.mxu1 }
 0x15e   : > { %v720_v20 = vadd.f32 %v719_v57, %v580_v3  ;;  %v879_v57 = vpack.c.bf16 %v710_v34, %v708_v39 }
 0x160   : > { %v881_v29 = vpack.c.bf16 %v720_v20, %v718_v24 }
 0x162   : > { %v8624_v58 = vpop.f32.mrf.mxu3  ;;  %v686_v59 = vpop.f32.mrf.mxu2 }
 0x163   : > { %v687_v41 = vadd.f32 %v686_v59, %v579_v10 }
 0x165   : > { %v722_v60 = vpop.f32.mrf.mxu1 }
 0x166   : > { %v723_v15 = vadd.f32 %v722_v60, %v580_v3  ;;  %v685_v60 = vadd.f32 %v684_v56, %v579_v10  ;;  %v649_v56 = vadd.f32 %v8620_v52, %v578_v7 }
 0x168   : > { %v738_v54 = vpack.c.bf16 %v687_v41, %v685_v60 }
 0x16a   : > { %v8626_v61 = vpop.f32.mrf.mxu3  ;;  %v689_v62 = vpop.f32.mrf.mxu2 }
 0x16b   : > { %v690_v33 = vadd.f32 %v689_v62, %v579_v10  ;;  %v675_v62 = vadd.f32 %v8612_v44, %v579_v10  ;;  %v657_v46 = vadd.f32 %v8626_v61, %v578_v7 }
 0x16d   : > { %v724_v63 = vpop.f32.mrf.mxu1  ;;  %v736_v45 = vpack.c.bf16 %v677_v48, %v675_v62 }
 0x16e   : > { %v725_v11 = vadd.f32 %v724_v63, %v580_v3  ;;  %v680_v63 = vadd.f32 %v679_v50, %v579_v10  ;;  %v654_v50 = vadd.f32 %v8624_v58, %v578_v7 }
 0x170   : > { %v882_v23 = vpack.c.bf16 %v725_v11, %v723_v15  ;;  %v737_v0 = vpack.c.bf16 %v682_v51, %v680_v63 }
 0x172   : > { %v8631_v1 = vpop.f32.mrf.mxu3  ;;  %v691_v2 = vpop.f32.mrf.mxu2 }
 0x173   : > { %v692_v26 = vadd.f32 %v691_v2, %v579_v10  ;;  %v642_v2 = vadd.f32 %v8610_v43, %v578_v7  ;;  %v659_v44 = vadd.f32 %v8631_v1, %v578_v7 }
 0x175   : > { %v727_v4 = vpop.f32.mrf.mxu1  ;;  %v739_v38 = vpack.c.bf16 %v692_v26, %v690_v33  ;;  %v731_v59 = vpack.c.bf16 %v644_v42, %v642_v2 }
 0x176   : > { %v728_v5 = vadd.f32 %v727_v4, %v580_v3  ;;  %v647_v3 = vadd.f32 %v8618_v49, %v578_v7  ;;  %v733_v4 = vpack.c.bf16 %v654_v50, %v652_v47 }
 0x178   : > { %v883_v6 = vpack.c.bf16 %v728_v5, %v728_v5  ;;  %v732_v53 = vpack.c.bf16 %v649_v56, %v647_v3  ;;  %v734_v5 = vpack.c.bf16 %v659_v44, %v657_v46 }
 0x17a   : > { %v661_v12 = vpop.f32.mrf.mxu3  ;;  %v694_v13 = vpop.f32.mrf.mxu2  ;;  %v901_v14 = vsel %vm899_vm2, %v883_v6, 0 }
 0x17b   : > { %v662_v18 = vadd.f32 %v661_v12, %v578_v7  ;;  %v695_v19 = vadd.f32 %v694_v13, %v579_v10  ;;  %906 = vmatpush.bf16.msrb.mxu0 %v901_v14 }
 0x17d   : > { %v740_v21 = vpack.c.bf16 %v695_v19, %v695_v19  ;;  %v729_v22 = vpop.f32.mrf.mxu1  ;;  %v735_v43 = vpack.c.bf16 %v662_v18, %v662_v18 }
 0x17f   : > { %907 = vmatpush.bf16.msrb.mxu0 %v882_v23  ;;  %744 = vmatpush.bf16.xpose.msrb.mxu3 %v740_v21 }
 0x182   : > { %v663_v30 = vpop.f32.mrf.mxu3  ;;  %v696_v31 = vpop.f32.mrf.mxu2 }
 0x183   : > { %908 = vmatpush.bf16.msrb.mxu0 %v881_v29 }
 0x187   : > { %909 = vmatpush.bf16.msrb.mxu0 %v880_v35  ;;  %745 = vmatpush.bf16.xpose.msrb.mxu3 %v739_v38 }
 0x18b   : > { %910 = vmatpush.bf16.msrb.mxu0 %v879_v57 }
 0x18f   : > { %746 = vmatpush.bf16.xpose.msrb.mxu3 %v738_v54 }
 0x197   : > { %747 = vmatpush.bf16.xpose.msrb.mxu3 %v737_v0 }
 0x19f   : > { %748 = vmatpush.bf16.xpose.msrb.mxu3 %v736_v45 }
 0x1a6   : > { %749 = vmatmul.bf16.vlgmr.msrb.gmra.mxu3 %v731_v59 }
 0x1b6   : > { %754 = vmatmul.bf16.gmra.mxu3 %v732_v53 }
 0x1c6   : > { %759 = vmatmul.bf16.gmra.mxu3 %v733_v4 }
 0x1d6   : > { %764 = vmatmul.bf16.gmra.mxu3 %v734_v5 }
 0x1e6   : > { %769 = vmatmul.bf16.gmra.mxu3 %v735_v43 }
 0x229   : > { %v750_v52 = vpop.f32.mrf.mxu3 }
 0x22a   : > { %v775_v49 = vsel %vm774_vm3, %v750_v52, -inf }
 0x22b   : > { %776 = vmax.xlane.f32.xlu0 %v775_v49 }
 0x231   : > { %v752_v6 = vpop.f32.mrf.mxu3 }
 0x232   : > { %v778_v58 = vsel %vm774_vm3, %v752_v6, -inf }
 0x233   : > { %779 = vmax.xlane.f32.xlu0 %v778_v58 }
 0x239   : > { %v755_v55 = vpop.f32.mrf.mxu3 }
 0x23a   : > { %v781_v10 = vsel %vm774_vm3, %v755_v55, -inf }
 0x23b   : > { %782 = vmax.xlane.f32.xlu1 %v781_v10 }
 0x241   : > { %v757_v1 = vpop.f32.mrf.mxu3 }
 0x242   : > { %v784_v61 = vsel %vm774_vm3, %v757_v1, -inf }
 0x243   : > { %785 = vmax.xlane.f32.xlu1 %v784_v61 }
 0x249   : > { %v760_v7 = vpop.f32.mrf.mxu3 }
 0x24a   : > { %v787_v11 = vsel %vm774_vm3, %v760_v7, -inf }
 0x24b   : > { %788 = vmax.xlane.f32.xlu2 %v787_v11 }
 0x251   : > { %v762_v12 = vpop.f32.mrf.mxu3 }
 0x252   : > { %v790_v13 = vsel %vm774_vm3, %v762_v12, -inf }
 0x253   : > { %791 = vmax.xlane.f32.xlu2 %v790_v13 }
 0x259   : > { %v765_v14 = vpop.f32.mrf.mxu3 }
 0x25a   : > { %v793_v15 = vsel %vm774_vm3, %v765_v14, -inf }
 0x25b   : > { %794 = vmax.xlane.f32.xlu0 %v793_v15 }
 0x261   : > { %v767_v18 = vpop.f32.mrf.mxu3 }
 0x262   : > { %v796_v19 = vsel %vm774_vm3, %v767_v18, -inf }
 0x263   : > { %797 = vmax.xlane.f32.xlu1 %v796_v19 }
 0x269   : > { %v8651_v20 = vpop.f32.mrf.mxu3 }
 0x26a   : > { %v799_v51 = vsel %vm774_vm3, %v8651_v20, -inf }
 0x271   : > { %v772_v21 = vpop.f32.mrf.mxu3 }
 0x29e   : > { %v777_v22 = vpop.xlane.xlu0 %776 }
 0x29f   : > { %v802_v23 = vsub.f32 %v750_v52, %v777_v22 }
 0x2a1   : > { %v811_v24 = vmul.f32 1.442695, %v802_v23 }
 0x2a3   : > { %7909 = vpow2.f32 %v811_v24 }
 0x2a6   : > { %v780_v25 = vpop.xlane.xlu0 %779 }
 0x2a7   : > { %v803_v26 = vsub.f32 %v752_v6, %v780_v25 }
 0x2a9   : > { %v7910_v29 = vpop.eup %7909  ;;  %v813_v30 = vmul.f32 1.442695, %v803_v26 }
 0x2aa   : > { %v829_v31 = vsel %vm774_vm3, %v7910_v29, 0.0 }
 0x2ab   : > { %7911 = vpow2.f32 %v813_v30  ;;  %830 = vadd.xlane.f32.xlu2 %v829_v31  ;;  %v7750_v31 = vld [vmem:[%s12123_s3 + $0xd0] sm:$0xff] }
 0x2ae   : > { %v783_v32 = vpop.xlane.xlu1 %782 }
 0x2af   : > { %v804_v33 = vsub.f32 %v755_v55, %v783_v32 }
 0x2b1   : > { %v7912_v34 = vpop.eup %7911  ;;  %v815_v35 = vmul.f32 1.442695, %v804_v33  ;;  %v7749_v33 = vld [vmem:[%s12123_s3 + $0xc8] sm:$0xff] }
 0x2b2   : > { %v832_v38 = vsel %vm774_vm3, %v7912_v34, 0.0 }
 0x2b3   : > { %7913 = vpow2.f32 %v815_v35  ;;  %833 = vadd.xlane.f32.xlu0 %v832_v38  ;;  %v7748_v35 = vld [vmem:[%s12123_s3 + $0xc0] sm:$0xff] }
 0x2b6   : > { %v786_v39 = vpop.xlane.xlu1 %785 }
 0x2b7   : > { %v805_v41 = vsub.f32 %v757_v1, %v786_v39 }
 0x2b9   : > { %v7914_v57 = vpop.eup %7913  ;;  %v817_v60 = vmul.f32 1.442695, %v805_v41 }
 0x2ba   : > { %v835_v54 = vsel %vm774_vm3, %v7914_v57, 0.0 }
 0x2bb   : > { %7915 = vpow2.f32 %v817_v60  ;;  %836 = vadd.xlane.f32.xlu1 %v835_v54  ;;  %800 = vmax.xlane.f32.xlu0 %v799_v51  ;;  %v7747_v60 = vld [vmem:[%s12123_s3 + $0xb8] sm:$0xff] }
 0x2be   : > { %v789_v63 = vpop.xlane.xlu2 %788 }
 0x2bf   : > { %v806_v0 = vsub.f32 %v760_v7, %v789_v63 }
 0x2c1   : > { %v7916_v48 = vpop.eup %7915  ;;  %v819_v62 = vmul.f32 1.442695, %v806_v0 }
 0x2c2   : > { %v838_v45 = vsel %vm774_vm3, %v7916_v48, 0.0 }
 0x2c3   : > { %7917 = vpow2.f32 %v819_v62  ;;  %839 = vadd.xlane.f32.xlu2 %v838_v45 }
 0x2c6   : > { %v792_v42 = vpop.xlane.xlu2 %791 }
 0x2c7   : > { %v807_v2 = vsub.f32 %v762_v12, %v792_v42  ;;  %v7746_v42 = vld [vmem:[%s12123_s3 + $0xb0] sm:$0xff] }
 0x2c9   : > { %v7918_v59 = vpop.eup %7917  ;;  %v821_v56 = vmul.f32 1.442695, %v807_v2  ;;  %v7745_v2 = vld [vmem:[%s12123_s3 + $0xa8] sm:$0xff] }
 0x2ca   : > { %v841_v3 = vsel %vm774_vm3, %v7918_v59, 0.0 }
 0x2cb   : > { %7919 = vpow2.f32 %v821_v56  ;;  %842 = vadd.xlane.f32.xlu1 %v841_v3 }
 0x2ce   : > { %v795_v53 = vpop.xlane.xlu0 %794 }
 0x2cf   : > { %v808_v50 = vsub.f32 %v765_v14, %v795_v53 }
 0x2d1   : > { %v7920_v47 = vpop.eup %7919  ;;  %v823_v4 = vmul.f32 1.442695, %v808_v50 }
 0x2d2   : > { %v844_v44 = vsel %vm774_vm3, %v7920_v47, 0.0 }
 0x2d3   : > { %7921 = vpow2.f32 %v823_v4  ;;  %845 = vadd.xlane.f32.xlu2 %v844_v44 }
 0x2d6   : > { %v798_v46 = vpop.xlane.xlu1 %797 }
 0x2d7   : > { %v809_v5 = vsub.f32 %v767_v18, %v798_v46 }
 0x2d9   : > { %v7922_v43 = vpop.eup %7921  ;;  %v825_v52 = vmul.f32 1.442695, %v809_v5 }
 0x2da   : > { %v847_v49 = vsel %vm774_vm3, %v7922_v43, 0.0 }
 0x2db   : > { %7923 = vpow2.f32 %v825_v52  ;;  %848 = vadd.xlane.f32.xlu0 %v847_v49 }
 0x2e1   : > { %v7924_v6 = vpop.eup %7923 }
 0x2e2   : > { %v850_v58 = vsel %vm774_vm3, %v7924_v6, 0.0 }
 0x2e3   : > { %851 = vadd.xlane.f32.xlu1 %v850_v58 }
 0x31e   : > { %v831_v55 = vpop.xlane.xlu2 %830 }
 0x31f   : > { %7925 = vrcp.f32 %v831_v55 }
 0x325   : > { %v7926_v1 = vpop.eup %7925 }
 0x326   : > { %v834_v10 = vpop.xlane.xlu0 %833  ;;  %v865_v7 = vmul.f32 %v7926_v1, %v7910_v29 }
 0x327   : > { %7927 = vrcp.f32 %v834_v10 }
 0x32d   : > { %v7928_v61 = vpop.eup %7927 }
 0x32e   : > { %v866_v11 = vmul.f32 %v7928_v61, %v7912_v34  ;;  %v801_v12 = vpop.xlane.xlu0 %800  ;;  %v837_v18 = vpop.xlane.xlu1 %836 }
 0x32f   : > { %v810_v13 = vsub.f32 %v8651_v20, %v801_v12  ;;  %v7751_v20 = vld [vmem:[%s12123_s3 + $0xd8] sm:$0xff] }
 0x330   : > { %v874_v14 = vpack.c.bf16 %v866_v11, %v865_v7  ;;  %991 = vmatpush.bf16.msra.mxu2 %v7751_v20  ;;  %v8697_v7 = vld [vmem:[%s12125_s5 + $0x2] ss:$0 sm:$0xff] }
 0x331   : > { %v827_v15 = vmul.f32 1.442695, %v810_v13 }
 0x332   : > { %7026 = vmatmul.msk.bf16.vlgmr.msrb.gmra.mxu0 %vm774_vm3, %v874_v14 }
 0x333   : > { %7929 = vpow2.f32 %v827_v15 }
 0x334   : > { %7931 = vrcp.f32 %v837_v18  ;;  %992 = vmatpush.bf16.msra.mxu2 %v7750_v31  ;;  %v8379_v31 = vmov 32.0  }
 0x336   : > { %v840_v19 = vpop.xlane.xlu2 %839 }
 0x337   : > { %7933 = vrcp.f32 %v840_v19 }
 0x338   : > { %993 = vmatpush.bf16.msra.mxu2 %v7749_v33 }
 0x339   : > { %v7930_v21 = vpop.eup %7929 }
 0x33a   : > { %v853_v22 = vsel %vm774_vm3, %v7930_v21, 0.0  ;;  %v7932_v23 = vpop.eup %7931 }
 0x33b   : > { %854 = vadd.xlane.f32.xlu2 %v853_v22  ;;  %v867_v25 = vmul.f32 %v7932_v23, %v7914_v57 }
 0x33c   : > { %994 = vmatpush.bf16.msra.mxu2 %v7748_v35 }
 0x33d   : > { %v7934_v24 = vpop.eup %7933 }
 0x33e   : > { %v868_v26 = vmul.f32 %v7934_v24, %v7916_v48  ;;  %v843_v30 = vpop.xlane.xlu1 %842 }
 0x33f   : > { %7935 = vrcp.f32 %v843_v30 }
 0x340   : > { %v875_v29 = vpack.c.bf16 %v868_v26, %v867_v25  ;;  %995 = vmatpush.bf16.msra.mxu2 %v7747_v60 }
 0x342   : > { %7027 = vmatmul.msk.bf16.gmra.mxu0 %vm774_vm3, %v875_v29 }
 0x344   : > { %996 = vmatpush.bf16.msra.mxu2 %v7746_v42 }
 0x345   : > { %v7936_v34 = vpop.eup %7935 }
 0x346   : > { %v846_v32 = vpop.xlane.xlu2 %845  ;;  %v869_v39 = vmul.f32 %v7936_v34, %v7918_v59  ;;  %v7744_v59 = vld [vmem:[%s12123_s3 + $0xa0] sm:$0xff] }
 0x347   : > { %7937 = vrcp.f32 %v846_v32 }
 0x348   : > { %997 = vmatpush.bf16.msra.mxu2 %v7745_v2 }
 0x34c   : > { %998 = vmatpush.bf16.msra.mxu2 %v7744_v59 }
 0x34d   : > { %v7938_v38 = vpop.eup %7937 }
 0x34e   : > { %v870_v41 = vmul.f32 %v7938_v38, %v7920_v47  ;;  %v849_v54 = vpop.xlane.xlu0 %848 }
 0x34f   : > { %7939 = vrcp.f32 %v849_v54 }
 0x350   : > { %v876_v57 = vpack.c.bf16 %v870_v41, %v869_v39 }
 0x352   : > { %7028 = vmatmul.msk.bf16.gmra.mxu0 %vm774_vm3, %v876_v57 }
 0x355   : > { %v7940_v63 = vpop.eup %7939 }
 0x356   : > { %v852_v51 = vpop.xlane.xlu1 %851  ;;  %v871_v48 = vmul.f32 %v7940_v63, %v7922_v43 }
 0x357   : > { %7941 = vrcp.f32 %v852_v51 }
 0x35d   : > { %v7942_v0 = vpop.eup %7941 }
 0x35e   : > { %v872_v62 = vmul.f32 %v7942_v0, %v7924_v6 }
 0x360   : > { %v877_v45 = vpack.c.bf16 %v872_v62, %v871_v48 }
 0x362   : > { %7029 = vmatmul.msk.bf16.gmra.mxu0 %vm774_vm3, %v877_v45 }
 0x3ae   : > { %v855_v56 = vpop.xlane.xlu2 %854 }
 0x3af   : > { %7943 = vrcp.f32 %v855_v56  ;;  %v912_v3 = vpop.f32.mrf.mxu0 }
 0x3b0   : > { %7945 = vrcp.f32 %v8379_v31  ;;  %v7756_v31 = vld [vmem:[%s12122_s2 + $0x94] sm:$0xf] }
 0x3b5   : > { %v7944_v53 = vpop.eup %7943 }
 0x3b6   : > { %v873_v50 = vmul.f32 %v7944_v53, %v7930_v21  ;;  %v7946_v32 = vpop.eup %7945 }
 0x3b7   : > { %v914_v47 = vpop.f32.mrf.mxu0  ;;  %v1063_v34 = vmul.f32 32.0, %v7946_v32  ;;  %vm1067_vm4 = vweird.f32 %v7946_v32 }
 0x3b8   : > { %v936_v4 = vpack.c.bf16 %v914_v47, %v912_v3  ;;  %v878_v44 = vpack.c.bf16 %v873_v50, %v873_v50 }
 0x3b9   : > { %v1064_v35 = vsub.f32 1.0, %v1063_v34 }
 0x3ba   : > { %7030 = vmatmul.msk.bf16.gmra.mxu0 %vm774_vm3, %v878_v44  ;;  %999 = vmatmul.bf16.vlgmr.msra.gmra.mxu2 %v936_v4 }
 0x3bb   : > { %v1065_v38 = vmul.f32 %v7946_v32, %v1064_v35  ;;  %v7084_v35 = vld [vmem:[%s12122_s2 + $0xa8] sm:$0xf0] }
 0x3bd   : > { %v1066_v39 = vadd.f32 %v7946_v32, %v1065_v38 }
 0x3bf   : > { %v917_v46 = vpop.f32.mrf.mxu0  ;;  %v8714_v41 = vsel %vm1067_vm4, %v7946_v32, %v1066_v39  ;;  %v7087_v39 = vor.u32 %v7756_v31, %v7084_v35  ;;  %v7076_v35 = vld [vmem:[%s12122_s2 + $0x80] sm:$0xf0] }
 0x3c0   : > { %12166 = vst [vmem:[#allocation2_spill] sm:$0xff] %v8714_v41 }
 0x3c1   : > { %1378 = vmatpush.bf16.msra.mxu3 %v7087_v39 }
 0x3c7   : > { %v919_v5 = vpop.f32.mrf.mxu0 }
 0x3c8   : > { %v937_v43 = vpack.c.bf16 %v919_v5, %v917_v46 }
 0x3ca   : > { %1004 = vmatmul.bf16.gmra.mxu2 %v937_v43 }
 0x3cf   : > { %v922_v52 = vpop.f32.mrf.mxu0 }
 0x3d7   : > { %v924_v49 = vpop.f32.mrf.mxu0 }
 0x3d8   : > { %v938_v6 = vpack.c.bf16 %v924_v49, %v922_v52 }
 0x3da   : > { %1009 = vmatmul.bf16.gmra.mxu2 %v938_v6 }
 0x3df   : > { %v927_v58 = vpop.f32.mrf.mxu0 }
 0x3e7   : > { %v929_v55 = vpop.f32.mrf.mxu0 }
 0x3e8   : > { %v939_v10 = vpack.c.bf16 %v929_v55, %v927_v58 }
 0x3ea   : > { %1014 = vmatmul.bf16.gmra.mxu2 %v939_v10 }
 0x437   : > { %v932_v1 = vpop.f32.mrf.mxu0 }
 0x438   : > { %v940_v61 = vpack.c.bf16 %v932_v1, %v932_v1 }
 0x43a   : > { %1019 = vmatmul.bf16.gmra.mxu2 %v940_v61 }
 0x43d   : > { %v1000_v11 = vpop.f32.mrf.mxu2 }
 0x43e   : > { %v1001_v12 = vadd.f32 %v8697_v7, %v1000_v11 }
 0x43f   : > { %v934_v13 = vpop.f32.mrf.mxu0 }
 0x440   : > { %v1024_v14 = vadd.f32 %v1001_v12, %v8564_v8 }
 0x442   : > { %v1035_v15 = vsel %vm616_vm1, %v1024_v14, 0.0 }
 0x443   : > { %1036 = vadd.xlane.f32.xlu1 %v1035_v15 }
 0x445   : > { %v1002_v18 = vpop.f32.mrf.mxu2 }
 0x446   : > { %v1003_v19 = vadd.f32 %v8697_v7, %v1002_v18 }
 0x448   : > { %v1025_v21 = vadd.f32 %v1003_v19, %v8566_v9 }
 0x44a   : > { %v1038_v22 = vsel %vm616_vm1, %v1025_v21, 0.0 }
 0x44b   : > { %1039 = vadd.xlane.f32.xlu2 %v1038_v22 }
 0x44d   : > { %v1005_v23 = vpop.f32.mrf.mxu2 }
 0x44e   : > { %v1006_v2 = vadd.f32 %v8697_v7, %v1005_v23 }
 0x450   : > { %v1026_v53 = vadd.f32 %v1006_v2, %v8573_v16  ;;  %v7074_v2 = vld [vmem:[%s12122_s2 + $0x68] sm:$0xf] }
 0x452   : > { %v1041_v47 = vsel %vm616_vm1, %v1026_v53, 0.0 }
 0x455   : > { %v1007_v24 = vpop.f32.mrf.mxu2 }
 0x456   : > { %v1008_v25 = vadd.f32 %v8697_v7, %v1007_v24 }
 0x458   : > { %v8707_v26 = vadd.f32 %v1008_v25, %v8575_v17 }
 0x45a   : > { %v1044_v8 = vsel %vm616_vm1, %v8707_v26, 0.0 }
 0x45b   : > { %1045 = vadd.xlane.f32.xlu1 %v1044_v8 }
 0x45d   : > { %v1010_v29 = vpop.f32.mrf.mxu2 }
 0x45e   : > { %v1011_v30 = vadd.f32 %v8697_v7, %v1010_v29 }
 0x460   : > { %v1028_v20 = vadd.f32 %v1011_v30, %v8582_v27 }
 0x462   : > { %v1047_v9 = vsel %vm616_vm1, %v1028_v20, 0.0 }
 0x463   : > { %1048 = vadd.xlane.f32.xlu2 %v1047_v9  ;;  %v7758_v9 = vld [vmem:[%s12122_s2 + $0xa4] sm:$0xf0] }
 0x465   : > { %v1012_v33 = vpop.f32.mrf.mxu2 }
 0x466   : > { %v1013_v50 = vadd.f32 %v8697_v7, %v1012_v33 }
 0x46d   : > { %v1015_v17 = vpop.f32.mrf.mxu2 }
 0x46e   : > { %v1016_v15 = vadd.f32 %v8697_v7, %v1015_v17  ;;  %v7090_v17 = vld [vmem:[%s12122_s2 + $0x98] sm:$0xf] }
 0x475   : > { %v1017_v57 = vpop.f32.mrf.mxu2 }
 0x476   : > { %v1018_v63 = vadd.f32 %v8697_v7, %v1017_v57 }
 0x478   : > { %v1031_v42 = vadd.f32 %v1018_v63, %v8593_v37  ;;  %v1029_v37 = vadd.f32 %v1013_v50, %v8584_v28  ;;  %v7754_v63 = vld [vmem:[%s12122_s2 + $0x74] sm:$0xf0] }
 0x47a   : > { %v1056_v3 = vsel %vm616_vm1, %v1031_v42, 0.0  ;;  %v1050_v46 = vsel %vm616_vm1, %v1029_v37, 0.0 }
 0x4b6   : > { %v1037_v60 = vpop.xlane.xlu1 %1036 }
 0x4b7   : > { %v1069_v54 = vmul.f32 %v8714_v41, %v1037_v60 }
 0x4b9   : > { %v8717_v27 = vsub.f32 %v1024_v14, %v1069_v54 }
 0x4bb   : > { %v1087_v51 = vmul.f32 %v8717_v27, %v8717_v27 }
 0x4bd   : > { %v1020_v0 = vpop.f32.mrf.mxu2  ;;  %v1096_v48 = vsel %vm616_vm1, %v1087_v51, 0.0  ;;  %v7066_v51 = vld [vmem:[%s12122_s2 + $0x60] sm:$0xf] }
 0x4be   : > { %v1021_v62 = vadd.f32 %v8697_v7, %v1020_v0  ;;  %1097 = vadd.xlane.f32.xlu2 %v1096_v48  ;;  %v1040_v4 = vpop.xlane.xlu2 %1039  ;;  %v8768_v7 = vadd.f32 %v1016_v15, %v8591_v36  ;;  %v7752_v0 = vld [vmem:[%s12122_s2 + $0x64] sm:$0xf] }
 0x4c0   : > { %v1032_v45 = vadd.f32 %v1021_v62, %v8603_v40  ;;  %v1070_v40 = vmul.f32 %v8714_v41, %v1040_v4  ;;  %v1053_v36 = vsel %vm616_vm1, %v8768_v7, 0.0 }
 0x4c2   : > { %v1059_v59 = vsel %vm616_vm1, %v1032_v45, 0.0  ;;  %v8734_v44 = vsub.f32 %v1025_v21, %v1070_v40 }
 0x4c3   : > { %1060 = vadd.xlane.f32.xlu0 %v1059_v59  ;;  %v7755_v59 = vld [vmem:[%s12122_s2 + $0x7c] sm:$0xf0] }
 0x4c4   : > { %v1088_v43 = vmul.f32 %v8734_v44, %v8734_v44 }
 0x4c5   : > { %v1022_v56 = vpop.f32.mrf.mxu2 }
 0x4c6   : > { %1057 = vadd.xlane.f32.xlu2 %v1056_v3  ;;  %v1099_v49 = vsel %vm616_vm1, %v1088_v43, 0.0 }
 0x4cb   : > { %1042 = vadd.xlane.f32.xlu0 %v1041_v47 }
 0x4ce   : > { %v1046_v21 = vpop.xlane.xlu1 %1045 }
 0x4cf   : > { %v1072_v8 = vmul.f32 %v8714_v41, %v1046_v21  ;;  %v8837_v21 = vld [vmem:[%s12125_s5 + $0x4] ss:$0 sm:$0xff] }
 0x4d1   : > { %v8782_v32 = vsub.f32 %v8707_v26, %v1072_v8  ;;  %v7759_v26 = vld [vmem:[%s12122_s2 + $0xac] sm:$0xf0] }
 0x4d2   : > { %v7091_v54 = vor.u32 %v7759_v26, %v7090_v17 }
 0x4d3   : > { %1051 = vadd.xlane.f32.xlu0 %v1050_v46  ;;  %v1090_v62 = vmul.f32 %v8782_v32, %v8782_v32 }
 0x4d4   : > { %1411 = vmatpush.bf16.msra.mxu0 %v7091_v54  ;;  %7868 = vmatpush.bf16.msrb.mxu2 %v7091_v54 }
 0x4d5   : > { %v1105_v47 = vsel %vm616_vm1, %v1090_v62, 0.0 }
 0x4d6   : > { %v1049_v5 = vpop.xlane.xlu2 %1048 }
 0x4d7   : > { %v1073_v16 = vmul.f32 %v8714_v41, %v1049_v5 }
 0x4d9   : > { %v8740_v52 = vsub.f32 %v1028_v20, %v1073_v16  ;;  %v7082_v20 = vld [vmem:[%s12122_s2 + $0x90] sm:$0xf] }
 0x4da   : > { %v7083_v34 = vor.u32 %v7758_v9, %v7082_v20  ;;  %v7092_v20 = vld [vmem:[%s12122_s2 + $0xb0] sm:$0xf0] }
 0x4db   : > { %1100 = vadd.xlane.f32.xlu0 %v1099_v49  ;;  %v1091_v6 = vmul.f32 %v8740_v52, %v8740_v52 }
 0x4dc   : > { %1345 = vmatpush.bf16.msra.mxu1 %v7083_v34  ;;  %v7753_v34 = vld [vmem:[%s12122_s2 + $0x6c] sm:$0xf] }
 0x4dd   : > { %v1108_v28 = vsel %vm616_vm1, %v1091_v6, 0.0  ;;  %v7079_v39 = vor.u32 %v7753_v34, %v7076_v35 }
 0x4de   : > { %1109 = vadd.xlane.f32.xlu2 %v1108_v28 }
 0x531   : > { %v1098_v58 = vpop.xlane.xlu2 %1097 }
 0x532   : > { %v1123_v1 = vmul.f32 %v1098_v58, %v8714_v41 }
 0x534   : > { %v8756_v18 = vadd.f32 1e-12, %v1123_v1 }
 0x536   : > { %v1061_v55 = vpop.xlane.xlu0 %1060  ;;  %7947 = vrsqrt.f32 %v8756_v18  ;;  %vm1147_vm6 = vweird.f32 %v8756_v18 }
 0x537   : > { %v1077_v10 = vmul.f32 %v8714_v41, %v1061_v55 }
 0x539   : > { %v8748_v61 = vsub.f32 %v1032_v45, %v1077_v10  ;;  %v1058_v11 = vpop.xlane.xlu2 %1057  ;;  %v7067_v45 = vor.u32 %v7754_v63, %v7066_v51 }
 0x53a   : > { %v1076_v12 = vmul.f32 %v8714_v41, %v1058_v11  ;;  %v8829_v11 = vld [vmem:[%s12125_s5 + $0x3] ss:$0 sm:$0xff] }
 0x53b   : > { %v1095_v13 = vmul.f32 %v8748_v61, %v8748_v61  ;;  %1346 = vmatpush.bf16.msra.mxu1 %v7067_v45 }
 0x53c   : > { %v8753_v14 = vsub.f32 %v1031_v42, %v1076_v12  ;;  %v7948_v57 = vpop.eup %7947  ;;  %v7068_v42 = vld [vmem:[%s12122_s2 + $0x78] sm:$0xf0] }
 0x53d   : > { %v1120_v19 = vsel %vm616_vm1, %v1095_v13, 0.0  ;;  %v1142_v56 = vmul.f32 %v7948_v57, %v8756_v18  ;;  %v7071_v3 = vor.u32 %v7752_v0, %v7068_v42  ;;  %vm1148_vm5 = vweird.f32 %v7948_v57 }
 0x53e   : > { %1121 = vadd.xlane.f32.xlu1 %v1120_v19  ;;  %v1043_v22 = vpop.xlane.xlu0 %1042  ;;  %v1094_v23 = vmul.f32 %v8753_v14, %v8753_v14  ;;  %vm1149_vm7 = vmor %vm1147_vm6, %vm1148_vm5 }
 0x53f   : > { %v1071_v24 = vmul.f32 %v8714_v41, %v1043_v22  ;;  %1379 = vmatpush.bf16.msra.mxu3 %v7071_v3  ;;  %v1143_v40 = vmul.f32 %v7948_v57, %v1142_v56 }
 0x540   : > { %v1117_v25 = vsel %vm616_vm1, %v1094_v23, 0.0 }
 0x541   : > { %v8765_v29 = vsub.f32 %v1026_v53, %v1071_v24  ;;  %1118 = vadd.xlane.f32.xlu2 %v1117_v25  ;;  %v7075_v53 = vor.u32 %v7755_v59, %v7074_v2  ;;  %v1144_v43 = vmul.f32 0.5, %v1143_v40 }
 0x543   : > { %v1089_v30 = vmul.f32 %v8765_v29, %v8765_v29  ;;  %1412 = vmatpush.bf16.msra.mxu0 %v7075_v53  ;;  %7869 = vmatpush.bf16.msrb.mxu2 %v7075_v53  ;;  %v1145_v16 = vsub.f32 1.5, %v1144_v43 }
 0x545   : > { %v1102_v33 = vsel %vm616_vm1, %v1089_v30, 0.0  ;;  %v1146_v6 = vmul.f32 %v7948_v57, %v1145_v16  ;;  %v7757_v30 = vld [vmem:[%s12122_s2 + $0x9c] sm:$0xf] }
 0x546   : > { %1054 = vadd.xlane.f32.xlu1 %v1053_v36  ;;  %1103 = vadd.xlane.f32.xlu0 %v1102_v33  ;;  %v1052_v38 = vpop.xlane.xlu0 %1051  ;;  %v7095_v31 = vor.u32 %v7757_v30, %v7092_v20 }
 0x547   : > { %v1074_v60 = vmul.f32 %v8714_v41, %v1052_v38  ;;  %v1150_v55 = vsel %vm1149_vm7, %v7948_v57, %v1146_v6 }
 0x548   : > { %v1231_v12 = vmul.f32 %v1150_v55, %v8717_v27  ;;  %1444 = vmatpush.bf16.msra.mxu2 %v7095_v31 }
 0x549   : > { %v8806_v48 = vsub.f32 %v1029_v37, %v1074_v60 }
 0x54a   : > { %v1241_v19 = vmul.f32 %v8829_v11, %v1231_v12 }
 0x54b   : > { %v1092_v50 = vmul.f32 %v8806_v48, %v8806_v48 }
 0x54c   : > { %v8841_v23 = vadd.f32 %v8837_v21, %v1241_v19  ;;  %1445 = vmatpush.bf16.msra.mxu2 %v7079_v39 }
 0x54d   : > { %v1111_v4 = vsel %vm616_vm1, %v1092_v50, 0.0 }
 0x54e   : > { %1106 = vadd.xlane.f32.xlu1 %v1105_v47  ;;  %1112 = vadd.xlane.f32.xlu0 %v1111_v4  ;;  %v1101_v37 = vpop.xlane.xlu0 %1100 }
 0x54f   : > { %v1124_v46 = vmul.f32 %v1101_v37, %v8714_v41 }
 0x551   : > { %v1133_v5 = vadd.f32 1e-12, %v1124_v46  ;;  %v1110_v9 = vpop.xlane.xlu2 %1109 }
 0x552   : > { %v1127_v57 = vmul.f32 %v1110_v9, %v8714_v41 }
 0x553   : > { %7949 = vrsqrt.f32 %v1133_v5  ;;  %vm1157_vm9 = vweird.f32 %v1133_v5 }
 0x554   : > { %v8877_v62 = vadd.f32 1e-12, %v1127_v57 }
 0x559   : > { %v7950_v49 = vpop.eup %7949 }
 0x55a   : > { %v1152_v28 = vmul.f32 %v7950_v49, %v1133_v5  ;;  %vm1158_vm8 = vweird.f32 %v7950_v49 }
 0x55b   : > { %vm1159_vm10 = vmor %vm1157_vm9, %vm1158_vm8  ;;  %vm1187_vm9 = vweird.f32 %v8877_v62 }
 0x55c   : > { %v1153_v58 = vmul.f32 %v7950_v49, %v1152_v28 }
 0x55e   : > { %v1154_v10 = vmul.f32 0.5, %v1153_v58 }
 0x560   : > { %v1155_v1 = vsub.f32 1.5, %v1154_v10 }
 0x562   : > { %v1156_v13 = vmul.f32 %v7950_v49, %v1155_v1 }
 0x564   : > { %v1160_v15 = vsel %vm1159_vm10, %v7950_v49, %v1156_v13 }
 0x565   : > { %v1232_v18 = vmul.f32 %v1160_v15, %v8734_v44 }
 0x567   : > { %v1242_v22 = vmul.f32 %v8829_v11, %v1232_v18 }
 0x569   : > { %v8844_v27 = vadd.f32 %v8837_v21, %v1242_v22 }
 0x56b   : > { %v8848_v24 = vpack.c.bf16 %v8844_v27, %v8841_v23 }
 0x56d   : > { %7096 = vmatmul.msk.bf16.vlgmr.msra.gmra.mxu1 %vm616_vm1, %v8848_v24  ;;  %7101 = vmatmul.msk.bf16.vlgmr.msra.gmra.mxu3 %vm616_vm1, %v8848_v24 }
 0x56e   : > { %7106 = vmatmul.msk.bf16.vlgmr.msra.gmra.mxu0 %vm616_vm1, %v8848_v24 }
 0x5b1   : > { %v1122_v44 = vpop.xlane.xlu1 %1121 }
 0x5b2   : > { %v1131_v25 = vmul.f32 %v1122_v44, %v8714_v41 }
 0x5b4   : > { %v1140_v8 = vadd.f32 1e-12, %v1131_v25 }
 0x5b6   : > { %7951 = vrsqrt.f32 %v1140_v8  ;;  %vm1227_vm12 = vweird.f32 %v1140_v8 }
 0x5b9   : > { %v1055_v36 = vpop.xlane.xlu1 %1054  ;;  %v1104_v33 = vpop.xlane.xlu0 %1103 }
 0x5ba   : > { %v1075_v17 = vmul.f32 %v8714_v41, %v1055_v36  ;;  %v1125_v38 = vmul.f32 %v1104_v33, %v8714_v41 }
 0x5bc   : > { %v7952_v26 = vpop.eup %7951  ;;  %v8873_v60 = vsub.f32 %v8768_v7, %v1075_v17  ;;  %v1134_v54 = vadd.f32 1e-12, %v1125_v38 }
 0x5bd   : > { %v1222_v51 = vmul.f32 %v7952_v26, %v1140_v8  ;;  %vm1228_vm11 = vweird.f32 %v7952_v26 }
 0x5be   : > { %7953 = vrsqrt.f32 %v1134_v54  ;;  %v1093_v63 = vmul.f32 %v8873_v60, %v8873_v60  ;;  %vm1229_vm13 = vmor %vm1227_vm12, %vm1228_vm11  ;;  %vm1167_vm15 = vweird.f32 %v1134_v54 }
 0x5bf   : > { %v1223_v0 = vmul.f32 %v7952_v26, %v1222_v51  ;;  %7955 = vrsqrt.f32 %v8877_v62 }
 0x5c0   : > { %v1114_v45 = vsel %vm616_vm1, %v1093_v63, 0.0 }
 0x5c1   : > { %v1224_v42 = vmul.f32 0.5, %v1223_v0  ;;  %1115 = vadd.xlane.f32.xlu1 %v1114_v45  ;;  %v1107_v2 = vpop.xlane.xlu1 %1106  ;;  %v1113_v59 = vpop.xlane.xlu0 %1112 }
 0x5c2   : > { %v1126_v56 = vmul.f32 %v1107_v2, %v8714_v41  ;;  %v1128_v7 = vmul.f32 %v1113_v59, %v8714_v41  ;;  %v7783_v59 = vld [vmem:[%s12123_s3 + $0x198] sm:$0xff] }
 0x5c3   : > { %v1225_v3 = vsub.f32 1.5, %v1224_v42  ;;  %2137 = vmatpush.bf16.msrb.mxu0 %v7783_v59 }
 0x5c4   : > { %v7954_v53 = vpop.eup %7953  ;;  %v1135_v50 = vadd.f32 1e-12, %v1126_v56  ;;  %v1137_v47 = vadd.f32 1e-12, %v1128_v7  ;;  %v7782_v56 = vld [vmem:[%s12123_s3 + $0x190] sm:$0xff]  ;;  %v7781_v7 = vld [vmem:[%s12123_s3 + $0x188] sm:$0xff] }
 0x5c5   : > { %v1226_v4 = vmul.f32 %v7952_v26, %v1225_v3  ;;  %v1162_v40 = vmul.f32 %v7954_v53, %v1134_v54  ;;  %v7956_v16 = vpop.eup %7955  ;;  %vm1168_vm14 = vweird.f32 %v7954_v53 }
 0x5c6   : > { %7957 = vrsqrt.f32 %v1135_v50  ;;  %v1182_v10 = vmul.f32 %v7956_v16, %v8877_v62  ;;  %vm1169_vm0 = vmor %vm1167_vm15, %vm1168_vm14  ;;  %vm1177_vm3 = vweird.f32 %v1135_v50  ;;  %vm1188_vm6 = vweird.f32 %v7956_v16 }
 0x5c7   : > { %v1230_v37 = vsel %vm1229_vm13, %v7952_v26, %v1226_v4  ;;  %v1163_v46 = vmul.f32 %v7954_v53, %v1162_v40  ;;  %7959 = vrsqrt.f32 %v1137_v47  ;;  %vm1197_vm7 = vweird.f32 %v1137_v47  ;;  %vm1189_vm10 = vmor %vm1187_vm9, %vm1188_vm6  ;;  %2138 = vmatpush.bf16.msrb.mxu0 %v7782_v56  ;;  %v7767_v4 = vld [vmem:[%s12123_s3 + $0x118] sm:$0xff] }
 0x5c8   : > { %v1239_v5 = vmul.f32 %v1230_v37, %v8748_v61  ;;  %v1183_v18 = vmul.f32 %v7956_v16, %v1182_v10  ;;  %v7775_v40 = vld [vmem:[%s12123_s3 + $0x158] sm:$0xff]  ;;  %2073 = vmatpush.bf16.msrb.mxu1 %v7767_v4  ;;  %v7766_v10 = vld [vmem:[%s12123_s3 + $0x110] sm:$0xff] }
 0x5c9   : > { %v1164_v43 = vmul.f32 0.5, %v1163_v46  ;;  %v7779_v37 = vld [vmem:[%s12123_s3 + $0x178] sm:$0xff]  ;;  %2105 = vmatpush.bf16.msrb.mxu3 %v7775_v40 }
 0x5ca   : > { %v1249_v49 = vmul.f32 %v8829_v11, %v1239_v5  ;;  %v1184_v20 = vmul.f32 0.5, %v1183_v18  ;;  %v8959_v5 = vld [vmem:[%s12124_s4 + $0x1] ss:$8 sm:$0xf] }
 0x5cb   : > { %v1165_v6 = vsub.f32 1.5, %v1164_v43  ;;  %2139 = vmatpush.bf16.msrb.mxu0 %v7781_v7  ;;  %v7765_v18 = vld [vmem:[%s12123_s3 + $0x108] sm:$0xff] }
 0x5cc   : > { %v7958_v28 = vpop.eup %7957  ;;  %v1259_v58 = vadd.f32 %v8837_v21, %v1249_v49  ;;  %v1185_v35 = vsub.f32 1.5, %v1184_v20  ;;  %2074 = vmatpush.bf16.msrb.mxu1 %v7766_v10 }
 0x5cd   : > { %v7960_v55 = vpop.eup %7959  ;;  %v1166_v1 = vmul.f32 %v7954_v53, %v1165_v6  ;;  %v1172_v12 = vmul.f32 %v7958_v28, %v1135_v50  ;;  %vm1178_vm2 = vweird.f32 %v7958_v28  ;;  %v7780_v50 = vld [vmem:[%s12123_s3 + $0x180] sm:$0xff] }
 0x5ce   : > { %v1192_v13 = vmul.f32 %v7960_v55, %v1137_v47  ;;  %v8887_v15 = vpack.c.bf16 %v1259_v58, %v1259_v58  ;;  %vm1179_vm4 = vmor %vm1177_vm3, %vm1178_vm2  ;;  %vm1198_vm5 = vweird.f32 %v7960_v55  ;;  %v1186_v26 = vmul.f32 %v7956_v16, %v1185_v35  ;;  %v7776_v35 = vld [vmem:[%s12123_s3 + $0x160] sm:$0xff] }
 0x5cf   : > { %v1173_v19 = vmul.f32 %v7958_v28, %v1172_v12  ;;  %v1170_v22 = vsel %vm1169_vm0, %v7954_v53, %v1166_v1  ;;  %vm1199_vm8 = vmor %vm1197_vm7, %vm1198_vm5  ;;  %2140 = vmatpush.bf16.msrb.mxu0 %v7780_v50  ;;  %v8963_v58 = vperm.slane %v8959_v5, 2  ;;  %v7774_v1 = vld [vmem:[%s12123_s3 + $0x150] sm:$0xff] }
 0x5d0   : > { %v1193_v61 = vmul.f32 %v7960_v55, %v1192_v13  ;;  %7110 = vmatmul.msk.bf16.vlgmr.msrb.gmra.mxu2 %vm616_vm1, %v8887_v15  ;;  %v1233_v30 = vmul.f32 %v1170_v22, %v8765_v29  ;;  %v1190_v54 = vsel %vm1189_vm10, %v7956_v16, %v1186_v26  ;;  %v7778_v12 = vld [vmem:[%s12123_s3 + $0x170] sm:$0xff]  ;;  %2106 = vmatpush.bf16.msrb.mxu3 %v7774_v1  ;;  %v7773_v22 = vld [vmem:[%s12123_s3 + $0x148] sm:$0xff] }
 0x5d1   : > { %v1174_v44 = vmul.f32 0.5, %v1173_v19  ;;  %v1235_v63 = vmul.f32 %v1190_v54, %v8740_v52  ;;  %v1119_v52 = vpop.xlane.xlu2 %1118  ;;  %2075 = vmatpush.bf16.msrb.mxu1 %v7765_v18  ;;  %v7761_v18 = vld [vmem:[%s12123_s3 + $0xe8] sm:$0xff] }
 0x5d2   : > { %v1194_v8 = vmul.f32 0.5, %v1193_v61  ;;  %v1243_v34 = vmul.f32 %v8829_v11, %v1233_v30 }
 0x5d3   : > { %v1175_v25 = vsub.f32 1.5, %v1174_v44  ;;  %v1245_v62 = vmul.f32 %v8829_v11, %v1235_v63  ;;  %2141 = vmatpush.bf16.msrb.mxu0 %v7779_v37  ;;  %v7777_v44 = vld [vmem:[%s12123_s3 + $0x168] sm:$0xff]  ;;  %v7762_v37 = vld [vmem:[%s12123_s3 + $0xf0] sm:$0xff] }
 0x5d4   : > { %v1195_v36 = vsub.f32 1.5, %v1194_v8  ;;  %v8896_v39 = vadd.f32 %v8837_v21, %v1243_v34  ;;  %2107 = vmatpush.bf16.msrb.mxu3 %v7773_v22  ;;  %v7772_v34 = vld [vmem:[%s12123_s3 + $0x140] sm:$0xff]  ;;  %v7769_v22 = vld [vmem:[%s12123_s3 + $0x128] sm:$0xff] }
 0x5d5   : > { %v1176_v9 = vmul.f32 %v7958_v28, %v1175_v25  ;;  %v8917_v42 = vadd.f32 %v8837_v21, %v1245_v62 }
 0x5d6   : > { %v1196_v38 = vmul.f32 %v7960_v55, %v1195_v36 }
 0x5d7   : > { %v1180_v31 = vsel %vm1179_vm4, %v7958_v28, %v1176_v9  ;;  %2142 = vmatpush.bf16.msrb.mxu0 %v7778_v12  ;;  %v8995_v9 = vperm.slane %v8959_v5, 0 }
 0x5d8   : > { %v1234_v33 = vmul.f32 %v1180_v31, %v8782_v32  ;;  %v1200_v57 = vsel %vm1199_vm8, %v7960_v55, %v1196_v38  ;;  %v9009_v38 = vperm.slane %v8959_v5, 1  ;;  %2108 = vmatpush.bf16.msrb.mxu3 %v7772_v34 }
 0x5d9   : > { %v1236_v51 = vmul.f32 %v1200_v57, %v8806_v48  ;;  %v1130_v48 = vmul.f32 %v1119_v52, %v8714_v41  ;;  %v7763_v52 = vld [vmem:[%s12123_s3 + $0xf8] sm:$0xff] }
 0x5da   : > { %v1244_v17 = vmul.f32 %v8829_v11, %v1234_v33  ;;  %v7764_v33 = vld [vmem:[%s12123_s3 + $0x100] sm:$0xff] }
 0x5db   : > { %v1246_v0 = vmul.f32 %v8829_v11, %v1236_v51  ;;  %2143 = vmatpush.bf16.msrb.mxu0 %v7777_v44  ;;  %2076 = vmatpush.bf16.msrb.mxu1 %v7764_v33 }
 0x5dc   : > { %v8899_v29 = vadd.f32 %v8837_v21, %v1244_v17 }
 0x5dd   : > { %v8914_v45 = vadd.f32 %v8837_v21, %v1246_v0 }
 0x5de   : > { %v1269_v32 = vpack.c.bf16 %v8899_v29, %v8896_v39 }
 0x5df   : > { %v1270_v2 = vpack.c.bf16 %v8914_v45, %v8917_v42  ;;  %2144 = vmatpush.bf16.msrb.mxu0 %v7776_v35  ;;  %2077 = vmatpush.bf16.msrb.mxu1 %v7763_v52  ;;  %v7768_v35 = vld [vmem:[%s12123_s3 + $0x120] sm:$0xff] }
 0x5e0   : > { %7097 = vmatmul.msk.bf16.gmra.mxu1 %vm616_vm1, %v1269_v32  ;;  %7102 = vmatmul.msk.bf16.gmra.mxu3 %vm616_vm1, %v1269_v32 }
 0x5e1   : > { %7107 = vmatmul.msk.bf16.gmra.mxu0 %vm616_vm1, %v1269_v32  ;;  %7111 = vmatmul.msk.bf16.vlgmr.msra.gmra.mxu2 %vm616_vm1, %v8848_v24  ;;  %v8927_v24 = vadd.f32 1e-12, %v1130_v48  ;;  %v7771_v48 = vld [vmem:[%s12123_s3 + $0x138] sm:$0xff] }
 0x5e2   : > { %2109 = vmatpush.bf16.msrb.mxu3 %v7771_v48  ;;  %v7787_v48 = vld [vmem:[%s12123_s3 + $0x1b8] sm:$0xff] }
 0x5e3   : > { %7961 = vrsqrt.f32 %v8927_v24  ;;  %vm1217_vm12 = vweird.f32 %v8927_v24  ;;  %2078 = vmatpush.bf16.msrb.mxu1 %v7762_v37 }
 0x5e7   : > { %2079 = vmatpush.bf16.msrb.mxu1 %v7761_v18  ;;  %v9128_v18 = vperm.slane %v8959_v5, 3 }
 0x5e9   : > { %v8939_v53 = vpop.eup %7961 }
 0x5ea   : > { %v1212_v47 = vmul.f32 %v8939_v53, %v8927_v24  ;;  %v1348_v43 = vpop.f32.mrf.mxu1  ;;  %vm1218_vm11 = vweird.f32 %v8939_v53 }
 0x5eb   : > { %v1414_v3 = vpop.f32.mrf.mxu0  ;;  %vm9019_vm13 = vmor %vm1217_vm12, %vm1218_vm11  ;;  %v9027_v0 = vadd.f32 %v1348_v43, %v8995_v9 }
 0x5ec   : > { %v1213_v46 = vmul.f32 %v8939_v53, %v1212_v47  ;;  %v8981_v61 = vadd.f32 %v1414_v3, %v8963_v58 }
 0x5ed   : > { %v1507_v40 = vmul.f32 0.044715, %v9027_v0 }
 0x5ee   : > { %v1214_v13 = vmul.f32 0.5, %v1213_v46  ;;  %v1509_v31 = vmul.f32 0.044715, %v8981_v61  ;;  %v7770_v46 = vld [vmem:[%s12123_s3 + $0x130] sm:$0xff] }
 0x5ef   : > { %2110 = vmatpush.bf16.msrb.mxu3 %v7770_v46  ;;  %v1543_v1 = vmul.f32 %v1507_v40, %v9027_v0 }
 0x5f0   : > { %7098 = vmatmul.msk.bf16.gmra.mxu1 %vm616_vm1, %v1270_v2  ;;  %7103 = vmatmul.msk.bf16.gmra.mxu3 %vm616_vm1, %v1270_v2  ;;  %v1381_v49 = vpop.f32.mrf.mxu3  ;;  %v1215_v25 = vsub.f32 1.5, %v1214_v13  ;;  %v1545_v62 = vmul.f32 %v1509_v31, %v8981_v61 }
 0x5f1   : > { %7108 = vmatmul.msk.bf16.gmra.mxu0 %vm616_vm1, %v1270_v2  ;;  %7112 = vmatmul.msk.bf16.gmra.mxu2 %vm616_vm1, %v1269_v32  ;;  %v9043_v59 = vadd.f32 %v1381_v49, %v9009_v38  ;;  %v1579_v31 = vmul.f32 %v1543_v1, %v9027_v0 }
 0x5f2   : > { %v1350_v30 = vpop.f32.mrf.mxu1  ;;  %v1216_v17 = vmul.f32 %v8939_v53, %v1215_v25 }
 0x5f3   : > { %v1416_v28 = vpop.f32.mrf.mxu0  ;;  %v9014_v32 = vadd.f32 %v1350_v30, %v8995_v9  ;;  %v1508_v43 = vmul.f32 0.044715, %v9043_v59  ;;  %2111 = vmatpush.bf16.msrb.mxu3 %v7769_v22 }
 0x5f4   : > { %v8977_v19 = vadd.f32 %v1416_v28, %v8963_v58  ;;  %v1220_v24 = vsel %vm9019_vm13, %v8939_v53, %v1216_v17  ;;  %v1581_v53 = vmul.f32 %v1545_v62, %v8981_v61 }
 0x5f5   : > { %v1511_v7 = vmul.f32 0.044715, %v9014_v32  ;;  %v1238_v4 = vmul.f32 %v1220_v24, %v8753_v14  ;;  %v1544_v44 = vmul.f32 %v1508_v43, %v9043_v59  ;;  %v7785_v43 = vld [vmem:[%s12123_s3 + $0x1a8] sm:$0xff] }
 0x5f6   : > { %v1513_v8 = vmul.f32 0.044715, %v8977_v19  ;;  %v1617_v12 = vadd.f32 %v1581_v53, %v8981_v61  ;;  %v1477_v37 = vmul.f32 0.5, %v8977_v19 }
 0x5f7   : > { %v1547_v49 = vmul.f32 %v1511_v7, %v9014_v32  ;;  %v1248_v13 = vmul.f32 %v8829_v11, %v1238_v4  ;;  %v1580_v17 = vmul.f32 %v1544_v44, %v9043_v59  ;;  %2112 = vmatpush.bf16.msrb.mxu3 %v7768_v35 }
 0x5f8   : > { %v1383_v36 = vpop.f32.mrf.mxu3  ;;  %v1549_v57 = vmul.f32 %v1513_v8, %v8977_v19 }
 0x5f9   : > { %v9024_v51 = vadd.f32 %v1383_v36, %v9009_v38  ;;  %v1583_v25 = vmul.f32 %v1547_v49, %v9014_v32  ;;  %v1653_v36 = vmul.f32 0.7978846, %v1617_v12  ;;  %v9087_v34 = vadd.f32 %v8837_v21, %v1248_v13 }
 0x5fa   : > { %v1585_v3 = vmul.f32 %v1549_v57, %v8977_v19 }
 0x5fb   : > { %v1512_v50 = vmul.f32 0.044715, %v9024_v51 }
 0x5fc   : > { %v1621_v14 = vadd.f32 %v1585_v3, %v8977_v19 }
 0x5fd   : > { %v1548_v28 = vmul.f32 %v1512_v50, %v9024_v51 }
 0x5fe   : > { %v1657_v8 = vmul.f32 0.7978846, %v1621_v14 }
 0x601   : > { %7113 = vmatmul.msk.bf16.gmra.mxu2 %vm616_vm1, %v1270_v2  ;;  %v7791_v2 = vld [vmem:[%s12123_s3 + $0x1d8] sm:$0xff] }
 0x602   : > { %2169 = vmatpush.bf16.msrb.mxu2 %v7791_v2  ;;  %v1616_v2 = vadd.f32 %v1580_v17, %v9043_v59  ;;  %v1476_v17 = vmul.f32 0.5, %v9024_v51 }
 0x604   : > { %v1652_v3 = vmul.f32 0.7978846, %v1616_v2 }
 0x634   : > { %v1116_v16 = vpop.xlane.xlu1 %1115 }
 0x635   : > { %v1129_v6 = vmul.f32 %v1116_v16, %v8714_v41 }
 0x637   : > { %v8965_v55 = vadd.f32 1e-12, %v1129_v6  ;;  %v7790_v6 = vld [vmem:[%s12123_s3 + $0x1d0] sm:$0xff] }
 0x638   : > { %2170 = vmatpush.bf16.msrb.mxu2 %v7790_v6 }
 0x639   : > { %7963 = vrsqrt.f32 %v8965_v55  ;;  %vm1207_vm15 = vweird.f32 %v8965_v55 }
 0x63a   : > { %7965 = vtanh.f32 %v1657_v8 }
 0x63b   : > { %7967 = vtanh.f32 %v1653_v36  ;;  %v1475_v36 = vmul.f32 0.5, %v9014_v32 }
 0x63f   : > { %v7964_v20 = vpop.eup %7963 }
 0x640   : > { %v1202_v26 = vmul.f32 %v7964_v20, %v8965_v55  ;;  %vm1208_vm14 = vweird.f32 %v7964_v20 }
 0x641   : > { %vm1209_vm0 = vmor %vm1207_vm15, %vm1208_vm14 }
 0x642   : > { %v1203_v63 = vmul.f32 %v7964_v20, %v1202_v26  ;;  %v1619_v26 = vadd.f32 %v1583_v25, %v9014_v32 }
 0x644   : > { %v1204_v56 = vmul.f32 0.5, %v1203_v63  ;;  %v1615_v63 = vadd.f32 %v1579_v31, %v9027_v0  ;;  %v1655_v52 = vmul.f32 0.7978846, %v1619_v26 }
 0x646   : > { %v1205_v47 = vsub.f32 1.5, %v1204_v56  ;;  %v7966_v56 = vpop.eup %7965  ;;  %v1651_v7 = vmul.f32 0.7978846, %v1615_v63  ;;  %7969 = vtanh.f32 %v1655_v52 }
 0x647   : > { %v7968_v50 = vpop.eup %7967  ;;  %v1729_v4 = vadd.f32 1.0, %v7966_v56 }
 0x648   : > { %v1206_v16 = vmul.f32 %v7964_v20, %v1205_v47  ;;  %v7786_v47 = vld [vmem:[%s12123_s3 + $0x1b0] sm:$0xff]  ;;  %v1725_v53 = vadd.f32 1.0, %v7968_v50 }
 0x649   : > { %v1765_v6 = vmul.f32 %v1729_v4, %v1477_v37 }
 0x64a   : > { %v1210_v10 = vsel %vm1209_vm0, %v7964_v20, %v1206_v16  ;;  %v1584_v20 = vmul.f32 %v1548_v28, %v9024_v51  ;;  %v1473_v16 = vmul.f32 0.5, %v8981_v61  ;;  %v7784_v61 = vld [vmem:[%s12123_s3 + $0x1a0] sm:$0xff] }
 0x64b   : > { %v1237_v55 = vmul.f32 %v1210_v10, %v8873_v60  ;;  %v7789_v60 = vld [vmem:[%s12123_s3 + $0x1c8] sm:$0xff] }
 0x64c   : > { %2171 = vmatpush.bf16.msrb.mxu2 %v7789_v60  ;;  %v1620_v54 = vadd.f32 %v1584_v20, %v9024_v51  ;;  %v7970_v28 = vpop.eup %7969  ;;  %v1472_v60 = vmul.f32 0.5, %v9043_v59 }
 0x64d   : > { %v1247_v30 = vmul.f32 %v8829_v11, %v1237_v55  ;;  %v7760_v11 = vld [vmem:[%s12123_s3 + $0xe0] sm:$0xff]  ;;  %v1761_v55 = vmul.f32 %v1725_v53, %v1473_v16  ;;  %v1727_v8 = vadd.f32 1.0, %v7970_v28 }
 0x64e   : > { %2080 = vmatpush.bf16.msrb.mxu1 %v7760_v11  ;;  %v1656_v24 = vmul.f32 0.7978846, %v1620_v54 }
 0x64f   : > { %v9084_v33 = vadd.f32 %v8837_v21, %v1247_v30  ;;  %v7788_v21 = vld [vmem:[%s12123_s3 + $0x1c0] sm:$0xff]  ;;  %v1861_v25 = vpack.c.bf16 %v1765_v6, %v1761_v55  ;;  %v1471_v30 = vmul.f32 0.5, %v9027_v0  ;;  %v1763_v52 = vmul.f32 %v1727_v8, %v1475_v36 }
 0x650   : > { %2172 = vmatpush.bf16.msrb.mxu2 %v7788_v21  ;;  %7971 = vtanh.f32 %v1656_v24 }
 0x651   : > { %v1271_v57 = vpack.c.bf16 %v9087_v34, %v9084_v33  ;;  %7973 = vtanh.f32 %v1651_v7 }
 0x652   : > { %7975 = vtanh.f32 %v1652_v3 }
 0x653   : > { %7099 = vmatmul.msk.bf16.gmra.mxu1 %vm616_vm1, %v1271_v57  ;;  %7104 = vmatmul.msk.bf16.gmra.mxu3 %vm616_vm1, %v1271_v57  ;;  %v9106_v62 = vpop.f32.mrf.mxu2 }
 0x654   : > { %7109 = vmatmul.msk.bf16.gmra.mxu0 %vm616_vm1, %v1271_v57  ;;  %7114 = vmatmul.msk.bf16.gmra.mxu2 %vm616_vm1, %v1271_v57 }
 0x655   : > { %2173 = vmatpush.bf16.msrb.mxu2 %v7787_v48 }
 0x656   : > { %v7972_v1 = vpop.eup %7971 }
 0x657   : > { %v7974_v19 = vpop.eup %7973  ;;  %v1728_v31 = vadd.f32 1.0, %v7972_v1 }
 0x658   : > { %v7976_v22 = vpop.eup %7975  ;;  %v1723_v0 = vadd.f32 1.0, %v7974_v19 }
 0x659   : > { %2174 = vmatpush.bf16.msrb.mxu2 %v7786_v47  ;;  %v1724_v21 = vadd.f32 1.0, %v7976_v22  ;;  %v1764_v56 = vmul.f32 %v1728_v31, %v1476_v17 }
 0x65a   : > { %v1759_v50 = vmul.f32 %v1723_v0, %v1471_v30 }
 0x65b   : > { %v1436_v40 = vpop.f32.mrf.mxu2  ;;  %v1760_v53 = vmul.f32 %v1724_v21, %v1472_v60 }
 0x65d   : > { %v1353_v46 = vpop.f32.mrf.mxu1  ;;  %2175 = vmatpush.bf16.msrb.mxu2 %v7785_v43  ;;  %v1859_v43 = vpack.c.bf16 %v1763_v52, %v1759_v50  ;;  %v1860_v28 = vpack.c.bf16 %v1764_v56, %v1760_v53 }
 0x65e   : > { %v1354_v49 = vadd.f32 %v1353_v46, %v8995_v9  ;;  %v1419_v14 = vpop.f32.mrf.mxu0 }
 0x65f   : > { %v9124_v10 = vadd.f32 %v1419_v14, %v8963_v58 }
 0x660   : > { %v1515_v12 = vmul.f32 0.044715, %v1354_v49  ;;  %v9151_v19 = vmul.f32 0.5, %v1354_v49 }
 0x661   : > { %v1517_v13 = vmul.f32 0.044715, %v9124_v10  ;;  %2176 = vmatpush.bf16.msrb.mxu2 %v7784_v61  ;;  %v1481_v60 = vmul.f32 0.5, %v9124_v10 }
 0x662   : > { %v1551_v44 = vmul.f32 %v1515_v12, %v1354_v49 }
 0x663   : > { %v1553_v20 = vmul.f32 %v1517_v13, %v9124_v10  ;;  %7100 = vmatmul.msk.bf16.gmra.mxu1 %vm616_vm1, %v8887_v15  ;;  %v1386_v5 = vpop.f32.mrf.mxu3  ;;  %7105 = vmatmul.msk.bf16.gmra.mxu3 %vm616_vm1, %v8887_v15 }
 0x664   : > { %v1387_v11 = vadd.f32 %v1386_v5, %v9009_v38  ;;  %v1447_v35 = vpop.f32.mrf.mxu2  ;;  %7115 = vmatmul.msk.bf16.gmra.mxu2 %vm616_vm1, %v8887_v15  ;;  %2145 = vmatmul.bf16.vlgmr.msrb.gmra.mxu0 %v1861_v25  ;;  %v1587_v59 = vmul.f32 %v1551_v44, %v1354_v49 }
 0x665   : > { %v1448_v26 = vadd.f32 %v1447_v35, %v9128_v18  ;;  %v1355_v57 = vpop.f32.mrf.mxu1  ;;  %v1589_v54 = vmul.f32 %v1553_v20, %v9124_v10 }
 0x666   : > { %v1516_v63 = vmul.f32 0.044715, %v1387_v11  ;;  %v1356_v32 = vadd.f32 %v1355_v57, %v8995_v9  ;;  %v1421_v2 = vpop.f32.mrf.mxu0  ;;  %v1623_v48 = vadd.f32 %v1587_v59, %v1354_v49  ;;  %v9155_v5 = vmul.f32 0.5, %v1387_v11 }
 0x667   : > { %v1510_v24 = vmul.f32 0.044715, %v1448_v26  ;;  %v1422_v15 = vadd.f32 %v1421_v2, %v8963_v58  ;;  %v1625_v7 = vadd.f32 %v1589_v54, %v9124_v10  ;;  %v1474_v21 = vmul.f32 0.5, %v1448_v26 }
 0x668   : > { %v1552_v51 = vmul.f32 %v1516_v63, %v1387_v11  ;;  %v1519_v3 = vmul.f32 0.044715, %v1356_v32  ;;  %v1659_v47 = vmul.f32 0.7978846, %v1623_v48  ;;  %v1483_v48 = vmul.f32 0.5, %v1356_v32 }
 0x669   : > { %v1546_v4 = vmul.f32 %v1510_v24, %v1448_v26  ;;  %v1521_v40 = vmul.f32 0.044715, %v1422_v15  ;;  %v1661_v37 = vmul.f32 0.7978846, %v1625_v7  ;;  %v1485_v2 = vmul.f32 0.5, %v1422_v15 }
 0x66a   : > { %v1555_v46 = vmul.f32 %v1519_v3, %v1356_v32  ;;  %v1588_v1 = vmul.f32 %v1552_v51, %v1387_v11  ;;  %7977 = vtanh.f32 %v1659_v47 }
 0x66b   : > { %v1582_v16 = vmul.f32 %v1546_v4, %v1448_v26  ;;  %v1557_v14 = vmul.f32 %v1521_v40, %v1422_v15  ;;  %v1388_v6 = vpop.f32.mrf.mxu3  ;;  %7979 = vtanh.f32 %v1661_v37 }
 0x66c   : > { %v1389_v12 = vadd.f32 %v1388_v6, %v9009_v38  ;;  %v1449_v55 = vpop.f32.mrf.mxu2  ;;  %v1591_v13 = vmul.f32 %v1555_v46, %v1356_v32  ;;  %v1624_v35 = vadd.f32 %v1588_v1, %v1387_v11 }
 0x66d   : > { %v1618_v61 = vadd.f32 %v1582_v16, %v1448_v26  ;;  %v1450_v22 = vadd.f32 %v1449_v55, %v9128_v18  ;;  %v1358_v44 = vpop.f32.mrf.mxu1  ;;  %v1593_v25 = vmul.f32 %v1557_v14, %v1422_v15 }
 0x66e   : > { %v1520_v8 = vmul.f32 0.044715, %v1389_v12  ;;  %v1424_v30 = vpop.f32.mrf.mxu0  ;;  %v1627_v20 = vadd.f32 %v1591_v13, %v1356_v32  ;;  %v9161_v59 = vadd.f32 %v1358_v44, %v8995_v9  ;;  %v9165_v51 = vmul.f32 0.5, %v1389_v12 }
 0x66f   : > { %v1654_v31 = vmul.f32 0.7978846, %v1618_v61  ;;  %v1514_v36 = vmul.f32 0.044715, %v1450_v22  ;;  %v9158_v49 = vadd.f32 %v1424_v30, %v8963_v58  ;;  %v1629_v17 = vadd.f32 %v1593_v25, %v1422_v15 }
 0x670   : > { %v1556_v0 = vmul.f32 %v1520_v8, %v1389_v12  ;;  %v1663_v57 = vmul.f32 0.7978846, %v1627_v20  ;;  %v7978_v63 = vpop.eup %7977  ;;  %v1660_v3 = vmul.f32 0.7978846, %v1624_v35  ;;  %v1523_v26 = vmul.f32 0.044715, %v9161_v59 }
 0x671   : > { %7981 = vtanh.f32 %v1654_v31  ;;  %v1550_v54 = vmul.f32 %v1514_v36, %v1450_v22  ;;  %v1525_v10 = vmul.f32 0.044715, %v9158_v49  ;;  %v1665_v52 = vmul.f32 0.7978846, %v1629_v17  ;;  %v7980_v24 = vpop.eup %7979 }
 0x672   : > { %7983 = vtanh.f32 %v1663_v57  ;;  %v1592_v15 = vmul.f32 %v1556_v0, %v1389_v12  ;;  %v1731_v53 = vadd.f32 1.0, %v7978_v63  ;;  %v1733_v16 = vadd.f32 1.0, %v7980_v24 }
 0x673   : > { %v1586_v56 = vmul.f32 %v1550_v54, %v1450_v22  ;;  %v1561_v11 = vmul.f32 %v1525_v10, %v9158_v49  ;;  %v1391_v7 = vpop.f32.mrf.mxu3  ;;  %2081 = vmatmul.bf16.vlgmr.msrb.gmra.mxu1 %v1859_v43  ;;  %2113 = vmatmul.bf16.vlgmr.msrb.gmra.mxu3 %v1860_v28  ;;  %7985 = vtanh.f32 %v1665_v52  ;;  %v1559_v25 = vmul.f32 %v1523_v26, %v9161_v59 }
 0x674   : > { %v9169_v50 = vadd.f32 %v1391_v7, %v9009_v38  ;;  %v1452_v47 = vpop.f32.mrf.mxu2  ;;  %7987 = vtanh.f32 %v1660_v3  ;;  %v1628_v14 = vadd.f32 %v1592_v15, %v1389_v12  ;;  %v1478_v20 = vmul.f32 0.5, %v1450_v22 }
 0x675   : > { %v1622_v32 = vadd.f32 %v1586_v56, %v1450_v22  ;;  %v9172_v4 = vadd.f32 %v1452_v47, %v9128_v18  ;;  %v1360_v40 = vpop.f32.mrf.mxu1  ;;  %v1597_v13 = vmul.f32 %v1561_v11, %v9158_v49  ;;  %v1769_v0 = vmul.f32 %v1733_v16, %v1481_v60 }
 0x676   : > { %v1524_v37 = vmul.f32 0.044715, %v9169_v50  ;;  %v9176_v46 = vadd.f32 %v1360_v40, %v8995_v9  ;;  %v1426_v43 = vpop.f32.mrf.mxu0  ;;  %v1664_v30 = vmul.f32 0.7978846, %v1628_v14  ;;  %v1767_v17 = vmul.f32 %v1731_v53, %v9151_v19 }
 0x677   : > { %v7982_v6 = vpop.eup %7981  ;;  %v1658_v28 = vmul.f32 0.7978846, %v1622_v32  ;;  %v1518_v1 = vmul.f32 0.044715, %v9172_v4  ;;  %v9180_v55 = vadd.f32 %v1426_v43, %v8963_v58  ;;  %v1633_v22 = vadd.f32 %v1597_v13, %v9158_v49 }
 0x678   : > { %v7984_v61 = vpop.eup %7983  ;;  %v1726_v44 = vadd.f32 1.0, %v7982_v6  ;;  %v1527_v8 = vmul.f32 0.044715, %v9176_v46  ;;  %v1560_v54 = vmul.f32 %v1524_v37, %v9169_v50  ;;  %v1595_v60 = vmul.f32 %v1559_v25, %v9161_v59 }
 0x679   : > { %7989 = vtanh.f32 %v1658_v28  ;;  %v1529_v12 = vmul.f32 0.044715, %v9180_v55  ;;  %v1735_v31 = vadd.f32 1.0, %v7984_v61  ;;  %v7986_v36 = vpop.eup %7985  ;;  %v1554_v24 = vmul.f32 %v1518_v1, %v9172_v4 }
 0x67a   : > { %v1563_v35 = vmul.f32 %v1527_v8, %v9176_v46  ;;  %7991 = vtanh.f32 %v1664_v30  ;;  %v7988_v57 = vpop.eup %7987  ;;  %v1737_v52 = vadd.f32 1.0, %v7986_v36  ;;  %v1762_v7 = vmul.f32 %v1726_v44, %v1474_v21 }
 0x67b   : > { %v1565_v10 = vmul.f32 %v1529_v12, %v9180_v55  ;;  %v1393_v63 = vpop.f32.mrf.mxu3  ;;  %v1771_v26 = vmul.f32 %v1735_v31, %v1483_v48  ;;  %v1732_v32 = vadd.f32 1.0, %v7988_v57  ;;  %v1669_v40 = vmul.f32 0.7978846, %v1633_v22 }
 0x67c   : > { %v9193_v56 = vadd.f32 %v1393_v63, %v9009_v38  ;;  %v1454_v11 = vpop.f32.mrf.mxu2  ;;  %v1773_v3 = vmul.f32 %v1737_v52, %v1485_v2  ;;  %v1599_v53 = vmul.f32 %v1563_v35, %v9176_v46  ;;  %v1631_v14 = vadd.f32 %v1595_v60, %v9161_v59 }
 0x67d   : > { %v9197_v19 = vadd.f32 %v1454_v11, %v9128_v18  ;;  %v1601_v47 = vmul.f32 %v1565_v10, %v9180_v55  ;;  %7993 = vtanh.f32 %v1669_v40  ;;  %v1863_v1 = vpack.c.bf16 %v1771_v26, %v1767_v17 }
 0x67e   : > { %v1528_v15 = vmul.f32 0.044715, %v9193_v56  ;;  %v1865_v16 = vpack.c.bf16 %v1773_v3, %v1769_v0  ;;  %v1635_v28 = vadd.f32 %v1599_v53, %v9176_v46  ;;  %v1667_v44 = vmul.f32 0.7978846, %v1631_v14 }
 0x67f   : > { %v7990_v37 = vpop.eup %7989  ;;  %v1522_v43 = vmul.f32 0.044715, %v9197_v19  ;;  %v1637_v21 = vadd.f32 %v1601_v47, %v9180_v55  ;;  %v1768_v8 = vmul.f32 %v1732_v32, %v9155_v5  ;;  %v1596_v36 = vmul.f32 %v1560_v54, %v9169_v50 }
 0x680   : > { %v7992_v6 = vpop.eup %7991  ;;  %v1564_v2 = vmul.f32 %v1528_v15, %v9193_v56  ;;  %v1730_v48 = vadd.f32 1.0, %v7990_v37  ;;  %2150 = vmatmul.bf16.gmra.mxu0 %v1865_v16  ;;  %v1671_v12 = vmul.f32 0.7978846, %v1635_v28  ;;  %v1489_v15 = vmul.f32 0.5, %v9158_v49 }
 0x681   : > { %v1736_v13 = vadd.f32 1.0, %v7992_v6  ;;  %v1673_v61 = vmul.f32 0.7978846, %v1637_v21  ;;  %v1558_v25 = vmul.f32 %v1522_v43, %v9197_v19  ;;  %v1632_v5 = vadd.f32 %v1596_v36, %v9169_v50 }
 0x682   : > { %v1766_v30 = vmul.f32 %v1730_v48, %v1478_v20  ;;  %v1600_v35 = vmul.f32 %v1564_v2, %v9193_v56  ;;  %v1493_v32 = vmul.f32 0.5, %v9180_v55  ;;  %v1491_v16 = vmul.f32 0.5, %v9176_v46 }
 0x683   : > { %2086 = vmatmul.bf16.gmra.mxu1 %v1863_v1  ;;  %v1772_v31 = vmul.f32 %v1736_v13, %v9165_v51  ;;  %7995 = vtanh.f32 %v1673_v61  ;;  %v7994_v20 = vpop.eup %7993  ;;  %v1590_v51 = vmul.f32 %v1554_v24, %v9172_v4  ;;  %v1594_v54 = vmul.f32 %v1558_v25, %v9197_v19 }
 0x684   : > { %v1457_v0 = vpop.f32.mrf.mxu2  ;;  %v1862_v57 = vpack.c.bf16 %v1766_v30, %v1762_v7  ;;  %7997 = vtanh.f32 %v1667_v44  ;;  %v1636_v63 = vadd.f32 %v1600_v35, %v9193_v56  ;;  %v1668_v22 = vmul.f32 0.7978846, %v1632_v5 }
 0x685   : > { %v9213_v17 = vadd.f32 %v1457_v0, %v9128_v18  ;;  %v1864_v10 = vpack.c.bf16 %v1772_v31, %v1768_v8  ;;  %7999 = vtanh.f32 %v1671_v12  ;;  %v1741_v11 = vadd.f32 1.0, %v7994_v20 }
 0x686   : > { %2177 = vmatmul.bf16.vlgmr.msrb.gmra.mxu2 %v1862_v57  ;;  %v1672_v7 = vmul.f32 0.7978846, %v1636_v63  ;;  %v1626_v60 = vadd.f32 %v1590_v51, %v9172_v4  ;;  %v1630_v3 = vadd.f32 %v1594_v54, %v9197_v19  ;;  %8001 = vtanh.f32 %v1668_v22 }
 0x687   : > { %v1526_v52 = vmul.f32 0.044715, %v9213_v17  ;;  %2118 = vmatmul.bf16.gmra.mxu3 %v1864_v10  ;;  %v1777_v2 = vmul.f32 %v1741_v11, %v1489_v15  ;;  %v1487_v55 = vmul.f32 0.5, %v9161_v59  ;;  %v1488_v30 = vmul.f32 0.5, %v9169_v50 }
 0x688   : > { %8003 = vtanh.f32 %v1672_v7  ;;  %v1662_v53 = vmul.f32 0.7978846, %v1626_v60  ;;  %v1666_v37 = vmul.f32 0.7978846, %v1630_v3  ;;  %v1492_v35 = vmul.f32 0.5, %v9193_v56 }
 0x689   : > { %v7996_v26 = vpop.eup %7995  ;;  %v1562_v47 = vmul.f32 %v1526_v52, %v9213_v17  ;;  %v1482_v54 = vmul.f32 0.5, %v9172_v4  ;;  %v1486_v52 = vmul.f32 0.5, %v9197_v19  ;;  %v1490_v4 = vmul.f32 0.5, %v9213_v17 }
 0x68a   : > { %v7998_v24 = vpop.eup %7997  ;;  %v1745_v40 = vadd.f32 1.0, %v7996_v26  ;;  %8005 = vtanh.f32 %v1662_v53 }
 0x68b   : > { %v8000_v43 = vpop.eup %7999  ;;  %v1739_v21 = vadd.f32 1.0, %v7998_v24  ;;  %v1598_v14 = vmul.f32 %v1562_v47, %v9213_v17  ;;  %8007 = vtanh.f32 %v1666_v37 }
 0x68c   : > { %v1459_v6 = vpop.f32.mrf.mxu2  ;;  %v1781_v48 = vmul.f32 %v1745_v40, %v1493_v32  ;;  %v1743_v28 = vadd.f32 1.0, %v8000_v43  ;;  %v8002_v44 = vpop.eup %8001 }
 0x68d   : > { %v1460_v49 = vadd.f32 %v1459_v6, %v9128_v18  ;;  %v1634_v61 = vadd.f32 %v1598_v14, %v9213_v17  ;;  %v1775_v46 = vmul.f32 %v1739_v21, %v1487_v55  ;;  %v1740_v12 = vadd.f32 1.0, %v8002_v44 }
 0x68e   : > { %v1869_v1 = vpack.c.bf16 %v1781_v48, %v1777_v2  ;;  %v1779_v13 = vmul.f32 %v1743_v28, %v1491_v16  ;;  %v8004_v8 = vpop.eup %8003  ;;  %v9240_v21 = vadd.f32 %v9106_v62, %v8963_v58 }
 0x68f   : > { %v1530_v25 = vmul.f32 0.044715, %v1460_v49  ;;  %v1744_v0 = vadd.f32 1.0, %v8004_v8  ;;  %v1670_v59 = vmul.f32 0.7978846, %v1634_v61  ;;  %v1776_v5 = vmul.f32 %v1740_v12, %v1488_v30 }
 0x690   : > { %2155 = vmatmul.bf16.gmra.mxu0 %v1869_v1  ;;  %v1867_v36 = vpack.c.bf16 %v1779_v13, %v1775_v46  ;;  %v8006_v57 = vpop.eup %8005  ;;  %v1494_v15 = vmul.f32 0.5, %v1460_v49  ;;  %v1541_v48 = vmul.f32 0.044715, %v9240_v21 }
 0x691   : > { %v1566_v31 = vmul.f32 %v1530_v25, %v1460_v49  ;;  %v8008_v10 = vpop.eup %8007  ;;  %v1780_v20 = vmul.f32 %v1744_v0, %v1492_v35  ;;  %v1734_v63 = vadd.f32 1.0, %v8006_v57  ;;  %8009 = vtanh.f32 %v1670_v59 }
 0x692   : > { %v1738_v50 = vadd.f32 1.0, %v8008_v10  ;;  %v1577_v12 = vmul.f32 %v1541_v48, %v9240_v21 }
 0x693   : > { %2091 = vmatmul.bf16.gmra.mxu1 %v1867_v36  ;;  %v1602_v51 = vmul.f32 %v1566_v31, %v1460_v49  ;;  %v1868_v22 = vpack.c.bf16 %v1780_v20, %v1776_v5  ;;  %v1770_v7 = vmul.f32 %v1734_v63, %v1482_v54 }
 0x694   : > { %v1774_v60 = vmul.f32 %v1738_v50, %v1486_v52  ;;  %v1613_v50 = vmul.f32 %v1577_v12, %v9240_v21 }
 0x695   : > { %v1638_v11 = vadd.f32 %v1602_v51, %v1460_v49 }
 0x696   : > { %v1866_v3 = vpack.c.bf16 %v1774_v60, %v1770_v7 }
 0x697   : > { %2123 = vmatmul.bf16.gmra.mxu3 %v1868_v22  ;;  %v1674_v56 = vmul.f32 0.7978846, %v1638_v11  ;;  %v8010_v26 = vpop.eup %8009 }
 0x698   : > { %2182 = vmatmul.bf16.gmra.mxu2 %v1866_v3  ;;  %v1742_v32 = vadd.f32 1.0, %v8010_v26 }
 0x699   : > { %8011 = vtanh.f32 %v1674_v56 }
 0x69a   : > { %v1778_v19 = vmul.f32 %v1742_v32, %v1490_v4 }
 0x69f   : > { %v8012_v47 = vpop.eup %8011 }
 0x6a0   : > { %v1746_v24 = vadd.f32 1.0, %v8012_v47 }
 0x6a2   : > { %v1782_v40 = vmul.f32 %v1746_v24, %v1494_v15 }
 0x6a4   : > { %v1870_v53 = vpack.c.bf16 %v1782_v40, %v1778_v19  ;;  %v1649_v19 = vadd.f32 %v1613_v50, %v9240_v21 }
 0x6a8   : > { %2187 = vmatmul.bf16.gmra.mxu2 %v1870_v53 }
 0x6d0   : > { %v1363_v37 = vpop.f32.mrf.mxu1 }
 0x6d1   : > { %v9236_v43 = vadd.f32 %v1363_v37, %v8995_v9  ;;  %v1429_v16 = vpop.f32.mrf.mxu0 }
 0x6d2   : > { %v9243_v14 = vadd.f32 %v1429_v16, %v8963_v58 }
 0x6d3   : > { %v1531_v6 = vmul.f32 0.044715, %v9236_v43 }
 0x6d4   : > { %v1533_v17 = vmul.f32 0.044715, %v9243_v14 }
 0x6d5   : > { %v1567_v2 = vmul.f32 %v1531_v6, %v9236_v43 }
 0x6d6   : > { %v1569_v28 = vmul.f32 %v1533_v17, %v9243_v14  ;;  %v1396_v49 = vpop.f32.mrf.mxu3 }
 0x6d7   : > { %v9251_v55 = vadd.f32 %v1396_v49, %v9009_v38  ;;  %v1462_v1 = vpop.f32.mrf.mxu2  ;;  %v1603_v62 = vmul.f32 %v1567_v2, %v9236_v43 }
 0x6d8   : > { %v9255_v13 = vadd.f32 %v1462_v1, %v9128_v18  ;;  %v1365_v61 = vpop.f32.mrf.mxu1  ;;  %v1605_v44 = vmul.f32 %v1569_v28, %v9243_v14 }
 0x6d9   : > { %v1532_v25 = vmul.f32 0.044715, %v9251_v55  ;;  %v9260_v46 = vadd.f32 %v1365_v61, %v8995_v9  ;;  %v1431_v8 = vpop.f32.mrf.mxu0  ;;  %v1639_v30 = vadd.f32 %v1603_v62, %v9236_v43 }
 0x6da   : > { %v1534_v31 = vmul.f32 0.044715, %v9255_v13  ;;  %v9266_v36 = vadd.f32 %v1431_v8, %v8963_v58  ;;  %v1641_v35 = vadd.f32 %v1605_v44, %v9243_v14  ;;  %v1685_v8 = vmul.f32 0.7978846, %v1649_v19 }
 0x6db   : > { %v1568_v0 = vmul.f32 %v1532_v25, %v9251_v55  ;;  %v1535_v57 = vmul.f32 0.044715, %v9260_v46  ;;  %v1675_v20 = vmul.f32 0.7978846, %v1639_v30 }
 0x6dc   : > { %v1570_v59 = vmul.f32 %v1534_v31, %v9255_v13  ;;  %v1537_v10 = vmul.f32 0.044715, %v9266_v36  ;;  %v1677_v58 = vmul.f32 0.7978846, %v1641_v35 }
 0x6dd   : > { %v1571_v5 = vmul.f32 %v1535_v57, %v9260_v46  ;;  %v1604_v63 = vmul.f32 %v1568_v0, %v9251_v55  ;;  %8013 = vtanh.f32 %v1675_v20 }
 0x6de   : > { %v1573_v51 = vmul.f32 %v1537_v10, %v9266_v36  ;;  %v1398_v54 = vpop.f32.mrf.mxu3  ;;  %v1606_v52 = vmul.f32 %v1570_v59, %v9255_v13  ;;  %8015 = vtanh.f32 %v1677_v58 }
 0x6df   : > { %v9279_v22 = vadd.f32 %v1398_v54, %v9009_v38  ;;  %v1464_v11 = vpop.f32.mrf.mxu2  ;;  %v1607_v7 = vmul.f32 %v1571_v5, %v9260_v46  ;;  %v1640_v60 = vadd.f32 %v1604_v63, %v9251_v55  ;;  %v1499_v54 = vmul.f32 0.5, %v9260_v46 }
 0x6e0   : > { %v9284_v56 = vadd.f32 %v1464_v11, %v9128_v18  ;;  %v1368_v3 = vpop.f32.mrf.mxu1  ;;  %v1609_v26 = vmul.f32 %v1573_v51, %v9266_v36  ;;  %v1642_v47 = vadd.f32 %v1606_v52, %v9255_v13 }
 0x6e1   : > { %v1536_v15 = vmul.f32 0.044715, %v9279_v22  ;;  %v9290_v32 = vadd.f32 %v1368_v3, %v8995_v9  ;;  %v1643_v24 = vadd.f32 %v1607_v7, %v9260_v46  ;;  %v1676_v6 = vmul.f32 0.7978846, %v1640_v60 }
 0x6e2   : > { %v1538_v4 = vmul.f32 0.044715, %v9284_v56  ;;  %v1645_v40 = vadd.f32 %v1609_v26, %v9266_v36  ;;  %v1678_v2 = vmul.f32 0.7978846, %v1642_v47  ;;  %v1497_v60 = vmul.f32 0.5, %v9243_v14 }
 0x6e3   : > { %v1572_v53 = vmul.f32 %v1536_v15, %v9279_v22  ;;  %v1539_v37 = vmul.f32 0.044715, %v9290_v32  ;;  %v1679_v16 = vmul.f32 0.7978846, %v1643_v24  ;;  %v8014_v62 = vpop.eup %8013  ;;  %v1501_v3 = vmul.f32 0.5, %v9266_v36 }
 0x6e4   : > { %v1574_v17 = vmul.f32 %v1538_v4, %v9284_v56  ;;  %v1681_v9 = vmul.f32 0.7978846, %v1645_v40  ;;  %v8016_v30 = vpop.eup %8015  ;;  %v1747_v5 = vadd.f32 1.0, %v8014_v62 }
 0x6e5   : > { %v1575_v48 = vmul.f32 %v1539_v37, %v9290_v32  ;;  %8017 = vtanh.f32 %v1679_v16  ;;  %v1608_v28 = vmul.f32 %v1572_v53, %v9279_v22  ;;  %v1749_v58 = vadd.f32 1.0, %v8016_v30 }
 0x6e6   : > { %v1401_v49 = vpop.f32.mrf.mxu3  ;;  %8019 = vtanh.f32 %v1681_v9  ;;  %v1610_v1 = vmul.f32 %v1574_v17, %v9284_v56  ;;  %v1502_v30 = vmul.f32 0.5, %v9284_v56 }
 0x6e7   : > { %v9303_v61 = vadd.f32 %v1401_v49, %v9009_v38  ;;  %v1467_v44 = vpop.f32.mrf.mxu2  ;;  %v1644_v25 = vadd.f32 %v1608_v28, %v9279_v22  ;;  %8021 = vtanh.f32 %v1676_v6  ;;  %v1611_v0 = vmul.f32 %v1575_v48, %v9290_v32 }
 0x6e8   : > { %v9307_v12 = vadd.f32 %v1467_v44, %v9128_v18  ;;  %v1370_v31 = vpop.f32.mrf.mxu1  ;;  %v1646_v35 = vadd.f32 %v1610_v1, %v9284_v56  ;;  %8023 = vtanh.f32 %v1678_v2  ;;  %v1495_v38 = vmul.f32 0.5, %v9236_v43 }
 0x6e9   : > { %v1540_v57 = vmul.f32 0.044715, %v9303_v61  ;;  %v1680_v59 = vmul.f32 0.7978846, %v1644_v25  ;;  %v1647_v63 = vadd.f32 %v1611_v0, %v9290_v32  ;;  %v1785_v53 = vmul.f32 %v1749_v58, %v1497_v60 }
 0x6ea   : > { %v1542_v10 = vmul.f32 0.044715, %v9307_v12  ;;  %v1682_v20 = vmul.f32 0.7978846, %v1646_v35  ;;  %v1783_v4 = vmul.f32 %v1747_v5, %v1495_v38  ;;  %v1496_v49 = vmul.f32 0.5, %v9251_v55 }
 0x6eb   : > { %v8018_v51 = vpop.eup %8017  ;;  %v1576_v18 = vmul.f32 %v1540_v57, %v9303_v61  ;;  %8025 = vtanh.f32 %v1680_v59  ;;  %v1683_v43 = vmul.f32 0.7978846, %v1647_v63  ;;  %v1500_v1 = vmul.f32 0.5, %v9279_v22 }
 0x6ec   : > { %v8020_v52 = vpop.eup %8019  ;;  %v1578_v50 = vmul.f32 %v1542_v10, %v9307_v12  ;;  %v1751_v11 = vadd.f32 1.0, %v8018_v51  ;;  %8027 = vtanh.f32 %v1682_v20  ;;  %v1498_v25 = vmul.f32 0.5, %v9255_v13 }
 0x6ed   : > { %v8022_v7 = vpop.eup %8021  ;;  %v1753_v26 = vadd.f32 1.0, %v8020_v52  ;;  %v1612_v47 = vmul.f32 %v1576_v18, %v9303_v61  ;;  %8029 = vtanh.f32 %v1683_v43  ;;  %v1503_v13 = vmul.f32 0.5, %v9290_v32  ;;  %v9333_v52 = vld [vmem:[%s12125_s5 + $0x5] ss:$0 sm:$0xff] }
 0x6ee   : > { %v8024_v15 = vpop.eup %8023  ;;  %v1403_v24 = vpop.f32.mrf.mxu3  ;;  %v1787_v46 = vmul.f32 %v1751_v11, %v1499_v54  ;;  %v1614_v40 = vmul.f32 %v1578_v50, %v9307_v12  ;;  %v1748_v17 = vadd.f32 1.0, %v8022_v7  ;;  %8031 = vtanh.f32 %v1685_v8 }
 0x6ef   : > { %v1469_v19 = vpop.f32.mrf.mxu2  ;;  %v1789_v37 = vmul.f32 %v1753_v26, %v1501_v3  ;;  %v1648_v16 = vadd.f32 %v1612_v47, %v9303_v61  ;;  %v1750_v2 = vadd.f32 1.0, %v8024_v15  ;;  %v1505_v56 = vmul.f32 0.5, %v9240_v21  ;;  %v2146_v26 = vpop.f32.mrf.mxu0 }
 0x6f0   : > { %v1871_v6 = vpack.c.bf16 %v1787_v46, %v1783_v4  ;;  %v1650_v14 = vadd.f32 %v1614_v40, %v9307_v12  ;;  %v1784_v31 = vmul.f32 %v1748_v17, %v1496_v49  ;;  %v2082_v5 = vpop.f32.mrf.mxu1  ;;  %v1504_v7 = vmul.f32 0.5, %v9303_v61 }
 0x6f1   : > { %v8026_v36 = vpop.eup %8025  ;;  %v1873_v9 = vpack.c.bf16 %v1789_v37, %v1785_v53  ;;  %v1684_v48 = vmul.f32 0.7978846, %v1648_v16  ;;  %v1786_v57 = vmul.f32 %v1750_v2, %v1498_v25  ;;  %v1506_v32 = vmul.f32 0.5, %v9307_v12 }
 0x6f2   : > { %v8028_v28 = vpop.eup %8027  ;;  %2096 = vmatmul.bf16.gmra.mxu1 %v1871_v6  ;;  %v1752_v62 = vadd.f32 1.0, %v8026_v36  ;;  %v1686_v44 = vmul.f32 0.7978846, %v1650_v14  ;;  %v2083_v3 = vadd.f32 %v9333_v52, %v2082_v5 }
 0x6f3   : > { %2160 = vmatmul.bf16.gmra.mxu0 %v1873_v9  ;;  %v1754_v8 = vadd.f32 1.0, %v8028_v28  ;;  %v8030_v0 = vpop.eup %8029  ;;  %8033 = vtanh.f32 %v1684_v48 }
 0x6f4   : > { %v1788_v35 = vmul.f32 %v1752_v62, %v1500_v1  ;;  %v8032_v59 = vpop.eup %8031  ;;  %8035 = vtanh.f32 %v1686_v44  ;;  %v1755_v22 = vadd.f32 1.0, %v8030_v0 }
 0x6f5   : > { %v1790_v38 = vmul.f32 %v1754_v8, %v1502_v30  ;;  %v1757_v20 = vadd.f32 1.0, %v8032_v59 }
 0x6f6   : > { %v1872_v10 = vpack.c.bf16 %v1788_v35, %v1784_v31  ;;  %v1791_v18 = vmul.f32 %v1755_v22, %v1503_v13  ;;  %v2114_v54 = vpop.f32.mrf.mxu3 }
 0x6f7   : > { %v1874_v55 = vpack.c.bf16 %v1790_v38, %v1786_v57  ;;  %v1793_v58 = vmul.f32 %v1757_v20, %v1505_v56  ;;  %v2115_v24 = vadd.f32 %v2114_v54, %v2083_v3  ;;  %v2148_v6 = vpop.f32.mrf.mxu0 }
 0x6f8   : > { %2128 = vmatmul.bf16.gmra.mxu3 %v1872_v10  ;;  %v1875_v43 = vpack.c.bf16 %v1791_v18, %v1791_v18  ;;  %v2084_v47 = vpop.f32.mrf.mxu1 }
 0x6f9   : > { %2192 = vmatmul.bf16.gmra.mxu2 %v1874_v55  ;;  %v8034_v63 = vpop.eup %8033  ;;  %v1877_v60 = vpack.c.bf16 %v1793_v58, %v1793_v58  ;;  %v2147_v19 = vadd.f32 %v2146_v26, %v2115_v24  ;;  %v2085_v61 = vadd.f32 %v9333_v52, %v2084_v47 }
 0x6fa   : > { %v8036_v51 = vpop.eup %8035  ;;  %v1756_v50 = vadd.f32 1.0, %v8034_v63 }
 0x6fb   : > { %v1758_v11 = vadd.f32 1.0, %v8036_v51 }
 0x6fc   : > { %v1792_v21 = vmul.f32 %v1756_v50, %v1504_v7 }
 0x6fd   : > { %v1794_v15 = vmul.f32 %v1758_v11, %v1506_v32 }
 0x6fe   : > { %v1876_v4 = vpack.c.bf16 %v1792_v21, %v1792_v21  ;;  %v2116_v46 = vpop.f32.mrf.mxu3 }
 0x6ff   : > { %v1878_v40 = vpack.c.bf16 %v1794_v15, %v1794_v15  ;;  %v2117_v12 = vadd.f32 %v2116_v46, %v2085_v61  ;;  %v2151_v49 = vpop.f32.mrf.mxu0 }
 0x700   : > { %v2087_v17 = vpop.f32.mrf.mxu1 }
 0x701   : > { %v2149_v9 = vadd.f32 %v2148_v6, %v2117_v12  ;;  %v2088_v1 = vadd.f32 %v9333_v52, %v2087_v17 }
 0x702   : > { %2101 = vmatmul.bf16.gmra.mxu1 %v1875_v43 }
 0x703   : > { %2165 = vmatmul.bf16.gmra.mxu0 %v1877_v60 }
 0x707   : > { %v2153_v0 = vpop.f32.mrf.mxu0 }
 0x708   : > { %2133 = vmatmul.bf16.gmra.mxu3 %v1876_v4  ;;  %v2089_v62 = vpop.f32.mrf.mxu1 }
 0x709   : > { %v2178_v53 = vpop.f32.mrf.mxu2  ;;  %2197 = vmatmul.bf16.gmra.mxu2 %v1878_v40  ;;  %v2090_v31 = vadd.f32 %v9333_v52, %v2089_v62 }
 0x70a   : > { %v2179_v37 = vadd.f32 %v2178_v53, %v2147_v19  ;;  %v2119_v36 = vpop.f32.mrf.mxu3 }
 0x70b   : > { %v2120_v44 = vadd.f32 %v2119_v36, %v2088_v1 }
 0x70c   : > { %v9340_v16 = vadd.f32 %v2179_v37, %v8841_v23 }
 0x70d   : > { %v2152_v30 = vadd.f32 %v2151_v49, %v2120_v44 }
 0x70e   : > { %v2211_v14 = vsel %vm616_vm1, %v9340_v16, 0.0 }
 0x70f   : > { %2212 = vadd.xlane.f32.xlu0 %v2211_v14  ;;  %v2156_v56 = vpop.f32.mrf.mxu0 }
 0x710   : > { %v2092_v38 = vpop.f32.mrf.mxu1 }
 0x711   : > { %v2180_v2 = vpop.f32.mrf.mxu2  ;;  %v2093_v5 = vadd.f32 %v9333_v52, %v2092_v38 }
 0x712   : > { %v2181_v48 = vadd.f32 %v2180_v2, %v2149_v9  ;;  %v2121_v25 = vpop.f32.mrf.mxu3 }
 0x713   : > { %v2122_v57 = vadd.f32 %v2121_v25, %v2090_v31 }
 0x714   : > { %v9345_v28 = vadd.f32 %v2181_v48, %v8844_v27 }
 0x715   : > { %v2154_v55 = vadd.f32 %v2153_v0, %v2122_v57 }
 0x716   : > { %v2214_v23 = vsel %vm616_vm1, %v9345_v28, 0.0 }
 0x717   : > { %2215 = vadd.xlane.f32.xlu1 %v2214_v23  ;;  %v2158_v60 = vpop.f32.mrf.mxu0 }
 0x718   : > { %v2094_v51 = vpop.f32.mrf.mxu1 }
 0x719   : > { %v2095_v50 = vadd.f32 %v9333_v52, %v2094_v51 }
 0x71a   : > { %v2124_v10 = vpop.f32.mrf.mxu3 }
 0x71b   : > { %v2183_v8 = vpop.f32.mrf.mxu2  ;;  %v2125_v13 = vadd.f32 %v2124_v10, %v2093_v5  ;;  %v2419_v5 = vld [vmem:[%s12125_s5 + $0x78] sm:$0xff] }
 0x71c   : > { %v2184_v35 = vadd.f32 %v2183_v8, %v2152_v30 }
 0x71d   : > { %v2157_v18 = vadd.f32 %v2156_v56, %v2125_v13  ;;  %v2418_v56 = vld [vmem:[%s12125_s5 + $0x70] sm:$0xff] }
 0x71e   : > { %v9352_v27 = vadd.f32 %v2184_v35, %v8896_v39 }
 0x720   : > { %v2217_v59 = vsel %vm616_vm1, %v9352_v27, 0.0 }
 0x721   : > { %2218 = vadd.xlane.f32.xlu2 %v2217_v59 }
 0x722   : > { %v2126_v54 = vpop.f32.mrf.mxu3 }
 0x723   : > { %v2185_v22 = vpop.f32.mrf.mxu2  ;;  %v2127_v43 = vadd.f32 %v2126_v54, %v2095_v50  ;;  %v2416_v50 = vld [vmem:[%s12125_s5 + $0x60] sm:$0xff] }
 0x724   : > { %v2186_v20 = vadd.f32 %v2185_v22, %v2154_v55 }
 0x725   : > { %v2159_v32 = vadd.f32 %v2158_v60, %v2127_v43 }
 0x726   : > { %v9358_v63 = vadd.f32 %v2186_v20, %v8899_v29 }
 0x728   : > { %v2220_v39 = vsel %vm616_vm1, %v9358_v63, 0.0 }
 0x729   : > { %2221 = vadd.xlane.f32.xlu0 %v2220_v39 }
 0x72b   : > { %v2188_v58 = vpop.f32.mrf.mxu2 }
 0x72c   : > { %v2189_v11 = vadd.f32 %v2188_v58, %v2157_v18 }
 0x72e   : > { %v9364_v7 = vadd.f32 %v2189_v11, %v8917_v42 }
 0x730   : > { %v2223_v29 = vsel %vm616_vm1, %v9364_v7, 0.0 }
 0x731   : > { %2224 = vadd.xlane.f32.xlu1 %v2223_v29 }
 0x733   : > { %v2190_v3 = vpop.f32.mrf.mxu2 }
 0x734   : > { %v2191_v21 = vadd.f32 %v2190_v3, %v2159_v32  ;;  %v2414_v3 = vld [vmem:[%s12125_s5 + $0x50] sm:$0xff] }
 0x736   : > { %v9369_v26 = vadd.f32 %v2191_v21, %v8914_v45 }
 0x738   : > { %v2226_v47 = vsel %vm616_vm1, %v9369_v26, 0.0 }
 0x739   : > { %2227 = vadd.xlane.f32.xlu2 %v2226_v47 }
 0x76f   : > { %v2097_v15 = vpop.f32.mrf.mxu1 }
 0x770   : > { %v2161_v24 = vpop.f32.mrf.mxu0  ;;  %v2098_v46 = vadd.f32 %v9333_v52, %v2097_v15 }
 0x777   : > { %v2099_v4 = vpop.f32.mrf.mxu1 }
 0x778   : > { %v2163_v42 = vpop.f32.mrf.mxu0  ;;  %v2100_v45 = vadd.f32 %v9333_v52, %v2099_v4 }
 0x77b   : > { %v2129_v40 = vpop.f32.mrf.mxu3 }
 0x77c   : > { %v2130_v19 = vadd.f32 %v2129_v40, %v2098_v46  ;;  %v2193_v53 = vpop.f32.mrf.mxu2  ;;  %v2412_v46 = vld [vmem:[%s12125_s5 + $0x40] sm:$0xff] }
 0x77e   : > { %v2162_v61 = vadd.f32 %v2161_v24, %v2130_v19 }
 0x77f   : > { %v2102_v37 = vpop.f32.mrf.mxu1 }
 0x780   : > { %v2194_v12 = vadd.f32 %v2193_v53, %v2162_v61  ;;  %v2166_v6 = vpop.f32.mrf.mxu0  ;;  %v2410_v53 = vld [vmem:[%s12125_s5 + $0x30] sm:$0xff] }
 0x782   : > { %v2213_v17 = vpop.xlane.xlu0 %2212  ;;  %v9376_v14 = vadd.f32 %v2194_v12, %v9084_v33 }
 0x783   : > { %v2235_v36 = vmul.f32 %v2213_v17, %v8714_v41  ;;  %v2131_v9 = vpop.f32.mrf.mxu3 }
 0x784   : > { %v2132_v2 = vadd.f32 %v2131_v9, %v2100_v45  ;;  %v2195_v48 = vpop.f32.mrf.mxu2  ;;  %v2229_v49 = vsel %vm616_vm1, %v9376_v14, 0.0  ;;  %v2409_v45 = vld [vmem:[%s12125_s5 + $0x28] sm:$0xff] }
 0x785   : > { %v9382_v1 = vsub.f32 %v9340_v16, %v2235_v36  ;;  %2230 = vadd.xlane.f32.xlu1 %v2229_v49 }
 0x786   : > { %v2164_v23 = vadd.f32 %v2163_v42, %v2132_v2 }
 0x787   : > { %v2103_v62 = vpop.f32.mrf.mxu1  ;;  %v2251_v52 = vmul.f32 %v9382_v1, %v9382_v1 }
 0x788   : > { %v2167_v44 = vpop.f32.mrf.mxu0  ;;  %v2196_v33 = vadd.f32 %v2195_v48, %v2164_v23 }
 0x789   : > { %v2259_v25 = vsel %vm616_vm1, %v2251_v52, 0.0  ;;  %v2407_v44 = vld [vmem:[%s12125_s5 + $0x18] sm:$0xff] }
 0x78a   : > { %v2216_v30 = vpop.xlane.xlu1 %2215  ;;  %2260 = vadd.xlane.f32.xlu0 %v2259_v25  ;;  %v9392_v16 = vadd.f32 %v2196_v33, %v9087_v34 }
 0x78b   : > { %v2236_v8 = vmul.f32 %v2216_v30, %v8714_v41  ;;  %v2134_v31 = vpop.f32.mrf.mxu3  ;;  %v2406_v30 = vld [vmem:[%s12125_s5 + $0x10] sm:$0xff] }
 0x78c   : > { %v2198_v35 = vpop.f32.mrf.mxu2  ;;  %v2232_v59 = vsel %vm616_vm1, %v9392_v16, 0.0 }
 0x78d   : > { %v9389_v0 = vsub.f32 %v9345_v28, %v2236_v8  ;;  %v2420_v28 = vld [vmem:[%s12125_s5 + $0x80] sm:$0xff] }
 0x78e   : > { %7244 = vmatpush.xpose.msk.msra.mxu1 %vm616_vm1, %v2420_v28 }
 0x78f   : > { %v2252_v57 = vmul.f32 %v9389_v0, %v9389_v0 }
 0x791   : > { %v2262_v38 = vsel %vm616_vm1, %v2252_v57, 0.0 }
 0x792   : > { %2263 = vadd.xlane.f32.xlu2 %v2262_v38  ;;  %2233 = vadd.xlane.f32.xlu0 %v2232_v59  ;;  %v2405_v38 = vld [vmem:[%s12125_s5 + $0x8] sm:$0xff] }
 0x793   : > { %v2135_v10 = vpop.f32.mrf.mxu3  ;;  %7245 = vmatpush.xpose.msk.msra.mxu1 %vm616_vm1, %v2419_v5 }
 0x794   : > { %v2199_v55 = vpop.f32.mrf.mxu2  ;;  %v2219_v22 = vpop.xlane.xlu2 %2218 }
 0x795   : > { %v2237_v34 = vmul.f32 %v2219_v22, %v8714_v41  ;;  %v9510_v22 = vld [vmem:[%s12125_s5 + $0x6] ss:$0 sm:$0xff] }
 0x797   : > { %v9408_v20 = vsub.f32 %v9352_v27, %v2237_v34  ;;  %7246 = vmatpush.xpose.msk.msra.mxu1 %vm616_vm1, %v2418_v56  ;;  %v2417_v27 = vld [vmem:[%s12125_s5 + $0x68] sm:$0xff] }
 0x799   : > { %v2253_v13 = vmul.f32 %v9408_v20, %v9408_v20 }
 0x79b   : > { %v2265_v39 = vsel %vm616_vm1, %v2253_v13, 0.0  ;;  %7247 = vmatpush.xpose.msk.msra.mxu1 %vm616_vm1, %v2417_v27  ;;  %v9516_v13 = vld [vmem:[%s12125_s5 + $0x7] ss:$0 sm:$0xff] }
 0x79c   : > { %2266 = vadd.xlane.f32.xlu1 %v2265_v39  ;;  %v2222_v51 = vpop.xlane.xlu0 %2221 }
 0x79d   : > { %v2238_v18 = vmul.f32 %v2222_v51, %v8714_v41 }
 0x79f   : > { %v9423_v54 = vsub.f32 %v9358_v63, %v2238_v18  ;;  %7248 = vmatpush.xpose.msk.msra.mxu1 %vm616_vm1, %v2416_v50  ;;  %v2415_v63 = vld [vmem:[%s12125_s5 + $0x58] sm:$0xff] }
 0x7a1   : > { %v2254_v58 = vmul.f32 %v9423_v54, %v9423_v54 }
 0x7a3   : > { %v2268_v11 = vsel %vm616_vm1, %v2254_v58, 0.0  ;;  %7249 = vmatpush.xpose.msk.msra.mxu1 %vm616_vm1, %v2415_v63 }
 0x7a4   : > { %v2225_v43 = vpop.xlane.xlu1 %2224  ;;  %2269 = vadd.xlane.f32.xlu2 %v2268_v11 }
 0x7a5   : > { %v2239_v29 = vmul.f32 %v2225_v43, %v8714_v41 }
 0x7a7   : > { %v9438_v60 = vsub.f32 %v9364_v7, %v2239_v29  ;;  %7250 = vmatpush.xpose.msk.msra.mxu1 %vm616_vm1, %v2414_v3  ;;  %v2413_v7 = vld [vmem:[%s12125_s5 + $0x48] sm:$0xff] }
 0x7a9   : > { %v2255_v32 = vmul.f32 %v9438_v60, %v9438_v60 }
 0x7ab   : > { %v2271_v21 = vsel %vm616_vm1, %v2255_v32, 0.0  ;;  %7251 = vmatpush.xpose.msk.msra.mxu1 %vm616_vm1, %v2413_v7 }
 0x7ac   : > { %v2228_v47 = vpop.xlane.xlu2 %2227  ;;  %2272 = vadd.xlane.f32.xlu0 %v2271_v21 }
 0x7ad   : > { %v2240_v15 = vmul.f32 %v2228_v47, %v8714_v41 }
 0x7af   : > { %v9453_v24 = vsub.f32 %v9369_v26, %v2240_v15  ;;  %7252 = vmatpush.xpose.msk.msra.mxu1 %vm616_vm1, %v2412_v46  ;;  %v2411_v26 = vld [vmem:[%s12125_s5 + $0x38] sm:$0xff] }
 0x7b1   : > { %v2256_v4 = vmul.f32 %v9453_v24, %v9453_v24 }
 0x7b3   : > { %v2274_v42 = vsel %vm616_vm1, %v2256_v4, 0.0  ;;  %7253 = vmatpush.xpose.msk.msra.mxu1 %vm616_vm1, %v2411_v26 }
 0x7b4   : > { %2275 = vadd.xlane.f32.xlu1 %v2274_v42 }
 0x7b7   : > { %7254 = vmatpush.xpose.msk.msra.mxu1 %vm616_vm1, %v2410_v53 }
 0x7bb   : > { %7255 = vmatpush.xpose.msk.msra.mxu1 %vm616_vm1, %v2409_v45 }
 0x7f8   : > { %v2231_v40 = vpop.xlane.xlu1 %2230 }
 0x7f9   : > { %v2241_v19 = vmul.f32 %v2231_v40, %v8714_v41 }
 0x7fb   : > { %v9472_v61 = vsub.f32 %v9376_v14, %v2241_v19  ;;  %v2408_v14 = vld [vmem:[%s12125_s5 + $0x20] sm:$0xff] }
 0x7fc   : > { %7256 = vmatpush.xpose.msk.msra.mxu1 %vm616_vm1, %v2408_v14 }
 0x7fd   : > { %v2261_v37 = vpop.xlane.xlu0 %2260  ;;  %v2257_v12 = vmul.f32 %v9472_v61, %v9472_v61 }
 0x7fe   : > { %v2283_v6 = vmul.f32 %v2261_v37, %v8714_v41 }
 0x7ff   : > { %v2277_v17 = vsel %vm616_vm1, %v2257_v12, 0.0 }
 0x800   : > { %v2291_v36 = vadd.f32 1e-12, %v2283_v6  ;;  %2278 = vadd.xlane.f32.xlu2 %v2277_v17  ;;  %7257 = vmatpush.xpose.msk.msra.mxu1 %vm616_vm1, %v2407_v44 }
 0x802   : > { %8037 = vrsqrt.f32 %v2291_v36  ;;  %vm2305_vm3 = vweird.f32 %v2291_v36 }
 0x804   : > { %7258 = vmatpush.xpose.msk.msra.mxu1 %vm616_vm1, %v2406_v30 }
 0x805   : > { %v2264_v9 = vpop.xlane.xlu2 %2263  ;;  %v2234_v2 = vpop.xlane.xlu0 %2233 }
 0x806   : > { %v2284_v48 = vmul.f32 %v2264_v9, %v8714_v41  ;;  %v2242_v49 = vmul.f32 %v2234_v2, %v8714_v41 }
 0x808   : > { %v8038_v23 = vpop.eup %8037  ;;  %v2292_v62 = vadd.f32 1e-12, %v2284_v48  ;;  %v9490_v52 = vsub.f32 %v9392_v16, %v2242_v49  ;;  %7259 = vmatpush.xpose.msk.msra.mxu1 %vm616_vm1, %v2405_v38 }
 0x809   : > { %v2300_v33 = vmul.f32 %v8038_v23, %v2291_v36  ;;  %vm2306_vm2 = vweird.f32 %v8038_v23 }
 0x80a   : > { %8039 = vrsqrt.f32 %v2292_v62  ;;  %v2258_v25 = vmul.f32 %v9490_v52, %v9490_v52  ;;  %vm2307_vm4 = vmor %vm2305_vm3, %vm2306_vm2  ;;  %vm2315_vm6 = vweird.f32 %v2292_v62 }
 0x80b   : > { %v2301_v8 = vmul.f32 %v8038_v23, %v2300_v33 }
 0x80c   : > { %v2280_v31 = vsel %vm616_vm1, %v2258_v25, 0.0 }
 0x80d   : > { %v2302_v35 = vmul.f32 0.5, %v2301_v8  ;;  %2281 = vadd.xlane.f32.xlu0 %v2280_v31 }
 0x80f   : > { %v2303_v16 = vsub.f32 1.5, %v2302_v35  ;;  %v2267_v55 = vpop.xlane.xlu1 %2266 }
 0x810   : > { %v8040_v57 = vpop.eup %8039  ;;  %v2285_v28 = vmul.f32 %v2267_v55, %v8714_v41 }
 0x811   : > { %v2304_v59 = vmul.f32 %v8038_v23, %v2303_v16  ;;  %v2310_v10 = vmul.f32 %v8040_v57, %v2292_v62  ;;  %vm2316_vm5 = vweird.f32 %v8040_v57 }
 0x812   : > { %v2293_v39 = vadd.f32 1e-12, %v2285_v28  ;;  %vm2317_vm7 = vmor %vm2315_vm6, %vm2316_vm5 }
 0x813   : > { %v2308_v34 = vsel %vm2307_vm4, %v8038_v23, %v2304_v59  ;;  %v2311_v5 = vmul.f32 %v8040_v57, %v2310_v10 }
 0x814   : > { %v2379_v56 = vmul.f32 %v2308_v34, %v9382_v1  ;;  %8041 = vrsqrt.f32 %v2293_v39  ;;  %vm2325_vm9 = vweird.f32 %v2293_v39 }
 0x815   : > { %v2312_v51 = vmul.f32 0.5, %v2311_v5 }
 0x816   : > { %v2388_v18 = vmul.f32 %v9510_v22, %v2379_v56 }
 0x817   : > { %v2313_v27 = vsub.f32 1.5, %v2312_v51  ;;  %v2270_v11 = vpop.xlane.xlu2 %2269 }
 0x818   : > { %v2397_v58 = vadd.f32 %v9516_v13, %v2388_v18  ;;  %v2286_v43 = vmul.f32 %v2270_v11, %v8714_v41 }
 0x819   : > { %v2314_v50 = vmul.f32 %v8040_v57, %v2313_v27 }
 0x81a   : > { %7260 = vmatmul.msk.f32.vlgmr.msra.gmra.mxu1 %vm616_vm1, %v2397_v58  ;;  %v2422_v29 = vmul.f32 %v2397_v58, %v2397_v58  ;;  %v8042_v1 = vpop.eup %8041  ;;  %v2294_v3 = vadd.f32 1e-12, %v2286_v43 }
 0x81b   : > { %v2318_v63 = vsel %vm2317_vm7, %v8040_v57, %v2314_v50  ;;  %v2320_v47 = vmul.f32 %v8042_v1, %v2293_v39  ;;  %vm2326_vm8 = vweird.f32 %v8042_v1 }
 0x81c   : > { %v2380_v32 = vmul.f32 %v2318_v63, %v9389_v0  ;;  %v2430_v21 = vsel %vm616_vm1, %v2422_v29, 0.0  ;;  %8043 = vrsqrt.f32 %v2294_v3  ;;  %vm2327_vm10 = vmor %vm2325_vm9, %vm2326_vm8  ;;  %vm2335_vm12 = vweird.f32 %v2294_v3 }
 0x81d   : > { %2431 = vadd.xlane.f32.xlu1 %v2430_v21  ;;  %v2321_v7 = vmul.f32 %v8042_v1, %v2320_v47 }
 0x81e   : > { %v2389_v15 = vmul.f32 %v9510_v22, %v2380_v32 }
 0x81f   : > { %v2322_v42 = vmul.f32 0.5, %v2321_v7  ;;  %v2273_v46 = vpop.xlane.xlu0 %2272 }
 0x820   : > { %v2398_v4 = vadd.f32 %v9516_v13, %v2389_v15  ;;  %v2287_v40 = vmul.f32 %v2273_v46, %v8714_v41 }
 0x821   : > { %v2323_v19 = vsub.f32 1.5, %v2322_v42 }
 0x822   : > { %7261 = vmatmul.msk.f32.gmra.mxu1 %vm616_vm1, %v2398_v4  ;;  %v2423_v26 = vmul.f32 %v2398_v4, %v2398_v4  ;;  %v8044_v0 = vpop.eup %8043  ;;  %v2295_v53 = vadd.f32 1e-12, %v2287_v40 }
 0x823   : > { %v2324_v12 = vmul.f32 %v8042_v1, %v2323_v19  ;;  %v2330_v6 = vmul.f32 %v8044_v0, %v2294_v3  ;;  %vm2336_vm11 = vweird.f32 %v8044_v0 }
 0x824   : > { %v2433_v37 = vsel %vm616_vm1, %v2423_v26, 0.0  ;;  %8045 = vrsqrt.f32 %v2295_v53  ;;  %vm2337_vm13 = vmor %vm2335_vm12, %vm2336_vm11  ;;  %vm2345_vm15 = vweird.f32 %v2295_v53 }
 0x825   : > { %2434 = vadd.xlane.f32.xlu2 %v2433_v37  ;;  %v2328_v45 = vsel %vm2327_vm10, %v8042_v1, %v2324_v12  ;;  %v2331_v17 = vmul.f32 %v8044_v0, %v2330_v6 }
 0x826   : > { %v2381_v36 = vmul.f32 %v2328_v45, %v9408_v20 }
 0x827   : > { %v2332_v14 = vmul.f32 0.5, %v2331_v17  ;;  %v2276_v9 = vpop.xlane.xlu1 %2275 }
 0x828   : > { %v2288_v2 = vmul.f32 %v2276_v9, %v8714_v41  ;;  %v2390_v48 = vmul.f32 %v9510_v22, %v2381_v36 }
 0x829   : > { %v2333_v49 = vsub.f32 1.5, %v2332_v14 }
 0x82a   : > { %v8046_v23 = vpop.eup %8045  ;;  %v2296_v62 = vadd.f32 1e-12, %v2288_v2  ;;  %v2399_v44 = vadd.f32 %v9516_v13, %v2390_v48 }
 0x82b   : > { %v2334_v33 = vmul.f32 %v8044_v0, %v2333_v49  ;;  %v2340_v25 = vmul.f32 %v8046_v23, %v2295_v53  ;;  %vm2346_vm14 = vweird.f32 %v8046_v23 }
 0x82c   : > { %8047 = vrsqrt.f32 %v2296_v62  ;;  %7262 = vmatmul.msk.f32.gmra.mxu1 %vm616_vm1, %v2399_v44  ;;  %v2424_v20 = vmul.f32 %v2399_v44, %v2399_v44  ;;  %vm2347_vm0 = vmor %vm2345_vm15, %vm2346_vm14  ;;  %vm2355_vm3 = vweird.f32 %v2296_v62 }
 0x82d   : > { %v2338_v30 = vsel %vm2337_vm13, %v8044_v0, %v2334_v33  ;;  %v2341_v8 = vmul.f32 %v8046_v23, %v2340_v25 }
 0x82e   : > { %v2382_v31 = vmul.f32 %v2338_v30, %v9423_v54  ;;  %v2436_v35 = vsel %vm616_vm1, %v2424_v20, 0.0 }
 0x82f   : > { %v2342_v16 = vmul.f32 0.5, %v2341_v8  ;;  %2437 = vadd.xlane.f32.xlu0 %v2436_v35 }
 0x830   : > { %v2391_v57 = vmul.f32 %v9510_v22, %v2382_v31 }
 0x831   : > { %v2343_v38 = vsub.f32 1.5, %v2342_v16 }
 0x832   : > { %v8048_v59 = vpop.eup %8047  ;;  %v2400_v10 = vadd.f32 %v9516_v13, %v2391_v57 }
 0x833   : > { %v2344_v55 = vmul.f32 %v8046_v23, %v2343_v38  ;;  %v2350_v28 = vmul.f32 %v8048_v59, %v2296_v62  ;;  %vm2356_vm2 = vweird.f32 %v8048_v59 }
 0x834   : > { %7263 = vmatmul.msk.f32.gmra.mxu1 %vm616_vm1, %v2400_v10  ;;  %v2425_v34 = vmul.f32 %v2400_v10, %v2400_v10  ;;  %vm2357_vm4 = vmor %vm2355_vm3, %vm2356_vm2 }
 0x835   : > { %v2348_v5 = vsel %vm2347_vm0, %v8046_v23, %v2344_v55  ;;  %v2351_v54 = vmul.f32 %v8048_v59, %v2350_v28 }
 0x836   : > { %v2383_v56 = vmul.f32 %v2348_v5, %v9438_v60  ;;  %v2439_v39 = vsel %vm616_vm1, %v2425_v34, 0.0 }
 0x837   : > { %v2352_v51 = vmul.f32 0.5, %v2351_v54  ;;  %2440 = vadd.xlane.f32.xlu1 %v2439_v39 }
 0x838   : > { %v2392_v18 = vmul.f32 %v9510_v22, %v2383_v56 }
 0x839   : > { %v2353_v27 = vsub.f32 1.5, %v2352_v51 }
 0x83a   : > { %v2401_v58 = vadd.f32 %v9516_v13, %v2392_v18 }
 0x83b   : > { %v2354_v50 = vmul.f32 %v8048_v59, %v2353_v27 }
 0x83c   : > { %7264 = vmatmul.msk.f32.gmra.mxu1 %vm616_vm1, %v2401_v58  ;;  %v2426_v11 = vmul.f32 %v2401_v58, %v2401_v58 }
 0x83d   : > { %v2358_v43 = vsel %vm2357_vm4, %v8048_v59, %v2354_v50 }
 0x83e   : > { %v2384_v29 = vmul.f32 %v2358_v43, %v9453_v24  ;;  %v2442_v60 = vsel %vm616_vm1, %v2426_v11, 0.0 }
 0x83f   : > { %2443 = vadd.xlane.f32.xlu2 %v2442_v60 }
 0x840   : > { %v2393_v63 = vmul.f32 %v9510_v22, %v2384_v29 }
 0x842   : > { %v2402_v1 = vadd.f32 %v9516_v13, %v2393_v63 }
 0x844   : > { %7265 = vmatmul.msk.f32.gmra.mxu1 %vm616_vm1, %v2402_v1  ;;  %v2427_v32 = vmul.f32 %v2402_v1, %v2402_v1 }
 0x846   : > { %v2445_v3 = vsel %vm616_vm1, %v2427_v32, 0.0  ;;  %v12128_v32 = vlaneseq }
 0x847   : > { %2446 = vadd.xlane.f32.xlu0 %v2445_v3 }
 0x873   : > { %v2279_v21 = vpop.xlane.xlu2 %2278 }
 0x874   : > { %v2289_v47 = vmul.f32 %v2279_v21, %v8714_v41 }
 0x876   : > { %v2297_v15 = vadd.f32 1e-12, %v2289_v47  ;;  %v9575_v47 = vand.u32 127, %v12128_v32 }
 0x878   : > { %8049 = vrsqrt.f32 %v2297_v15  ;;  %vm2365_vm6 = vweird.f32 %v2297_v15  ;;  %12169 = vst [vmem:[#allocation3_spill] sm:$0xff] %v9575_v47 }
 0x87e   : > { %v8050_v7 = vpop.eup %8049 }
 0x87f   : > { %v2360_v24 = vmul.f32 %v8050_v7, %v2297_v15  ;;  %vm2366_vm5 = vweird.f32 %v8050_v7 }
 0x880   : > { %v2282_v4 = vpop.xlane.xlu0 %2281  ;;  %vm2367_vm7 = vmor %vm2365_vm6, %vm2366_vm5 }
 0x881   : > { %v2361_v42 = vmul.f32 %v8050_v7, %v2360_v24  ;;  %v2290_v46 = vmul.f32 %v2282_v4, %v8714_v41 }
 0x883   : > { %v2362_v40 = vmul.f32 0.5, %v2361_v42  ;;  %v2298_v26 = vadd.f32 1e-12, %v2290_v46 }
 0x885   : > { %v2363_v19 = vsub.f32 1.5, %v2362_v40  ;;  %8051 = vrsqrt.f32 %v2298_v26  ;;  %vm2375_vm9 = vweird.f32 %v2298_v26 }
 0x887   : > { %v2364_v0 = vmul.f32 %v8050_v7, %v2363_v19 }
 0x889   : > { %v2368_v53 = vsel %vm2367_vm7, %v8050_v7, %v2364_v0 }
 0x88a   : > { %v2385_v37 = vmul.f32 %v2368_v53, %v9472_v61  ;;  %v9561_v61 = vld [vmem:[%s12124_s4 + $0x2] ss:$0 sm:$0xff] }
 0x88b   : > { %v8052_v12 = vpop.eup %8051 }
 0x88c   : > { %v2370_v6 = vmul.f32 %v8052_v12, %v2298_v26  ;;  %v2394_v45 = vmul.f32 %v9510_v22, %v2385_v37  ;;  %vm2376_vm8 = vweird.f32 %v8052_v12 }
 0x88d   : > { %vm2377_vm10 = vmor %vm2375_vm9, %vm2376_vm8 }
 0x88e   : > { %v2371_v17 = vmul.f32 %v8052_v12, %v2370_v6  ;;  %v2403_v36 = vadd.f32 %v9516_v13, %v2394_v45 }
 0x890   : > { %v2372_v14 = vmul.f32 0.5, %v2371_v17  ;;  %7266 = vmatmul.msk.f32.gmra.mxu1 %vm616_vm1, %v2403_v36  ;;  %v2428_v9 = vmul.f32 %v2403_v36, %v2403_v36  ;;  %v2432_v23 = vpop.xlane.xlu1 %2431 }
 0x891   : > { %v2454_v25 = vadd.f32 %v2432_v23, %v9561_v61 }
 0x892   : > { %v2373_v2 = vsub.f32 1.5, %v2372_v14  ;;  %v2448_v48 = vsel %vm616_vm1, %v2428_v9, 0.0 }
 0x893   : > { %2449 = vadd.xlane.f32.xlu2 %v2448_v48 }
 0x894   : > { %v2374_v49 = vmul.f32 %v8052_v12, %v2373_v2 }
 0x896   : > { %v2378_v62 = vsel %vm2377_vm10, %v8052_v12, %v2374_v49 }
 0x897   : > { %v2386_v44 = vmul.f32 %v2378_v62, %v9490_v52  ;;  %v2551_v33 = vpop.f32.mrf.mxu1 }
 0x898   : > { %v2575_v20 = vmul.f32 2.0, %v2551_v33  ;;  %v2435_v35 = vpop.xlane.xlu2 %2434 }
 0x899   : > { %v2395_v30 = vmul.f32 %v9510_v22, %v2386_v44  ;;  %v2455_v38 = vadd.f32 %v2435_v35, %v9561_v61 }
 0x89a   : > { %v2583_v8 = vsub.f32 %v2454_v25, %v2575_v20 }
 0x89b   : > { %v2404_v31 = vadd.f32 %v9516_v13, %v2395_v30 }
 0x89c   : > { %2591 = vmin.xlane.f32.xlu1 %v2583_v8 }
 0x89d   : > { %7267 = vmatmul.msk.f32.gmra.mxu1 %vm616_vm1, %v2404_v31  ;;  %v2429_v57 = vmul.f32 %v2404_v31, %v2404_v31 }
 0x89f   : > { %v2554_v16 = vpop.f32.mrf.mxu1  ;;  %v2451_v52 = vsel %vm616_vm1, %v2429_v57, 0.0 }
 0x8a0   : > { %v2576_v59 = vmul.f32 2.0, %v2554_v16 }
 0x8a2   : > { %v2584_v10 = vsub.f32 %v2455_v38, %v2576_v59  ;;  %v2438_v55 = vpop.xlane.xlu0 %2437 }
 0x8a3   : > { %v2456_v22 = vadd.f32 %v2438_v55, %v9561_v61 }
 0x8a4   : > { %2593 = vmin.xlane.f32.xlu0 %v2584_v10  ;;  %2452 = vadd.xlane.f32.xlu1 %v2451_v52 }
 0x8a9   : > { %v2557_v28 = vpop.f32.mrf.mxu1 }
 0x8aa   : > { %v2577_v34 = vmul.f32 2.0, %v2557_v28  ;;  %v2441_v5 = vpop.xlane.xlu1 %2440 }
 0x8ab   : > { %v2457_v56 = vadd.f32 %v2441_v5, %v9561_v61 }
 0x8ac   : > { %v2585_v13 = vsub.f32 %v2456_v22, %v2577_v34 }
 0x8ae   : > { %2595 = vmin.xlane.f32.xlu2 %v2585_v13 }
 0x8b1   : > { %v2560_v54 = vpop.f32.mrf.mxu1 }
 0x8b2   : > { %v2578_v39 = vmul.f32 2.0, %v2560_v54  ;;  %v2444_v18 = vpop.xlane.xlu2 %2443 }
 0x8b3   : > { %v2458_v58 = vadd.f32 %v2444_v18, %v9561_v61  ;;  %v2775_v18 = vld [vmem:[%s12125_s5 + $0xf8] sm:$0xff] }
 0x8b4   : > { %v2586_v51 = vsub.f32 %v2457_v56, %v2578_v39 }
 0x8b6   : > { %2597 = vmin.xlane.f32.xlu0 %v2586_v51 }
 0x8b9   : > { %v2563_v27 = vpop.f32.mrf.mxu1 }
 0x8ba   : > { %v2579_v50 = vmul.f32 2.0, %v2563_v27  ;;  %v2447_v43 = vpop.xlane.xlu0 %2446 }
 0x8bb   : > { %v2459_v60 = vadd.f32 %v2447_v43, %v9561_v61 }
 0x8bc   : > { %v2587_v11 = vsub.f32 %v2458_v58, %v2579_v50  ;;  %v2774_v58 = vld [vmem:[%s12125_s5 + $0xf0] sm:$0xff]  ;;  %v2773_v50 = vld [vmem:[%s12125_s5 + $0xe8] sm:$0xff] }
 0x8be   : > { %2599 = vmin.xlane.f32.xlu1 %v2587_v11 }
 0x8c1   : > { %v2566_v29 = vpop.f32.mrf.mxu1 }
 0x8c2   : > { %v2580_v63 = vmul.f32 2.0, %v2566_v29  ;;  %v2772_v29 = vld [vmem:[%s12125_s5 + $0xe0] sm:$0xff] }
 0x8c4   : > { %v2588_v1 = vsub.f32 %v2459_v60, %v2580_v63  ;;  %v2771_v63 = vld [vmem:[%s12125_s5 + $0xd8] sm:$0xff] }
 0x8c6   : > { %2601 = vmin.xlane.f32.xlu2 %v2588_v1 }
 0x906   : > { %v2450_v3 = vpop.xlane.xlu2 %2449 }
 0x907   : > { %v2460_v15 = vadd.f32 %v2450_v3, %v9561_v61  ;;  %v2770_v3 = vld [vmem:[%s12125_s5 + $0xd0] sm:$0xff] }
 0x90d   : > { %v2569_v21 = vpop.f32.mrf.mxu1 }
 0x90e   : > { %v2581_v7 = vmul.f32 2.0, %v2569_v21  ;;  %v2769_v21 = vld [vmem:[%s12125_s5 + $0xc8] sm:$0xff] }
 0x90f   : > { %v2592_v24 = vpop.xlane.xlu1 %2591 }
 0x910   : > { %vm2609_vm11 = vcmp.le.f32.partialorder %v2583_v8, %v2592_v24  ;;  %v2589_v4 = vsub.f32 %v2460_v15, %v2581_v7  ;;  %v2768_v24 = vld [vmem:[%s12125_s5 + $0xc0] sm:$0xff] }
 0x911   : > { %v2617_v42 = vsel %vm2609_vm11, %v9575_v47, 128 }
 0x912   : > { %2603 = vmin.xlane.f32.xlu1 %v2589_v4  ;;  %v2626_v46 = vshra.s32 %v2617_v42, 16  ;;  %v2625_v16 = vand.u32 65535, %v2617_v42  ;;  %v2767_v42 = vld [vmem:[%s12125_s5 + $0xb8] sm:$0xff] }
 0x914   : > { %v2628_v40 = vcvt.s32.f32 %v2626_v46 }
 0x916   : > { %2629 = vmin.xlane.f32.xlu0 %v2628_v40 }
 0x917   : > { %v2594_v26 = vpop.xlane.xlu0 %2593  ;;  %v2453_v19 = vpop.xlane.xlu1 %2452 }
 0x918   : > { %vm2610_vm12 = vcmp.le.f32.partialorder %v2584_v10, %v2594_v26  ;;  %v2461_v12 = vadd.f32 %v2453_v19, %v9561_v61  ;;  %v2627_v10 = vcvt.s32.f32 %v2625_v16  ;;  %v2765_v26 = vld [vmem:[%s12125_s5 + $0xa8] sm:$0xff] }
 0x919   : > { %v2618_v0 = vsel %vm2610_vm12, %v9575_v47, 128 }
 0x91a   : > { %v2572_v53 = vpop.f32.mrf.mxu1  ;;  %v2640_v37 = vshra.s32 %v2618_v0, 16  ;;  %v2639_v28 = vand.u32 65535, %v2618_v0 }
 0x91b   : > { %v2582_v6 = vmul.f32 2.0, %v2572_v53  ;;  %v2764_v53 = vld [vmem:[%s12125_s5 + $0xa0] sm:$0xff] }
 0x91c   : > { %v2642_v45 = vcvt.s32.f32 %v2640_v37  ;;  %v2641_v34 = vcvt.s32.f32 %v2639_v28 }
 0x91d   : > { %v2590_v17 = vsub.f32 %v2461_v12, %v2582_v6 }
 0x91e   : > { %2643 = vmin.xlane.f32.xlu2 %v2642_v45 }
 0x91f   : > { %2605 = vmin.xlane.f32.xlu0 %v2590_v17 }
 0x921   : > { %v2596_v36 = vpop.xlane.xlu2 %2595 }
 0x922   : > { %vm2611_vm13 = vcmp.le.f32.partialorder %v2585_v13, %v2596_v36  ;;  %v2763_v36 = vld [vmem:[%s12125_s5 + $0x98] sm:$0xff] }
 0x923   : > { %v2619_v14 = vsel %vm2611_vm13, %v9575_v47, 128 }
 0x924   : > { %v2654_v9 = vshra.s32 %v2619_v14, 16  ;;  %v2653_v27 = vand.u32 65535, %v2619_v14  ;;  %v2762_v14 = vld [vmem:[%s12125_s5 + $0x90] sm:$0xff] }
 0x926   : > { %v2656_v2 = vcvt.s32.f32 %v2654_v9  ;;  %v2655_v43 = vcvt.s32.f32 %v2653_v27  ;;  %v2761_v9 = vld [vmem:[%s12125_s5 + $0x88] sm:$0xff] }
 0x928   : > { %2657 = vmin.xlane.f32.xlu1 %v2656_v2 }
 0x929   : > { %v2598_v48 = vpop.xlane.xlu0 %2597 }
 0x92a   : > { %vm2612_vm14 = vcmp.le.f32.partialorder %v2586_v51, %v2598_v48  ;;  %v2776_v51 = vld [vmem:[%s12125_s5 + $0x100] sm:$0xff] }
 0x92b   : > { %v2620_v49 = vsel %vm2612_vm14, %v9575_v47, 128  ;;  %2777 = vmatpush.msra.mxu3 %v2776_v51 }
 0x92c   : > { %v2668_v23 = vshra.s32 %v2620_v49, 16 }
 0x92d   : > { %2778 = vmatpush.msra.mxu3 %v2775_v18 }
 0x92e   : > { %v9583_v62 = vcvt.s32.f32 %v2668_v23 }
 0x92f   : > { %2779 = vmatpush.msra.mxu3 %v2774_v58 }
 0x930   : > { %2671 = vmin.xlane.f32.xlu2 %v9583_v62 }
 0x931   : > { %v2600_v61 = vpop.xlane.xlu1 %2599  ;;  %2780 = vmatpush.msra.mxu3 %v2773_v50 }
 0x932   : > { %vm2613_vm15 = vcmp.le.f32.partialorder %v2587_v11, %v2600_v61 }
 0x933   : > { %v9587_v44 = vsel %vm2613_vm15, %v9575_v47, 128  ;;  %2781 = vmatpush.msra.mxu3 %v2772_v29 }
 0x934   : > { %v2682_v33 = vshra.s32 %v9587_v44, 16  ;;  %v2681_v46 = vand.u32 65535, %v9587_v44 }
 0x935   : > { %2782 = vmatpush.msra.mxu3 %v2771_v63 }
 0x936   : > { %v9590_v25 = vcvt.s32.f32 %v2682_v33  ;;  %v2683_v0 = vcvt.s32.f32 %v2681_v46 }
 0x937   : > { %2783 = vmatpush.msra.mxu3 %v2770_v3 }
 0x938   : > { %2685 = vmin.xlane.f32.xlu0 %v9590_v25 }
 0x939   : > { %v2602_v20 = vpop.xlane.xlu2 %2601  ;;  %2784 = vmatpush.msra.mxu3 %v2769_v21 }
 0x93a   : > { %vm2614_vm0 = vcmp.le.f32.partialorder %v2588_v1, %v2602_v20  ;;  %v2667_v1 = vand.u32 65535, %v2620_v49 }
 0x93b   : > { %v9594_v30 = vsel %vm2614_vm0, %v9575_v47, 128  ;;  %2785 = vmatpush.msra.mxu3 %v2768_v24 }
 0x93c   : > { %v2696_v8 = vshra.s32 %v9594_v30, 16  ;;  %v2669_v7 = vcvt.s32.f32 %v2667_v1  ;;  %v2695_v12 = vand.u32 65535, %v9594_v30  ;;  %v8380_v30 = vmov 1.0  }
 0x93d   : > { %2786 = vmatpush.msra.mxu3 %v2767_v42 }
 0x93e   : > { %v9597_v31 = vcvt.s32.f32 %v2696_v8 }
 0x940   : > { %2699 = vmin.xlane.f32.xlu1 %v9597_v31 }
 0x985   : > { %v2604_v35 = vpop.xlane.xlu1 %2603 }
 0x986   : > { %vm2615_vm2 = vcmp.le.f32.partialorder %v2589_v4, %v2604_v35 }
 0x987   : > { %v9601_v57 = vsel %vm2615_vm2, %v9575_v47, 128 }
 0x988   : > { %v2710_v38 = vshra.s32 %v9601_v57, 16 }
 0x989   : > { %v9604_v59 = vpop.xlane.xlu0 %2629 }
 0x98a   : > { %vm2631_vm3 = vcmp.eq.f32.partialorder %v2628_v40, %v9604_v59  ;;  %v9607_v52 = vcvt.s32.f32 %v2710_v38  ;;  %v2766_v40 = vld [vmem:[%s12125_s5 + $0xb0] sm:$0xff]  ;;  %v2636_v48 = vcvt.f32.s32 %v9604_v59 }
 0x98b   : > { %v2632_v55 = vsel %vm2631_vm3, %v2627_v10, inf  ;;  %2787 = vmatpush.msra.mxu3 %v2766_v40 }
 0x98c   : > { %2633 = vmin.xlane.f32.xlu2 %v2632_v55  ;;  %2713 = vmin.xlane.f32.xlu0 %v9607_v52  ;;  %v2637_v61 = vshll.u32 %v2636_v48, 16 }
 0x98d   : > { %2788 = vmatpush.msra.mxu3 %v2765_v26 }
 0x98f   : > { %2789 = vmatpush.msra.mxu3 %v2764_v53  ;;  %v2853_v53 = vld [vmem:[%s12125_s5 + $0x110] sm:$0xff] }
 0x991   : > { %v9610_v22 = vpop.xlane.xlu2 %2643  ;;  %2790 = vmatpush.msra.mxu3 %v2763_v36  ;;  %v2854_v36 = vld [vmem:[%s12125_s5 + $0x118] sm:$0xff] }
 0x992   : > { %v2606_v13 = vpop.xlane.xlu0 %2605  ;;  %vm2645_vm4 = vcmp.eq.f32.partialorder %v2642_v45, %v9610_v22  ;;  %v2697_v45 = vcvt.s32.f32 %v2695_v12  ;;  %v2650_v20 = vcvt.f32.s32 %v9610_v22 }
 0x993   : > { %vm2616_vm5 = vcmp.le.f32.partialorder %v2590_v17, %v2606_v13  ;;  %v2646_v5 = vsel %vm2645_vm4, %v2641_v34, inf  ;;  %2791 = vmatpush.msra.mxu3 %v2762_v14 }
 0x994   : > { %v9614_v54 = vsel %vm2616_vm5, %v9575_v47, 128  ;;  %2647 = vmin.xlane.f32.xlu1 %v2646_v5  ;;  %vm2827_vm5 = vcmask 1040384  }
 0x995   : > { %v2724_v56 = vshra.s32 %v9614_v54, 16  ;;  %2792 = vmatpush.msra.mxu3 %v2761_v9  ;;  %v2723_v16 = vand.u32 65535, %v9614_v54 }
 0x997   : > { %v9617_v39 = vcvt.s32.f32 %v2724_v56  ;;  %v2725_v59 = vcvt.s32.f32 %v2723_v16 }
 0x999   : > { %2727 = vmin.xlane.f32.xlu2 %v9617_v39 }
 0x99b   : > { %v9632_v11 = vpop.xlane.xlu1 %2657 }
 0x99c   : > { %vm2659_vm6 = vcmp.eq.f32.partialorder %v2656_v2, %v9632_v11  ;;  %v2709_v2 = vand.u32 65535, %v9601_v57 }
 0x99d   : > { %v2660_v60 = vsel %vm2659_vm6, %v2655_v43, inf  ;;  %vm2925_vm6 = vcmask 253952  }
 0x99e   : > { %2661 = vmin.xlane.f32.xlu0 %v2660_v60 }
 0x9a3   : > { %v9647_v15 = vpop.xlane.xlu2 %2671 }
 0x9a4   : > { %vm2673_vm7 = vcmp.eq.f32.partialorder %v9583_v62, %v9647_v15  ;;  %v2711_v62 = vcvt.s32.f32 %v2709_v2  ;;  %v2678_v13 = vcvt.f32.s32 %v9647_v15 }
 0x9a5   : > { %v2674_v4 = vsel %vm2673_vm7, %v2669_v7, inf }
 0x9a6   : > { %2675 = vmin.xlane.f32.xlu1 %v2674_v4  ;;  %v2679_v54 = vshll.u32 %v2678_v13, 16  ;;  %v2858_v13 = vld [vmem:[%s12125_s5 + $0x138] sm:$0xff] }
 0x9ab   : > { %v9664_v19 = vpop.xlane.xlu0 %2685 }
 0x9ac   : > { %vm2687_vm8 = vcmp.eq.f32.partialorder %v9590_v25, %v9664_v19  ;;  %v2692_v51 = vcvt.f32.s32 %v9664_v19  ;;  %v2818_v19 = vld [vmem:[%s12125_s5 + $0x108] sm:$0x1] }
 0x9ad   : > { %v2688_v37 = vsel %vm2687_vm8, %v2683_v0, inf }
 0x9ae   : > { %2689 = vmin.xlane.f32.xlu2 %v2688_v37  ;;  %v2693_v27 = vshll.u32 %v2692_v51, 16 }
 0x9b3   : > { %v2700_v6 = vpop.xlane.xlu1 %2699 }
 0x9b4   : > { %vm2701_vm9 = vcmp.eq.f32.partialorder %v9597_v31, %v2700_v6  ;;  %v2651_v31 = vshll.u32 %v2650_v20, 16 }
 0x9b5   : > { %v2702_v17 = vsel %vm2701_vm9, %v2697_v45, inf }
 0x9b6   : > { %2703 = vmin.xlane.f32.xlu0 %v2702_v17 }
 0x9ff   : > { %v2634_v49 = vpop.xlane.xlu2 %2633  ;;  %v2714_v23 = vpop.xlane.xlu0 %2713 }
 0xa00   : > { %v2635_v44 = vcvt.f32.s32 %v2634_v49  ;;  %vm2715_vm10 = vcmp.eq.f32.partialorder %v9607_v52, %v2714_v23  ;;  %v2664_v52 = vcvt.f32.s32 %v9632_v11  ;;  %v2706_v11 = vcvt.f32.s32 %v2700_v6 }
 0xa01   : > { %v2716_v33 = vsel %vm2715_vm10, %v2711_v62, inf  ;;  %v2720_v1 = vcvt.f32.s32 %v2714_v23  ;;  %v2855_v23 = vld [vmem:[%s12125_s5 + $0x120] sm:$0xff] }
 0xa02   : > { %v9685_v25 = vadd.s32 %v2637_v61, %v2635_v44  ;;  %2717 = vmin.xlane.f32.xlu1 %v2716_v33  ;;  %v2665_v28 = vshll.u32 %v2664_v52, 16  ;;  %v2707_v29 = vshll.u32 %v2706_v11, 16 }
 0xa03   : > { %v2721_v21 = vshll.u32 %v2720_v1, 16 }
 0xa04   : > { %12170 = vst [vmem:[#allocation4_spill] sm:$0xff] %v9685_v25  ;;  %vm2737_vm11 = vcmp.eq.s32.totalorder %v9575_v47, %v9685_v25 }
 0xa05   : > { %7276 = vmatmul.msk.f32.vlgmr.msra.gmra.mxu3 %vm2737_vm11, %v8380_v30 }
 0xa07   : > { %v2648_v8 = vpop.xlane.xlu1 %2647 }
 0xa08   : > { %v2649_v35 = vcvt.f32.s32 %v2648_v8 }
 0xa0a   : > { %v9694_v57 = vadd.s32 %v2651_v31, %v2649_v35 }
 0xa0c   : > { %12171 = vst [vmem:[#allocation5_spill] sm:$0xff] %v9694_v57  ;;  %v2728_v38 = vpop.xlane.xlu2 %2727  ;;  %vm2738_vm12 = vcmp.eq.s32.totalorder %v9575_v47, %v9694_v57 }
 0xa0d   : > { %7277 = vmatmul.msk.f32.gmra.mxu3 %vm2738_vm12, %v8380_v30  ;;  %vm2729_vm13 = vcmp.eq.f32.partialorder %v9617_v39, %v2728_v38  ;;  %v2734_v24 = vcvt.f32.s32 %v2728_v38 }
 0xa0e   : > { %v2730_v10 = vsel %vm2729_vm13, %v2725_v59, inf  ;;  %v2857_v59 = vld [vmem:[%s12125_s5 + $0x130] sm:$0xff] }
 0xa0f   : > { %2731 = vmin.xlane.f32.xlu2 %v2730_v10  ;;  %v2735_v42 = vshll.u32 %v2734_v24, 16 }
 0xa11   : > { %v2662_v55 = vpop.xlane.xlu0 %2661 }
 0xa12   : > { %v2663_v22 = vcvt.f32.s32 %v2662_v55 }
 0xa14   : > { %v9703_v34 = vadd.s32 %v2665_v28, %v2663_v22 }
 0xa16   : > { %12172 = vst [vmem:[#allocation6_spill] sm:$0xff] %v9703_v34  ;;  %vm2739_vm14 = vcmp.eq.s32.totalorder %v9575_v47, %v9703_v34 }
 0xa17   : > { %7278 = vmatmul.msk.f32.gmra.mxu3 %vm2739_vm14, %v8380_v30 }
 0xa19   : > { %v2676_v5 = vpop.xlane.xlu1 %2675 }
 0xa1a   : > { %v2677_v56 = vcvt.f32.s32 %v2676_v5 }
 0xa1c   : > { %v9711_v39 = vadd.s32 %v2679_v54, %v2677_v56 }
 0xa1e   : > { %12173 = vst [vmem:[#allocation7_spill] sm:$0xff] %v9711_v39  ;;  %vm2740_vm15 = vcmp.eq.s32.totalorder %v9575_v47, %v9711_v39 }
 0xa1f   : > { %7279 = vmatmul.msk.f32.gmra.mxu3 %vm2740_vm15, %v8380_v30 }
 0xa21   : > { %v2690_v18 = vpop.xlane.xlu2 %2689 }
 0xa22   : > { %v2691_v58 = vcvt.f32.s32 %v2690_v18 }
 0xa24   : > { %v9719_v50 = vadd.s32 %v2693_v27, %v2691_v58  ;;  %v2859_v27 = vld [vmem:[%s12125_s5 + $0x140] sm:$0xff] }
 0xa26   : > { %12174 = vst [vmem:[#allocation8_spill] sm:$0xff] %v9719_v50  ;;  %vm2741_vm0 = vcmp.eq.s32.totalorder %v9575_v47, %v9719_v50 }
 0xa27   : > { %7280 = vmatmul.msk.f32.gmra.mxu3 %vm2741_vm0, %v8380_v30 }
 0xa29   : > { %v2704_v43 = vpop.xlane.xlu0 %2703 }
 0xa2a   : > { %v2705_v60 = vcvt.f32.s32 %v2704_v43 }
 0xa2c   : > { %v9726_v63 = vadd.s32 %v2707_v29, %v2705_v60 }
 0xa2e   : > { %12175 = vst [vmem:[#allocation9_spill] sm:$0xff] %v9726_v63  ;;  %vm2742_vm2 = vcmp.eq.s32.totalorder %v9575_v47, %v9726_v63 }
 0xa2f   : > { %7281 = vmatmul.msk.f32.gmra.mxu3 %vm2742_vm2, %v8380_v30 }
 0xa75   : > { %v2718_v3 = vpop.xlane.xlu1 %2717 }
 0xa76   : > { %v2719_v15 = vcvt.f32.s32 %v2718_v3 }
 0xa78   : > { %v9733_v7 = vadd.s32 %v2721_v21, %v2719_v15 }
 0xa7a   : > { %12176 = vst [vmem:[#allocation10_spill] sm:$0xff] %v9733_v7  ;;  %vm12149_vm3 = vcmp.eq.s32.totalorder %v9575_v47, %v9733_v7 }
 0xa7b   : > { %7282 = vmatmul.msk.f32.gmra.mxu3 %vm12149_vm3, %v8380_v30 }
 0xa82   : > { %v2732_v4 = vpop.xlane.xlu2 %2731 }
 0xa83   : > { %v2733_v46 = vcvt.f32.s32 %v2732_v4 }
 0xa85   : > { %v9740_v40 = vadd.s32 %v2735_v42, %v2733_v46  ;;  %v2860_v46 = vld [vmem:[%s12125_s5 + $0x148] sm:$0xff] }
 0xa87   : > { %12177 = vst [vmem:[#allocation11_spill] sm:$0xff] %v9740_v40  ;;  %vm12127_vm4 = vcmp.eq.s32.totalorder %v9575_v47, %v9740_v40 }
 0xa88   : > { %v2794_v26 = vpop.f32.mrf.mxu3  ;;  %7283 = vmatmul.msk.f32.gmra.mxu3 %vm12127_vm4, %v8380_v30  ;;  %v2856_v30 = vld [vmem:[%s12125_s5 + $0x128] sm:$0xff] }
 0xa89   : > { %v2828_v0 = vrot.slane %v2794_v26, 7 }
 0xa8b   : > { %v2852_v37 = vsel %vm2827_vm5, %v2818_v19, %v2828_v0 }
 0xa8c   : > { %v9754_v12 = vadd.f32 %v2853_v53, %v2852_v37 }
 0xa8e   : > { %v2901_v6 = vsel %vm616_vm1, %v9754_v12, 0.0 }
 0xa8f   : > { %2902 = vadd.xlane.f32.xlu0 %v2901_v6 }
 0xa90   : > { %v2797_v45 = vpop.f32.mrf.mxu3 }
 0xa91   : > { %v2829_v17 = vrot.slane %v2797_v45, 7  ;;  %v2861_v45 = vld [vmem:[%s12125_s5 + $0x150] sm:$0x1] }
 0xa93   : > { %v2830_v14 = vsel %vm2827_vm5, %v2828_v0, %v2829_v17 }
 0xa94   : > { %v9762_v9 = vadd.f32 %v2854_v36, %v2830_v14 }
 0xa96   : > { %v2904_v2 = vsel %vm616_vm1, %v9762_v9, 0.0 }
 0xa97   : > { %2905 = vadd.xlane.f32.xlu1 %v2904_v2 }
 0xa9a   : > { %v2800_v48 = vpop.f32.mrf.mxu3 }
 0xa9b   : > { %v2831_v49 = vrot.slane %v2800_v48, 7 }
 0xa9d   : > { %v2832_v62 = vsel %vm2827_vm5, %v2829_v17, %v2831_v49 }
 0xa9e   : > { %v9770_v61 = vadd.f32 %v2855_v23, %v2832_v62 }
 0xaa0   : > { %v2907_v44 = vsel %vm616_vm1, %v9770_v61, 0.0 }
 0xaa1   : > { %2908 = vadd.xlane.f32.xlu2 %v2907_v44 }
 0xaa2   : > { %v2803_v33 = vpop.f32.mrf.mxu3 }
 0xaa3   : > { %v2833_v20 = vrot.slane %v2803_v33, 7 }
 0xaa5   : > { %v2834_v8 = vsel %vm2827_vm5, %v2831_v49, %v2833_v20 }
 0xaa6   : > { %v9778_v31 = vadd.f32 %v2856_v30, %v2834_v8 }
 0xaa8   : > { %v2910_v35 = vsel %vm616_vm1, %v9778_v31, 0.0 }
 0xaa9   : > { %2911 = vadd.xlane.f32.xlu0 %v2910_v35 }
 0xaaa   : > { %v2806_v16 = vpop.f32.mrf.mxu3 }
 0xaab   : > { %v2835_v38 = vrot.slane %v2806_v16, 7 }
 0xaad   : > { %v2836_v10 = vsel %vm2827_vm5, %v2833_v20, %v2835_v38 }
 0xaae   : > { %v9786_v52 = vadd.f32 %v2857_v59, %v2836_v10 }
 0xab0   : > { %v2913_v55 = vsel %vm616_vm1, %v9786_v52, 0.0 }
 0xab1   : > { %2914 = vadd.xlane.f32.xlu1 %v2913_v55 }
 0xab2   : > { %v2809_v28 = vpop.f32.mrf.mxu3 }
 0xab3   : > { %v2837_v22 = vrot.slane %v2809_v28, 7 }
 0xab5   : > { %v2838_v5 = vsel %vm2827_vm5, %v2835_v38, %v2837_v22 }
 0xab6   : > { %v9794_v54 = vadd.f32 %v2858_v13, %v2838_v5 }
 0xab8   : > { %v2916_v56 = vsel %vm616_vm1, %v9794_v54, 0.0 }
 0xab9   : > { %2917 = vadd.xlane.f32.xlu2 %v2916_v56 }
 0xafe   : > { %v2812_v51 = vpop.f32.mrf.mxu3 }
 0xaff   : > { %v2839_v18 = vrot.slane %v2812_v51, 7 }
 0xb01   : > { %v2840_v58 = vsel %vm2827_vm5, %v2837_v22, %v2839_v18 }
 0xb02   : > { %v2903_v11 = vpop.xlane.xlu0 %2902  ;;  %v9802_v43 = vadd.f32 %v2859_v27, %v2840_v58 }
 0xb03   : > { %v2929_v29 = vmul.f32 %v2903_v11, %v8714_v41 }
 0xb04   : > { %v2919_v60 = vsel %vm616_vm1, %v9802_v43, 0.0 }
 0xb05   : > { %v9808_v1 = vsub.f32 %v9754_v12, %v2929_v29  ;;  %2920 = vadd.xlane.f32.xlu2 %v2919_v60 }
 0xb07   : > { %v2947_v3 = vmul.f32 %v9808_v1, %v9808_v1 }
 0xb09   : > { %v2956_v21 = vsel %vm616_vm1, %v2947_v3, 0.0 }
 0xb0a   : > { %v2906_v15 = vpop.xlane.xlu1 %2905  ;;  %2957 = vadd.xlane.f32.xlu0 %v2956_v21 }
 0xb0b   : > { %v2930_v24 = vmul.f32 %v2906_v15, %v8714_v41  ;;  %v2815_v4 = vpop.f32.mrf.mxu3 }
 0xb0c   : > { %v2841_v42 = vrot.slane %v2815_v4, 7 }
 0xb0d   : > { %v9818_v26 = vsub.f32 %v9762_v9, %v2930_v24 }
 0xb0e   : > { %v2842_v19 = vsel %vm2827_vm5, %v2839_v18, %v2841_v42  ;;  %v9831_v17 = vadd.f32 %v2861_v45, %v2841_v42 }
 0xb0f   : > { %v2948_v0 = vmul.f32 %v9818_v26, %v9818_v26  ;;  %v9823_v53 = vadd.f32 %v2860_v46, %v2842_v19 }
 0xb10   : > { %12179 = vst [vmem:[#allocation13_spill] sm:$0xff] %v9831_v17  ;;  %v2926_v48 = vsel %vm2925_vm6, %v9831_v17, 0.0 }
 0xb11   : > { %12178 = vst [vmem:[#allocation12_spill] sm:$0xff] %v9823_v53  ;;  %v2959_v37 = vsel %vm616_vm1, %v2948_v0, 0.0  ;;  %v2922_v6 = vsel %vm616_vm1, %v9823_v53, 0.0 }
 0xb12   : > { %2960 = vadd.xlane.f32.xlu1 %v2959_v37  ;;  %2923 = vadd.xlane.f32.xlu0 %v2922_v6 }
 0xb14   : > { %v2909_v36 = vpop.xlane.xlu2 %2908 }
 0xb15   : > { %v2931_v14 = vmul.f32 %v2909_v36, %v8714_v41 }
 0xb17   : > { %v9835_v2 = vsub.f32 %v9770_v61, %v2931_v14 }
 0xb19   : > { %v2949_v49 = vmul.f32 %v9835_v2, %v9835_v2 }
 0xb1a   : > { %2927 = vadd.xlane.f32.xlu0 %v2926_v48 }
 0xb1b   : > { %v2962_v23 = vsel %vm616_vm1, %v2949_v49, 0.0 }
 0xb1c   : > { %2963 = vadd.xlane.f32.xlu1 %v2962_v23  ;;  %v2912_v62 = vpop.xlane.xlu0 %2911 }
 0xb1d   : > { %v2932_v44 = vmul.f32 %v2912_v62, %v8714_v41 }
 0xb1f   : > { %v9844_v33 = vsub.f32 %v9778_v31, %v2932_v44 }
 0xb21   : > { %v2950_v20 = vmul.f32 %v9844_v33, %v9844_v33 }
 0xb23   : > { %v2965_v30 = vsel %vm616_vm1, %v2950_v20, 0.0 }
 0xb24   : > { %v2915_v8 = vpop.xlane.xlu1 %2914  ;;  %2966 = vadd.xlane.f32.xlu2 %v2965_v30 }
 0xb25   : > { %v2933_v35 = vmul.f32 %v2915_v8, %v8714_v41 }
 0xb27   : > { %v9851_v16 = vsub.f32 %v9786_v52, %v2933_v35 }
 0xb29   : > { %v2951_v38 = vmul.f32 %v9851_v16, %v9851_v16 }
 0xb2b   : > { %v2968_v59 = vsel %vm616_vm1, %v2951_v38, 0.0 }
 0xb2c   : > { %2969 = vadd.xlane.f32.xlu1 %v2968_v59  ;;  %v2918_v10 = vpop.xlane.xlu2 %2917 }
 0xb2d   : > { %v2934_v55 = vmul.f32 %v2918_v10, %v8714_v41  ;;  %v7312_v10 = vld [vmem:[%s12122_s2 + $0xf0] sm:$0xf] }
 0xb2f   : > { %v9858_v28 = vsub.f32 %v9794_v54, %v2934_v55 }
 0xb31   : > { %v2952_v22 = vmul.f32 %v9858_v28, %v9858_v28 }
 0xb33   : > { %v2971_v13 = vsel %vm616_vm1, %v2952_v22, 0.0 }
 0xb34   : > { %2972 = vadd.xlane.f32.xlu2 %v2971_v13  ;;  %v7801_v13 = vld [vmem:[%s12122_s2 + $0x104] sm:$0xf0] }
 0xb78   : > { %v2921_v5 = vpop.xlane.xlu2 %2920 }
 0xb79   : > { %v2935_v56 = vmul.f32 %v2921_v5, %v8714_v41  ;;  %v7798_v5 = vld [vmem:[%s12122_s2 + $0xf4] sm:$0xf] }
 0xb7b   : > { %v9865_v51 = vsub.f32 %v9802_v43, %v2935_v56  ;;  %v9907_v56 = vld [vmem:[%s12125_s5 + $0x151] ss:$0 sm:$0xff] }
 0xb7d   : > { %v2958_v18 = vpop.xlane.xlu0 %2957  ;;  %v2953_v27 = vmul.f32 %v9865_v51, %v9865_v51 }
 0xb7e   : > { %v2983_v58 = vmul.f32 %v2958_v18, %v8714_v41  ;;  %v7313_v18 = vor.u32 %v7801_v13, %v7312_v10  ;;  %v9955_v10 = vld [vmem:[%s12125_s5 + $0x152] ss:$0 sm:$0xff] }
 0xb7f   : > { %v2974_v11 = vsel %vm616_vm1, %v2953_v27, 0.0  ;;  %v7314_v27 = vld [vmem:[%s12122_s2 + $0x108] sm:$0xf0] }
 0xb80   : > { %v2992_v29 = vadd.f32 1e-05, %v2983_v58  ;;  %2975 = vadd.xlane.f32.xlu0 %v2974_v11  ;;  %v7320_v58 = vld [vmem:[%s12122_s2 + $0xf8] sm:$0xf]  ;;  %v7802_v11 = vld [vmem:[%s12122_s2 + $0x10c] sm:$0xf0]  ;;  %3267 = vmatpush.bf16.msra.mxu0 %v7313_v18 }
 0xb82   : > { %8053 = vrsqrt.f32 %v2992_v29  ;;  %vm3007_vm8 = vweird.f32 %v2992_v29 }
 0xb85   : > { %v2961_v60 = vpop.xlane.xlu1 %2960  ;;  %v2924_v3 = vpop.xlane.xlu0 %2923 }
 0xb86   : > { %v2984_v21 = vmul.f32 %v2961_v60, %v8714_v41  ;;  %v2936_v15 = vmul.f32 %v2924_v3, %v8714_v41  ;;  %v7317_v60 = vor.u32 %v7798_v5, %v7314_v27  ;;  %v7321_v3 = vor.u32 %v7802_v11, %v7320_v58 }
 0xb88   : > { %v8054_v24 = vpop.eup %8053  ;;  %v2993_v4 = vadd.f32 1e-05, %v2984_v21  ;;  %v9874_v42 = vsub.f32 %v9823_v53, %v2936_v15  ;;  %v7799_v21 = vld [vmem:[%s12122_s2 + $0xfc] sm:$0xf]  ;;  %v7322_v15 = vld [vmem:[%s12122_s2 + $0x110] sm:$0xf0]  ;;  %3300 = vmatpush.bf16.msra.mxu2 %v7317_v60  ;;  %3333 = vmatpush.bf16.msrb.mxu1 %v7321_v3 }
 0xb89   : > { %v3002_v46 = vmul.f32 %v8054_v24, %v2992_v29  ;;  %vm3008_vm7 = vweird.f32 %v8054_v24 }
 0xb8a   : > { %8055 = vrsqrt.f32 %v2993_v4  ;;  %v2954_v19 = vmul.f32 %v9874_v42, %v9874_v42  ;;  %vm9886_vm9 = vmor %vm3007_vm8, %vm3008_vm7  ;;  %vm3017_vm13 = vweird.f32 %v2993_v4 }
 0xb8b   : > { %v3003_v0 = vmul.f32 %v8054_v24, %v3002_v46  ;;  %v7325_v46 = vor.u32 %v7799_v21, %v7322_v15 }
 0xb8c   : > { %v2977_v37 = vsel %vm616_vm1, %v2954_v19, 0.0  ;;  %v7288_v19 = vld [vmem:[%s12122_s2 + $0xc0] sm:$0xf] }
 0xb8d   : > { %v3004_v6 = vmul.f32 0.5, %v3003_v0  ;;  %2978 = vadd.xlane.f32.xlu1 %v2977_v37  ;;  %v2928_v45 = vpop.xlane.xlu0 %2927  ;;  %v7795_v0 = vld [vmem:[%s12122_s2 + $0xd4] sm:$0xf0]  ;;  %v7792_v37 = vld [vmem:[%s12122_s2 + $0xc4] sm:$0xf]  ;;  %3366 = vmatpush.bf16.msrb.mxu3 %v7325_v46 }
 0xb8e   : > { %v2937_v36 = vmul.f32 %v2928_v45, %v8714_v41 }
 0xb8f   : > { %v3005_v14 = vsub.f32 1.5, %v3004_v6  ;;  %v2964_v44 = vpop.xlane.xlu1 %2963 }
 0xb90   : > { %v8056_v48 = vpop.eup %8055  ;;  %v9881_v49 = vsub.f32 %v9831_v17, %v2937_v36  ;;  %v2985_v20 = vmul.f32 %v2964_v44, %v8714_v41  ;;  %v7290_v36 = vld [vmem:[%s12122_s2 + $0xd8] sm:$0xf0] }
 0xb91   : > { %v3006_v23 = vmul.f32 %v8054_v24, %v3005_v14  ;;  %v3012_v62 = vmul.f32 %v8056_v48, %v2993_v4  ;;  %vm3018_vm10 = vweird.f32 %v8056_v48  ;;  %v7296_v14 = vld [vmem:[%s12122_s2 + $0xc8] sm:$0xf] }
 0xb92   : > { %v2955_v30 = vmul.f32 %v9881_v49, %v9881_v49  ;;  %v9890_v38 = vadd.f32 1e-05, %v2985_v20  ;;  %vm3019_vm7 = vmor %vm3017_vm13, %vm3018_vm10  ;;  %v7793_v20 = vld [vmem:[%s12122_s2 + $0xcc] sm:$0xf] }
 0xb93   : > { %v3013_v8 = vmul.f32 %v8056_v48, %v3012_v62  ;;  %v3010_v55 = vsel %vm9886_vm9, %v8054_v24, %v3006_v23  ;;  %v7796_v23 = vld [vmem:[%s12122_s2 + $0xdc] sm:$0xf0]  ;;  %v7293_v62 = vor.u32 %v7792_v37, %v7290_v36 }
 0xb94   : > { %v2980_v59 = vsel %vm2925_vm6, %v2955_v30, 0.0  ;;  %8057 = vrsqrt.f32 %v9890_v38  ;;  %v3091_v24 = vmul.f32 %v3010_v55, %v9808_v1  ;;  %v7289_v1 = vor.u32 %v7795_v0, %v7288_v19  ;;  %v7298_v30 = vld [vmem:[%s12122_s2 + $0xe0] sm:$0xf0] }
 0xb95   : > { %v3014_v22 = vmul.f32 0.5, %v3013_v8  ;;  %2981 = vadd.xlane.f32.xlu2 %v2980_v59  ;;  %v7297_v44 = vor.u32 %v7796_v23, %v7296_v14  ;;  %v7301_v35 = vor.u32 %v7793_v20, %v7298_v30  ;;  %3301 = vmatpush.bf16.msra.mxu2 %v7293_v62  ;;  %vm3027_vm9 = vweird.f32 %v9890_v38 }
 0xb96   : > { %v3101_v55 = vmul.f32 %v9907_v56, %v3091_v24  ;;  %3268 = vmatpush.bf16.msra.mxu0 %v7289_v1 }
 0xb97   : > { %v3015_v29 = vsub.f32 1.5, %v3014_v22  ;;  %v2967_v45 = vpop.xlane.xlu2 %2966  ;;  %3334 = vmatpush.bf16.msrb.mxu1 %v7297_v44  ;;  %3367 = vmatpush.bf16.msrb.mxu3 %v7301_v35 }
 0xb98   : > { %v2986_v4 = vmul.f32 %v2967_v45, %v8714_v41  ;;  %v3111_v27 = vadd.f32 %v9955_v10, %v3101_v55 }
 0xb99   : > { %v3016_v6 = vmul.f32 %v8056_v48, %v3015_v29 }
 0xb9a   : > { %v8058_v59 = vpop.eup %8057  ;;  %v2995_v13 = vadd.f32 1e-05, %v2986_v4 }
 0xb9b   : > { %v3020_v8 = vsel %vm3019_vm7, %v8056_v48, %v3016_v6  ;;  %v3022_v5 = vmul.f32 %v8058_v59, %v9890_v38  ;;  %vm3028_vm8 = vweird.f32 %v8058_v59 }
 0xb9c   : > { %v3092_v22 = vmul.f32 %v3020_v8, %v9818_v26  ;;  %8059 = vrsqrt.f32 %v2995_v13  ;;  %vm3029_vm10 = vmor %vm3027_vm9, %vm3028_vm8  ;;  %vm3037_vm7 = vweird.f32 %v2995_v13 }
 0xb9d   : > { %v3023_v48 = vmul.f32 %v8058_v59, %v3022_v5 }
 0xb9e   : > { %v3102_v18 = vmul.f32 %v9907_v56, %v3092_v22 }
 0xb9f   : > { %v3024_v11 = vmul.f32 0.5, %v3023_v48  ;;  %v2970_v29 = vpop.xlane.xlu1 %2969 }
 0xba0   : > { %v3112_v58 = vadd.f32 %v9955_v10, %v3102_v18  ;;  %v2987_v26 = vmul.f32 %v2970_v29, %v8714_v41 }
 0xba1   : > { %v3025_v3 = vsub.f32 1.5, %v3024_v11 }
 0xba2   : > { %v9963_v60 = vpack.c.bf16 %v3112_v58, %v3111_v27  ;;  %v8060_v21 = vpop.eup %8059  ;;  %v2996_v15 = vadd.f32 1e-05, %v2987_v26 }
 0xba3   : > { %v3026_v24 = vmul.f32 %v8058_v59, %v3025_v3  ;;  %v3032_v46 = vmul.f32 %v8060_v21, %v2995_v13  ;;  %vm3038_vm13 = vweird.f32 %v8060_v21 }
 0xba4   : > { %7334 = vmatmul.msk.bf16.vlgmr.msra.gmra.mxu0 %vm616_vm1, %v9963_v60  ;;  %7339 = vmatmul.msk.bf16.vlgmr.msra.gmra.mxu2 %vm616_vm1, %v9963_v60  ;;  %8061 = vrsqrt.f32 %v2996_v15  ;;  %vm3039_vm4 = vmor %vm3037_vm7, %vm3038_vm13 }
 0xba5   : > { %7344 = vmatmul.msk.bf16.vlgmr.msrb.gmra.mxu1 %vm616_vm1, %v9963_v60  ;;  %7349 = vmatmul.msk.bf16.vlgmr.msrb.gmra.mxu3 %vm616_vm1, %v9963_v60  ;;  %v3033_v19 = vmul.f32 %v8060_v21, %v3032_v46  ;;  %v3030_v0 = vsel %vm3029_vm10, %v8058_v59, %v3026_v24 }
 0xba6   : > { %v3093_v14 = vmul.f32 %v3030_v0, %v9835_v2 }
 0xba7   : > { %v3034_v37 = vmul.f32 0.5, %v3033_v19  ;;  %v2973_v6 = vpop.xlane.xlu2 %2972 }
 0xba8   : > { %v2988_v45 = vmul.f32 %v2973_v6, %v8714_v41  ;;  %v3103_v20 = vmul.f32 %v9907_v56, %v3093_v14 }
 0xba9   : > { %v3035_v1 = vsub.f32 1.5, %v3034_v37 }
 0xbaa   : > { %v8062_v36 = vpop.eup %8061  ;;  %v2997_v23 = vadd.f32 1e-05, %v2988_v45  ;;  %v3113_v22 = vadd.f32 %v9955_v10, %v3103_v20 }
 0xbab   : > { %v3036_v4 = vmul.f32 %v8060_v21, %v3035_v1  ;;  %v3042_v62 = vmul.f32 %v8062_v36, %v2996_v15  ;;  %vm3048_vm8 = vweird.f32 %v8062_v36 }
 0xbac   : > { %8063 = vrsqrt.f32 %v2997_v23  ;;  %vm3057_vm13 = vweird.f32 %v2997_v23 }
 0xbad   : > { %v3040_v44 = vsel %vm3039_vm4, %v8060_v21, %v3036_v4  ;;  %v3043_v38 = vmul.f32 %v8062_v36, %v3042_v62  ;;  %vm3047_vm4 = vweird.f32 %v2996_v15 }
 0xbae   : > { %v3094_v30 = vmul.f32 %v3040_v44, %v9844_v33  ;;  %vm3049_vm9 = vmor %vm3047_vm4, %vm3048_vm8 }
 0xbaf   : > { %v3044_v8 = vmul.f32 0.5, %v3043_v38 }
 0xbb0   : > { %v3104_v35 = vmul.f32 %v9907_v56, %v3094_v30 }
 0xbb1   : > { %v3045_v59 = vsub.f32 1.5, %v3044_v8 }
 0xbb2   : > { %v8064_v55 = vpop.eup %8063  ;;  %v3114_v2 = vadd.f32 %v9955_v10, %v3104_v35 }
 0xbb3   : > { %v3046_v5 = vmul.f32 %v8062_v36, %v3045_v59  ;;  %v3052_v13 = vmul.f32 %v8064_v55, %v2997_v23  ;;  %vm3058_vm10 = vweird.f32 %v8064_v55 }
 0xbb4   : > { %v9982_v18 = vpack.c.bf16 %v3114_v2, %v3113_v22  ;;  %vm3059_vm7 = vmor %vm3057_vm13, %vm3058_vm10 }
 0xbb5   : > { %v3053_v48 = vmul.f32 %v8064_v55, %v3052_v13  ;;  %v3050_v33 = vsel %vm3049_vm9, %v8062_v36, %v3046_v5 }
 0xbb6   : > { %7335 = vmatmul.msk.bf16.gmra.mxu0 %vm616_vm1, %v9982_v18  ;;  %7340 = vmatmul.msk.bf16.gmra.mxu2 %vm616_vm1, %v9982_v18  ;;  %v3095_v11 = vmul.f32 %v3050_v33, %v9851_v16 }
 0xbb7   : > { %v3054_v27 = vmul.f32 0.5, %v3053_v48  ;;  %7345 = vmatmul.msk.bf16.gmra.mxu1 %vm616_vm1, %v9982_v18  ;;  %7350 = vmatmul.msk.bf16.gmra.mxu3 %vm616_vm1, %v9982_v18 }
 0xbb8   : > { %v3105_v3 = vmul.f32 %v9907_v56, %v3095_v11 }
 0xbb9   : > { %v3055_v58 = vsub.f32 1.5, %v3054_v27 }
 0xbba   : > { %v3115_v24 = vadd.f32 %v9955_v10, %v3105_v3 }
 0xbbb   : > { %v3056_v29 = vmul.f32 %v8064_v55, %v3055_v58 }
 0xbbd   : > { %v3060_v26 = vsel %vm3059_vm7, %v8064_v55, %v3056_v29 }
 0xbbe   : > { %v3096_v21 = vmul.f32 %v3060_v26, %v9858_v28 }
 0xbc0   : > { %v3106_v15 = vmul.f32 %v9907_v56, %v3096_v21 }
 0xbc2   : > { %v3116_v46 = vadd.f32 %v9955_v10, %v3106_v15 }
 0xbc4   : > { %v9998_v19 = vpack.c.bf16 %v3116_v46, %v3115_v24  ;;  %v7328_v46 = vld [vmem:[%s12122_s2 + $0x100] sm:$0xf] }
 0xbc6   : > { %7336 = vmatmul.msk.bf16.gmra.mxu0 %vm616_vm1, %v9998_v19  ;;  %7341 = vmatmul.msk.bf16.gmra.mxu2 %vm616_vm1, %v9998_v19 }
 0xbc7   : > { %7346 = vmatmul.msk.bf16.gmra.mxu1 %vm616_vm1, %v9998_v19  ;;  %7351 = vmatmul.msk.bf16.gmra.mxu3 %vm616_vm1, %v9998_v19 }
 0xbf3   : > { %v2976_v16 = vpop.xlane.xlu0 %2975 }
 0xbf4   : > { %v2989_v28 = vmul.f32 %v2976_v16, %v8714_v41  ;;  %v7800_v16 = vld [vmem:[%s12122_s2 + $0x104] sm:$0xf] }
 0xbf6   : > { %v2998_v0 = vadd.f32 1e-05, %v2989_v28 }
 0xbf8   : > { %8065 = vrsqrt.f32 %v2998_v0  ;;  %vm3067_vm4 = vweird.f32 %v2998_v0 }
 0xbfe   : > { %v8066_v37 = vpop.eup %8065 }
 0xbff   : > { %v3062_v6 = vmul.f32 %v8066_v37, %v2998_v0  ;;  %vm3068_vm8 = vweird.f32 %v8066_v37 }
 0xc00   : > { %v2979_v45 = vpop.xlane.xlu1 %2978  ;;  %vm3069_vm9 = vmor %vm3067_vm4, %vm3068_vm8 }
 0xc01   : > { %v3063_v1 = vmul.f32 %v8066_v37, %v3062_v6  ;;  %v2990_v36 = vmul.f32 %v2979_v45, %v8714_v41 }
 0xc03   : > { %v2999_v14 = vadd.f32 1e-05, %v2990_v36  ;;  %v3064_v23 = vmul.f32 0.5, %v3063_v1  ;;  %v7304_v1 = vld [vmem:[%s12122_s2 + $0xd0] sm:$0xf] }
 0xc04   : > { %v7797_v36 = vld [vmem:[%s12122_s2 + $0xe4] sm:$0xf0] }
 0xc05   : > { %8067 = vrsqrt.f32 %v2999_v14  ;;  %v3065_v4 = vsub.f32 1.5, %v3064_v23  ;;  %vm3077_vm13 = vweird.f32 %v2999_v14  ;;  %v7305_v23 = vor.u32 %v7797_v36, %v7304_v1 }
 0xc07   : > { %v3066_v30 = vmul.f32 %v8066_v37, %v3065_v4  ;;  %v7306_v4 = vld [vmem:[%s12122_s2 + $0xe8] sm:$0xf0] }
 0xc08   : > { %v2982_v62 = vpop.xlane.xlu2 %2981 }
 0xc09   : > { %v2991_v44 = vmul.f32 %v2982_v62, %v8714_v41  ;;  %v3070_v59 = vsel %vm3069_vm9, %v8066_v37, %v3066_v30  ;;  %v7330_v37 = vld [vmem:[%s12122_s2 + $0x118] sm:$0xf0] }
 0xc0a   : > { %v3097_v5 = vmul.f32 %v3070_v59, %v9865_v51  ;;  %v7333_v6 = vor.u32 %v7800_v16, %v7330_v37  ;;  %v7285_v16 = vld [vmem:[%s12124_s4 + $0x3] ss:$8 sm:$0x30] }
 0xc0b   : > { %v8068_v38 = vpop.eup %8067  ;;  %v3000_v20 = vadd.f32 1e-05, %v2991_v44 }
 0xc0c   : > { %v3072_v8 = vmul.f32 %v8068_v38, %v2999_v14  ;;  %vm3078_vm10 = vweird.f32 %v8068_v38  ;;  %v3107_v58 = vmul.f32 %v9907_v56, %v3097_v5  ;;  %3432 = vmatpush.bf16.msrb.mxu2 %v7333_v6  ;;  %v7794_v14 = vld [vmem:[%s12122_s2 + $0xd4] sm:$0xf] }
 0xc0d   : > { %8069 = vrsqrt.f32 %v3000_v20  ;;  %vm3079_vm7 = vmor %vm3077_vm13, %vm3078_vm10  ;;  %vm3087_vm4 = vweird.f32 %v3000_v20  ;;  %vm3502_vm10 = vcmask 531456  }
 0xc0e   : > { %v3073_v35 = vmul.f32 %v8068_v38, %v3072_v8  ;;  %v3117_v21 = vadd.f32 %v9955_v10, %v3107_v58 }
 0xc10   : > { %v3074_v55 = vmul.f32 0.5, %v3073_v35 }
 0xc12   : > { %v3075_v22 = vsub.f32 1.5, %v3074_v55 }
 0xc13   : > { %v8070_v2 = vpop.eup %8069 }
 0xc14   : > { %v3076_v13 = vmul.f32 %v8068_v38, %v3075_v22  ;;  %v3082_v48 = vmul.f32 %v8070_v2, %v3000_v20  ;;  %vm3088_vm8 = vweird.f32 %v8070_v2 }
 0xc15   : > { %vm3089_vm9 = vmor %vm3087_vm4, %vm3088_vm8 }
 0xc16   : > { %v3080_v33 = vsel %vm3079_vm7, %v8068_v38, %v3076_v13  ;;  %v3083_v27 = vmul.f32 %v8070_v2, %v3082_v48 }
 0xc17   : > { %v3098_v11 = vmul.f32 %v3080_v33, %v9874_v42  ;;  %v7803_v42 = vld [vmem:[%s12122_s2 + $0x114] sm:$0xf0] }
 0xc18   : > { %v3084_v29 = vmul.f32 0.5, %v3083_v27  ;;  %v7329_v0 = vor.u32 %v7803_v42, %v7328_v46  ;;  %v7284_v42 = vld [vmem:[%s12124_s4 + $0x3] ss:$8 sm:$0xf] }
 0xc19   : > { %v3108_v26 = vmul.f32 %v9907_v56, %v3098_v11  ;;  %v10116_v37 = vor.u32 %v7285_v16, %v7284_v42 }
 0xc1a   : > { %v3085_v3 = vsub.f32 1.5, %v3084_v29  ;;  %3399 = vmatpush.bf16.msrb.mxu0 %v7329_v0 }
 0xc1b   : > { %v3118_v15 = vadd.f32 %v9955_v10, %v3108_v26  ;;  %v3176_v36 = vperm.slane %v10116_v37, 2 }
 0xc1c   : > { %v3086_v51 = vmul.f32 %v8070_v2, %v3085_v3 }
 0xc1d   : > { %v3171_v24 = vpack.c.bf16 %v3118_v15, %v3117_v21 }
 0xc1e   : > { %v3090_v28 = vsel %vm3089_vm9, %v8070_v2, %v3086_v51  ;;  %3400 = vmatpush.bf16.msrb.mxu0 %v7305_v23 }
 0xc1f   : > { %7337 = vmatmul.msk.bf16.gmra.mxu0 %vm616_vm1, %v3171_v24  ;;  %7342 = vmatmul.msk.bf16.gmra.mxu2 %vm616_vm1, %v3171_v24  ;;  %v3099_v45 = vmul.f32 %v3090_v28, %v9881_v49  ;;  %v7309_v49 = vor.u32 %v7794_v14, %v7306_v4 }
 0xc20   : > { %7347 = vmatmul.msk.bf16.gmra.mxu1 %vm616_vm1, %v3171_v24  ;;  %7352 = vmatmul.msk.bf16.gmra.mxu3 %vm616_vm1, %v3171_v24 }
 0xc21   : > { %v3109_v62 = vmul.f32 %v9907_v56, %v3099_v45  ;;  %3433 = vmatpush.bf16.msrb.mxu2 %v7309_v49  ;;  %v10064_v56 = vpop.f32.mrf.mxu0  ;;  %v10121_v45 = vperm.slane %v10116_v37, 0 }
 0xc23   : > { %v3119_v44 = vadd.f32 %v9955_v10, %v3109_v62  ;;  %v10066_v10 = vpop.f32.mrf.mxu1 }
 0xc25   : > { %v3172_v38 = vpack.c.bf16 %v3119_v44, %v3119_v44  ;;  %v10128_v44 = vperm.slane %v10116_v37, 1 }
 0xc27   : > { %v10068_v20 = vpop.f32.mrf.mxu2 }
 0xc28   : > { %v10070_v30 = vpop.f32.mrf.mxu3 }
 0xc2b   : > { %v10074_v8 = vpop.f32.mrf.mxu1 }
 0xc2f   : > { %7338 = vmatmul.msk.bf16.gmra.mxu0 %vm616_vm1, %v3172_v38  ;;  %7343 = vmatmul.msk.bf16.gmra.mxu2 %vm616_vm1, %v3172_v38 }
 0xc30   : > { %7348 = vmatmul.msk.bf16.gmra.mxu1 %vm616_vm1, %v3172_v38  ;;  %7353 = vmatmul.msk.bf16.gmra.mxu3 %vm616_vm1, %v3172_v38  ;;  %v10080_v35 = vpop.f32.mrf.mxu3 }
 0xc34   : > { %v10084_v59 = vpop.f32.mrf.mxu1 }
 0xc3a   : > { %v10088_v22 = vpop.f32.mrf.mxu3 }
 0xc3c   : > { %v3343_v5 = vpop.f32.mrf.mxu1 }
 0xc3f   : > { %7354 = vmatmul.msk.bf16.vlgmr.msrb.gmra.mxu0 %vm616_vm1, %v9963_v60  ;;  %7359 = vmatmul.msk.bf16.vlgmr.msrb.gmra.mxu2 %vm616_vm1, %v9963_v60  ;;  %v10072_v60 = vpop.f32.mrf.mxu0 }
 0xc42   : > { %v3376_v48 = vpop.f32.mrf.mxu3 }
 0xc44   : > { %v3346_v27 = vpop.f32.mrf.mxu1 }
 0xc45   : > { %v3347_v53 = vadd.f32 %v3346_v27, %v3176_v36 }
 0xc4a   : > { %v3379_v11 = vpop.f32.mrf.mxu3 }
 0xc4c   : > { %v3348_v26 = vpop.f32.mrf.mxu1 }
 0xc4d   : > { %v3349_v25 = vadd.f32 %v3348_v26, %v3176_v36 }
 0xc4f   : > { %7355 = vmatmul.msk.bf16.gmra.mxu0 %vm616_vm1, %v9982_v18  ;;  %7360 = vmatmul.msk.bf16.gmra.mxu2 %vm616_vm1, %v9982_v18  ;;  %v10078_v18 = vpop.f32.mrf.mxu2  ;;  %v3466_v41 = vpack.c.bf16 %v3349_v25, %v3347_v53  ;;  %v3339_v25 = vadd.f32 %v10074_v8, %v3176_v36 }
 0xc52   : > { %v3381_v21 = vpop.f32.mrf.mxu3 }
 0xc57   : > { %v10086_v55 = vpop.f32.mrf.mxu2 }
 0xc5f   : > { %7356 = vmatmul.msk.bf16.gmra.mxu0 %vm616_vm1, %v9998_v19  ;;  %7361 = vmatmul.msk.bf16.gmra.mxu2 %vm616_vm1, %v9998_v19  ;;  %v10082_v19 = vpop.f32.mrf.mxu0  ;;  %v10094_v13 = vpop.f32.mrf.mxu2 }
 0xc67   : > { %v10092_v2 = vpop.f32.mrf.mxu0  ;;  %v10098_v58 = vpop.f32.mrf.mxu2 }
 0xc6f   : > { %7357 = vmatmul.msk.bf16.gmra.mxu0 %vm616_vm1, %v3171_v24  ;;  %7362 = vmatmul.msk.bf16.gmra.mxu2 %vm616_vm1, %v3171_v24  ;;  %v10096_v33 = vpop.f32.mrf.mxu0  ;;  %v10102_v3 = vpop.f32.mrf.mxu2 }
 0xc77   : > { %v10100_v29 = vpop.f32.mrf.mxu0 }
 0xc7f   : > { %7358 = vmatmul.msk.bf16.gmra.mxu0 %vm616_vm1, %v3172_v38  ;;  %7363 = vmatmul.msk.bf16.gmra.mxu2 %vm616_vm1, %v3172_v38  ;;  %v3177_v38 = vperm.slane %v10116_v37, 3 }
 0xc81   : > { %v3375_v53 = vadd.f32 %v10088_v22, %v3177_v38  ;;  %v3271_v22 = vadd.f32 %v10064_v56, %v10121_v45 }
 0xc9c   : > { %v10104_v15 = vpop.f32.mrf.mxu0 }
 0xc9d   : > { %v3351_v51 = vpop.f32.mrf.mxu1 }
 0xca2   : > { %v10106_v24 = vpop.f32.mrf.mxu2 }
 0xca3   : > { %v3384_v46 = vpop.f32.mrf.mxu3 }
 0xca4   : > { %v10114_v28 = vpop.f32.mrf.mxu0  ;;  %v3385_v17 = vadd.f32 %v3384_v46, %v3177_v38 }
 0xca5   : > { %v3353_v0 = vpop.f32.mrf.mxu1 }
 0xca6   : > { %v3354_v40 = vadd.f32 %v3353_v0, %v3176_v36  ;;  %v3382_v0 = vadd.f32 %v3381_v21, %v3177_v38  ;;  %v3370_v21 = vadd.f32 %v10070_v30, %v3177_v38 }
 0xcaa   : > { %v10118_v6 = vpop.f32.mrf.mxu2 }
 0xcab   : > { %v3386_v1 = vpop.f32.mrf.mxu3 }
 0xcac   : > { %v3290_v14 = vpop.f32.mrf.mxu0 }
 0xcad   : > { %v10125_v23 = vadd.f32 %v3290_v14, %v10121_v45  ;;  %v3356_v4 = vpop.f32.mrf.mxu1  ;;  %v3352_v14 = vadd.f32 %v3351_v51, %v3176_v36 }
 0xcae   : > { %v3357_v49 = vadd.f32 %v3356_v4, %v3176_v36  ;;  %v3387_v4 = vadd.f32 %v3386_v1, %v3177_v38  ;;  %v3304_v1 = vadd.f32 %v10068_v20, %v10128_v44  ;;  %v3309_v20 = vadd.f32 %v10086_v55, %v10128_v44 }
 0xcaf   : > { %v3467_v34 = vpack.c.bf16 %v3354_v40, %v3352_v14  ;;  %v3377_v40 = vadd.f32 %v3376_v48, %v3177_v38  ;;  %v3273_v48 = vadd.f32 %v10072_v60, %v10121_v45  ;;  %v3276_v14 = vadd.f32 %v10082_v19, %v10121_v45 }
 0xcb0   : > { %v3468_v62 = vpack.c.bf16 %v3357_v49, %v3357_v49  ;;  %v3281_v19 = vadd.f32 %v10096_v33, %v10121_v45  ;;  %v3314_v55 = vadd.f32 %v10098_v58, %v10128_v44  ;;  %v3179_v33 = vperm.slane %v10116_v37, 5 }
 0xcb1   : > { %v3459_v46 = vpack.c.bf16 %v3273_v48, %v3271_v22  ;;  %v3288_v58 = vadd.f32 %v10114_v28, %v10121_v45 }
 0xcb2   : > { %3472 = vmatpush.bf16.xpose.msra.mxu1 %v3468_v62  ;;  %v3323_v42 = vpop.f32.mrf.mxu2 }
 0xcb3   : > { %v10132_v16 = vadd.f32 %v3323_v42, %v10128_v44  ;;  %v3389_v32 = vpop.f32.mrf.mxu3  ;;  %v3674_v42 = vpack.c.bf16 %v3387_v4, %v3385_v17  ;;  %v3337_v17 = vadd.f32 %v10066_v10, %v3176_v36  ;;  %v3306_v10 = vadd.f32 %v10078_v18, %v10128_v44 }
 0xcb4   : > { %v3390_v7 = vadd.f32 %v3389_v32, %v3177_v38  ;;  %v3292_v63 = vpop.f32.mrf.mxu0  ;;  %v3311_v18 = vadd.f32 %v10094_v13, %v10128_v44  ;;  %v3316_v13 = vadd.f32 %v10102_v3, %v10128_v44 }
 0xcb5   : > { %v3358_v50 = vpop.f32.mrf.mxu1  ;;  %v3380_v63 = vadd.f32 %v3379_v11, %v3177_v38  ;;  %v3464_v27 = vpack.c.bf16 %v3339_v25, %v3337_v17  ;;  %v3666_v60 = vpack.c.bf16 %v3306_v10, %v3304_v1  ;;  %v8381_v17 = vmov 0  }
 0xcb6   : > { %v3675_v39 = vpack.c.bf16 %v3390_v7, %v3390_v7  ;;  %v3344_v50 = vadd.f32 %v3343_v5, %v3176_v36  ;;  %v3672_v5 = vpack.c.bf16 %v3377_v40, %v3375_v53  ;;  %v3668_v25 = vpack.c.bf16 %v3316_v13, %v3314_v55 }
 0xcb8   : > { %3679 = vmatpush.bf16.xpose.msra.mxu0 %v3675_v39  ;;  %v3673_v39 = vpack.c.bf16 %v3382_v0, %v3380_v63  ;;  %v3667_v0 = vpack.c.bf16 %v3311_v18, %v3309_v20 }
 0xcba   : > { %3473 = vmatpush.bf16.xpose.msra.mxu1 %v3467_v34  ;;  %v3325_v49 = vpop.f32.mrf.mxu2  ;;  %v3342_v34 = vadd.f32 %v10084_v59, %v3176_v36  ;;  %v3372_v59 = vadd.f32 %v10080_v35, %v3177_v38  ;;  %v3278_v38 = vadd.f32 %v10092_v2, %v10121_v45  ;;  %v3283_v2 = vadd.f32 %v10100_v29, %v10121_v45 }
 0xcbb   : > { %v3391_v57 = vpop.f32.mrf.mxu3  ;;  %v10180_v29 = vsel %vm2827_vm5, 65535, %v8381_v17 }
 0xcbc   : > { %v10134_v62 = vpop.f32.mrf.mxu0  ;;  %v3465_v57 = vpack.c.bf16 %v3344_v50, %v3342_v34  ;;  %v3671_v51 = vpack.c.bf16 %v3372_v59, %v3370_v21  ;;  %v3460_v4 = vpack.c.bf16 %v3278_v38, %v3276_v14  ;;  %v3461_v34 = vpack.c.bf16 %v3283_v2, %v3281_v19 }
 0xcc0   : > { %3680 = vmatpush.bf16.xpose.msra.mxu0 %v3674_v42 }
 0xcc2   : > { %3474 = vmatpush.bf16.xpose.msra.mxu1 %v3466_v41  ;;  %v10136_v32 = vpop.f32.mrf.mxu2 }
 0xcc4   : > { %v10138_v7 = vpop.f32.mrf.mxu0 }
 0xcc8   : > { %3681 = vmatpush.bf16.xpose.msra.mxu0 %v3673_v39 }
 0xcca   : > { %3475 = vmatpush.bf16.xpose.msra.mxu1 %v3465_v57  ;;  %v10141_v26 = vpop.f32.mrf.mxu2  ;;  %v3178_v57 = vperm.slane %v10116_v37, 4 }
 0xccc   : > { %v10145_v41 = vpop.f32.mrf.mxu0  ;;  %v3405_v2 = vadd.f32 %v10138_v7, %v3178_v57  ;;  %v3436_v7 = vadd.f32 %v10136_v32, %v3179_v33 }
 0xcd0   : > { %3682 = vmatpush.bf16.xpose.msra.mxu0 %v3672_v5 }
 0xcd2   : > { %3476 = vmatpush.bf16.xpose.msra.mxu1 %v3464_v27  ;;  %v10149_v11 = vpop.f32.mrf.mxu2 }
 0xcd4   : > { %v3409_v8 = vpop.f32.mrf.mxu0 }
 0xcd5   : > { %v3410_v28 = vadd.f32 %v3409_v8, %v3178_v57 }
 0xcd8   : > { %3683 = vmatpush.bf16.xpose.msra.mxu0 %v3671_v51  ;;  %v3286_v51 = vadd.f32 %v10104_v15, %v10121_v45  ;;  %v3319_v15 = vadd.f32 %v10106_v24, %v10128_v44  ;;  %v3408_v45 = vadd.f32 %v10145_v41, %v3178_v57  ;;  %v3441_v24 = vadd.f32 %v10149_v11, %v3179_v33 }
 0xcd9   : > { %3477 = vmatmul.bf16.vlgmr.msra.gmra.mxu1 %v3459_v46 }
 0xcda   : > { %v10158_v35 = vpop.f32.mrf.mxu2 }
 0xcdb   : > { %v3443_v8 = vadd.f32 %v10158_v35, %v3179_v33  ;;  %v3670_v35 = vpack.c.bf16 %v10132_v16, %v10132_v16 }
 0xcdc   : > { %v3412_v36 = vpop.f32.mrf.mxu0 }
 0xcdd   : > { %v3413_v38 = vadd.f32 %v3412_v36, %v3178_v57  ;;  %v3814_v41 = vpack.c.bf16 %v3443_v8, %v3441_v24 }
 0xcdf   : > { %3684 = vmatmul.bf16.vlgmr.msra.gmra.mxu0 %v3666_v60  ;;  %v3462_v60 = vpack.c.bf16 %v3288_v58, %v3286_v51 }
 0xce2   : > { %v3445_v30 = vpop.f32.mrf.mxu2 }
 0xce3   : > { %v3446_v19 = vadd.f32 %v3445_v30, %v3179_v33  ;;  %v3463_v30 = vpack.c.bf16 %v10125_v23, %v10125_v23 }
 0xce4   : > { %v3414_v56 = vpop.f32.mrf.mxu0 }
 0xce5   : > { %v3415_v46 = vadd.f32 %v3414_v56, %v3178_v57 }
 0xce7   : > { %v3610_v18 = vpack.c.bf16 %v3415_v46, %v3413_v38 }
 0xce9   : > { %3482 = vmatmul.bf16.gmra.mxu1 %v3460_v4  ;;  %v3321_v4 = vadd.f32 %v10118_v6, %v10128_v44  ;;  %v3403_v6 = vadd.f32 %v10134_v62, %v3178_v57  ;;  %v3438_v44 = vadd.f32 %v10141_v26, %v3179_v33  ;;  %v8382_v26 = vmov -1e+30  }
 0xcea   : > { %v3447_v49 = vpop.f32.mrf.mxu2 }
 0xceb   : > { %v3448_v56 = vadd.f32 %v3447_v49, %v3179_v33  ;;  %v3813_v62 = vpack.c.bf16 %v3438_v44, %v3436_v7  ;;  %v12182_v49 = vlaneseq }
 0xcec   : > { %v3417_v42 = vpop.f32.mrf.mxu0 }
 0xced   : > { %v3418_v48 = vadd.f32 %v3417_v42, %v3178_v57  ;;  %v10205_v11 = vshrl.u32 %v12182_v49, 7 }
 0xcef   : > { %3689 = vmatmul.bf16.gmra.mxu0 %v3667_v0  ;;  %v3669_v0 = vpack.c.bf16 %v3321_v4, %v3319_v15  ;;  %vm2881_vm5 = vcmp.le.s32.totalorder %v9575_v47, %v10205_v11  ;;  %v2873_v16 = vadd.s32 8, %v10205_v11  ;;  %v2874_v17 = vadd.s32 16, %v10205_v11 }
 0xcf0   : > { %v10210_v32 = vsel %vm2881_vm5, 0.0, %v8382_v26  ;;  %v2878_v8 = vadd.s32 48, %v10205_v11 }
 0xcf1   : > { %vm2882_vm13 = vcmp.le.s32.totalorder %v9575_v47, %v2873_v16  ;;  %vm2883_vm7 = vcmp.le.s32.totalorder %v9575_v47, %v2874_v17 }
 0xcf2   : > { %v3450_v50 = vpop.f32.mrf.mxu2  ;;  %vm2887_vm5 = vcmp.le.s32.totalorder %v9575_v47, %v2878_v8 }
 0xcf3   : > { %v3451_v20 = vadd.f32 %v3450_v50, %v3179_v33  ;;  %v3815_v50 = vpack.c.bf16 %v3448_v56, %v3446_v19 }
 0xcf4   : > { %v3419_v63 = vpop.f32.mrf.mxu0 }
 0xcf5   : > { %v3420_v27 = vadd.f32 %v3419_v63, %v3178_v57  ;;  %v3609_v63 = vpack.c.bf16 %v3410_v28, %v3408_v45  ;;  %v2877_v45 = vadd.s32 40, %v10205_v11 }
 0xcf7   : > { %v3611_v10 = vpack.c.bf16 %v3420_v27, %v3418_v48  ;;  %v10240_v48 = vsel %vm2883_vm7, 0.0, %v8382_v26  ;;  %vm2886_vm9 = vcmp.le.s32.totalorder %v9575_v47, %v2877_v45 }
 0xcf9   : > { %3487 = vmatmul.bf16.gmra.mxu1 %v3461_v34  ;;  %v3608_v34 = vpack.c.bf16 %v3405_v2, %v3403_v6  ;;  %v10285_v6 = vsel %vm2886_vm9, 0.0, %v8382_v26 }
 0xcfa   : > { %v3452_v39 = vpop.f32.mrf.mxu2 }
 0xcfb   : > { %v3453_v37 = vadd.f32 %v3452_v39, %v3179_v33 }
 0xcfc   : > { %v3422_v40 = vpop.f32.mrf.mxu0 }
 0xcfd   : > { %v3423_v53 = vadd.f32 %v3422_v40, %v3178_v57  ;;  %v3816_v36 = vpack.c.bf16 %v3453_v37, %v3451_v20  ;;  %v2876_v37 = vadd.s32 32, %v10205_v11 }
 0xcff   : > { %v3612_v5 = vpack.c.bf16 %v3423_v53, %v3423_v53  ;;  %3694 = vmatmul.bf16.gmra.mxu0 %v3668_v25  ;;  %v10225_v53 = vsel %vm2882_vm13, 0.0, %v8382_v26  ;;  %vm2885_vm4 = vcmp.le.s32.totalorder %v9575_v47, %v2876_v37 }
 0xd00   : > { %v10270_v15 = vsel %vm2885_vm4, 0.0, %v8382_v26 }
 0xd01   : > { %v3631_v3 = vand.u32 %v10180_v29, %v3612_v5 }
 0xd02   : > { %v3455_v59 = vpop.f32.mrf.mxu2 }
 0xd03   : > { %v3456_v21 = vadd.f32 %v3455_v59, %v3179_v33  ;;  %3636 = vmatpush.bf16.msra.mxu3 %v3631_v3 }
 0xd04   : > { %v3424_v22 = vpop.f32.mrf.mxu0 }
 0xd05   : > { %v3817_v1 = vpack.c.bf16 %v3456_v21, %v3456_v21  ;;  %v2875_v21 = vadd.s32 24, %v10205_v11 }
 0xd07   : > { %v3834_v14 = vand.u32 %v3817_v1, %v10180_v29  ;;  %3637 = vmatpush.bf16.msra.mxu3 %v3611_v10  ;;  %vm2884_vm8 = vcmp.le.s32.totalorder %v9575_v47, %v2875_v21 }
 0xd08   : > { %v10255_v38 = vsel %vm2884_vm8, 0.0, %v8382_v26  ;;  %vm3527_vm8 = vcmask 524288  }
 0xd09   : > { %3492 = vmatmul.bf16.gmra.mxu1 %v3462_v60  ;;  %3839 = vmatpush.bf16.msra.mxu2 %v3834_v14 }
 0xd0a   : > { %v3457_v42 = vpop.f32.mrf.mxu2 }
 0xd0b   : > { %3638 = vmatpush.bf16.msra.mxu3 %v3610_v18 }
 0xd0d   : > { %3840 = vmatpush.bf16.msra.mxu2 %v3816_v36 }
 0xd0f   : > { %3699 = vmatmul.bf16.gmra.mxu0 %v3669_v0  ;;  %3639 = vmatpush.bf16.msra.mxu3 %v3609_v63 }
 0xd11   : > { %3841 = vmatpush.bf16.msra.mxu2 %v3815_v50 }
 0xd13   : > { %3640 = vmatpush.bf16.msra.mxu3 %v3608_v34 }
 0xd15   : > { %3842 = vmatpush.bf16.msra.mxu2 %v3814_v41 }
 0xd19   : > { %3497 = vmatmul.bf16.gmra.mxu1 %v3463_v30  ;;  %3843 = vmatpush.bf16.msra.mxu2 %v3813_v62  ;;  %v10300_v30 = vsel %vm2887_vm5, 0.0, %v8382_v26  ;;  %v2879_v62 = vadd.s32 56, %v10205_v11 }
 0xd1b   : > { %vm2888_vm13 = vcmp.le.s32.totalorder %v9575_v47, %v2879_v62 }
 0xd1f   : > { %3704 = vmatmul.bf16.gmra.mxu0 %v3670_v35 }
 0xd56   : > { %v3478_v13 = vpop.f32.mrf.mxu1 }
 0xd57   : > { %v10213_v23 = vadd.f32 %v3478_v13, %v10210_v32 }
 0xd59   : > { %v3503_v39 = vsel %vm3502_vm10, %v10213_v23, -inf }
 0xd5a   : > { %3504 = vmax.xlane.f32.xlu2 %v3503_v39 }
 0xd5c   : > { %v3685_v55 = vpop.f32.mrf.mxu0 }
 0xd5d   : > { %v10219_v57 = vadd.f32 %v3685_v55, %v10210_v32 }
 0xd5e   : > { %v3480_v40 = vpop.f32.mrf.mxu1 }
 0xd5f   : > { %v3709_v25 = vsel %vm3502_vm10, %v10219_v57, -inf  ;;  %v10229_v5 = vadd.f32 %v3480_v40, %v10225_v53  ;;  %v10315_v40 = vsel %vm2888_vm13, 0.0, %v8382_v26 }
 0xd60   : > { %3710 = vmax.xlane.f32.xlu0 %v3709_v25  ;;  %12183 = vst [vmem:[#allocation14_spill] sm:$0xff] %v10315_v40 }
 0xd61   : > { %v3506_v58 = vsel %vm3502_vm10, %v10229_v5, -inf }
 0xd64   : > { %v3687_v33 = vpop.f32.mrf.mxu0 }
 0xd65   : > { %v10232_v27 = vadd.f32 %v3687_v33, %v10225_v53 }
 0xd66   : > { %v3483_v3 = vpop.f32.mrf.mxu1 }
 0xd67   : > { %v3712_v59 = vsel %vm3502_vm10, %v10232_v27, -inf  ;;  %v10244_v22 = vadd.f32 %v3483_v3, %v10240_v48 }
 0xd68   : > { %3713 = vmax.xlane.f32.xlu1 %v3712_v59  ;;  %3507 = vmax.xlane.f32.xlu0 %v3506_v58 }
 0xd69   : > { %v3509_v60 = vsel %vm3502_vm10, %v10244_v22, -inf }
 0xd6c   : > { %v3690_v51 = vpop.f32.mrf.mxu0 }
 0xd6d   : > { %v10247_v46 = vadd.f32 %v3690_v51, %v10240_v48 }
 0xd6e   : > { %v3485_v10 = vpop.f32.mrf.mxu1 }
 0xd6f   : > { %v3715_v1 = vsel %vm3502_vm10, %v10247_v46, -inf  ;;  %v10259_v14 = vadd.f32 %v3485_v10, %v10255_v38 }
 0xd70   : > { %3716 = vmax.xlane.f32.xlu1 %v3715_v1  ;;  %3510 = vmax.xlane.f32.xlu0 %v3509_v60 }
 0xd71   : > { %v3512_v42 = vsel %vm3502_vm10, %v10259_v14, -inf }
 0xd74   : > { %v3692_v4 = vpop.f32.mrf.mxu0 }
 0xd75   : > { %v10262_v28 = vadd.f32 %v3692_v4, %v10255_v38 }
 0xd76   : > { %v3488_v18 = vpop.f32.mrf.mxu1 }
 0xd77   : > { %v3718_v20 = vsel %vm3502_vm10, %v10262_v28, -inf  ;;  %v10274_v56 = vadd.f32 %v3488_v18, %v10270_v15 }
 0xd78   : > { %3719 = vmax.xlane.f32.xlu2 %v3718_v20  ;;  %3513 = vmax.xlane.f32.xlu1 %v3512_v42 }
 0xd79   : > { %v3515_v19 = vsel %vm3502_vm10, %v10274_v56, -inf }
 0xd7c   : > { %v3695_v36 = vpop.f32.mrf.mxu0 }
 0xd7d   : > { %v10277_v0 = vadd.f32 %v3695_v36, %v10270_v15 }
 0xd7e   : > { %v3490_v2 = vpop.f32.mrf.mxu1 }
 0xd7f   : > { %v3721_v63 = vsel %vm3502_vm10, %v10277_v0, -inf  ;;  %v10289_v50 = vadd.f32 %v3490_v2, %v10285_v6 }
 0xd80   : > { %3722 = vmax.xlane.f32.xlu2 %v3721_v63  ;;  %3516 = vmax.xlane.f32.xlu1 %v3515_v19 }
 0xd81   : > { %v3518_v41 = vsel %vm3502_vm10, %v10289_v50, -inf }
 0xd84   : > { %v3697_v34 = vpop.f32.mrf.mxu0 }
 0xd85   : > { %v10292_v24 = vadd.f32 %v3697_v34, %v10285_v6 }
 0xd86   : > { %v3493_v44 = vpop.f32.mrf.mxu1 }
 0xd87   : > { %v3724_v7 = vsel %vm3502_vm10, %v10292_v24, -inf  ;;  %v10304_v35 = vadd.f32 %v3493_v44, %v10300_v30 }
 0xd88   : > { %3519 = vmax.xlane.f32.xlu2 %v3518_v41  ;;  %3725 = vmax.xlane.f32.xlu0 %v3724_v7 }
 0xd89   : > { %v3521_v55 = vsel %vm3502_vm10, %v10304_v35, -inf }
 0xd8c   : > { %v3700_v49 = vpop.f32.mrf.mxu0 }
 0xd8d   : > { %v10307_v13 = vadd.f32 %v3700_v49, %v10300_v30 }
 0xd8e   : > { %v3495_v39 = vpop.f32.mrf.mxu1 }
 0xd8f   : > { %v3727_v16 = vsel %vm3502_vm10, %v10307_v13, -inf  ;;  %v10318_v25 = vadd.f32 %v3495_v39, %v10315_v40 }
 0xd90   : > { %3728 = vmax.xlane.f32.xlu0 %v3727_v16  ;;  %3522 = vmax.xlane.f32.xlu2 %v3521_v55 }
 0xd91   : > { %v3524_v58 = vsel %vm3502_vm10, %v10318_v25, -inf }
 0xd94   : > { %v3702_v17 = vpop.f32.mrf.mxu0 }
 0xd95   : > { %v10321_v33 = vadd.f32 %v3702_v17, %v10315_v40 }
 0xd96   : > { %v10323_v3 = vpop.f32.mrf.mxu1 }
 0xd97   : > { %v3730_v59 = vsel %vm3502_vm10, %v10321_v33, -inf }
 0xd98   : > { %3731 = vmax.xlane.f32.xlu1 %v3730_v59  ;;  %3525 = vmax.xlane.f32.xlu0 %v3524_v58 }
 0xd9c   : > { %v10329_v21 = vpop.f32.mrf.mxu0 }
 0xd9e   : > { %v3500_v51 = vpop.f32.mrf.mxu1 }
 0xda4   : > { %v3707_v10 = vpop.f32.mrf.mxu0 }
 0xdcd   : > { %v3505_v1 = vpop.xlane.xlu2 %3504 }
 0xdce   : > { %v3531_v60 = vsub.f32 %v10213_v23, %v3505_v1 }
 0xdd0   : > { %v3540_v37 = vmul.f32 1.442695, %v3531_v60 }
 0xdd2   : > { %8071 = vpow2.f32 %v3540_v37 }
 0xdd3   : > { %v3711_v4 = vpop.xlane.xlu0 %3710 }
 0xdd4   : > { %v3736_v18 = vsub.f32 %v10219_v57, %v3711_v4 }
 0xdd6   : > { %v3745_v20 = vmul.f32 1.442695, %v3736_v18 }
 0xdd8   : > { %v10333_v42 = vpop.eup %8071  ;;  %8073 = vpow2.f32 %v3745_v20 }
 0xdd9   : > { %v3558_v45 = vsel %vm3502_vm10, %v10333_v42, 0.0 }
 0xdda   : > { %3559 = vadd.xlane.f32.xlu0 %v3558_v45 }
 0xddb   : > { %v3714_v36 = vpop.xlane.xlu1 %3713  ;;  %v3508_v2 = vpop.xlane.xlu0 %3507 }
 0xddc   : > { %v3737_v63 = vsub.f32 %v10232_v27, %v3714_v36  ;;  %v3532_v19 = vsub.f32 %v10229_v5, %v3508_v2 }
 0xdde   : > { %v10339_v23 = vpop.eup %8073  ;;  %v3747_v8 = vmul.f32 1.442695, %v3737_v63  ;;  %v3542_v34 = vmul.f32 1.442695, %v3532_v19 }
 0xddf   : > { %v3763_v57 = vsel %vm3502_vm10, %v10339_v23, 0.0 }
 0xde0   : > { %8075 = vpow2.f32 %v3747_v8  ;;  %3764 = vadd.xlane.f32.xlu1 %v3763_v57 }
 0xde1   : > { %8077 = vpow2.f32 %v3542_v34 }
 0xde3   : > { %v3717_v44 = vpop.xlane.xlu1 %3716  ;;  %v3511_v41 = vpop.xlane.xlu0 %3510 }
 0xde4   : > { %v3738_v7 = vsub.f32 %v10247_v46, %v3717_v44  ;;  %v3533_v62 = vsub.f32 %v10244_v22, %v3511_v41 }
 0xde6   : > { %v10345_v49 = vpop.eup %8075  ;;  %v3749_v27 = vmul.f32 1.442695, %v3738_v7  ;;  %v3544_v5 = vmul.f32 1.442695, %v3533_v62 }
 0xde7   : > { %v10347_v39 = vpop.eup %8077  ;;  %v3766_v16 = vsel %vm3502_vm10, %v10345_v49, 0.0 }
 0xde8   : > { %8079 = vpow2.f32 %v3749_v27  ;;  %v3561_v55 = vsel %vm3502_vm10, %v10347_v39, 0.0  ;;  %3767 = vadd.xlane.f32.xlu2 %v3766_v16 }
 0xde9   : > { %8081 = vpow2.f32 %v3544_v5  ;;  %3562 = vadd.xlane.f32.xlu1 %v3561_v55 }
 0xdeb   : > { %v3720_v17 = vpop.xlane.xlu2 %3719  ;;  %v3514_v46 = vpop.xlane.xlu1 %3513 }
 0xdec   : > { %v3739_v22 = vsub.f32 %v10262_v28, %v3720_v17  ;;  %v3534_v59 = vsub.f32 %v10259_v14, %v3514_v46 }
 0xdee   : > { %v10355_v58 = vpop.eup %8079  ;;  %v3751_v51 = vmul.f32 1.442695, %v3739_v22  ;;  %v3546_v10 = vmul.f32 1.442695, %v3534_v59 }
 0xdef   : > { %v10357_v1 = vpop.eup %8081  ;;  %v3769_v60 = vsel %vm3502_vm10, %v10355_v58, 0.0 }
 0xdf0   : > { %8083 = vpow2.f32 %v3751_v51  ;;  %v3564_v37 = vsel %vm3502_vm10, %v10357_v1, 0.0  ;;  %3770 = vadd.xlane.f32.xlu2 %v3769_v60 }
 0xdf1   : > { %8085 = vpow2.f32 %v3546_v10  ;;  %3565 = vadd.xlane.f32.xlu1 %v3564_v37 }
 0xdf3   : > { %v3723_v4 = vpop.xlane.xlu2 %3722  ;;  %v3517_v28 = vpop.xlane.xlu1 %3516 }
 0xdf4   : > { %v3740_v14 = vsub.f32 %v10277_v0, %v3723_v4  ;;  %v3535_v18 = vsub.f32 %v10274_v56, %v3517_v28  ;;  %v2880_v0 = vadd.s32 64, %v10205_v11 }
 0xdf6   : > { %v10365_v20 = vpop.eup %8083  ;;  %v3753_v45 = vmul.f32 1.442695, %v3740_v14  ;;  %v3548_v36 = vmul.f32 1.442695, %v3535_v18  ;;  %vm2889_vm7 = vcmp.le.s32.totalorder %v9575_v47, %v2880_v0 }
 0xdf7   : > { %v10367_v2 = vpop.eup %8085  ;;  %v3772_v63 = vsel %vm3502_vm10, %v10365_v20, 0.0 }
 0xdf8   : > { %8087 = vpow2.f32 %v3753_v45  ;;  %3773 = vadd.xlane.f32.xlu0 %v3772_v63  ;;  %v3567_v19 = vsel %vm3502_vm10, %v10367_v2, 0.0 }
 0xdf9   : > { %8089 = vpow2.f32 %v3548_v36  ;;  %3568 = vadd.xlane.f32.xlu2 %v3567_v19 }
 0xdfb   : > { %v3520_v8 = vpop.xlane.xlu2 %3519  ;;  %v3726_v56 = vpop.xlane.xlu0 %3725 }
 0xdfc   : > { %v3536_v34 = vsub.f32 %v10289_v50, %v3520_v8  ;;  %v3741_v57 = vsub.f32 %v10292_v24, %v3726_v56  ;;  %v10386_v50 = vsel %vm2889_vm7, 0.0, %v8382_v26 }
 0xdfd   : > { %12184 = vst [vmem:[#allocation15_spill] sm:$0xff] %v10386_v50  ;;  %v10390_v16 = vadd.f32 %v10323_v3, %v10386_v50  ;;  %v10406_v60 = vadd.f32 %v10329_v21, %v10386_v50 }
 0xdfe   : > { %v10376_v44 = vpop.eup %8087  ;;  %v3550_v41 = vmul.f32 1.442695, %v3536_v34  ;;  %v3755_v7 = vmul.f32 1.442695, %v3741_v57 }
 0xdff   : > { %v10379_v62 = vpop.eup %8089  ;;  %v3775_v27 = vsel %vm3502_vm10, %v10376_v44, 0.0  ;;  %v3733_v63 = vsel %vm3527_vm8, %v10406_v60, -inf }
 0xe00   : > { %8091 = vpow2.f32 %v3550_v41  ;;  %3776 = vadd.xlane.f32.xlu0 %v3775_v27  ;;  %v3570_v11 = vsel %vm3502_vm10, %v10379_v62, 0.0 }
 0xe01   : > { %8093 = vpow2.f32 %v3755_v7  ;;  %3571 = vadd.xlane.f32.xlu2 %v3570_v11 }
 0xe03   : > { %v3729_v24 = vpop.xlane.xlu0 %3728  ;;  %v3523_v5 = vpop.xlane.xlu2 %3522 }
 0xe04   : > { %v3742_v55 = vsub.f32 %v10307_v13, %v3729_v24  ;;  %v3537_v17 = vsub.f32 %v10304_v35, %v3523_v5  ;;  %v3528_v13 = vsel %vm3527_vm8, %v10390_v16, -inf }
 0xe06   : > { %v10394_v46 = vpop.eup %8091  ;;  %v3757_v22 = vmul.f32 1.442695, %v3742_v55  ;;  %v3552_v59 = vmul.f32 1.442695, %v3537_v17 }
 0xe07   : > { %v10396_v51 = vpop.eup %8093  ;;  %v3573_v26 = vsel %vm3502_vm10, %v10394_v46, 0.0 }
 0xe08   : > { %8095 = vpow2.f32 %v3757_v22  ;;  %v3778_v10 = vsel %vm3502_vm10, %v10396_v51, 0.0  ;;  %3574 = vadd.xlane.f32.xlu0 %v3573_v26 }
 0xe09   : > { %8097 = vpow2.f32 %v3552_v59  ;;  %3779 = vadd.xlane.f32.xlu1 %v3778_v10  ;;  %3529 = vmax.xlane.f32.xlu2 %v3528_v13 }
 0xe0b   : > { %v3732_v35 = vpop.xlane.xlu1 %3731  ;;  %v3526_v3 = vpop.xlane.xlu0 %3525 }
 0xe0c   : > { %v3743_v37 = vsub.f32 %v10321_v33, %v3732_v35  ;;  %v3538_v4 = vsub.f32 %v10318_v25, %v3526_v3 }
 0xe0e   : > { %v10410_v28 = vpop.eup %8095  ;;  %v3759_v14 = vmul.f32 1.442695, %v3743_v37  ;;  %v3554_v18 = vmul.f32 1.442695, %v3538_v4 }
 0xe0f   : > { %v10412_v45 = vpop.eup %8097  ;;  %v3781_v36 = vsel %vm3502_vm10, %v10410_v28, 0.0 }
 0xe10   : > { %8099 = vpow2.f32 %v3759_v14  ;;  %3782 = vadd.xlane.f32.xlu0 %v3781_v36  ;;  %v3576_v21 = vsel %vm3502_vm10, %v10412_v45, 0.0 }
 0xe11   : > { %8101 = vpow2.f32 %v3554_v18  ;;  %3734 = vmax.xlane.f32.xlu1 %v3733_v63  ;;  %3577 = vadd.xlane.f32.xlu2 %v3576_v21 }
 0xe16   : > { %v10420_v25 = vpop.eup %8099 }
 0xe17   : > { %v10422_v33 = vpop.eup %8101  ;;  %v3784_v19 = vsel %vm3502_vm10, %v10420_v25, 0.0 }
 0xe18   : > { %v3579_v0 = vsel %vm3502_vm10, %v10422_v33, 0.0 }
 0xe19   : > { %3785 = vadd.xlane.f32.xlu1 %v3784_v19  ;;  %3580 = vadd.xlane.f32.xlu0 %v3579_v0  ;;  %v7811_v19 = vld [vmem:[%s12123_s3 + $0x218] sm:$0xff] }
 0xe1a   : > { %3977 = vmatpush.bf16.msrb.mxu1 %v7811_v19  ;;  %v7817_v19 = vld [vmem:[%s12123_s3 + $0x248] sm:$0xff] }
 0xe4d   : > { %v3560_v56 = vpop.xlane.xlu0 %3559 }
 0xe53   : > { %v3765_v8 = vpop.xlane.xlu1 %3764 }
 0xe54   : > { %8103 = vrcp.f32 %v3765_v8 }
 0xe55   : > { %8105 = vrcp.f32 %v3560_v56  ;;  %v7809_v56 = vld [vmem:[%s12123_s3 + $0x208] sm:$0xff] }
 0xe5a   : > { %v8104_v41 = vpop.eup %8103 }
 0xe5b   : > { %v3768_v34 = vpop.xlane.xlu2 %3767  ;;  %v8106_v7 = vpop.eup %8105  ;;  %v3799_v24 = vmul.f32 %v8104_v41, %v10339_v23 }
 0xe5c   : > { %v3563_v57 = vpop.xlane.xlu1 %3562  ;;  %8107 = vrcp.f32 %v3768_v34  ;;  %v3594_v17 = vmul.f32 %v8106_v7, %v10333_v42 }
 0xe5d   : > { %8109 = vrcp.f32 %v3563_v57 }
 0xe62   : > { %v8108_v27 = vpop.eup %8107 }
 0xe63   : > { %v8110_v11 = vpop.eup %8109  ;;  %v3800_v5 = vmul.f32 %v8108_v27, %v10345_v49  ;;  %v3771_v55 = vpop.xlane.xlu2 %3770 }
 0xe64   : > { %v3595_v22 = vmul.f32 %v8110_v11, %v10347_v39  ;;  %v3566_v10 = vpop.xlane.xlu1 %3565  ;;  %8111 = vrcp.f32 %v3771_v55 }
 0xe65   : > { %v3808_v59 = vpack.c.bf16 %v3800_v5, %v3799_v24  ;;  %8113 = vrcp.f32 %v3566_v10 }
 0xe66   : > { %v3603_v26 = vpack.c.bf16 %v3595_v22, %v3594_v17 }
 0xe67   : > { %7369 = vmatmul.msk.bf16.vlgmr.msra.gmra.mxu2 %vm3502_vm10, %v3808_v59 }
 0xe68   : > { %7364 = vmatmul.msk.bf16.vlgmr.msra.gmra.mxu3 %vm3502_vm10, %v3603_v26 }
 0xe6a   : > { %v8112_v23 = vpop.eup %8111 }
 0xe6b   : > { %v3774_v13 = vpop.xlane.xlu0 %3773  ;;  %v8114_v49 = vpop.eup %8113  ;;  %v3801_v42 = vmul.f32 %v8112_v23, %v10355_v58 }
 0xe6c   : > { %8115 = vrcp.f32 %v3774_v13  ;;  %v3569_v35 = vpop.xlane.xlu2 %3568  ;;  %v3596_v14 = vmul.f32 %v8114_v49, %v10357_v1  ;;  %v7810_v1 = vld [vmem:[%s12123_s3 + $0x210] sm:$0xff] }
 0xe6d   : > { %8117 = vrcp.f32 %v3569_v35  ;;  %3978 = vmatpush.bf16.msrb.mxu1 %v7810_v1  ;;  %v7815_v1 = vld [vmem:[%s12123_s3 + $0x238] sm:$0xff] }
 0xe71   : > { %3979 = vmatpush.bf16.msrb.mxu1 %v7809_v56 }
 0xe72   : > { %v8116_v3 = vpop.eup %8115 }
 0xe73   : > { %v8118_v37 = vpop.eup %8117  ;;  %v3802_v39 = vmul.f32 %v8116_v3, %v10365_v20  ;;  %v3777_v4 = vpop.xlane.xlu0 %3776 }
 0xe74   : > { %v3597_v18 = vmul.f32 %v8118_v37, %v10367_v2  ;;  %v3572_v36 = vpop.xlane.xlu2 %3571 }
 0xe75   : > { %v3809_v63 = vpack.c.bf16 %v3802_v39, %v3801_v42  ;;  %8119 = vrcp.f32 %v3572_v36 }
 0xe76   : > { %v3604_v21 = vpack.c.bf16 %v3597_v18, %v3596_v14  ;;  %8121 = vrcp.f32 %v3777_v4 }
 0xe77   : > { %7370 = vmatmul.msk.bf16.gmra.mxu2 %vm3502_vm10, %v3809_v63 }
 0xe78   : > { %7365 = vmatmul.msk.bf16.gmra.mxu3 %vm3502_vm10, %v3604_v21  ;;  %v7806_v21 = vld [vmem:[%s12123_s3 + $0x1f0] sm:$0xff] }
 0xe7b   : > { %v3575_v58 = vpop.xlane.xlu0 %3574  ;;  %v8120_v34 = vpop.eup %8119 }
 0xe7c   : > { %v3780_v20 = vpop.xlane.xlu1 %3779  ;;  %8123 = vrcp.f32 %v3575_v58  ;;  %v3530_v2 = vpop.xlane.xlu2 %3529  ;;  %v3598_v27 = vmul.f32 %v8120_v34, %v10379_v62  ;;  %v7816_v58 = vld [vmem:[%s12123_s3 + $0x240] sm:$0xff] }
 0xe7d   : > { %8125 = vrcp.f32 %v3780_v20  ;;  %v3539_v0 = vsub.f32 %v10390_v16, %v3530_v2  ;;  %v8122_v57 = vpop.eup %8121  ;;  %v7808_v16 = vld [vmem:[%s12123_s3 + $0x200] sm:$0xff]  ;;  %v7814_v2 = vld [vmem:[%s12123_s3 + $0x230] sm:$0xff] }
 0xe7e   : > { %v3803_v5 = vmul.f32 %v8122_v57, %v10376_v44  ;;  %3980 = vmatpush.bf16.msrb.mxu1 %v7808_v16  ;;  %v7812_v34 = vld [vmem:[%s12123_s3 + $0x220] sm:$0xff] }
 0xe7f   : > { %v3556_v8 = vmul.f32 1.442695, %v3539_v0  ;;  %v7813_v0 = vld [vmem:[%s12123_s3 + $0x228] sm:$0xff] }
 0xe81   : > { %8127 = vpow2.f32 %v3556_v8 }
 0xe82   : > { %v8124_v41 = vpop.eup %8123 }
 0xe83   : > { %v8126_v7 = vpop.eup %8125  ;;  %v3599_v11 = vmul.f32 %v8124_v41, %v10394_v46  ;;  %v3783_v24 = vpop.xlane.xlu0 %3782  ;;  %v7807_v46 = vld [vmem:[%s12123_s3 + $0x1f8] sm:$0xff] }
 0xe84   : > { %v3804_v55 = vmul.f32 %v8126_v7, %v10396_v51  ;;  %v3735_v17 = vpop.xlane.xlu1 %3734  ;;  %v3578_v51 = vpop.xlane.xlu2 %3577  ;;  %3981 = vmatpush.bf16.msrb.mxu1 %v7807_v46 }
 0xe85   : > { %v3744_v22 = vsub.f32 %v10406_v60, %v3735_v17  ;;  %v3605_v59 = vpack.c.bf16 %v3599_v11, %v3598_v27 }
 0xe86   : > { %v3810_v26 = vpack.c.bf16 %v3804_v55, %v3803_v5 }
 0xe87   : > { %v10458_v10 = vpop.eup %8127  ;;  %v3761_v62 = vmul.f32 1.442695, %v3744_v22 }
 0xe88   : > { %7366 = vmatmul.msk.bf16.gmra.mxu3 %vm3502_vm10, %v3605_v59  ;;  %7371 = vmatmul.msk.bf16.gmra.mxu2 %vm3502_vm10, %v3810_v26  ;;  %v3582_v44 = vsel %vm3527_vm8, %v10458_v10, 0.0 }
 0xe89   : > { %8129 = vpow2.f32 %v3761_v62  ;;  %3583 = vadd.xlane.f32.xlu2 %v3582_v44  ;;  %3982 = vmatpush.bf16.msrb.mxu1 %v7806_v21 }
 0xe8a   : > { %8131 = vrcp.f32 %v3783_v24 }
 0xe8b   : > { %8133 = vrcp.f32 %v3578_v51 }
 0xe8c   : > { %v3786_v60 = vpop.xlane.xlu1 %3785  ;;  %v3581_v13 = vpop.xlane.xlu0 %3580 }
 0xe8d   : > { %8135 = vrcp.f32 %v3786_v60 }
 0xe8e   : > { %8137 = vrcp.f32 %v3581_v13 }
 0xe8f   : > { %v8130_v35 = vpop.eup %8129 }
 0xe90   : > { %v3787_v23 = vsel %vm3527_vm8, %v8130_v35, 0.0  ;;  %v8132_v49 = vpop.eup %8131 }
 0xe91   : > { %3788 = vadd.xlane.f32.xlu1 %v3787_v23  ;;  %v8134_v3 = vpop.eup %8133  ;;  %v3805_v39 = vmul.f32 %v8132_v49, %v10410_v28  ;;  %v7819_v28 = vld [vmem:[%s12123_s3 + $0x258] sm:$0xff] }
 0xe92   : > { %v3600_v14 = vmul.f32 %v8134_v3, %v10412_v45  ;;  %v7805_v45 = vld [vmem:[%s12123_s3 + $0x1e8] sm:$0xff]  ;;  %4010 = vmatpush.bf16.msrb.mxu3 %v7819_v28 }
 0xe93   : > { %v8136_v37 = vpop.eup %8135  ;;  %3983 = vmatpush.bf16.msrb.mxu1 %v7805_v45 }
 0xe94   : > { %v8138_v42 = vpop.eup %8137  ;;  %v3806_v4 = vmul.f32 %v8136_v37, %v10420_v25  ;;  %v7804_v25 = vld [vmem:[%s12123_s3 + $0x1e0] sm:$0xff] }
 0xe95   : > { %v3601_v18 = vmul.f32 %v8138_v42, %v10422_v33  ;;  %v7818_v33 = vld [vmem:[%s12123_s3 + $0x250] sm:$0xff] }
 0xe96   : > { %v3811_v36 = vpack.c.bf16 %v3806_v4, %v3805_v39  ;;  %4011 = vmatpush.bf16.msrb.mxu3 %v7818_v33  ;;  %v10513_v33 = vld [vmem:[%s12125_s5 + $0x153] ss:$0 sm:$0xff] }
 0xe97   : > { %v3606_v63 = vpack.c.bf16 %v3601_v18, %v3600_v14  ;;  %3984 = vmatpush.bf16.msrb.mxu1 %v7804_v25 }
 0xe98   : > { %7372 = vmatmul.msk.bf16.gmra.mxu2 %vm3502_vm10, %v3811_v36 }
 0xe99   : > { %7367 = vmatmul.msk.bf16.gmra.mxu3 %vm3502_vm10, %v3606_v63 }
 0xe9a   : > { %4012 = vmatpush.bf16.msrb.mxu3 %v7817_v19 }
 0xe9e   : > { %4013 = vmatpush.bf16.msrb.mxu3 %v7816_v58 }
 0xea2   : > { %4014 = vmatpush.bf16.msrb.mxu3 %v7815_v1 }
 0xea6   : > { %4015 = vmatpush.bf16.msrb.mxu3 %v7814_v2 }
 0xeaa   : > { %4016 = vmatpush.bf16.msrb.mxu3 %v7813_v0 }
 0xeae   : > { %4017 = vmatpush.bf16.msrb.mxu3 %v7812_v34 }
 0xeea   : > { %v3845_v7 = vpop.f32.mrf.mxu2 }
 0xeeb   : > { %v3642_v20 = vpop.f32.mrf.mxu3 }
 0xef2   : > { %v3847_v17 = vpop.f32.mrf.mxu2 }
 0xef3   : > { %v3644_v8 = vpop.f32.mrf.mxu3  ;;  %v3870_v60 = vpack.c.bf16 %v3847_v17, %v3845_v7 }
 0xef4   : > { %v3869_v56 = vpack.c.bf16 %v3644_v8, %v3642_v20 }
 0xef6   : > { %3985 = vmatmul.bf16.vlgmr.msrb.gmra.mxu1 %v3869_v56 }
 0xefa   : > { %v3850_v46 = vpop.f32.mrf.mxu2 }
 0xefb   : > { %v3647_v57 = vpop.f32.mrf.mxu3 }
 0xefc   : > { %v3584_v41 = vpop.xlane.xlu2 %3583 }
 0xefd   : > { %8139 = vrcp.f32 %v3584_v41 }
 0xf02   : > { %v3852_v13 = vpop.f32.mrf.mxu2 }
 0xf03   : > { %v8140_v27 = vpop.eup %8139  ;;  %v3649_v11 = vpop.f32.mrf.mxu3  ;;  %v3872_v37 = vpack.c.bf16 %v3852_v13, %v3850_v46 }
 0xf04   : > { %v3871_v24 = vpack.c.bf16 %v3649_v11, %v3647_v57  ;;  %v3789_v16 = vpop.xlane.xlu1 %3788  ;;  %v3602_v5 = vmul.f32 %v8140_v27, %v10458_v10 }
 0xf05   : > { %8141 = vrcp.f32 %v3789_v16 }
 0xf06   : > { %3990 = vmatmul.bf16.gmra.mxu1 %v3871_v24  ;;  %v3607_v55 = vpack.c.bf16 %v3602_v5, %v3602_v5 }
 0xf08   : > { %7368 = vmatmul.msk.bf16.gmra.mxu3 %vm3502_vm10, %v3607_v55 }
 0xf0b   : > { %v8142_v22 = vpop.eup %8141  ;;  %v3652_v59 = vpop.f32.mrf.mxu3 }
 0xf0c   : > { %v3807_v26 = vmul.f32 %v8142_v22, %v8130_v35  ;;  %v3855_v49 = vpop.f32.mrf.mxu2 }
 0xf0e   : > { %v3812_v62 = vpack.c.bf16 %v3807_v26, %v3807_v26 }
 0xf10   : > { %7373 = vmatmul.msk.bf16.gmra.mxu2 %vm3502_vm10, %v3812_v62 }
 0xf13   : > { %v3654_v44 = vpop.f32.mrf.mxu3 }
 0xf14   : > { %v3873_v51 = vpack.c.bf16 %v3654_v44, %v3652_v59  ;;  %v3857_v42 = vpop.f32.mrf.mxu2 }
 0xf15   : > { %v3874_v39 = vpack.c.bf16 %v3857_v42, %v3855_v49 }
 0xf16   : > { %3995 = vmatmul.bf16.gmra.mxu1 %v3873_v51 }
 0xf18   : > { %4018 = vmatmul.bf16.vlgmr.msrb.gmra.mxu3 %v3870_v60 }
 0xf1c   : > { %v3657_v10 = vpop.f32.mrf.mxu3  ;;  %v3860_v35 = vpop.f32.mrf.mxu2 }
 0xf24   : > { %v3659_v23 = vpop.f32.mrf.mxu3  ;;  %v3862_v4 = vpop.f32.mrf.mxu2 }
 0xf25   : > { %v3875_v3 = vpack.c.bf16 %v3659_v23, %v3657_v10  ;;  %v3876_v14 = vpack.c.bf16 %v3862_v4, %v3860_v35 }
 0xf27   : > { %4000 = vmatmul.bf16.gmra.mxu1 %v3875_v3 }
 0xf28   : > { %4023 = vmatmul.bf16.gmra.mxu3 %v3872_v37 }
 0xf38   : > { %4028 = vmatmul.bf16.gmra.mxu3 %v3874_v39 }
 0xf48   : > { %4033 = vmatmul.bf16.gmra.mxu3 %v3876_v14 }
 0xf73   : > { %v3986_v18 = vpop.f32.mrf.mxu1 }
 0xf74   : > { %v3987_v19 = vadd.f32 %v10513_v33, %v3986_v18 }
 0xf7b   : > { %v3988_v25 = vpop.f32.mrf.mxu1 }
 0xf7c   : > { %v3989_v56 = vadd.f32 %v10513_v33, %v3988_v25 }
 0xf83   : > { %v3991_v0 = vpop.f32.mrf.mxu1 }
 0xf8b   : > { %v3662_v36 = vpop.f32.mrf.mxu3  ;;  %v3993_v27 = vpop.f32.mrf.mxu1 }
 0xf8c   : > { %v3877_v63 = vpack.c.bf16 %v3662_v36, %v3662_v36  ;;  %v3994_v55 = vadd.f32 %v10513_v33, %v3993_v27 }
 0xf8e   : > { %4005 = vmatmul.bf16.gmra.mxu1 %v3877_v63  ;;  %v12185_v63 = vld [vmem:[#allocation2_spill] sm:$0xff] }
 0xf93   : > { %v3664_v21 = vpop.f32.mrf.mxu3  ;;  %v3865_v28 = vpop.f32.mrf.mxu2 }
 0xf94   : > { %v3878_v45 = vpack.c.bf16 %v3865_v28, %v3865_v28 }
 0xf96   : > { %4038 = vmatmul.bf16.gmra.mxu3 %v3878_v45 }
 0xf9b   : > { %v3867_v58 = vpop.f32.mrf.mxu2  ;;  %v4019_v1 = vpop.f32.mrf.mxu3 }
 0xf9c   : > { %v4020_v20 = vadd.f32 %v4019_v1, %v3987_v19 }
 0xf9e   : > { %v10517_v2 = vadd.f32 %v4020_v20, %v9754_v12  ;;  %v3992_v12 = vadd.f32 %v10513_v33, %v3991_v0  ;;  %v12186_v0 = vld [vmem:[#allocation12_spill] sm:$0xff] }
 0xfa0   : > { %v4054_v8 = vsel %vm616_vm1, %v10517_v2, 0.0 }
 0xfa1   : > { %4055 = vadd.xlane.f32.xlu0 %v4054_v8 }
 0xfa3   : > { %v4021_v34 = vpop.f32.mrf.mxu3 }
 0xfa4   : > { %v4022_v57 = vadd.f32 %v4021_v34, %v3989_v56 }
 0xfa6   : > { %v10523_v41 = vadd.f32 %v4022_v57, %v9762_v9  ;;  %v3996_v9 = vpop.f32.mrf.mxu1 }
 0xfa7   : > { %v3997_v62 = vadd.f32 %v10513_v33, %v3996_v9 }
 0xfa8   : > { %v4057_v7 = vsel %vm616_vm1, %v10523_v41, 0.0 }
 0xfa9   : > { %4058 = vadd.xlane.f32.xlu1 %v4057_v7 }
 0xfab   : > { %v4024_v11 = vpop.f32.mrf.mxu3 }
 0xfac   : > { %v4025_v24 = vadd.f32 %v4024_v11, %v3992_v12 }
 0xfae   : > { %v10529_v16 = vadd.f32 %v4025_v24, %v9770_v61  ;;  %v3998_v44 = vpop.f32.mrf.mxu1 }
 0xfaf   : > { %v3999_v13 = vadd.f32 %v10513_v33, %v3998_v44 }
 0xfb0   : > { %v4060_v5 = vsel %vm616_vm1, %v10529_v16, 0.0 }
 0xfb1   : > { %4061 = vadd.xlane.f32.xlu2 %v4060_v5 }
 0xfb3   : > { %v4026_v17 = vpop.f32.mrf.mxu3 }
 0xfb4   : > { %v4027_v22 = vadd.f32 %v4026_v17, %v3994_v55  ;;  %v7444_v17 = vld [vmem:[%s12122_s2 + $0x150] sm:$0xf] }
 0xfb6   : > { %v10535_v59 = vadd.f32 %v4027_v22, %v9778_v31  ;;  %v4001_v49 = vpop.f32.mrf.mxu1  ;;  %v7821_v22 = vld [vmem:[%s12122_s2 + $0x164] sm:$0xf0] }
 0xfb7   : > { %v4002_v37 = vadd.f32 %v10513_v33, %v4001_v49  ;;  %v12187_v49 = vld [vmem:[#allocation13_spill] sm:$0xff] }
 0xfb8   : > { %v4063_v26 = vsel %vm616_vm1, %v10535_v59, 0.0 }
 0xfb9   : > { %4064 = vadd.xlane.f32.xlu0 %v4063_v26 }
 0xfbb   : > { %v4029_v61 = vpop.f32.mrf.mxu3 }
 0xfbc   : > { %v4030_v46 = vadd.f32 %v4029_v61, %v3997_v62  ;;  %v7445_v62 = vor.u32 %v7821_v22, %v7444_v17 }
 0xfbe   : > { %v10541_v51 = vadd.f32 %v4030_v46, %v9786_v52  ;;  %v4003_v4 = vpop.f32.mrf.mxu1  ;;  %4315 = vmatpush.bf16.msrb.mxu0 %v7445_v62 }
 0xfbf   : > { %v4004_v45 = vadd.f32 %v10513_v33, %v4003_v4 }
 0xfc0   : > { %v4066_v60 = vsel %vm616_vm1, %v10541_v51, 0.0 }
 0xfc1   : > { %4067 = vadd.xlane.f32.xlu1 %v4066_v60 }
 0xfc3   : > { %v4031_v31 = vpop.f32.mrf.mxu3 }
 0xfc4   : > { %v4032_v10 = vadd.f32 %v4031_v31, %v3999_v13 }
 0xfc6   : > { %v10547_v23 = vadd.f32 %v4032_v10, %v9794_v54 }
 0xfc8   : > { %v4069_v3 = vsel %vm616_vm1, %v10547_v23, 0.0 }
 0xfc9   : > { %4070 = vadd.xlane.f32.xlu2 %v4069_v3 }
 0xfcb   : > { %v4034_v52 = vpop.f32.mrf.mxu3 }
 0xfcc   : > { %v4035_v42 = vadd.f32 %v4034_v52, %v4002_v37 }
 0xfce   : > { %v10553_v39 = vadd.f32 %v4035_v42, %v9802_v43 }
 0xfd0   : > { %v4072_v35 = vsel %vm616_vm1, %v10553_v39, 0.0 }
 0xfd1   : > { %4073 = vadd.xlane.f32.xlu2 %v4072_v35 }
 0xfd3   : > { %v4036_v54 = vpop.f32.mrf.mxu3 }
 0xfd4   : > { %v4037_v19 = vadd.f32 %v4036_v54, %v4004_v45 }
 0xfd6   : > { %v10567_v8 = vadd.f32 %v4037_v19, %v12186_v0 }
 0xfd8   : > { %v4075_v27 = vsel %vm616_vm1, %v10567_v8, 0.0 }
0x100b   : > { %v4006_v14 = vpop.f32.mrf.mxu1 }
0x100c   : > { %v4007_v46 = vadd.f32 %v10513_v33, %v4006_v14 }
0x1013   : > { %v4008_v18 = vpop.f32.mrf.mxu1 }
0x1014   : > { %v4056_v36 = vpop.xlane.xlu0 %4055 }
0x1015   : > { %v4081_v21 = vmul.f32 %v4056_v36, %v12185_v63 }
0x1017   : > { %v10559_v28 = vsub.f32 %v10517_v2, %v4081_v21 }
0x1019   : > { %v4039_v25 = vpop.f32.mrf.mxu3  ;;  %v4099_v43 = vmul.f32 %v10559_v28, %v10559_v28 }
0x101a   : > { %v4040_v60 = vadd.f32 %v4039_v25, %v4007_v46 }
0x101b   : > { %v4108_v58 = vsel %vm616_vm1, %v4099_v43, 0.0 }
0x101c   : > { %v4059_v1 = vpop.xlane.xlu1 %4058  ;;  %4109 = vadd.xlane.f32.xlu0 %v4108_v58  ;;  %v10600_v3 = vadd.f32 %v4040_v60, %v12187_v49  ;;  %v7820_v49 = vld [vmem:[%s12122_s2 + $0x134] sm:$0xf0] }
0x101d   : > { %v4082_v20 = vmul.f32 %v4059_v1, %v12185_v63 }
0x101e   : > { %v4078_v42 = vsel %vm2925_vm6, %v10600_v3, 0.0 }
0x101f   : > { %v10570_v56 = vsub.f32 %v10523_v41, %v4082_v20 }
0x1021   : > { %v4041_v34 = vpop.f32.mrf.mxu3  ;;  %v4100_v57 = vmul.f32 %v10570_v56, %v10570_v56 }
0x1023   : > { %v4111_v7 = vsel %vm616_vm1, %v4100_v57, 0.0 }
0x1024   : > { %v4062_v12 = vpop.xlane.xlu2 %4061  ;;  %4112 = vadd.xlane.f32.xlu1 %v4111_v7  ;;  %4076 = vadd.xlane.f32.xlu0 %v4075_v27 }
0x1025   : > { %v4083_v11 = vmul.f32 %v4062_v12, %v12185_v63 }
0x1027   : > { %v10579_v24 = vsub.f32 %v10529_v16, %v4083_v11 }
0x1029   : > { %v4101_v5 = vmul.f32 %v10579_v24, %v10579_v24 }
0x102b   : > { %v4114_v55 = vsel %vm616_vm1, %v4101_v5, 0.0 }
0x102c   : > { %4115 = vadd.xlane.f32.xlu1 %v4114_v55  ;;  %v4065_v9 = vpop.xlane.xlu0 %4064 }
0x102d   : > { %v4084_v26 = vmul.f32 %v4065_v9, %v12185_v63 }
0x102f   : > { %v10592_v61 = vsub.f32 %v10535_v59, %v4084_v26 }
0x1031   : > { %v4102_v44 = vmul.f32 %v10592_v61, %v10592_v61 }
0x1033   : > { %v4117_v13 = vsel %vm616_vm1, %v4102_v44, 0.0 }
0x1034   : > { %v4068_v31 = vpop.xlane.xlu1 %4067  ;;  %4118 = vadd.xlane.f32.xlu2 %v4117_v13 }
0x1035   : > { %v4085_v10 = vmul.f32 %v4068_v31, %v12185_v63 }
0x1037   : > { %v10603_v37 = vsub.f32 %v10541_v51, %v4085_v10  ;;  %v7440_v10 = vld [vmem:[%s12122_s2 + $0x120] sm:$0xf] }
0x1039   : > { %v4103_v52 = vmul.f32 %v10603_v37, %v10603_v37 }
0x103b   : > { %v4120_v33 = vsel %vm616_vm1, %v4103_v52, 0.0 }
0x103c   : > { %v4071_v35 = vpop.xlane.xlu2 %4070  ;;  %4121 = vadd.xlane.f32.xlu0 %v4120_v33  ;;  %4079 = vadd.xlane.f32.xlu2 %v4078_v42 }
0x103d   : > { %v4086_v4 = vmul.f32 %v4071_v35, %v12185_v63  ;;  %v7441_v35 = vor.u32 %v7820_v49, %v7440_v10 }
0x103f   : > { %v10612_v14 = vsub.f32 %v10547_v23, %v4086_v4  ;;  %4316 = vmatpush.bf16.msrb.mxu0 %v7441_v35 }
0x1041   : > { %v4104_v54 = vmul.f32 %v10612_v14, %v10612_v14 }
0x1043   : > { %v4123_v18 = vsel %vm616_vm1, %v4104_v54, 0.0 }
0x1044   : > { %v4074_v36 = vpop.xlane.xlu2 %4073  ;;  %4124 = vadd.xlane.f32.xlu1 %v4123_v18 }
0x1045   : > { %v4087_v21 = vmul.f32 %v4074_v36, %v12185_v63  ;;  %v10644_v36 = vld [vmem:[%s12125_s5 + $0x154] ss:$0 sm:$0xff] }
0x1047   : > { %v10619_v45 = vsub.f32 %v10553_v39, %v4087_v21 }
0x1049   : > { %v4105_v25 = vmul.f32 %v10619_v45, %v10619_v45 }
0x104b   : > { %v4126_v43 = vsel %vm616_vm1, %v4105_v25, 0.0 }
0x104c   : > { %4127 = vadd.xlane.f32.xlu0 %v4126_v43 }
0x108f   : > { %v4110_v19 = vpop.xlane.xlu0 %4109 }
0x1090   : > { %v4135_v58 = vmul.f32 %v4110_v19, %v12185_v63 }
0x1092   : > { %v4144_v1 = vadd.f32 1e-05, %v4135_v58 }
0x1094   : > { %8143 = vrsqrt.f32 %v4144_v1  ;;  %vm4159_vm9 = vweird.f32 %v4144_v1 }
0x1097   : > { %v4113_v20 = vpop.xlane.xlu1 %4112  ;;  %v4077_v0 = vpop.xlane.xlu0 %4076 }
0x1098   : > { %v4136_v34 = vmul.f32 %v4113_v20, %v12185_v63  ;;  %v4088_v57 = vmul.f32 %v4077_v0, %v12185_v63  ;;  %v10650_v20 = vld [vmem:[%s12125_s5 + $0x155] ss:$0 sm:$0xff] }
0x109a   : > { %v8144_v7 = vpop.eup %8143  ;;  %v4145_v27 = vadd.f32 1e-05, %v4136_v34  ;;  %v10628_v12 = vsub.f32 %v10567_v8, %v4088_v57 }
0x109b   : > { %v4154_v11 = vmul.f32 %v8144_v7, %v4144_v1  ;;  %vm4160_vm4 = vweird.f32 %v8144_v7 }
0x109c   : > { %8145 = vrsqrt.f32 %v4145_v27  ;;  %v4106_v5 = vmul.f32 %v10628_v12, %v10628_v12  ;;  %vm4161_vm5 = vmor %vm4159_vm9, %vm4160_vm4  ;;  %vm4169_vm7 = vweird.f32 %v4145_v27 }
0x109d   : > { %v4155_v55 = vmul.f32 %v8144_v7, %v4154_v11 }
0x109e   : > { %v4129_v9 = vsel %vm616_vm1, %v4106_v5, 0.0 }
0x109f   : > { %v4156_v17 = vmul.f32 0.5, %v4155_v55  ;;  %v4116_v22 = vpop.xlane.xlu1 %4115  ;;  %4130 = vadd.xlane.f32.xlu1 %v4129_v9 }
0x10a0   : > { %v4137_v26 = vmul.f32 %v4116_v22, %v12185_v63 }
0x10a1   : > { %v4157_v62 = vsub.f32 1.5, %v4156_v17 }
0x10a2   : > { %v8146_v46 = vpop.eup %8145  ;;  %v4146_v44 = vadd.f32 1e-05, %v4137_v26 }
0x10a3   : > { %v4158_v60 = vmul.f32 %v8144_v7, %v4157_v62  ;;  %v4164_v13 = vmul.f32 %v8146_v46, %v4145_v27  ;;  %vm4170_vm13 = vweird.f32 %v8146_v46 }
0x10a4   : > { %8147 = vrsqrt.f32 %v4146_v44  ;;  %vm4171_vm4 = vmor %vm4169_vm7, %vm4170_vm13 }
0x10a5   : > { %v4165_v31 = vmul.f32 %v8146_v46, %v4164_v13  ;;  %v4162_v52 = vsel %vm4161_vm5, %v8144_v7, %v4158_v60  ;;  %vm4179_vm5 = vweird.f32 %v4146_v44 }
0x10a6   : > { %v4243_v21 = vmul.f32 %v4162_v52, %v10559_v28 }
0x10a7   : > { %v4166_v33 = vmul.f32 0.5, %v4165_v31  ;;  %v4119_v42 = vpop.xlane.xlu2 %4118 }
0x10a8   : > { %v4138_v4 = vmul.f32 %v4119_v42, %v12185_v63  ;;  %v4253_v0 = vmul.f32 %v10644_v36, %v4243_v21 }
0x10a9   : > { %v4167_v54 = vsub.f32 1.5, %v4166_v33 }
0x10aa   : > { %v8148_v18 = vpop.eup %8147  ;;  %v4147_v25 = vadd.f32 1e-05, %v4138_v4  ;;  %v4263_v17 = vadd.f32 %v10650_v20, %v4253_v0 }
0x10ab   : > { %v4168_v43 = vmul.f32 %v8146_v46, %v4167_v54  ;;  %v4174_v19 = vmul.f32 %v8148_v18, %v4146_v44  ;;  %vm4180_vm9 = vweird.f32 %v8148_v18 }
0x10ac   : > { %8149 = vrsqrt.f32 %v4147_v25  ;;  %vm4181_vm13 = vmor %vm4179_vm5, %vm4180_vm9 }
0x10ad   : > { %v4172_v58 = vsel %vm4171_vm4, %v8146_v46, %v4168_v43  ;;  %v4175_v1 = vmul.f32 %v8148_v18, %v4174_v19  ;;  %vm4189_vm4 = vweird.f32 %v4147_v25 }
0x10ae   : > { %v4244_v34 = vmul.f32 %v4172_v58, %v10570_v56 }
0x10af   : > { %v4176_v57 = vmul.f32 0.5, %v4175_v1  ;;  %v4080_v7 = vpop.xlane.xlu2 %4079  ;;  %v4122_v28 = vpop.xlane.xlu0 %4121 }
0x10b0   : > { %v4254_v11 = vmul.f32 %v10644_v36, %v4244_v34  ;;  %v4089_v27 = vmul.f32 %v4080_v7, %v12185_v63  ;;  %v4139_v5 = vmul.f32 %v4122_v28, %v12185_v63 }
0x10b1   : > { %v4177_v55 = vsub.f32 1.5, %v4176_v57 }
0x10b2   : > { %v8150_v9 = vpop.eup %8149  ;;  %v4264_v22 = vadd.f32 %v10650_v20, %v4254_v11  ;;  %v10660_v26 = vsub.f32 %v10600_v3, %v4089_v27  ;;  %v4148_v62 = vadd.f32 1e-05, %v4139_v5 }
0x10b3   : > { %v4178_v56 = vmul.f32 %v8148_v18, %v4177_v55  ;;  %v4184_v46 = vmul.f32 %v8150_v9, %v4147_v25  ;;  %vm4190_vm7 = vweird.f32 %v8150_v9 }
0x10b4   : > { %v4276_v60 = vpack.c.bf16 %v4264_v22, %v4263_v17  ;;  %8151 = vrsqrt.f32 %v4148_v62  ;;  %v4107_v13 = vmul.f32 %v10660_v26, %v10660_v26  ;;  %vm4191_vm9 = vmor %vm4189_vm4, %vm4190_vm7 }
0x10b5   : > { %v4185_v31 = vmul.f32 %v8150_v9, %v4184_v46  ;;  %v4182_v49 = vsel %vm4181_vm13, %v8148_v18, %v4178_v56  ;;  %vm4199_vm13 = vweird.f32 %v4148_v62 }
0x10b6   : > { %7446 = vmatmul.msk.bf16.vlgmr.msrb.gmra.mxu0 %vm616_vm1, %v4276_v60  ;;  %v4132_v10 = vsel %vm2925_vm6, %v4107_v13, 0.0  ;;  %v4245_v54 = vmul.f32 %v4182_v49, %v10579_v24 }
0x10b7   : > { %v4186_v52 = vmul.f32 0.5, %v4185_v31  ;;  %v4125_v33 = vpop.xlane.xlu1 %4124  ;;  %4133 = vadd.xlane.f32.xlu2 %v4132_v10 }
0x10b8   : > { %v4140_v42 = vmul.f32 %v4125_v33, %v12185_v63  ;;  %v4255_v1 = vmul.f32 %v10644_v36, %v4245_v54 }
0x10b9   : > { %v4187_v35 = vsub.f32 1.5, %v4186_v52 }
0x10ba   : > { %v8152_v4 = vpop.eup %8151  ;;  %v4149_v21 = vadd.f32 1e-05, %v4140_v42  ;;  %v4265_v28 = vadd.f32 %v10650_v20, %v4255_v1  ;;  %v7829_v1 = vld [vmem:[%s12123_s3 + $0x298] sm:$0xff] }
0x10bb   : > { %v4188_v43 = vmul.f32 %v8150_v9, %v4187_v35  ;;  %v4194_v44 = vmul.f32 %v8152_v4, %v4148_v62  ;;  %vm4200_vm5 = vweird.f32 %v8152_v4  ;;  %4494 = vmatpush.bf16.msrb.mxu2 %v7829_v1 }
0x10bc   : > { %8153 = vrsqrt.f32 %v4149_v21  ;;  %vm4201_vm7 = vmor %vm4199_vm13, %vm4200_vm5 }
0x10bd   : > { %v4192_v19 = vsel %vm4191_vm9, %v8150_v9, %v4188_v43  ;;  %v4195_v58 = vmul.f32 %v8152_v4, %v4194_v44  ;;  %vm4209_vm9 = vweird.f32 %v4149_v21 }
0x10be   : > { %v4246_v18 = vmul.f32 %v4192_v19, %v10592_v61 }
0x10bf   : > { %v4196_v0 = vmul.f32 0.5, %v4195_v58  ;;  %v4128_v49 = vpop.xlane.xlu0 %4127 }
0x10c0   : > { %v4256_v34 = vmul.f32 %v10644_v36, %v4246_v18 }
0x10c1   : > { %v4197_v57 = vsub.f32 1.5, %v4196_v0 }
0x10c2   : > { %v8154_v7 = vpop.eup %8153  ;;  %v4266_v24 = vadd.f32 %v10650_v20, %v4256_v34 }
0x10c3   : > { %v4198_v11 = vmul.f32 %v8152_v4, %v4197_v57  ;;  %v4204_v25 = vmul.f32 %v8154_v7, %v4149_v21  ;;  %vm4210_vm4 = vweird.f32 %v8154_v7 }
0x10c4   : > { %v4277_v27 = vpack.c.bf16 %v4266_v24, %v4265_v28  ;;  %vm4211_vm3 = vmor %vm4209_vm9, %vm4210_vm4  ;;  %v7828_v24 = vld [vmem:[%s12123_s3 + $0x290] sm:$0xff] }
0x10c5   : > { %v4205_v5 = vmul.f32 %v8154_v7, %v4204_v25  ;;  %v4202_v61 = vsel %vm4201_vm7, %v8152_v4, %v4198_v11  ;;  %4495 = vmatpush.bf16.msrb.mxu2 %v7828_v24 }
0x10c6   : > { %7447 = vmatmul.msk.bf16.gmra.mxu0 %vm616_vm1, %v4277_v27  ;;  %v4247_v17 = vmul.f32 %v4202_v61, %v10603_v37  ;;  %v4141_v37 = vmul.f32 %v4128_v49, %v12185_v63 }
0x10c7   : > { %v4206_v55 = vmul.f32 0.5, %v4205_v5  ;;  %v7827_v5 = vld [vmem:[%s12123_s3 + $0x288] sm:$0xff] }
0x10c8   : > { %v4257_v60 = vmul.f32 %v10644_v36, %v4247_v17  ;;  %v4150_v52 = vadd.f32 1e-05, %v4141_v37 }
0x10c9   : > { %v4207_v9 = vsub.f32 1.5, %v4206_v55  ;;  %4496 = vmatpush.bf16.msrb.mxu2 %v7827_v5 }
0x10ca   : > { %v4267_v13 = vadd.f32 %v10650_v20, %v4257_v60  ;;  %8155 = vrsqrt.f32 %v4150_v52  ;;  %vm4219_vm5 = vweird.f32 %v4150_v52  ;;  %v7825_v60 = vld [vmem:[%s12123_s3 + $0x278] sm:$0xff] }
0x10cb   : > { %v4208_v22 = vmul.f32 %v8154_v7, %v4207_v9 }
0x10cd   : > { %v4212_v56 = vsel %vm4211_vm3, %v8154_v7, %v4208_v22 }
0x10ce   : > { %v4248_v46 = vmul.f32 %v4212_v56, %v10612_v14 }
0x10d0   : > { %v4258_v62 = vmul.f32 %v10644_v36, %v4248_v46  ;;  %v8156_v33 = vpop.eup %8155  ;;  %v10706_v46 = vld [vmem:[%s12124_s4 + $0x4] ss:$0 sm:$0xff] }
0x10d1   : > { %v4214_v42 = vmul.f32 %v8156_v33, %v4150_v52  ;;  %vm4220_vm3 = vweird.f32 %v8156_v33 }
0x10d2   : > { %v4268_v31 = vadd.f32 %v10650_v20, %v4258_v62  ;;  %vm4221_vm13 = vmor %vm4219_vm5, %vm4220_vm3 }
0x10d3   : > { %v4215_v35 = vmul.f32 %v8156_v33, %v4214_v42  ;;  %v7823_v42 = vld [vmem:[%s12123_s3 + $0x268] sm:$0xff] }
0x10d4   : > { %v4278_v10 = vpack.c.bf16 %v4268_v31, %v4267_v13 }
0x10d5   : > { %v4216_v21 = vmul.f32 0.5, %v4215_v35 }
0x10d6   : > { %7448 = vmatmul.msk.bf16.gmra.mxu0 %vm616_vm1, %v4278_v10  ;;  %v7824_v10 = vld [vmem:[%s12123_s3 + $0x270] sm:$0xff] }
0x10d7   : > { %v4217_v43 = vsub.f32 1.5, %v4216_v21 }
0x10d9   : > { %v4218_v19 = vmul.f32 %v8156_v33, %v4217_v43 }
0x10db   : > { %v4222_v0 = vsel %vm4221_vm13, %v8156_v33, %v4218_v19 }
0x10dc   : > { %v4249_v7 = vmul.f32 %v4222_v0, %v10619_v45 }
0x10de   : > { %v4259_v27 = vmul.f32 %v10644_v36, %v4249_v7 }
0x10e0   : > { %v4269_v17 = vadd.f32 %v10650_v20, %v4259_v27 }
0x1112   : > { %v4131_v14 = vpop.xlane.xlu1 %4130 }
0x1113   : > { %v4142_v4 = vmul.f32 %v4131_v14, %v12185_v63 }
0x1115   : > { %v4151_v54 = vadd.f32 1e-05, %v4142_v4 }
0x1117   : > { %8157 = vrsqrt.f32 %v4151_v54  ;;  %vm4229_vm4 = vweird.f32 %v4151_v54 }
0x111d   : > { %v8158_v44 = vpop.eup %8157 }
0x111e   : > { %v4224_v58 = vmul.f32 %v8158_v44, %v4151_v54  ;;  %vm4230_vm7 = vweird.f32 %v8158_v44 }
0x111f   : > { %vm4231_vm9 = vmor %vm4229_vm4, %vm4230_vm7 }
0x1120   : > { %v4225_v18 = vmul.f32 %v8158_v44, %v4224_v58 }
0x1122   : > { %v4226_v34 = vmul.f32 0.5, %v4225_v18 }
0x1124   : > { %v4227_v57 = vsub.f32 1.5, %v4226_v34 }
0x1126   : > { %v4228_v28 = vmul.f32 %v8158_v44, %v4227_v57 }
0x1128   : > { %v4232_v11 = vsel %vm4231_vm9, %v8158_v44, %v4228_v28  ;;  %v7822_v44 = vld [vmem:[%s12123_s3 + $0x260] sm:$0xff] }
0x1129   : > { %v4250_v25 = vmul.f32 %v4232_v11, %v10628_v12  ;;  %v7826_v12 = vld [vmem:[%s12123_s3 + $0x280] sm:$0xff] }
0x112a   : > { %v4134_v61 = vpop.xlane.xlu2 %4133  ;;  %4497 = vmatpush.bf16.msrb.mxu2 %v7826_v12 }
0x112b   : > { %v4143_v45 = vmul.f32 %v4134_v61, %v12185_v63  ;;  %v4260_v55 = vmul.f32 %v10644_v36, %v4250_v25 }
0x112d   : > { %v4152_v9 = vadd.f32 1e-05, %v4143_v45  ;;  %v4270_v22 = vadd.f32 %v10650_v20, %v4260_v55 }
0x112e   : > { %4498 = vmatpush.bf16.msrb.mxu2 %v7825_v60 }
0x112f   : > { %8159 = vrsqrt.f32 %v4152_v9  ;;  %v4279_v56 = vpack.c.bf16 %v4270_v22, %v4269_v17  ;;  %vm4239_vm5 = vweird.f32 %v4152_v9 }
0x1131   : > { %7449 = vmatmul.msk.bf16.gmra.mxu0 %vm616_vm1, %v4279_v56 }
0x1132   : > { %4499 = vmatpush.bf16.msrb.mxu2 %v7824_v10 }
0x1133   : > { %v4318_v62 = vpop.f32.mrf.mxu0 }
0x1134   : > { %v4319_v13 = vadd.f32 %v4318_v62, %v10706_v46 }
0x1135   : > { %v8160_v31 = vpop.eup %8159 }
0x1136   : > { %v4234_v49 = vmul.f32 %v8160_v31, %v4152_v9  ;;  %v4351_v37 = vmul.f32 0.044715, %v4319_v13  ;;  %vm4240_vm3 = vweird.f32 %v8160_v31  ;;  %4500 = vmatpush.bf16.msrb.mxu2 %v7823_v42  ;;  %v4342_v60 = vmul.f32 0.5, %v4319_v13 }
0x1137   : > { %vm4241_vm13 = vmor %vm4239_vm5, %vm4240_vm3 }
0x1138   : > { %v4235_v52 = vmul.f32 %v8160_v31, %v4234_v49  ;;  %v4360_v33 = vmul.f32 %v4351_v37, %v4319_v13 }
0x113a   : > { %v4236_v35 = vmul.f32 0.5, %v4235_v52  ;;  %v4369_v14 = vmul.f32 %v4360_v33, %v4319_v13  ;;  %4501 = vmatpush.bf16.msrb.mxu2 %v7822_v44 }
0x113b   : > { %v4320_v4 = vpop.f32.mrf.mxu0 }
0x113c   : > { %v4237_v54 = vsub.f32 1.5, %v4236_v35  ;;  %v4378_v21 = vadd.f32 %v4369_v14, %v4319_v13  ;;  %v4321_v43 = vadd.f32 %v4320_v4, %v10706_v46 }
0x113e   : > { %v4238_v19 = vmul.f32 %v8160_v31, %v4237_v54  ;;  %v4352_v58 = vmul.f32 0.044715, %v4321_v43  ;;  %v4387_v1 = vmul.f32 0.7978846, %v4378_v21  ;;  %v4343_v62 = vmul.f32 0.5, %v4321_v43 }
0x1140   : > { %v4242_v18 = vsel %vm4241_vm13, %v8160_v31, %v4238_v19  ;;  %v4361_v0 = vmul.f32 %v4352_v58, %v4321_v43  ;;  %8161 = vtanh.f32 %v4387_v1 }
0x1141   : > { %v4251_v34 = vmul.f32 %v4242_v18, %v10660_v26 }
0x1142   : > { %v4370_v57 = vmul.f32 %v4361_v0, %v4321_v43 }
0x1143   : > { %v4323_v7 = vpop.f32.mrf.mxu0  ;;  %v4261_v28 = vmul.f32 %v10644_v36, %v4251_v34 }
0x1144   : > { %v4379_v24 = vadd.f32 %v4370_v57, %v4321_v43  ;;  %v4324_v11 = vadd.f32 %v4323_v7, %v10706_v46 }
0x1145   : > { %v4271_v25 = vadd.f32 %v10650_v20, %v4261_v28 }
0x1146   : > { %v4388_v27 = vmul.f32 0.7978846, %v4379_v24  ;;  %v4353_v5 = vmul.f32 0.044715, %v4324_v11  ;;  %v8162_v55 = vpop.eup %8161  ;;  %v4344_v34 = vmul.f32 0.5, %v4324_v11 }
0x1147   : > { %v4280_v61 = vpack.c.bf16 %v4271_v25, %v4271_v25  ;;  %v4405_v36 = vadd.f32 1.0, %v8162_v55 }
0x1148   : > { %8163 = vtanh.f32 %v4388_v27  ;;  %v4362_v45 = vmul.f32 %v4353_v5, %v4324_v11 }
0x1149   : > { %7450 = vmatmul.msk.bf16.gmra.mxu0 %vm616_vm1, %v4280_v61  ;;  %v4414_v49 = vmul.f32 %v4405_v36, %v4342_v60 }
0x114a   : > { %v4371_v26 = vmul.f32 %v4362_v45, %v4324_v11 }
0x114b   : > { %v4325_v9 = vpop.f32.mrf.mxu0 }
0x114c   : > { %v4326_v17 = vadd.f32 %v4325_v9, %v10706_v46  ;;  %v4380_v22 = vadd.f32 %v4371_v26, %v4324_v11 }
0x114e   : > { %v8164_v12 = vpop.eup %8163  ;;  %v4354_v56 = vmul.f32 0.044715, %v4326_v17  ;;  %v4389_v10 = vmul.f32 0.7978846, %v4380_v22  ;;  %v4345_v57 = vmul.f32 0.5, %v4326_v17 }
0x114f   : > { %v4406_v31 = vadd.f32 1.0, %v8164_v12 }
0x1150   : > { %v4363_v20 = vmul.f32 %v4354_v56, %v4326_v17  ;;  %8165 = vtanh.f32 %v4389_v10 }
0x1151   : > { %v4415_v37 = vmul.f32 %v4406_v31, %v4343_v62 }
0x1152   : > { %v4372_v52 = vmul.f32 %v4363_v20, %v4326_v17 }
0x1153   : > { %v4328_v33 = vpop.f32.mrf.mxu0  ;;  %v4439_v42 = vpack.c.bf16 %v4415_v37, %v4414_v49 }
0x1154   : > { %v4329_v35 = vadd.f32 %v4328_v33, %v10706_v46  ;;  %v4381_v14 = vadd.f32 %v4372_v52, %v4326_v17 }
0x1155   : > { %4502 = vmatmul.bf16.vlgmr.msrb.gmra.mxu2 %v4439_v42 }
0x1156   : > { %v4355_v4 = vmul.f32 0.044715, %v4329_v35  ;;  %v4390_v54 = vmul.f32 0.7978846, %v4381_v14  ;;  %v8166_v44 = vpop.eup %8165  ;;  %v4346_v36 = vmul.f32 0.5, %v4329_v35 }
0x1157   : > { %v4407_v18 = vadd.f32 1.0, %v8166_v44 }
0x1158   : > { %v4364_v21 = vmul.f32 %v4355_v4, %v4329_v35  ;;  %8167 = vtanh.f32 %v4390_v54 }
0x1159   : > { %v4416_v25 = vmul.f32 %v4407_v18, %v4344_v34 }
0x115a   : > { %v4373_v13 = vmul.f32 %v4364_v21, %v4329_v35 }
0x115b   : > { %v4330_v43 = vpop.f32.mrf.mxu0 }
0x115c   : > { %v4331_v19 = vadd.f32 %v4330_v43, %v10706_v46  ;;  %v4382_v58 = vadd.f32 %v4373_v13, %v4329_v35 }
0x115e   : > { %v8168_v1 = vpop.eup %8167  ;;  %v4356_v0 = vmul.f32 0.044715, %v4331_v19  ;;  %v4391_v24 = vmul.f32 0.7978846, %v4382_v58  ;;  %v4347_v12 = vmul.f32 0.5, %v4331_v19 }
0x115f   : > { %v4408_v7 = vadd.f32 1.0, %v8168_v1 }
0x1160   : > { %v4365_v28 = vmul.f32 %v4356_v0, %v4331_v19  ;;  %8169 = vtanh.f32 %v4391_v24 }
0x1161   : > { %v4417_v27 = vmul.f32 %v4408_v7, %v4345_v57 }
0x1162   : > { %v4374_v5 = vmul.f32 %v4365_v28, %v4331_v19 }
0x1163   : > { %v4440_v61 = vpack.c.bf16 %v4417_v27, %v4416_v25 }
0x1164   : > { %v4383_v45 = vadd.f32 %v4374_v5, %v4331_v19 }
0x1165   : > { %4507 = vmatmul.bf16.gmra.mxu2 %v4440_v61 }
0x1166   : > { %v4392_v55 = vmul.f32 0.7978846, %v4383_v45  ;;  %v8170_v26 = vpop.eup %8169 }
0x1167   : > { %v4409_v9 = vadd.f32 1.0, %v8170_v26 }
0x1168   : > { %8171 = vtanh.f32 %v4392_v55 }
0x1169   : > { %v4418_v11 = vmul.f32 %v4409_v9, %v4346_v36 }
0x116e   : > { %v8172_v22 = vpop.eup %8171 }
0x116f   : > { %v4410_v56 = vadd.f32 1.0, %v8172_v22 }
0x1171   : > { %v4419_v17 = vmul.f32 %v4410_v56, %v4347_v12 }
0x1173   : > { %v4441_v60 = vpack.c.bf16 %v4419_v17, %v4418_v11 }
0x1175   : > { %4512 = vmatmul.bf16.gmra.mxu2 %v4441_v60 }
0x11ae   : > { %v4333_v62 = vpop.f32.mrf.mxu0 }
0x11af   : > { %v4334_v31 = vadd.f32 %v4333_v62, %v10706_v46 }
0x11b1   : > { %v4357_v20 = vmul.f32 0.044715, %v4334_v31  ;;  %v4348_v1 = vmul.f32 0.5, %v4334_v31 }
0x11b3   : > { %v4366_v10 = vmul.f32 %v4357_v20, %v4334_v31 }
0x11b5   : > { %v4375_v49 = vmul.f32 %v4366_v10, %v4334_v31 }
0x11b6   : > { %v4335_v37 = vpop.f32.mrf.mxu0 }
0x11b7   : > { %v4336_v52 = vadd.f32 %v4335_v37, %v10706_v46  ;;  %v4384_v33 = vadd.f32 %v4375_v49, %v4334_v31 }
0x11b9   : > { %v4358_v42 = vmul.f32 0.044715, %v4336_v52  ;;  %v4393_v4 = vmul.f32 0.7978846, %v4384_v33  ;;  %v4349_v0 = vmul.f32 0.5, %v4336_v52 }
0x11bb   : > { %v4367_v14 = vmul.f32 %v4358_v42, %v4336_v52  ;;  %8173 = vtanh.f32 %v4393_v4 }
0x11bd   : > { %v4376_v35 = vmul.f32 %v4367_v14, %v4336_v52 }
0x11bf   : > { %v4385_v54 = vadd.f32 %v4376_v35, %v4336_v52 }
0x11c1   : > { %v4394_v21 = vmul.f32 0.7978846, %v4385_v54  ;;  %v8174_v44 = vpop.eup %8173 }
0x11c2   : > { %v4411_v19 = vadd.f32 1.0, %v8174_v44 }
0x11c3   : > { %8175 = vtanh.f32 %v4394_v21 }
0x11c4   : > { %v4420_v7 = vmul.f32 %v4411_v19, %v4348_v1 }
0x11c6   : > { %v4338_v13 = vpop.f32.mrf.mxu0 }
0x11c7   : > { %v4339_v43 = vadd.f32 %v4338_v13, %v10706_v46  ;;  %v10736_v46 = vld [vmem:[%s12125_s5 + $0x156] ss:$0 sm:$0xff] }
0x11c9   : > { %v8176_v58 = vpop.eup %8175  ;;  %v4359_v18 = vmul.f32 0.044715, %v4339_v43  ;;  %v4350_v9 = vmul.f32 0.5, %v4339_v43 }
0x11ca   : > { %v4412_v34 = vadd.f32 1.0, %v8176_v58 }
0x11cb   : > { %v4368_v57 = vmul.f32 %v4359_v18, %v4339_v43 }
0x11cc   : > { %v4421_v28 = vmul.f32 %v4412_v34, %v4349_v0 }
0x11cd   : > { %v4377_v24 = vmul.f32 %v4368_v57, %v4339_v43 }
0x11ce   : > { %v4340_v25 = vpop.f32.mrf.mxu0  ;;  %v4442_v27 = vpack.c.bf16 %v4421_v28, %v4420_v7 }
0x11cf   : > { %v4386_v5 = vadd.f32 %v4377_v24, %v4339_v43 }
0x11d0   : > { %4517 = vmatmul.bf16.gmra.mxu2 %v4442_v27 }
0x11d1   : > { %v4395_v61 = vmul.f32 0.7978846, %v4386_v5 }
0x11d3   : > { %8177 = vtanh.f32 %v4395_v61 }
0x11d8   : > { %v4503_v45 = vpop.f32.mrf.mxu2 }
0x11d9   : > { %v8178_v55 = vpop.eup %8177  ;;  %v4504_v26 = vadd.f32 %v10736_v46, %v4503_v45 }
0x11da   : > { %v4413_v22 = vadd.f32 1.0, %v8178_v55 }
0x11db   : > { %v10740_v36 = vadd.f32 %v4504_v26, %v10517_v2 }
0x11dc   : > { %v4422_v12 = vmul.f32 %v4413_v22, %v4350_v9 }
0x11dd   : > { %12188 = vst [vmem:[#allocation12_spill] sm:$0xff] %v10740_v36  ;;  %v4538_v56 = vsel %vm616_vm1, %v10740_v36, 0.0 }
0x11de   : > { %4539 = vadd.xlane.f32.xlu0 %v4538_v56  ;;  %v4443_v11 = vpack.c.bf16 %v4422_v12, %v4422_v12 }
0x11e0   : > { %v4505_v17 = vpop.f32.mrf.mxu2  ;;  %4522 = vmatmul.bf16.gmra.mxu2 %v4443_v11 }
0x11e1   : > { %v4506_v60 = vadd.f32 %v10736_v46, %v4505_v17 }
0x11e3   : > { %v10746_v62 = vadd.f32 %v4506_v60, %v10523_v41 }
0x11e5   : > { %12189 = vst [vmem:[#allocation13_spill] sm:$0xff] %v10746_v62  ;;  %v4541_v31 = vsel %vm616_vm1, %v10746_v62, 0.0 }
0x11e6   : > { %4542 = vadd.xlane.f32.xlu1 %v4541_v31 }
0x11e8   : > { %v4508_v20 = vpop.f32.mrf.mxu2 }
0x11e9   : > { %v4509_v2 = vadd.f32 %v10736_v46, %v4508_v20 }
0x11eb   : > { %v10752_v10 = vadd.f32 %v4509_v2, %v10529_v16 }
0x11ed   : > { %12190 = vst [vmem:[#allocation16_spill] sm:$0xff] %v10752_v10  ;;  %v4544_v49 = vsel %vm616_vm1, %v10752_v10, 0.0 }
0x11ee   : > { %4545 = vadd.xlane.f32.xlu2 %v4544_v49 }
0x11f0   : > { %v4510_v37 = vpop.f32.mrf.mxu2 }
0x11f1   : > { %v4511_v52 = vadd.f32 %v10736_v46, %v4510_v37 }
0x11f3   : > { %v10758_v41 = vadd.f32 %v4511_v52, %v10535_v59 }
0x11f5   : > { %12191 = vst [vmem:[#allocation17_spill] sm:$0xff] %v10758_v41  ;;  %v4547_v33 = vsel %vm616_vm1, %v10758_v41, 0.0 }
0x11f6   : > { %4548 = vadd.xlane.f32.xlu0 %v4547_v33 }
0x11f8   : > { %v4513_v42 = vpop.f32.mrf.mxu2 }
0x11f9   : > { %v4514_v14 = vadd.f32 %v10736_v46, %v4513_v42 }
0x11fb   : > { %v10764_v16 = vadd.f32 %v4514_v14, %v10541_v51 }
0x11fd   : > { %12192 = vst [vmem:[#allocation18_spill] sm:$0xff] %v10764_v16  ;;  %v4550_v4 = vsel %vm616_vm1, %v10764_v16, 0.0 }
0x11fe   : > { %4551 = vadd.xlane.f32.xlu1 %v4550_v4 }
0x1200   : > { %v4515_v35 = vpop.f32.mrf.mxu2 }
0x1201   : > { %v4516_v54 = vadd.f32 %v10736_v46, %v4515_v35 }
0x1203   : > { %v10770_v59 = vadd.f32 %v4516_v54, %v10547_v23 }
0x1205   : > { %12193 = vst [vmem:[#allocation19_spill] sm:$0xff] %v10770_v59  ;;  %v4553_v21 = vsel %vm616_vm1, %v10770_v59, 0.0 }
0x1206   : > { %4554 = vadd.xlane.f32.xlu2 %v4553_v21 }
0x1251   : > { %v4540_v44 = vpop.xlane.xlu0 %4539 }
0x1252   : > { %v4565_v13 = vmul.f32 %v4540_v44, %v12185_v63 }
0x1253   : > { %v4518_v43 = vpop.f32.mrf.mxu2 }
0x1254   : > { %v10776_v51 = vsub.f32 %v10740_v36, %v4565_v13  ;;  %v4519_v19 = vadd.f32 %v10736_v46, %v4518_v43 }
0x1256   : > { %v10780_v58 = vadd.f32 %v4519_v19, %v10553_v39  ;;  %v4583_v23 = vmul.f32 %v10776_v51, %v10776_v51 }
0x1258   : > { %12194 = vst [vmem:[#allocation20_spill] sm:$0xff] %v10780_v58  ;;  %v4556_v18 = vsel %vm616_vm1, %v10780_v58, 0.0  ;;  %v4592_v1 = vsel %vm616_vm1, %v4583_v23, 0.0 }
0x1259   : > { %v4543_v0 = vpop.xlane.xlu1 %4542  ;;  %4557 = vadd.xlane.f32.xlu2 %v4556_v18  ;;  %4593 = vadd.xlane.f32.xlu0 %v4592_v1 }
0x125a   : > { %v4566_v34 = vmul.f32 %v4543_v0, %v12185_v63 }
0x125b   : > { %v4520_v57 = vpop.f32.mrf.mxu2 }
0x125c   : > { %v10789_v7 = vsub.f32 %v10746_v62, %v4566_v34  ;;  %v4521_v39 = vadd.f32 %v10736_v46, %v4520_v57 }
0x125e   : > { %v10793_v28 = vadd.f32 %v4521_v39, %v10567_v8  ;;  %v4584_v24 = vmul.f32 %v10789_v7, %v10789_v7 }
0x1260   : > { %12195 = vst [vmem:[#allocation21_spill] sm:$0xff] %v10793_v28  ;;  %v4595_v25 = vsel %vm616_vm1, %v4584_v24, 0.0  ;;  %v4559_v27 = vsel %vm616_vm1, %v10793_v28, 0.0 }
0x1261   : > { %v4546_v5 = vpop.xlane.xlu2 %4545  ;;  %4596 = vadd.xlane.f32.xlu1 %v4595_v25  ;;  %4560 = vadd.xlane.f32.xlu0 %v4559_v27 }
0x1262   : > { %v4567_v61 = vmul.f32 %v4546_v5, %v12185_v63 }
0x1263   : > { %v4523_v45 = vpop.f32.mrf.mxu2 }
0x1264   : > { %v10802_v55 = vsub.f32 %v10752_v10, %v4567_v61  ;;  %v4524_v8 = vadd.f32 %v10736_v46, %v4523_v45 }
0x1266   : > { %v10806_v26 = vadd.f32 %v4524_v8, %v10600_v3  ;;  %v4585_v9 = vmul.f32 %v10802_v55, %v10802_v55 }
0x1268   : > { %12196 = vst [vmem:[#allocation22_spill] sm:$0xff] %v10806_v26  ;;  %v4598_v22 = vsel %vm616_vm1, %v4585_v9, 0.0  ;;  %v4562_v12 = vsel %vm2925_vm6, %v10806_v26, 0.0 }
0x1269   : > { %4599 = vadd.xlane.f32.xlu1 %v4598_v22  ;;  %4563 = vadd.xlane.f32.xlu0 %v4562_v12  ;;  %v4549_v56 = vpop.xlane.xlu0 %4548 }
0x126a   : > { %v4568_v11 = vmul.f32 %v4549_v56, %v12185_v63 }
0x126b   : > { %v4525_v17 = vpop.f32.mrf.mxu2 }
0x126c   : > { %v10815_v60 = vsub.f32 %v10758_v41, %v4568_v11 }
0x126e   : > { %v4586_v3 = vmul.f32 %v10815_v60, %v10815_v60 }
0x1270   : > { %v4601_v46 = vsel %vm616_vm1, %v4586_v3, 0.0 }
0x1271   : > { %v4552_v31 = vpop.xlane.xlu1 %4551  ;;  %4602 = vadd.xlane.f32.xlu2 %v4601_v46 }
0x1272   : > { %v4569_v20 = vmul.f32 %v4552_v31, %v12185_v63 }
0x1274   : > { %v10822_v2 = vsub.f32 %v10764_v16, %v4569_v20 }
0x1276   : > { %v4587_v49 = vmul.f32 %v10822_v2, %v10822_v2 }
0x1278   : > { %v4604_v37 = vsel %vm616_vm1, %v4587_v49, 0.0  ;;  %v7511_v49 = vld [vmem:[%s12122_s2 + $0x1b0] sm:$0xf] }
0x1279   : > { %v4555_v52 = vpop.xlane.xlu2 %4554  ;;  %4605 = vadd.xlane.f32.xlu1 %v4604_v37  ;;  %v7839_v37 = vld [vmem:[%s12122_s2 + $0x1c4] sm:$0xf0] }
0x127a   : > { %v4570_v33 = vmul.f32 %v4555_v52, %v12185_v63 }
0x127c   : > { %v10829_v42 = vsub.f32 %v10770_v59, %v4570_v33  ;;  %v7512_v33 = vor.u32 %v7839_v37, %v7511_v49  ;;  %v7834_v49 = vld [vmem:[%s12122_s2 + $0x19c] sm:$0xf0]  ;;  %v7831_v37 = vld [vmem:[%s12122_s2 + $0x18c] sm:$0xf] }
0x127e   : > { %v4588_v14 = vmul.f32 %v10829_v42, %v10829_v42  ;;  %4903 = vmatpush.bf16.msra.mxu1 %v7512_v33 }
0x1280   : > { %v4607_v4 = vsel %vm616_vm1, %v4588_v14, 0.0  ;;  %v7836_v14 = vld [vmem:[%s12122_s2 + $0x1b4] sm:$0xf] }
0x1281   : > { %4608 = vadd.xlane.f32.xlu2 %v4607_v4  ;;  %v7513_v4 = vld [vmem:[%s12122_s2 + $0x1c8] sm:$0xf0] }
0x12cc   : > { %v4558_v35 = vpop.xlane.xlu2 %4557  ;;  %v4594_v54 = vpop.xlane.xlu0 %4593 }
0x12cd   : > { %v4571_v21 = vmul.f32 %v4558_v35, %v12185_v63  ;;  %v4619_v44 = vmul.f32 %v4594_v54, %v12185_v63  ;;  %v7519_v35 = vld [vmem:[%s12122_s2 + $0x1b8] sm:$0xf] }
0x12cf   : > { %v10837_v13 = vsub.f32 %v10780_v58, %v4571_v21  ;;  %v4628_v43 = vadd.f32 1e-05, %v4619_v44  ;;  %v7516_v44 = vor.u32 %v7836_v14, %v7513_v4 }
0x12d1   : > { %8179 = vrsqrt.f32 %v4628_v43  ;;  %v4589_v19 = vmul.f32 %v10837_v13, %v10837_v13  ;;  %vm4643_vm4 = vweird.f32 %v4628_v43  ;;  %4936 = vmatpush.bf16.msra.mxu3 %v7516_v44 }
0x12d3   : > { %v4610_v23 = vsel %vm616_vm1, %v4589_v19, 0.0  ;;  %v7837_v19 = vld [vmem:[%s12122_s2 + $0x1bc] sm:$0xf] }
0x12d4   : > { %v4597_v18 = vpop.xlane.xlu1 %4596  ;;  %4611 = vadd.xlane.f32.xlu0 %v4610_v23  ;;  %v4561_v1 = vpop.xlane.xlu0 %4560 }
0x12d5   : > { %v4620_v0 = vmul.f32 %v4597_v18, %v12185_v63  ;;  %v4572_v34 = vmul.f32 %v4561_v1, %v12185_v63 }
0x12d7   : > { %v8180_v57 = vpop.eup %8179  ;;  %v10844_v39 = vadd.f32 1e-05, %v4620_v0  ;;  %v10847_v24 = vsub.f32 %v10793_v28, %v4572_v34  ;;  %v7521_v34 = vld [vmem:[%s12122_s2 + $0x1d0] sm:$0xf0] }
0x12d8   : > { %v4638_v25 = vmul.f32 %v8180_v57, %v4628_v43  ;;  %vm4644_vm7 = vweird.f32 %v8180_v57  ;;  %v7840_v43 = vld [vmem:[%s12122_s2 + $0x1cc] sm:$0xf0] }
0x12d9   : > { %8181 = vrsqrt.f32 %v10844_v39  ;;  %v4590_v27 = vmul.f32 %v10847_v24, %v10847_v24  ;;  %vm10883_vm9 = vmor %vm4643_vm4, %vm4644_vm7  ;;  %v7520_v0 = vor.u32 %v7840_v43, %v7519_v35  ;;  %vm4653_vm5 = vweird.f32 %v10844_v39 }
0x12da   : > { %v4639_v5 = vmul.f32 %v8180_v57, %v4638_v25  ;;  %v10902_v25 = vld [vmem:[%s12125_s5 + $0x157] ss:$0 sm:$0xff] }
0x12db   : > { %v4613_v61 = vsel %vm616_vm1, %v4590_v27, 0.0  ;;  %4969 = vmatpush.bf16.msra.mxu0 %v7520_v0 }
0x12dc   : > { %v4640_v45 = vmul.f32 0.5, %v4639_v5  ;;  %v4600_v8 = vpop.xlane.xlu1 %4599  ;;  %4614 = vadd.xlane.f32.xlu1 %v4613_v61  ;;  %v4564_v9 = vpop.xlane.xlu0 %4563  ;;  %v7524_v5 = vor.u32 %v7837_v19, %v7521_v34  ;;  %v7833_v61 = vld [vmem:[%s12122_s2 + $0x194] sm:$0xf0] }
0x12dd   : > { %v4621_v22 = vmul.f32 %v4600_v8, %v12185_v63  ;;  %v4573_v12 = vmul.f32 %v4564_v9, %v12185_v63 }
0x12de   : > { %v4641_v56 = vsub.f32 1.5, %v4640_v45  ;;  %v7830_v45 = vld [vmem:[%s12122_s2 + $0x184] sm:$0xf]  ;;  %5002 = vmatpush.bf16.msra.mxu2 %v7524_v5 }
0x12df   : > { %v10855_v11 = vpop.eup %8181  ;;  %v10857_v17 = vadd.f32 1e-05, %v4621_v22  ;;  %v10860_v3 = vsub.f32 %v10806_v26, %v4573_v12  ;;  %v7489_v22 = vld [vmem:[%s12122_s2 + $0x198] sm:$0xf0]  ;;  %v7495_v12 = vld [vmem:[%s12122_s2 + $0x188] sm:$0xf] }
0x12e0   : > { %v4642_v46 = vmul.f32 %v8180_v57, %v4641_v56  ;;  %v4648_v31 = vmul.f32 %v10855_v11, %v10844_v39  ;;  %vm4654_vm3 = vweird.f32 %v10855_v11  ;;  %v7496_v14 = vor.u32 %v7834_v49, %v7495_v12  ;;  %v10940_v39 = vld [vmem:[%s12125_s5 + $0x158] ss:$0 sm:$0xff] }
0x12e1   : > { %8183 = vrsqrt.f32 %v10857_v17  ;;  %v4591_v20 = vmul.f32 %v10860_v3, %v10860_v3  ;;  %vm4655_vm13 = vmor %vm4653_vm5, %vm4654_vm3  ;;  %vm4663_vm4 = vweird.f32 %v10857_v17 }
0x12e2   : > { %v4649_v52 = vmul.f32 %v10855_v11, %v4648_v31  ;;  %v4646_v23 = vsel %vm10883_vm9, %v8180_v57, %v4642_v46  ;;  %v7487_v57 = vld [vmem:[%s12122_s2 + $0x180] sm:$0xf]  ;;  %4970 = vmatpush.bf16.msra.mxu0 %v7496_v14 }
0x12e3   : > { %v4616_v21 = vsel %vm2925_vm6, %v4591_v20, 0.0  ;;  %v7488_v9 = vor.u32 %v7833_v61, %v7487_v57  ;;  %v4727_v46 = vmul.f32 %v4646_v23, %v10776_v51  ;;  %v7492_v20 = vor.u32 %v7830_v45, %v7489_v22  ;;  %v7497_v51 = vld [vmem:[%s12122_s2 + $0x1a0] sm:$0xf0] }
0x12e4   : > { %v4650_v18 = vmul.f32 0.5, %v4649_v52  ;;  %v4603_v1 = vpop.xlane.xlu2 %4602  ;;  %4617 = vadd.xlane.f32.xlu2 %v4616_v21  ;;  %v7500_v4 = vor.u32 %v7831_v37, %v7497_v51 }
0x12e5   : > { %v4622_v27 = vmul.f32 %v4603_v1, %v12185_v63  ;;  %4904 = vmatpush.bf16.msra.mxu1 %v7488_v9  ;;  %4937 = vmatpush.bf16.msra.mxu3 %v7492_v20  ;;  %v4737_v21 = vmul.f32 %v10902_v25, %v4727_v46 }
0x12e6   : > { %v4651_v8 = vsub.f32 1.5, %v4650_v18  ;;  %5003 = vmatpush.bf16.msra.mxu2 %v7500_v4 }
0x12e7   : > { %v8184_v56 = vpop.eup %8183  ;;  %v4631_v31 = vadd.f32 1e-05, %v4622_v27  ;;  %v4747_v0 = vadd.f32 %v10940_v39, %v4737_v21 }
0x12e8   : > { %v4652_v52 = vmul.f32 %v10855_v11, %v4651_v8  ;;  %v4658_v33 = vmul.f32 %v8184_v56, %v10857_v17  ;;  %vm4664_vm7 = vweird.f32 %v8184_v56 }
0x12e9   : > { %8185 = vrsqrt.f32 %v4631_v31  ;;  %vm4665_vm9 = vmor %vm4663_vm4, %vm4664_vm7  ;;  %vm4673_vm5 = vweird.f32 %v4631_v31 }
0x12ea   : > { %v4656_v35 = vsel %vm4655_vm13, %v10855_v11, %v4652_v52  ;;  %v4659_v54 = vmul.f32 %v8184_v56, %v4658_v33 }
0x12eb   : > { %v4728_v44 = vmul.f32 %v4656_v35, %v10789_v7 }
0x12ec   : > { %v4660_v43 = vmul.f32 0.5, %v4659_v54  ;;  %v4606_v19 = vpop.xlane.xlu1 %4605 }
0x12ed   : > { %v4738_v23 = vmul.f32 %v10902_v25, %v4728_v44  ;;  %v4623_v18 = vmul.f32 %v4606_v19, %v12185_v63 }
0x12ee   : > { %v4661_v1 = vsub.f32 1.5, %v4660_v43 }
0x12ef   : > { %v8186_v11 = vpop.eup %8185  ;;  %v4748_v34 = vadd.f32 %v10940_v39, %v4738_v23  ;;  %v4632_v27 = vadd.f32 1e-05, %v4623_v18 }
0x12f0   : > { %v4662_v5 = vmul.f32 %v8184_v56, %v4661_v1  ;;  %v4668_v57 = vmul.f32 %v8186_v11, %v4631_v31  ;;  %vm4674_vm3 = vweird.f32 %v8186_v11 }
0x12f1   : > { %v10948_v61 = vpack.c.bf16 %v4748_v34, %v4747_v0  ;;  %8187 = vrsqrt.f32 %v4632_v27  ;;  %vm4675_vm13 = vmor %vm4673_vm5, %vm4674_vm3  ;;  %vm4683_vm4 = vweird.f32 %v4632_v27 }
0x12f2   : > { %v4669_v7 = vmul.f32 %v8186_v11, %v4668_v57  ;;  %v4666_v45 = vsel %vm4665_vm9, %v8184_v56, %v4662_v5 }
0x12f3   : > { %7533 = vmatmul.msk.bf16.vlgmr.msra.gmra.mxu1 %vm616_vm1, %v10948_v61  ;;  %7538 = vmatmul.msk.bf16.vlgmr.msra.gmra.mxu3 %vm616_vm1, %v10948_v61  ;;  %v4729_v46 = vmul.f32 %v4666_v45, %v10802_v55 }
0x12f4   : > { %v4670_v8 = vmul.f32 0.5, %v4669_v7  ;;  %7543 = vmatmul.msk.bf16.vlgmr.msra.gmra.mxu0 %vm616_vm1, %v10948_v61  ;;  %7548 = vmatmul.msk.bf16.vlgmr.msra.gmra.mxu2 %vm616_vm1, %v10948_v61  ;;  %v4609_v9 = vpop.xlane.xlu2 %4608 }
0x12f5   : > { %v4624_v22 = vmul.f32 %v4609_v9, %v12185_v63  ;;  %v4739_v33 = vmul.f32 %v10902_v25, %v4729_v46 }
0x12f6   : > { %v4671_v17 = vsub.f32 1.5, %v4670_v8 }
0x12f7   : > { %v8188_v12 = vpop.eup %8187  ;;  %v4633_v20 = vadd.f32 1e-05, %v4624_v22  ;;  %v4749_v21 = vadd.f32 %v10940_v39, %v4739_v33 }
0x12f8   : > { %v4672_v49 = vmul.f32 %v8186_v11, %v4671_v17  ;;  %v4678_v37 = vmul.f32 %v8188_v12, %v4632_v27  ;;  %vm4684_vm7 = vweird.f32 %v8188_v12 }
0x12f9   : > { %8189 = vrsqrt.f32 %v4633_v20  ;;  %vm4685_vm9 = vmor %vm4683_vm4, %vm4684_vm7  ;;  %vm4693_vm5 = vweird.f32 %v4633_v20 }
0x12fa   : > { %v4676_v56 = vsel %vm4675_vm13, %v8186_v11, %v4672_v49  ;;  %v4679_v52 = vmul.f32 %v8188_v12, %v4678_v37 }
0x12fb   : > { %v4730_v14 = vmul.f32 %v4676_v56, %v10815_v60 }
0x12fc   : > { %v4680_v51 = vmul.f32 0.5, %v4679_v52 }
0x12fd   : > { %v4740_v4 = vmul.f32 %v10902_v25, %v4730_v14 }
0x12fe   : > { %v4681_v35 = vsub.f32 1.5, %v4680_v51 }
0x12ff   : > { %v8190_v54 = vpop.eup %8189  ;;  %v4750_v55 = vadd.f32 %v10940_v39, %v4740_v4 }
0x1300   : > { %v4682_v44 = vmul.f32 %v8188_v12, %v4681_v35  ;;  %v4688_v31 = vmul.f32 %v8190_v54, %v4633_v20  ;;  %vm4694_vm3 = vweird.f32 %v8190_v54 }
0x1301   : > { %v10966_v43 = vpack.c.bf16 %v4750_v55, %v4749_v21  ;;  %vm4695_vm13 = vmor %vm4693_vm5, %vm4694_vm3 }
0x1302   : > { %v4689_v19 = vmul.f32 %v8190_v54, %v4688_v31  ;;  %v4686_v60 = vsel %vm4685_vm9, %v8188_v12, %v4682_v44 }
0x1303   : > { %7534 = vmatmul.msk.bf16.gmra.mxu1 %vm616_vm1, %v10966_v43  ;;  %7539 = vmatmul.msk.bf16.gmra.mxu3 %vm616_vm1, %v10966_v43  ;;  %v4731_v1 = vmul.f32 %v4686_v60, %v10822_v2 }
0x1304   : > { %v4690_v23 = vmul.f32 0.5, %v4689_v19  ;;  %7544 = vmatmul.msk.bf16.gmra.mxu0 %vm616_vm1, %v10966_v43  ;;  %7549 = vmatmul.msk.bf16.gmra.mxu2 %vm616_vm1, %v10966_v43 }
0x1305   : > { %v4741_v34 = vmul.f32 %v10902_v25, %v4731_v1 }
0x1306   : > { %v4691_v18 = vsub.f32 1.5, %v4690_v23 }
0x1307   : > { %v4751_v57 = vadd.f32 %v10940_v39, %v4741_v34 }
0x1308   : > { %v4692_v11 = vmul.f32 %v8190_v54, %v4691_v18 }
0x130a   : > { %v4696_v0 = vsel %vm4695_vm13, %v8190_v54, %v4692_v11 }
0x130b   : > { %v4732_v27 = vmul.f32 %v4696_v0, %v10829_v42 }
0x130d   : > { %v4742_v5 = vmul.f32 %v10902_v25, %v4732_v27  ;;  %v7527_v27 = vld [vmem:[%s12122_s2 + $0x1c0] sm:$0xf] }
0x130f   : > { %v4752_v7 = vadd.f32 %v10940_v39, %v4742_v5  ;;  %v7838_v5 = vld [vmem:[%s12122_s2 + $0x1c4] sm:$0xf] }
0x1311   : > { %v10982_v45 = vpack.c.bf16 %v4752_v7, %v4751_v57 }
0x1313   : > { %7535 = vmatmul.msk.bf16.gmra.mxu1 %vm616_vm1, %v10982_v45  ;;  %7540 = vmatmul.msk.bf16.gmra.mxu3 %vm616_vm1, %v10982_v45 }
0x1314   : > { %7545 = vmatmul.msk.bf16.gmra.mxu0 %vm616_vm1, %v10982_v45  ;;  %7550 = vmatmul.msk.bf16.gmra.mxu2 %vm616_vm1, %v10982_v45 }
0x1347   : > { %v4612_v2 = vpop.xlane.xlu0 %4611 }
0x1348   : > { %v4625_v42 = vmul.f32 %v4612_v2, %v12185_v63 }
0x134a   : > { %v4634_v8 = vadd.f32 1e-05, %v4625_v42 }
0x134c   : > { %8191 = vrsqrt.f32 %v4634_v8  ;;  %vm4703_vm4 = vweird.f32 %v4634_v8 }
0x134f   : > { %v4615_v9 = vpop.xlane.xlu1 %4614 }
0x1350   : > { %v4626_v22 = vmul.f32 %v4615_v9, %v12185_v63 }
0x1352   : > { %v8192_v17 = vpop.eup %8191  ;;  %v4635_v12 = vadd.f32 1e-05, %v4626_v22 }
0x1353   : > { %v4698_v46 = vmul.f32 %v8192_v17, %v4634_v8  ;;  %vm4704_vm7 = vweird.f32 %v8192_v17 }
0x1354   : > { %8193 = vrsqrt.f32 %v4635_v12  ;;  %vm4705_vm9 = vmor %vm4703_vm4, %vm4704_vm7  ;;  %vm4713_vm5 = vweird.f32 %v4635_v12 }
0x1355   : > { %v4699_v20 = vmul.f32 %v8192_v17, %v4698_v46  ;;  %v7832_v46 = vld [vmem:[%s12122_s2 + $0x194] sm:$0xf] }
0x1357   : > { %v4700_v49 = vmul.f32 0.5, %v4699_v20  ;;  %v4618_v37 = vpop.xlane.xlu2 %4617 }
0x1358   : > { %v4627_v56 = vmul.f32 %v4618_v37, %v12185_v63  ;;  %v7505_v37 = vld [vmem:[%s12122_s2 + $0x1a8] sm:$0xf0] }
0x1359   : > { %v4701_v52 = vsub.f32 1.5, %v4700_v49 }
0x135a   : > { %v8194_v33 = vpop.eup %8193  ;;  %v4636_v14 = vadd.f32 1e-05, %v4627_v56  ;;  %v7508_v56 = vor.u32 %v7832_v46, %v7505_v37 }
0x135b   : > { %v4702_v51 = vmul.f32 %v8192_v17, %v4701_v52  ;;  %v4708_v4 = vmul.f32 %v8194_v33, %v4635_v12  ;;  %vm4714_vm3 = vweird.f32 %v8194_v33  ;;  %v7835_v12 = vld [vmem:[%s12122_s2 + $0x1a4] sm:$0xf0] }
0x135c   : > { %8195 = vrsqrt.f32 %v4636_v14  ;;  %vm4715_vm13 = vmor %vm4713_vm5, %vm4714_vm3  ;;  %vm4723_vm4 = vweird.f32 %v4636_v14 }
0x135d   : > { %v4709_v35 = vmul.f32 %v8194_v33, %v4708_v4  ;;  %v4706_v54 = vsel %vm4705_vm9, %v8192_v17, %v4702_v51  ;;  %v7503_v17 = vld [vmem:[%s12122_s2 + $0x190] sm:$0xf] }
0x135e   : > { %v4733_v31 = vmul.f32 %v4706_v54, %v10837_v13  ;;  %v7841_v13 = vld [vmem:[%s12122_s2 + $0x1d4] sm:$0xf0]  ;;  %v7504_v49 = vor.u32 %v7835_v12, %v7503_v17 }
0x135f   : > { %v4710_v21 = vmul.f32 0.5, %v4709_v35  ;;  %v7528_v7 = vor.u32 %v7841_v13, %v7527_v27 }
0x1360   : > { %v4743_v1 = vmul.f32 %v10902_v25, %v4733_v31 }
0x1361   : > { %v4711_v55 = vsub.f32 1.5, %v4710_v21  ;;  %5035 = vmatpush.bf16.msrb.mxu1 %v7528_v7 }
0x1362   : > { %v8196_v44 = vpop.eup %8195  ;;  %v4753_v2 = vadd.f32 %v10940_v39, %v4743_v1 }
0x1363   : > { %v4712_v19 = vmul.f32 %v8194_v33, %v4711_v55  ;;  %v4718_v60 = vmul.f32 %v8196_v44, %v4636_v14  ;;  %vm4724_vm7 = vweird.f32 %v8196_v44 }
0x1364   : > { %vm4725_vm9 = vmor %vm4723_vm4, %vm4724_vm7 }
0x1365   : > { %v4716_v23 = vsel %vm4715_vm13, %v8194_v33, %v4712_v19  ;;  %v4719_v18 = vmul.f32 %v8196_v44, %v4718_v60  ;;  %5036 = vmatpush.bf16.msrb.mxu1 %v7504_v49 }
0x1366   : > { %v4734_v11 = vmul.f32 %v4716_v23, %v10847_v24  ;;  %v7529_v24 = vld [vmem:[%s12122_s2 + $0x1d8] sm:$0xf0] }
0x1367   : > { %v4720_v0 = vmul.f32 0.5, %v4719_v18  ;;  %v7532_v8 = vor.u32 %v7838_v5, %v7529_v24 }
0x1368   : > { %v4744_v34 = vmul.f32 %v10902_v25, %v4734_v11 }
0x1369   : > { %v4721_v57 = vsub.f32 1.5, %v4720_v0  ;;  %5068 = vmatpush.bf16.msrb.mxu3 %v7532_v8  ;;  %v7484_v8 = vld [vmem:[%s12124_s4 + $0x5] ss:$8 sm:$0x30] }
0x136a   : > { %v4754_v42 = vadd.f32 %v10940_v39, %v4744_v34 }
0x136b   : > { %v4722_v9 = vmul.f32 %v8196_v44, %v4721_v57 }
0x136c   : > { %v4807_v22 = vpack.c.bf16 %v4754_v42, %v4753_v2  ;;  %v7483_v42 = vld [vmem:[%s12124_s4 + $0x5] ss:$8 sm:$0xf] }
0x136d   : > { %v4726_v20 = vsel %vm4725_vm9, %v8196_v44, %v4722_v9  ;;  %5069 = vmatpush.bf16.msrb.mxu3 %v7508_v56  ;;  %v11100_v17 = vor.u32 %v7484_v8, %v7483_v42 }
0x136e   : > { %7536 = vmatmul.msk.bf16.gmra.mxu1 %vm616_vm1, %v4807_v22  ;;  %7541 = vmatmul.msk.bf16.gmra.mxu3 %vm616_vm1, %v4807_v22  ;;  %v4735_v52 = vmul.f32 %v4726_v20, %v10860_v3 }
0x136f   : > { %7546 = vmatmul.msk.bf16.gmra.mxu0 %vm616_vm1, %v4807_v22  ;;  %7551 = vmatmul.msk.bf16.gmra.mxu2 %vm616_vm1, %v4807_v22  ;;  %v11105_v46 = vperm.slane %v11100_v17, 0  ;;  %v4812_v49 = vperm.slane %v11100_v17, 2  ;;  %v4813_v42 = vperm.slane %v11100_v17, 3 }
0x1370   : > { %v4745_v33 = vmul.f32 %v10902_v25, %v4735_v52  ;;  %v11048_v3 = vpop.f32.mrf.mxu1 }
0x1371   : > { %v11050_v25 = vpop.f32.mrf.mxu0 }
0x1372   : > { %v4755_v14 = vadd.f32 %v10940_v39, %v4745_v33 }
0x1374   : > { %v4808_v51 = vpack.c.bf16 %v4755_v14, %v4755_v14 }
0x1376   : > { %v11052_v39 = vpop.f32.mrf.mxu3 }
0x1377   : > { %v11054_v4 = vpop.f32.mrf.mxu2 }
0x1379   : > { %v11058_v35 = vpop.f32.mrf.mxu0 }
0x137e   : > { %7537 = vmatmul.msk.bf16.gmra.mxu1 %vm616_vm1, %v4808_v51  ;;  %7542 = vmatmul.msk.bf16.gmra.mxu3 %vm616_vm1, %v4808_v51 }
0x137f   : > { %7547 = vmatmul.msk.bf16.gmra.mxu0 %vm616_vm1, %v4808_v51  ;;  %7552 = vmatmul.msk.bf16.gmra.mxu2 %vm616_vm1, %v4808_v51  ;;  %v11064_v54 = vpop.f32.mrf.mxu2 }
0x1381   : > { %v11068_v21 = vpop.f32.mrf.mxu0 }
0x1387   : > { %v11072_v44 = vpop.f32.mrf.mxu2 }
0x1389   : > { %v4979_v19 = vpop.f32.mrf.mxu0 }
0x138e   : > { %7553 = vmatmul.msk.bf16.vlgmr.msrb.gmra.mxu1 %vm616_vm1, %v10948_v61  ;;  %7558 = vmatmul.msk.bf16.vlgmr.msrb.gmra.mxu3 %vm616_vm1, %v10948_v61  ;;  %v11056_v61 = vpop.f32.mrf.mxu1 }
0x138f   : > { %v5012_v23 = vpop.f32.mrf.mxu2 }
0x1391   : > { %v4982_v1 = vpop.f32.mrf.mxu0 }
0x1392   : > { %v4983_v50 = vadd.f32 %v4982_v1, %v4812_v49 }
0x1397   : > { %v5015_v0 = vpop.f32.mrf.mxu2 }
0x1399   : > { %v4984_v27 = vpop.f32.mrf.mxu0 }
0x139a   : > { %v4985_v62 = vadd.f32 %v4984_v27, %v4812_v49 }
0x139c   : > { %v5102_v40 = vpack.c.bf16 %v4985_v62, %v4983_v50  ;;  %v4975_v50 = vadd.f32 %v11058_v35, %v4812_v49  ;;  %v4973_v62 = vadd.f32 %v11050_v25, %v4812_v49 }
0x139e   : > { %7554 = vmatmul.msk.bf16.gmra.mxu1 %vm616_vm1, %v10966_v43  ;;  %7559 = vmatmul.msk.bf16.gmra.mxu3 %vm616_vm1, %v10966_v43  ;;  %v11062_v43 = vpop.f32.mrf.mxu3  ;;  %v5100_v1 = vpack.c.bf16 %v4975_v50, %v4973_v62 }
0x139f   : > { %v5017_v5 = vpop.f32.mrf.mxu2 }
0x13a6   : > { %v11070_v55 = vpop.f32.mrf.mxu3 }
0x13ae   : > { %7555 = vmatmul.msk.bf16.gmra.mxu1 %vm616_vm1, %v10982_v45  ;;  %7560 = vmatmul.msk.bf16.gmra.mxu3 %vm616_vm1, %v10982_v45  ;;  %v11066_v45 = vpop.f32.mrf.mxu1  ;;  %v11078_v60 = vpop.f32.mrf.mxu3 }
0x13b6   : > { %v11076_v31 = vpop.f32.mrf.mxu1  ;;  %v11082_v11 = vpop.f32.mrf.mxu3 }
0x13be   : > { %7556 = vmatmul.msk.bf16.gmra.mxu1 %vm616_vm1, %v4807_v22  ;;  %7561 = vmatmul.msk.bf16.gmra.mxu3 %vm616_vm1, %v4807_v22  ;;  %v11080_v18 = vpop.f32.mrf.mxu1  ;;  %v11086_v13 = vpop.f32.mrf.mxu3 }
0x13c6   : > { %v11084_v34 = vpop.f32.mrf.mxu1 }
0x13ce   : > { %7557 = vmatmul.msk.bf16.gmra.mxu1 %vm616_vm1, %v4808_v51  ;;  %7562 = vmatmul.msk.bf16.gmra.mxu3 %vm616_vm1, %v4808_v51  ;;  %v11112_v51 = vperm.slane %v11100_v17, 1 }
0x13d0   : > { %v4942_v25 = vadd.f32 %v11062_v43, %v11112_v51  ;;  %v4947_v43 = vadd.f32 %v11078_v60, %v11112_v51  ;;  %v4952_v60 = vadd.f32 %v11086_v13, %v11112_v51 }
0x13eb   : > { %v11088_v57 = vpop.f32.mrf.mxu1 }
0x13ec   : > { %v4987_v7 = vpop.f32.mrf.mxu0 }
0x13f1   : > { %v11090_v24 = vpop.f32.mrf.mxu3 }
0x13f2   : > { %v5020_v2 = vpop.f32.mrf.mxu2 }
0x13f3   : > { %v11098_v9 = vpop.f32.mrf.mxu1  ;;  %v5021_v36 = vadd.f32 %v5020_v2, %v4813_v42 }
0x13f4   : > { %v4989_v22 = vpop.f32.mrf.mxu0  ;;  %v4924_v13 = vadd.f32 %v11098_v9, %v11105_v46 }
0x13f5   : > { %v4990_v28 = vadd.f32 %v4989_v22, %v4812_v49  ;;  %v5018_v22 = vadd.f32 %v5017_v5, %v4813_v42  ;;  %v5006_v5 = vadd.f32 %v11054_v4, %v4813_v42 }
0x13f9   : > { %v11102_v12 = vpop.f32.mrf.mxu3 }
0x13fa   : > { %v5022_v20 = vpop.f32.mrf.mxu2 }
0x13fb   : > { %v4926_v37 = vpop.f32.mrf.mxu1 }
0x13fc   : > { %v11109_v56 = vadd.f32 %v4926_v37, %v11105_v46  ;;  %v4992_v52 = vpop.f32.mrf.mxu0  ;;  %v4988_v37 = vadd.f32 %v4987_v7, %v4812_v49 }
0x13fd   : > { %v4993_v33 = vadd.f32 %v4992_v52, %v4812_v49  ;;  %v5023_v52 = vadd.f32 %v5022_v20, %v4813_v42  ;;  %v4940_v20 = vadd.f32 %v11052_v39, %v11112_v51  ;;  %v4945_v39 = vadd.f32 %v11070_v55, %v11112_v51 }
0x13fe   : > { %v5103_v41 = vpack.c.bf16 %v4990_v28, %v4988_v37  ;;  %v4912_v37 = vadd.f32 %v11066_v45, %v11105_v46  ;;  %v4917_v45 = vadd.f32 %v11080_v18, %v11105_v46  ;;  %v4950_v55 = vadd.f32 %v11082_v11, %v11112_v51 }
0x13ff   : > { %v5104_v14 = vpack.c.bf16 %v4993_v33, %v4993_v33 }
0x1400   : > { %v5300_v50 = vpack.c.bf16 %v4952_v60, %v4950_v55 }
0x1401   : > { %5108 = vmatpush.bf16.xpose.msrb.mxu0 %v5104_v14  ;;  %v4959_v8 = vpop.f32.mrf.mxu3 }
0x1402   : > { %v11116_v47 = vadd.f32 %v4959_v8, %v11112_v51  ;;  %v5025_v26 = vpop.f32.mrf.mxu2  ;;  %v5306_v8 = vpack.c.bf16 %v5023_v52, %v5021_v36  ;;  %v5011_v36 = vadd.f32 %v11072_v44, %v4813_v42  ;;  %v4907_v44 = vadd.f32 %v11048_v3, %v11105_v46 }
0x1403   : > { %v5026_v63 = vadd.f32 %v5025_v26, %v4813_v42  ;;  %v4928_v58 = vpop.f32.mrf.mxu1  ;;  %v5013_v26 = vadd.f32 %v5012_v23, %v4813_v42  ;;  %v4909_v23 = vadd.f32 %v11056_v61, %v11105_v46  ;;  %v5298_v61 = vpack.c.bf16 %v4942_v25, %v4940_v20 }
0x1404   : > { %v4994_v59 = vpop.f32.mrf.mxu0 }
0x1405   : > { %v5307_v16 = vpack.c.bf16 %v5026_v63, %v5026_v63  ;;  %v4980_v59 = vadd.f32 %v4979_v19, %v4812_v49  ;;  %v5016_v63 = vadd.f32 %v5015_v0, %v4813_v42  ;;  %v5304_v19 = vpack.c.bf16 %v5013_v26, %v5011_v36 }
0x1406   : > { %v5095_v2 = vpack.c.bf16 %v4909_v23, %v4907_v44 }
0x1407   : > { %5311 = vmatpush.bf16.xpose.msra.mxu1 %v5307_v16  ;;  %v5305_v16 = vpack.c.bf16 %v5018_v22, %v5016_v63  ;;  %v5299_v22 = vpack.c.bf16 %v4947_v43, %v4945_v39 }
0x1409   : > { %5109 = vmatpush.bf16.xpose.msrb.mxu0 %v5103_v41  ;;  %v4961_v33 = vpop.f32.mrf.mxu3  ;;  %v4978_v41 = vadd.f32 %v11068_v21, %v4812_v49  ;;  %v5008_v21 = vadd.f32 %v11064_v54, %v4813_v42  ;;  %v4914_v42 = vadd.f32 %v11076_v31, %v11105_v46  ;;  %v4919_v31 = vadd.f32 %v11084_v34, %v11105_v46 }
0x140a   : > { %v5027_v10 = vpop.f32.mrf.mxu2  ;;  %v4815_v34 = vperm.slane %v11100_v17, 5 }
0x140b   : > { %v11118_v14 = vpop.f32.mrf.mxu1  ;;  %v5101_v10 = vpack.c.bf16 %v4980_v59, %v4978_v41  ;;  %v5303_v7 = vpack.c.bf16 %v5008_v21, %v5006_v5  ;;  %v5096_v52 = vpack.c.bf16 %v4914_v42, %v4912_v37  ;;  %v5097_v41 = vpack.c.bf16 %v4919_v31, %v4917_v45 }
0x140c   : > { %v4922_v5 = vadd.f32 %v11088_v57, %v11105_v46  ;;  %v4957_v42 = vadd.f32 %v11102_v12, %v11112_v51  ;;  %v4955_v57 = vadd.f32 %v11090_v24, %v11112_v51 }
0x140e   : > { %v5098_v25 = vpack.c.bf16 %v4924_v13, %v4922_v5  ;;  %v5301_v39 = vpack.c.bf16 %v4957_v42, %v4955_v57 }
0x140f   : > { %5312 = vmatpush.bf16.xpose.msra.mxu1 %v5306_v8 }
0x1411   : > { %5110 = vmatpush.bf16.xpose.msrb.mxu0 %v5102_v40  ;;  %v11120_v58 = vpop.f32.mrf.mxu3 }
0x1413   : > { %v11122_v28 = vpop.f32.mrf.mxu1 }
0x1417   : > { %5313 = vmatpush.bf16.xpose.msra.mxu1 %v5305_v16 }
0x1419   : > { %5111 = vmatpush.bf16.xpose.msrb.mxu0 %v5101_v10  ;;  %v11125_v27 = vpop.f32.mrf.mxu3  ;;  %v4814_v10 = vperm.slane %v11100_v17, 4 }
0x141a   : > { %v5074_v51 = vadd.f32 %v11125_v27, %v4815_v34 }
0x141b   : > { %v11129_v40 = vpop.f32.mrf.mxu1  ;;  %v5039_v12 = vadd.f32 %v11118_v14, %v4814_v10 }
0x141c   : > { %v5044_v46 = vadd.f32 %v11129_v40, %v4814_v10 }
0x141f   : > { %5314 = vmatpush.bf16.xpose.msra.mxu1 %v5304_v19 }
0x1421   : > { %5112 = vmatpush.bf16.xpose.msrb.mxu0 %v5100_v1  ;;  %v11133_v0 = vpop.f32.mrf.mxu3 }
0x1422   : > { %v5077_v24 = vadd.f32 %v11133_v0, %v4815_v34 }
0x1423   : > { %v5045_v35 = vpop.f32.mrf.mxu1 }
0x1424   : > { %v5046_v9 = vadd.f32 %v5045_v35, %v4814_v10 }
0x1427   : > { %5315 = vmatpush.bf16.xpose.msra.mxu1 %v5303_v7 }
0x1428   : > { %5113 = vmatmul.bf16.vlgmr.msrb.gmra.mxu0 %v5095_v2 }
0x1429   : > { %v11142_v54 = vpop.f32.mrf.mxu3 }
0x142a   : > { %v5079_v35 = vadd.f32 %v11142_v54, %v4815_v34  ;;  %v5302_v54 = vpack.c.bf16 %v11116_v47, %v11116_v47 }
0x142b   : > { %v5048_v49 = vpop.f32.mrf.mxu1 }
0x142c   : > { %v5049_v20 = vadd.f32 %v5048_v49, %v4814_v10  ;;  %v5446_v40 = vpack.c.bf16 %v5079_v35, %v5077_v24 }
0x142e   : > { %5316 = vmatmul.bf16.vlgmr.msra.gmra.mxu1 %v5298_v61 }
0x1431   : > { %v5081_v4 = vpop.f32.mrf.mxu3 }
0x1433   : > { %v5050_v3 = vpop.f32.mrf.mxu1 }
0x1434   : > { %v5051_v44 = vadd.f32 %v5050_v3, %v4814_v10 }
0x1436   : > { %v5244_v37 = vpack.c.bf16 %v5051_v44, %v5049_v20 }
0x1438   : > { %5118 = vmatmul.bf16.gmra.mxu0 %v5096_v52 }
0x1439   : > { %v5083_v33 = vpop.f32.mrf.mxu3 }
0x143a   : > { %v5084_v3 = vadd.f32 %v5083_v33, %v4815_v34 }
0x143b   : > { %v5053_v8 = vpop.f32.mrf.mxu1 }
0x143c   : > { %v5054_v21 = vadd.f32 %v5053_v8, %v4814_v10  ;;  %v5243_v8 = vpack.c.bf16 %v5046_v9, %v5044_v46 }
0x143e   : > { %5321 = vmatmul.bf16.gmra.mxu1 %v5299_v22  ;;  %v5082_v22 = vadd.f32 %v5081_v4, %v4815_v34  ;;  %v5099_v4 = vpack.c.bf16 %v11109_v56, %v11109_v56 }
0x1441   : > { %v5086_v59 = vpop.f32.mrf.mxu3 }
0x1442   : > { %v5087_v52 = vadd.f32 %v5086_v59, %v4815_v34  ;;  %v5447_v59 = vpack.c.bf16 %v5084_v3, %v5082_v22 }
0x1443   : > { %v5055_v63 = vpop.f32.mrf.mxu1 }
0x1444   : > { %v5056_v19 = vadd.f32 %v5055_v63, %v4814_v10 }
0x1446   : > { %v5245_v7 = vpack.c.bf16 %v5056_v19, %v5054_v21 }
0x1448   : > { %5123 = vmatmul.bf16.gmra.mxu0 %v5097_v41 }
0x1449   : > { %v5088_v16 = vpop.f32.mrf.mxu3 }
0x144a   : > { %v5089_v17 = vadd.f32 %v5088_v16, %v4815_v34 }
0x144b   : > { %v5058_v26 = vpop.f32.mrf.mxu1 }
0x144c   : > { %v5059_v36 = vadd.f32 %v5058_v26, %v4814_v10  ;;  %v5448_v49 = vpack.c.bf16 %v5089_v17, %v5087_v52 }
0x144e   : > { %v5246_v62 = vpack.c.bf16 %v5059_v36, %v5059_v36  ;;  %5326 = vmatmul.bf16.gmra.mxu1 %v5300_v50 }
0x1450   : > { %v5263_v18 = vand.u32 %v5246_v62, %v10180_v29 }
0x1451   : > { %v5091_v1 = vpop.f32.mrf.mxu3 }
0x1452   : > { %v5092_v23 = vadd.f32 %v5091_v1, %v4815_v34  ;;  %5268 = vmatpush.bf16.msrb.mxu2 %v5263_v18 }
0x1453   : > { %v5060_v11 = vpop.f32.mrf.mxu1 }
0x1454   : > { %v5449_v2 = vpack.c.bf16 %v5092_v23, %v5092_v23 }
0x1456   : > { %v5466_v61 = vand.u32 %v5449_v2, %v10180_v29  ;;  %5269 = vmatpush.bf16.msrb.mxu2 %v5245_v7  ;;  %v5041_v29 = vadd.f32 %v11122_v28, %v4814_v10  ;;  %v5072_v28 = vadd.f32 %v11120_v58, %v4815_v34 }
0x1458   : > { %5128 = vmatmul.bf16.gmra.mxu0 %v5098_v25  ;;  %5471 = vmatpush.bf16.msra.mxu3 %v5466_v61  ;;  %v5242_v31 = vpack.c.bf16 %v5041_v29, %v5039_v12  ;;  %v5445_v14 = vpack.c.bf16 %v5074_v51, %v5072_v28 }
0x1459   : > { %v5093_v43 = vpop.f32.mrf.mxu3 }
0x145a   : > { %5270 = vmatpush.bf16.msrb.mxu2 %v5244_v37  ;;  %v12199_v43 = vld [vmem:[#allocation14_spill] sm:$0xff] }
0x145c   : > { %5472 = vmatpush.bf16.msra.mxu3 %v5448_v49 }
0x145e   : > { %5331 = vmatmul.bf16.gmra.mxu1 %v5301_v39  ;;  %5271 = vmatpush.bf16.msrb.mxu2 %v5243_v8 }
0x1460   : > { %5473 = vmatpush.bf16.msra.mxu3 %v5447_v59 }
0x1462   : > { %5272 = vmatpush.bf16.msrb.mxu2 %v5242_v31 }
0x1464   : > { %5474 = vmatpush.bf16.msra.mxu3 %v5446_v40 }
0x1468   : > { %5133 = vmatmul.bf16.gmra.mxu0 %v5099_v4  ;;  %5475 = vmatpush.bf16.msra.mxu3 %v5445_v14 }
0x146e   : > { %5336 = vmatmul.bf16.gmra.mxu1 %v5302_v54 }
0x14a5   : > { %v5114_v33 = vpop.f32.mrf.mxu0 }
0x14a6   : > { %v11186_v0 = vadd.f32 %v5114_v33, %v10210_v32 }
0x14a8   : > { %v5138_v27 = vsel %vm3502_vm10, %v11186_v0, -inf }
0x14a9   : > { %5139 = vmax.xlane.f32.xlu2 %v5138_v27 }
0x14ab   : > { %v5317_v58 = vpop.f32.mrf.mxu1 }
0x14ac   : > { %v11191_v63 = vadd.f32 %v5317_v58, %v10210_v32 }
0x14ad   : > { %v5116_v56 = vpop.f32.mrf.mxu0 }
0x14ae   : > { %v5341_v45 = vsel %vm3502_vm10, %v11191_v63, -inf  ;;  %v11196_v47 = vadd.f32 %v5116_v56, %v10225_v53 }
0x14af   : > { %5342 = vmax.xlane.f32.xlu0 %v5341_v45 }
0x14b0   : > { %v5141_v32 = vsel %vm3502_vm10, %v11196_v47, -inf }
0x14b3   : > { %v5319_v41 = vpop.f32.mrf.mxu1 }
0x14b4   : > { %v11199_v60 = vadd.f32 %v5319_v41, %v10225_v53 }
0x14b5   : > { %v5119_v16 = vpop.f32.mrf.mxu0 }
0x14b6   : > { %v5344_v55 = vsel %vm3502_vm10, %v11199_v60, -inf  ;;  %v11206_v10 = vadd.f32 %v5119_v16, %v10240_v48 }
0x14b7   : > { %5345 = vmax.xlane.f32.xlu1 %v5344_v55  ;;  %5142 = vmax.xlane.f32.xlu0 %v5141_v32 }
0x14b8   : > { %v5144_v62 = vsel %vm3502_vm10, %v11206_v10, -inf }
0x14bb   : > { %v5322_v26 = vpop.f32.mrf.mxu1 }
0x14bc   : > { %v11209_v50 = vadd.f32 %v5322_v26, %v10240_v48 }
0x14bd   : > { %v5121_v36 = vpop.f32.mrf.mxu0 }
0x14be   : > { %v5347_v53 = vsel %vm3502_vm10, %v11209_v50, -inf  ;;  %v11216_v34 = vadd.f32 %v5121_v36, %v10255_v38 }
0x14bf   : > { %5348 = vmax.xlane.f32.xlu1 %v5347_v53  ;;  %5145 = vmax.xlane.f32.xlu0 %v5144_v62 }
0x14c0   : > { %v5147_v13 = vsel %vm3502_vm10, %v11216_v34, -inf }
0x14c3   : > { %v5324_v19 = vpop.f32.mrf.mxu1 }
0x14c4   : > { %v11219_v18 = vadd.f32 %v5324_v19, %v10255_v38 }
0x14c5   : > { %v5124_v1 = vpop.f32.mrf.mxu0 }
0x14c6   : > { %v5350_v48 = vsel %vm3502_vm10, %v11219_v18, -inf  ;;  %v11226_v21 = vadd.f32 %v5124_v1, %v10270_v15 }
0x14c7   : > { %5351 = vmax.xlane.f32.xlu2 %v5350_v48  ;;  %5148 = vmax.xlane.f32.xlu1 %v5147_v13 }
0x14c8   : > { %v5150_v44 = vsel %vm3502_vm10, %v11226_v21, -inf }
0x14cb   : > { %v5327_v23 = vpop.f32.mrf.mxu1 }
0x14cc   : > { %v11229_v11 = vadd.f32 %v5327_v23, %v10270_v15 }
0x14cd   : > { %v5126_v5 = vpop.f32.mrf.mxu0 }
0x14ce   : > { %v5353_v38 = vsel %vm3502_vm10, %v11229_v11, -inf  ;;  %v11236_v7 = vadd.f32 %v5126_v5, %v10285_v6 }
0x14cf   : > { %5354 = vmax.xlane.f32.xlu2 %v5353_v38  ;;  %5151 = vmax.xlane.f32.xlu1 %v5150_v44 }
0x14d0   : > { %v5153_v15 = vsel %vm3502_vm10, %v11236_v7, -inf }
0x14d3   : > { %v5329_v2 = vpop.f32.mrf.mxu1 }
0x14d4   : > { %v11239_v25 = vadd.f32 %v5329_v2, %v10285_v6 }
0x14d5   : > { %v5129_v20 = vpop.f32.mrf.mxu0 }
0x14d6   : > { %v5356_v17 = vsel %vm3502_vm10, %v11239_v25, -inf  ;;  %v11246_v61 = vadd.f32 %v5129_v20, %v10300_v30 }
0x14d7   : > { %5154 = vmax.xlane.f32.xlu2 %v5153_v15  ;;  %5357 = vmax.xlane.f32.xlu0 %v5356_v17 }
0x14d8   : > { %v5156_v52 = vsel %vm3502_vm10, %v11246_v61, -inf }
0x14db   : > { %v5332_v42 = vpop.f32.mrf.mxu1 }
0x14dc   : > { %v11249_v9 = vadd.f32 %v5332_v42, %v10300_v30 }
0x14dd   : > { %v5131_v37 = vpop.f32.mrf.mxu0 }
0x14de   : > { %v5359_v6 = vsel %vm3502_vm10, %v11249_v9, -inf  ;;  %v11256_v57 = vadd.f32 %v5131_v37, %v12199_v43 }
0x14df   : > { %5360 = vmax.xlane.f32.xlu0 %v5359_v6  ;;  %5157 = vmax.xlane.f32.xlu2 %v5156_v52 }
0x14e0   : > { %v5159_v39 = vsel %vm3502_vm10, %v11256_v57, -inf }
0x14e3   : > { %v5334_v46 = vpop.f32.mrf.mxu1 }
0x14e4   : > { %v11259_v3 = vadd.f32 %v5334_v46, %v12199_v43 }
0x14e5   : > { %v11261_v49 = vpop.f32.mrf.mxu0 }
0x14e6   : > { %v5362_v30 = vsel %vm3502_vm10, %v11259_v3, -inf }
0x14e7   : > { %5363 = vmax.xlane.f32.xlu1 %v5362_v30  ;;  %5160 = vmax.xlane.f32.xlu0 %v5159_v39 }
0x14eb   : > { %v11267_v29 = vpop.f32.mrf.mxu1 }
0x14ed   : > { %v5136_v8 = vpop.f32.mrf.mxu0 }
0x14f3   : > { %v5339_v22 = vpop.f32.mrf.mxu1 }
0x151c   : > { %v5140_v12 = vpop.xlane.xlu2 %5139 }
0x151d   : > { %v5165_v35 = vsub.f32 %v11186_v0, %v5140_v12 }
0x151f   : > { %v5174_v59 = vmul.f32 1.442695, %v5165_v35 }
0x1521   : > { %8197 = vpow2.f32 %v5174_v59 }
0x1522   : > { %v5343_v31 = vpop.xlane.xlu0 %5342 }
0x1523   : > { %v5368_v24 = vsub.f32 %v11191_v63, %v5343_v31 }
0x1525   : > { %v5377_v51 = vmul.f32 1.442695, %v5368_v24 }
0x1527   : > { %v11271_v40 = vpop.eup %8197  ;;  %8199 = vpow2.f32 %v5377_v51 }
0x1528   : > { %v5192_v28 = vsel %vm3502_vm10, %v11271_v40, 0.0 }
0x1529   : > { %5193 = vadd.xlane.f32.xlu0 %v5192_v28 }
0x152a   : > { %v5346_v4 = vpop.xlane.xlu1 %5345  ;;  %v5143_v14 = vpop.xlane.xlu0 %5142 }
0x152b   : > { %v5369_v54 = vsub.f32 %v11199_v60, %v5346_v4  ;;  %v5166_v33 = vsub.f32 %v11196_v47, %v5143_v14 }
0x152d   : > { %v11277_v0 = vpop.eup %8199  ;;  %v5379_v27 = vmul.f32 1.442695, %v5369_v54  ;;  %v5176_v58 = vmul.f32 1.442695, %v5166_v33 }
0x152e   : > { %v5395_v63 = vsel %vm3502_vm10, %v11277_v0, 0.0 }
0x152f   : > { %8201 = vpow2.f32 %v5379_v27  ;;  %5396 = vadd.xlane.f32.xlu1 %v5395_v63 }
0x1530   : > { %8203 = vpow2.f32 %v5176_v58 }
0x1532   : > { %v5349_v56 = vpop.xlane.xlu1 %5348  ;;  %v5146_v45 = vpop.xlane.xlu0 %5145 }
0x1533   : > { %v5370_v41 = vsub.f32 %v11209_v50, %v5349_v56  ;;  %v5167_v16 = vsub.f32 %v11206_v10, %v5146_v45 }
0x1535   : > { %v11283_v55 = vpop.eup %8201  ;;  %v5381_v60 = vmul.f32 1.442695, %v5370_v41  ;;  %v5178_v47 = vmul.f32 1.442695, %v5167_v16 }
0x1536   : > { %v11285_v32 = vpop.eup %8203  ;;  %v5398_v26 = vsel %vm3502_vm10, %v11283_v55, 0.0 }
0x1537   : > { %8205 = vpow2.f32 %v5381_v60  ;;  %v5195_v36 = vsel %vm3502_vm10, %v11285_v32, 0.0  ;;  %5399 = vadd.xlane.f32.xlu2 %v5398_v26  ;;  %v12200_v60 = vld [vmem:[#allocation15_spill] sm:$0xff] }
0x1538   : > { %8207 = vpow2.f32 %v5178_v47  ;;  %5196 = vadd.xlane.f32.xlu1 %v5195_v36  ;;  %v11351_v47 = vadd.f32 %v11261_v49, %v12200_v60 }
0x153a   : > { %v5352_v53 = vpop.xlane.xlu2 %5351  ;;  %v5149_v50 = vpop.xlane.xlu1 %5148  ;;  %v5162_v26 = vsel %vm3527_vm8, %v11351_v47, -inf }
0x153b   : > { %v5371_v10 = vsub.f32 %v11219_v18, %v5352_v53  ;;  %v5168_v62 = vsub.f32 %v11216_v34, %v5149_v50 }
0x153d   : > { %v11293_v19 = vpop.eup %8205  ;;  %v5383_v1 = vmul.f32 1.442695, %v5371_v10  ;;  %v5180_v48 = vmul.f32 1.442695, %v5168_v62 }
0x153e   : > { %v11295_v13 = vpop.eup %8207  ;;  %v5401_v23 = vsel %vm3502_vm10, %v11293_v19, 0.0 }
0x153f   : > { %8209 = vpow2.f32 %v5383_v1  ;;  %v5198_v5 = vsel %vm3502_vm10, %v11295_v13, 0.0  ;;  %5402 = vadd.xlane.f32.xlu2 %v5401_v23 }
0x1540   : > { %8211 = vpow2.f32 %v5180_v48  ;;  %5199 = vadd.xlane.f32.xlu1 %v5198_v5 }
0x1542   : > { %v5355_v38 = vpop.xlane.xlu2 %5354  ;;  %v5152_v18 = vpop.xlane.xlu1 %5151 }
0x1543   : > { %v5372_v34 = vsub.f32 %v11229_v11, %v5355_v38  ;;  %v5169_v44 = vsub.f32 %v11226_v21, %v5152_v18 }
0x1545   : > { %v11303_v2 = vpop.eup %8209  ;;  %v5385_v20 = vmul.f32 1.442695, %v5372_v34  ;;  %v5182_v15 = vmul.f32 1.442695, %v5169_v44 }
0x1546   : > { %v11305_v17 = vpop.eup %8211  ;;  %v5404_v42 = vsel %vm3502_vm10, %v11303_v2, 0.0 }
0x1547   : > { %8213 = vpow2.f32 %v5385_v20  ;;  %5405 = vadd.xlane.f32.xlu0 %v5404_v42  ;;  %v5201_v37 = vsel %vm3502_vm10, %v11305_v17, 0.0 }
0x1548   : > { %8215 = vpow2.f32 %v5182_v15  ;;  %5202 = vadd.xlane.f32.xlu2 %v5201_v37 }
0x154a   : > { %v5155_v6 = vpop.xlane.xlu2 %5154  ;;  %v5358_v11 = vpop.xlane.xlu0 %5357 }
0x154b   : > { %v5170_v21 = vsub.f32 %v11236_v7, %v5155_v6  ;;  %v5373_v52 = vsub.f32 %v11239_v25, %v5358_v11 }
0x154d   : > { %v11313_v43 = vpop.eup %8213  ;;  %v5184_v46 = vmul.f32 1.442695, %v5170_v21  ;;  %v5387_v30 = vmul.f32 1.442695, %v5373_v52 }
0x154e   : > { %v11315_v39 = vpop.eup %8215  ;;  %v5407_v8 = vsel %vm3502_vm10, %v11313_v43, 0.0 }
0x154f   : > { %8217 = vpow2.f32 %v5184_v46  ;;  %5408 = vadd.xlane.f32.xlu0 %v5407_v8  ;;  %v5204_v22 = vsel %vm3502_vm10, %v11315_v39, 0.0 }
0x1550   : > { %8219 = vpow2.f32 %v5387_v30  ;;  %5205 = vadd.xlane.f32.xlu2 %v5204_v22 }
0x1552   : > { %v5361_v12 = vpop.xlane.xlu0 %5360  ;;  %v5158_v7 = vpop.xlane.xlu2 %5157 }
0x1553   : > { %v5374_v25 = vsub.f32 %v11249_v9, %v5361_v12  ;;  %v5171_v35 = vsub.f32 %v11246_v61, %v5158_v7 }
0x1555   : > { %v11323_v59 = vpop.eup %8217  ;;  %v5389_v31 = vmul.f32 1.442695, %v5374_v25  ;;  %v5186_v24 = vmul.f32 1.442695, %v5171_v35  ;;  %v7848_v25 = vld [vmem:[%s12123_s3 + $0x2d0] sm:$0xff] }
0x1556   : > { %v11325_v51 = vpop.eup %8219  ;;  %v5207_v28 = vsel %vm3502_vm10, %v11323_v59, 0.0 }
0x1557   : > { %8221 = vpow2.f32 %v5389_v31  ;;  %v5410_v4 = vsel %vm3502_vm10, %v11325_v51, 0.0  ;;  %5208 = vadd.xlane.f32.xlu0 %v5207_v28 }
0x1558   : > { %8223 = vpow2.f32 %v5186_v24  ;;  %5411 = vadd.xlane.f32.xlu1 %v5410_v4 }
0x155a   : > { %v5364_v14 = vpop.xlane.xlu1 %5363  ;;  %v5161_v9 = vpop.xlane.xlu0 %5160 }
0x155b   : > { %v5375_v61 = vsub.f32 %v11259_v3, %v5364_v14  ;;  %v5172_v54 = vsub.f32 %v11256_v57, %v5161_v9 }
0x155d   : > { %v11333_v33 = vpop.eup %8221  ;;  %v5391_v27 = vmul.f32 1.442695, %v5375_v61  ;;  %v5188_v58 = vmul.f32 1.442695, %v5172_v54  ;;  %v7847_v54 = vld [vmem:[%s12123_s3 + $0x2c8] sm:$0xff] }
0x155e   : > { %v11335_v63 = vpop.eup %8223  ;;  %v5413_v56 = vsel %vm3502_vm10, %v11333_v33, 0.0 }
0x155f   : > { %8225 = vpow2.f32 %v5391_v27  ;;  %v5210_v45 = vsel %vm3502_vm10, %v11335_v63, 0.0 }
0x1560   : > { %8227 = vpow2.f32 %v5188_v58  ;;  %5414 = vadd.xlane.f32.xlu1 %v5413_v56  ;;  %5211 = vadd.xlane.f32.xlu0 %v5210_v45 }
0x1565   : > { %v11341_v41 = vpop.eup %8225 }
0x1566   : > { %v11343_v3 = vpop.eup %8227  ;;  %v5416_v57 = vsel %vm3502_vm10, %v11341_v41, 0.0 }
0x1567   : > { %v5213_v16 = vsel %vm3502_vm10, %v11343_v3, 0.0  ;;  %5417 = vadd.xlane.f32.xlu2 %v5416_v57 }
0x1568   : > { %5214 = vadd.xlane.f32.xlu1 %v5213_v16 }
0x156f   : > { %5163 = vmax.xlane.f32.xlu2 %v5162_v26 }
0x159c   : > { %v5194_v53 = vpop.xlane.xlu0 %5193 }
0x15a2   : > { %v5397_v36 = vpop.xlane.xlu1 %5396 }
0x15a3   : > { %8229 = vrcp.f32 %v5397_v36 }
0x15a4   : > { %8231 = vrcp.f32 %v5194_v53 }
0x15a9   : > { %v8230_v62 = vpop.eup %8229 }
0x15aa   : > { %v5400_v50 = vpop.xlane.xlu2 %5399  ;;  %v8232_v1 = vpop.eup %8231  ;;  %v5431_v5 = vmul.f32 %v8230_v62, %v11277_v0 }
0x15ab   : > { %v5197_v10 = vpop.xlane.xlu1 %5196  ;;  %8233 = vrcp.f32 %v5400_v50  ;;  %v5228_v18 = vmul.f32 %v8232_v1, %v11271_v40 }
0x15ac   : > { %8235 = vrcp.f32 %v5197_v10 }
0x15b1   : > { %v8234_v48 = vpop.eup %8233 }
0x15b2   : > { %v8236_v23 = vpop.eup %8235  ;;  %v5432_v49 = vmul.f32 %v8234_v48, %v11283_v55  ;;  %v5403_v38 = vpop.xlane.xlu2 %5402 }
0x15b3   : > { %v5229_v34 = vmul.f32 %v8236_v23, %v11285_v32  ;;  %v5200_v15 = vpop.xlane.xlu1 %5199  ;;  %8237 = vrcp.f32 %v5403_v38  ;;  %v8358_v38 = vld [vmem:[%s12125_s5 + $0xe8] sm:$0xff] }
0x15b4   : > { %v5440_v44 = vpack.c.bf16 %v5432_v49, %v5431_v5  ;;  %8239 = vrcp.f32 %v5200_v15  ;;  %v8356_v5 = vld [vmem:[%s12125_s5 + $0xf8] sm:$0xff]  ;;  %v8357_v49 = vld [vmem:[%s12125_s5 + $0xf0] sm:$0xff] }
0x15b5   : > { %v5237_v20 = vpack.c.bf16 %v5229_v34, %v5228_v18  ;;  %v7857_v18 = vld [vmem:[%s12123_s3 + $0x318] sm:$0xff]  ;;  %v8359_v34 = vld [vmem:[%s12125_s5 + $0xe0] sm:$0xff]  ;;  %v8361_v15 = vld [vmem:[%s12125_s5 + $0xd0] sm:$0xff] }
0x15b6   : > { %7568 = vmatmul.msk.bf16.vlgmr.msra.gmra.mxu3 %vm3502_vm10, %v5440_v44  ;;  %5642 = vmatpush.bf16.msra.mxu2 %v7857_v18 }
0x15b7   : > { %7563 = vmatmul.msk.bf16.vlgmr.msrb.gmra.mxu2 %vm3502_vm10, %v5237_v20  ;;  %v8360_v20 = vld [vmem:[%s12125_s5 + $0xd8] sm:$0xff] }
0x15b9   : > { %v8238_v0 = vpop.eup %8237 }
0x15ba   : > { %v5406_v42 = vpop.xlane.xlu0 %5405  ;;  %v8240_v55 = vpop.eup %8239  ;;  %v5433_v40 = vmul.f32 %v8238_v0, %v11293_v19 }
0x15bb   : > { %8241 = vrcp.f32 %v5406_v42  ;;  %v5203_v37 = vpop.xlane.xlu2 %5202  ;;  %v5230_v52 = vmul.f32 %v8240_v55, %v11295_v13  ;;  %v7849_v13 = vld [vmem:[%s12123_s3 + $0x2d8] sm:$0xff]  ;;  %v7856_v55 = vld [vmem:[%s12123_s3 + $0x310] sm:$0xff] }
0x15bc   : > { %8243 = vrcp.f32 %v5203_v37  ;;  %5609 = vmatpush.bf16.msra.mxu0 %v7849_v13  ;;  %v8362_v37 = vld [vmem:[%s12125_s5 + $0xc8] sm:$0xff]  ;;  %5643 = vmatpush.bf16.msra.mxu2 %v7856_v55 }
0x15c0   : > { %5610 = vmatpush.bf16.msra.mxu0 %v7848_v25  ;;  %v8369_v25 = vld [vmem:[%s12125_s5 + $0x90] sm:$0xff] }
0x15c1   : > { %v8242_v6 = vpop.eup %8241 }
0x15c2   : > { %v8244_v11 = vpop.eup %8243  ;;  %v5434_v32 = vmul.f32 %v8242_v6, %v11303_v2  ;;  %v5409_v21 = vpop.xlane.xlu0 %5408  ;;  %v8363_v6 = vld [vmem:[%s12125_s5 + $0xc0] sm:$0xff] }
0x15c3   : > { %v5231_v46 = vmul.f32 %v8244_v11, %v11305_v17  ;;  %v5206_v22 = vpop.xlane.xlu2 %5205 }
0x15c4   : > { %v5441_v30 = vpack.c.bf16 %v5434_v32, %v5433_v40  ;;  %8245 = vrcp.f32 %v5206_v22  ;;  %5611 = vmatpush.bf16.msra.mxu0 %v7847_v54  ;;  %v8364_v40 = vld [vmem:[%s12125_s5 + $0xb8] sm:$0xff]  ;;  %v7855_v32 = vld [vmem:[%s12123_s3 + $0x308] sm:$0xff] }
0x15c5   : > { %v5238_v8 = vpack.c.bf16 %v5231_v46, %v5230_v52  ;;  %8247 = vrcp.f32 %v5409_v21  ;;  %5644 = vmatpush.bf16.msra.mxu2 %v7855_v32  ;;  %v7854_v21 = vld [vmem:[%s12123_s3 + $0x300] sm:$0xff]  ;;  %v8365_v52 = vld [vmem:[%s12125_s5 + $0xb0] sm:$0xff]  ;;  %v7853_v46 = vld [vmem:[%s12123_s3 + $0x2f8] sm:$0xff] }
0x15c6   : > { %7569 = vmatmul.msk.bf16.gmra.mxu3 %vm3502_vm10, %v5441_v30 }
0x15c7   : > { %7564 = vmatmul.msk.bf16.gmra.mxu2 %vm3502_vm10, %v5238_v8  ;;  %v8366_v8 = vld [vmem:[%s12125_s5 + $0xa8] sm:$0xff] }
0x15c9   : > { %5645 = vmatpush.bf16.msra.mxu2 %v7854_v21 }
0x15ca   : > { %v5209_v12 = vpop.xlane.xlu0 %5208  ;;  %v8246_v19 = vpop.eup %8245 }
0x15cb   : > { %v5412_v7 = vpop.xlane.xlu1 %5411  ;;  %8249 = vrcp.f32 %v5209_v12  ;;  %v8248_v2 = vpop.eup %8247  ;;  %v5232_v31 = vmul.f32 %v8246_v19, %v11315_v39  ;;  %v7852_v12 = vld [vmem:[%s12123_s3 + $0x2f0] sm:$0xff]  ;;  %v7851_v19 = vld [vmem:[%s12123_s3 + $0x2e8] sm:$0xff] }
0x15cc   : > { %8251 = vrcp.f32 %v5412_v7  ;;  %v5435_v28 = vmul.f32 %v8248_v2, %v11313_v43  ;;  %v7846_v43 = vld [vmem:[%s12123_s3 + $0x2c0] sm:$0xff]  ;;  %v8368_v2 = vld [vmem:[%s12125_s5 + $0x98] sm:$0xff] }
0x15cd   : > { %5612 = vmatpush.bf16.msra.mxu0 %v7846_v43  ;;  %5646 = vmatpush.bf16.msra.mxu2 %v7853_v46  ;;  %v8367_v7 = vld [vmem:[%s12125_s5 + $0xa0] sm:$0xff] }
0x15d1   : > { %v8250_v17 = vpop.eup %8249  ;;  %5647 = vmatpush.bf16.msra.mxu2 %v7852_v12 }
0x15d2   : > { %v8252_v35 = vpop.eup %8251  ;;  %v5233_v24 = vmul.f32 %v8250_v17, %v11323_v59  ;;  %v7850_v17 = vld [vmem:[%s12123_s3 + $0x2e0] sm:$0xff] }
0x15d3   : > { %v5436_v4 = vmul.f32 %v8252_v35, %v11325_v51  ;;  %v5415_v14 = vpop.xlane.xlu1 %5414  ;;  %v5212_v27 = vpop.xlane.xlu0 %5211  ;;  %v7845_v51 = vld [vmem:[%s12123_s3 + $0x2b8] sm:$0xff] }
0x15d4   : > { %v5239_v9 = vpack.c.bf16 %v5233_v24, %v5232_v31  ;;  %8253 = vrcp.f32 %v5415_v14  ;;  %5613 = vmatpush.bf16.msra.mxu0 %v7845_v51  ;;  %v8370_v31 = vld [vmem:[%s12125_s5 + $0x88] sm:$0xff] }
0x15d5   : > { %v5442_v61 = vpack.c.bf16 %v5436_v4, %v5435_v28  ;;  %8255 = vrcp.f32 %v5212_v27  ;;  %5648 = vmatpush.bf16.msra.mxu2 %v7851_v19  ;;  %v11530_v19 = vadd.f32 %v11267_v29, %v12200_v60 }
0x15d7   : > { %7565 = vmatmul.msk.bf16.gmra.mxu2 %vm3502_vm10, %v5239_v9  ;;  %7570 = vmatmul.msk.bf16.gmra.mxu3 %vm3502_vm10, %v5442_v61 }
0x15d9   : > { %5649 = vmatpush.bf16.msra.mxu2 %v7850_v17  ;;  %v12205_v17 = vld [vmem:[#allocation18_spill] sm:$0xff] }
0x15da   : > { %v5418_v39 = vpop.xlane.xlu2 %5417  ;;  %v8254_v58 = vpop.eup %8253 }
0x15db   : > { %v5215_v59 = vpop.xlane.xlu1 %5214  ;;  %8257 = vrcp.f32 %v5418_v39  ;;  %v8256_v56 = vpop.eup %8255  ;;  %v5437_v16 = vmul.f32 %v8254_v58, %v11333_v33 }
0x15dc   : > { %8259 = vrcp.f32 %v5215_v59  ;;  %v5234_v53 = vmul.f32 %v8256_v56, %v11335_v63  ;;  %v7844_v63 = vld [vmem:[%s12123_s3 + $0x2b0] sm:$0xff] }
0x15dd   : > { %5614 = vmatpush.bf16.msra.mxu0 %v7844_v63 }
0x15e1   : > { %v8258_v45 = vpop.eup %8257 }
0x15e2   : > { %v8260_v57 = vpop.eup %8259  ;;  %v5438_v26 = vmul.f32 %v8258_v45, %v11341_v41  ;;  %v5164_v36 = vpop.xlane.xlu2 %5163  ;;  %v7843_v41 = vld [vmem:[%s12123_s3 + $0x2a8] sm:$0xff] }
0x15e3   : > { %v5235_v50 = vmul.f32 %v8260_v57, %v11343_v3  ;;  %v5173_v10 = vsub.f32 %v11351_v47, %v5164_v36  ;;  %5615 = vmatpush.bf16.msra.mxu0 %v7843_v41  ;;  %v7842_v3 = vld [vmem:[%s12123_s3 + $0x2a0] sm:$0xff] }
0x15e4   : > { %v5443_v62 = vpack.c.bf16 %v5438_v26, %v5437_v16  ;;  %v8355_v47 = vld [vmem:[%s12125_s5 + $0x100] sm:$0xff] }
0x15e5   : > { %v5190_v1 = vmul.f32 1.442695, %v5173_v10  ;;  %v5240_v48 = vpack.c.bf16 %v5235_v50, %v5234_v53 }
0x15e7   : > { %8261 = vpow2.f32 %v5190_v1  ;;  %7566 = vmatmul.msk.bf16.gmra.mxu2 %vm3502_vm10, %v5240_v48  ;;  %7571 = vmatmul.msk.bf16.gmra.mxu3 %vm3502_vm10, %v5443_v62 }
0x15e8   : > { %5616 = vmatpush.bf16.msra.mxu0 %v7842_v3  ;;  %v12201_v3 = vld [vmem:[#allocation12_spill] sm:$0xff] }
0x15ec   : > { %7682 = vmatpush.xpose.msk.msrb.mxu0 %vm616_vm1, %v8355_v47 }
0x15ed   : > { %v11395_v23 = vpop.eup %8261 }
0x15ee   : > { %v5216_v33 = vsel %vm3527_vm8, %v11395_v23, 0.0 }
0x15ef   : > { %5217 = vadd.xlane.f32.xlu0 %v5216_v33 }
0x15f0   : > { %7683 = vmatpush.xpose.msk.msrb.mxu0 %vm616_vm1, %v8356_v5 }
0x15f4   : > { %7684 = vmatpush.xpose.msk.msrb.mxu0 %vm616_vm1, %v8357_v49 }
0x15f8   : > { %7685 = vmatpush.xpose.msk.msrb.mxu0 %vm616_vm1, %v8358_v38 }
0x15fc   : > { %7686 = vmatpush.xpose.msk.msrb.mxu0 %vm616_vm1, %v8359_v34 }
0x1600   : > { %7687 = vmatpush.xpose.msk.msrb.mxu0 %vm616_vm1, %v8360_v20 }
0x1604   : > { %7688 = vmatpush.xpose.msk.msrb.mxu0 %vm616_vm1, %v8361_v15 }
0x1608   : > { %7689 = vmatpush.xpose.msk.msrb.mxu0 %vm616_vm1, %v8362_v37 }
0x160c   : > { %7690 = vmatpush.xpose.msk.msrb.mxu0 %vm616_vm1, %v8363_v6  ;;  %v12203_v6 = vld [vmem:[#allocation16_spill] sm:$0xff] }
0x1610   : > { %7691 = vmatpush.xpose.msk.msrb.mxu0 %vm616_vm1, %v8364_v40 }
0x1614   : > { %7692 = vmatpush.xpose.msk.msrb.mxu0 %vm616_vm1, %v8365_v52 }
0x1618   : > { %7693 = vmatpush.xpose.msk.msrb.mxu0 %vm616_vm1, %v8366_v8 }
0x161c   : > { %7694 = vmatpush.xpose.msk.msrb.mxu0 %vm616_vm1, %v8367_v7 }
0x1620   : > { %7695 = vmatpush.xpose.msk.msrb.mxu0 %vm616_vm1, %v8368_v2 }
0x1624   : > { %7696 = vmatpush.xpose.msk.msrb.mxu0 %vm616_vm1, %v8369_v25 }
0x1628   : > { %7697 = vmatpush.xpose.msk.msrb.mxu0 %vm616_vm1, %v8370_v31  ;;  %v5365_v31 = vsel %vm3527_vm8, %v11530_v19, -inf }
0x1639   : > { %v5477_v4 = vpop.f32.mrf.mxu3 }
0x163a   : > { %v5274_v44 = vpop.f32.mrf.mxu2 }
0x1641   : > { %v5479_v27 = vpop.f32.mrf.mxu3 }
0x1642   : > { %v5276_v42 = vpop.f32.mrf.mxu2  ;;  %v5502_v51 = vpack.c.bf16 %v5479_v27, %v5477_v4 }
0x1643   : > { %v5501_v0 = vpack.c.bf16 %v5276_v42, %v5274_v44  ;;  %v12202_v44 = vld [vmem:[#allocation13_spill] sm:$0xff] }
0x1645   : > { %5617 = vmatmul.bf16.vlgmr.msra.gmra.mxu0 %v5501_v0 }
0x1649   : > { %v5482_v59 = vpop.f32.mrf.mxu3 }
0x164a   : > { %v5279_v11 = vpop.f32.mrf.mxu2 }
0x1651   : > { %v5484_v58 = vpop.f32.mrf.mxu3 }
0x1652   : > { %v5281_v30 = vpop.f32.mrf.mxu2  ;;  %v5504_v45 = vpack.c.bf16 %v5484_v58, %v5482_v59 }
0x1653   : > { %v5503_v22 = vpack.c.bf16 %v5281_v30, %v5279_v11  ;;  %v12204_v30 = vld [vmem:[#allocation17_spill] sm:$0xff] }
0x1655   : > { %5622 = vmatmul.bf16.gmra.mxu0 %v5503_v22 }
0x165a   : > { %v5284_v13 = vpop.f32.mrf.mxu2  ;;  %v5487_v56 = vpop.f32.mrf.mxu3 }
0x1662   : > { %v5286_v35 = vpop.f32.mrf.mxu2  ;;  %v5218_v28 = vpop.xlane.xlu0 %5217 }
0x1663   : > { %v5505_v24 = vpack.c.bf16 %v5286_v35, %v5284_v13  ;;  %8263 = vrcp.f32 %v5218_v28  ;;  %v5489_v57 = vpop.f32.mrf.mxu3 }
0x1664   : > { %v5506_v16 = vpack.c.bf16 %v5489_v57, %v5487_v56  ;;  %v12208_v57 = vld [vmem:[#allocation2_spill] sm:$0xff] }
0x1665   : > { %5627 = vmatmul.bf16.gmra.mxu0 %v5505_v24 }
0x1669   : > { %v8264_v14 = vpop.eup %8263 }
0x166a   : > { %v5289_v9 = vpop.f32.mrf.mxu2  ;;  %v5236_v61 = vmul.f32 %v8264_v14, %v11395_v23  ;;  %v11501_v23 = vld [vmem:[%s12125_s5 + $0x159] ss:$0 sm:$0xff]  ;;  %v12206_v14 = vld [vmem:[#allocation19_spill] sm:$0xff] }
0x166b   : > { %v5492_v26 = vpop.f32.mrf.mxu3 }
0x166c   : > { %v5241_v54 = vpack.c.bf16 %v5236_v61, %v5236_v61 }
0x166e   : > { %7567 = vmatmul.msk.bf16.gmra.mxu2 %vm3502_vm10, %v5241_v54 }
0x1672   : > { %v5291_v43 = vpop.f32.mrf.mxu2 }
0x1673   : > { %v5507_v39 = vpack.c.bf16 %v5291_v43, %v5289_v9  ;;  %v5494_v36 = vpop.f32.mrf.mxu3  ;;  %v12207_v43 = vld [vmem:[#allocation20_spill] sm:$0xff] }
0x1674   : > { %v5508_v53 = vpack.c.bf16 %v5494_v36, %v5492_v26 }
0x1675   : > { %5632 = vmatmul.bf16.gmra.mxu0 %v5507_v39 }
0x167e   : > { %5650 = vmatmul.bf16.vlgmr.msra.gmra.mxu2 %v5502_v51 }
0x168e   : > { %5655 = vmatmul.bf16.gmra.mxu2 %v5504_v45 }
0x169e   : > { %5660 = vmatmul.bf16.gmra.mxu2 %v5506_v16 }
0x16ae   : > { %5665 = vmatmul.bf16.gmra.mxu2 %v5508_v53 }
0x16c2   : > { %v5618_v50 = vpop.f32.mrf.mxu0 }
0x16c3   : > { %v5619_v33 = vadd.f32 %v11501_v23, %v5618_v50 }
0x16ca   : > { %v5620_v48 = vpop.f32.mrf.mxu0 }
0x16cb   : > { %v5621_v38 = vadd.f32 %v11501_v23, %v5620_v48 }
0x16d2   : > { %v5623_v5 = vpop.f32.mrf.mxu0 }
0x16d3   : > { %v5624_v37 = vadd.f32 %v11501_v23, %v5623_v5 }
0x16da   : > { %v5625_v42 = vpop.f32.mrf.mxu0 }
0x16db   : > { %v5626_v32 = vadd.f32 %v11501_v23, %v5625_v42 }
0x16e2   : > { %v5628_v21 = vpop.f32.mrf.mxu0 }
0x16e3   : > { %v5629_v12 = vadd.f32 %v11501_v23, %v5628_v21 }
0x16ea   : > { %v5630_v2 = vpop.f32.mrf.mxu0 }
0x16eb   : > { %v5631_v24 = vadd.f32 %v11501_v23, %v5630_v2 }
0x16f1   : > { %v5294_v10 = vpop.f32.mrf.mxu2 }
0x16f2   : > { %v5509_v62 = vpack.c.bf16 %v5294_v10, %v5294_v10  ;;  %v5633_v60 = vpop.f32.mrf.mxu0 }
0x16f3   : > { %v5634_v61 = vadd.f32 %v11501_v23, %v5633_v60 }
0x16f4   : > { %5637 = vmatmul.bf16.gmra.mxu0 %v5509_v62 }
0x16f9   : > { %v5296_v1 = vpop.f32.mrf.mxu2 }
0x16fa   : > { %v5635_v51 = vpop.f32.mrf.mxu0 }
0x16fb   : > { %v5636_v53 = vadd.f32 %v11501_v23, %v5635_v51 }
0x1701   : > { %v5651_v63 = vpop.f32.mrf.mxu2 }
0x1702   : > { %v5652_v41 = vadd.f32 %v5651_v63, %v5619_v33  ;;  %v12209_v33 = vld [vmem:[#allocation21_spill] sm:$0xff] }
0x1704   : > { %v11505_v47 = vadd.f32 %v5652_v41, %v12201_v3 }
0x1706   : > { %v5686_v49 = vsel %vm616_vm1, %v11505_v47, 0.0 }
0x1707   : > { %5687 = vadd.xlane.f32.xlu1 %v5686_v49 }
0x1709   : > { %v5653_v18 = vpop.f32.mrf.mxu2 }
0x170a   : > { %v5654_v34 = vadd.f32 %v5653_v18, %v5621_v38 }
0x170c   : > { %v11511_v20 = vadd.f32 %v5654_v34, %v12202_v44 }
0x170e   : > { %v5689_v15 = vsel %vm616_vm1, %v11511_v20, 0.0 }
0x170f   : > { %5690 = vadd.xlane.f32.xlu2 %v5689_v15 }
0x1711   : > { %v5656_v0 = vpop.f32.mrf.mxu2 }
0x1712   : > { %v5657_v55 = vadd.f32 %v5656_v0, %v5624_v37  ;;  %v7643_v37 = vld [vmem:[%s12122_s2 + $0x210] sm:$0xf]  ;;  %v7859_v0 = vld [vmem:[%s12122_s2 + $0x224] sm:$0xf0] }
0x1714   : > { %v11517_v11 = vadd.f32 %v5657_v55, %v12203_v6  ;;  %v7644_v6 = vor.u32 %v7859_v0, %v7643_v37  ;;  %v7639_v37 = vld [vmem:[%s12122_s2 + $0x1e0] sm:$0xf]  ;;  %v7858_v0 = vld [vmem:[%s12122_s2 + $0x1f4] sm:$0xf0] }
0x1716   : > { %v5692_v40 = vsel %vm616_vm1, %v11517_v11, 0.0  ;;  %5947 = vmatpush.bf16.msrb.mxu1 %v7644_v6 }
0x1717   : > { %5693 = vadd.xlane.f32.xlu0 %v5692_v40 }
0x1719   : > { %v5658_v52 = vpop.f32.mrf.mxu2 }
0x171a   : > { %v5659_v46 = vadd.f32 %v5658_v52, %v5626_v32 }
0x171c   : > { %v11523_v8 = vadd.f32 %v5659_v46, %v12204_v30 }
0x171e   : > { %v5695_v22 = vsel %vm616_vm1, %v11523_v8, 0.0 }
0x171f   : > { %5696 = vadd.xlane.f32.xlu1 %v5695_v22 }
0x1721   : > { %v5661_v7 = vpop.f32.mrf.mxu2 }
0x1722   : > { %v5662_v13 = vadd.f32 %v5661_v7, %v5629_v12 }
0x1724   : > { %v11533_v25 = vadd.f32 %v5662_v13, %v12205_v17 }
0x1726   : > { %v5698_v35 = vsel %vm616_vm1, %v11533_v25, 0.0 }
0x1727   : > { %5699 = vadd.xlane.f32.xlu2 %v5698_v35  ;;  %5366 = vmax.xlane.f32.xlu1 %v5365_v31 }
0x1729   : > { %v5663_v28 = vpop.f32.mrf.mxu2 }
0x172a   : > { %v5664_v4 = vadd.f32 %v5663_v28, %v5631_v24 }
0x172c   : > { %v11541_v29 = vadd.f32 %v5664_v4, %v12206_v14 }
0x172e   : > { %v5701_v9 = vsel %vm616_vm1, %v11541_v29, 0.0 }
0x172f   : > { %5702 = vadd.xlane.f32.xlu0 %v5701_v9 }
0x1731   : > { %v5666_v54 = vpop.f32.mrf.mxu2 }
0x1732   : > { %v5667_v27 = vadd.f32 %v5666_v54, %v5634_v61 }
0x1734   : > { %v11547_v39 = vadd.f32 %v5667_v27, %v12207_v43 }
0x1736   : > { %v5704_v59 = vsel %vm616_vm1, %v11547_v39, 0.0 }
0x1737   : > { %5705 = vadd.xlane.f32.xlu1 %v5704_v59 }
0x1739   : > { %v5668_v36 = vpop.f32.mrf.mxu2 }
0x173a   : > { %v5669_v10 = vadd.f32 %v5668_v36, %v5636_v53 }
0x173c   : > { %v11563_v63 = vadd.f32 %v5669_v10, %v12209_v33 }
0x173e   : > { %v5707_v49 = vsel %vm616_vm1, %v11563_v63, 0.0 }
0x1771   : > { %v11551_v58 = vpop.f32.mrf.mxu0 }
0x1779   : > { %v5640_v56 = vpop.f32.mrf.mxu0 }
0x177a   : > { %v5688_v45 = vpop.xlane.xlu1 %5687 }
0x177b   : > { %v5713_v16 = vmul.f32 %v5688_v45, %v12208_v57 }
0x177d   : > { %v11555_v26 = vsub.f32 %v11505_v47, %v5713_v16 }
0x177f   : > { %v5731_v50 = vmul.f32 %v11555_v26, %v11555_v26 }
0x1781   : > { %v5740_v62 = vsel %vm616_vm1, %v5731_v50, 0.0 }
0x1782   : > { %v5691_v1 = vpop.xlane.xlu2 %5690  ;;  %5741 = vadd.xlane.f32.xlu2 %v5740_v62 }
0x1783   : > { %v5714_v48 = vmul.f32 %v5691_v1, %v12208_v57 }
0x1785   : > { %v11566_v41 = vsub.f32 %v11511_v20, %v5714_v48 }
0x1787   : > { %v5732_v3 = vmul.f32 %v11566_v41, %v11566_v41 }
0x1789   : > { %v5743_v5 = vsel %vm616_vm1, %v5732_v3, 0.0 }
0x178a   : > { %v5694_v38 = vpop.xlane.xlu0 %5693  ;;  %5744 = vadd.xlane.f32.xlu0 %v5743_v5  ;;  %5708 = vadd.xlane.f32.xlu2 %v5707_v49 }
0x178b   : > { %v5715_v18 = vmul.f32 %v5694_v38, %v12208_v57 }
0x178d   : > { %v11575_v34 = vsub.f32 %v11517_v11, %v5715_v18 }
0x178f   : > { %v5733_v44 = vmul.f32 %v11575_v34, %v11575_v34 }
0x1791   : > { %v5746_v15 = vsel %vm616_vm1, %v5733_v44, 0.0 }
0x1792   : > { %5747 = vadd.xlane.f32.xlu0 %v5746_v15  ;;  %v5697_v42 = vpop.xlane.xlu1 %5696 }
0x1793   : > { %v5716_v55 = vmul.f32 %v5697_v42, %v12208_v57 }
0x1795   : > { %v11588_v40 = vsub.f32 %v11523_v8, %v5716_v55 }
0x1797   : > { %v5734_v32 = vmul.f32 %v11588_v40, %v11588_v40 }
0x1799   : > { %v5749_v21 = vsel %vm616_vm1, %v5734_v32, 0.0 }
0x179a   : > { %v5700_v52 = vpop.xlane.xlu2 %5699  ;;  %5750 = vadd.xlane.f32.xlu1 %v5749_v21  ;;  %v5367_v46 = vpop.xlane.xlu1 %5366  ;;  %v7640_v21 = vor.u32 %v7858_v0, %v7639_v37 }
0x179b   : > { %v5717_v30 = vmul.f32 %v5700_v52, %v12208_v57  ;;  %v5376_v22 = vsub.f32 %v11530_v19, %v5367_v46 }
0x179c   : > { %5948 = vmatpush.bf16.msrb.mxu1 %v7640_v21 }
0x179d   : > { %v11596_v12 = vsub.f32 %v11533_v25, %v5717_v30  ;;  %v5393_v7 = vmul.f32 1.442695, %v5376_v22  ;;  %v11639_v22 = vld [vmem:[%s12125_s5 + $0x15a] ss:$0 sm:$0xff] }
0x179f   : > { %8265 = vpow2.f32 %v5393_v7  ;;  %v5735_v13 = vmul.f32 %v11596_v12, %v11596_v12 }
0x17a1   : > { %v5752_v2 = vsel %vm616_vm1, %v5735_v13, 0.0 }
0x17a2   : > { %v5703_v17 = vpop.xlane.xlu0 %5702  ;;  %5753 = vadd.xlane.f32.xlu2 %v5752_v2 }
0x17a3   : > { %v5718_v35 = vmul.f32 %v5703_v17, %v12208_v57 }
0x17a5   : > { %v11602_v31 = vpop.eup %8265  ;;  %v11605_v24 = vsub.f32 %v11541_v29, %v5718_v35 }
0x17a6   : > { %v5419_v19 = vsel %vm3527_vm8, %v11602_v31, 0.0 }
0x17a7   : > { %5420 = vadd.xlane.f32.xlu1 %v5419_v19  ;;  %v5736_v28 = vmul.f32 %v11605_v24, %v11605_v24 }
0x17a9   : > { %v5755_v4 = vsel %vm616_vm1, %v5736_v28, 0.0  ;;  %v11645_v28 = vld [vmem:[%s12125_s5 + $0x15b] ss:$0 sm:$0xff] }
0x17aa   : > { %5756 = vadd.xlane.f32.xlu0 %v5755_v4  ;;  %v5706_v14 = vpop.xlane.xlu1 %5705 }
0x17ab   : > { %v5719_v60 = vmul.f32 %v5706_v14, %v12208_v57 }
0x17ad   : > { %v11614_v9 = vsub.f32 %v11547_v39, %v5719_v60 }
0x17af   : > { %v5737_v61 = vmul.f32 %v11614_v9, %v11614_v9 }
0x17b1   : > { %v5758_v54 = vsel %vm616_vm1, %v5737_v61, 0.0 }
0x17b2   : > { %5759 = vadd.xlane.f32.xlu2 %v5758_v54 }
0x17f5   : > { %v5742_v27 = vpop.xlane.xlu2 %5741 }
0x17f6   : > { %v5767_v43 = vmul.f32 %v5742_v27, %v12208_v57 }
0x17f8   : > { %v5776_v59 = vadd.f32 1e-05, %v5767_v43 }
0x17fa   : > { %8267 = vrsqrt.f32 %v5776_v59  ;;  %vm5791_vm3 = vweird.f32 %v5776_v59 }
0x17fd   : > { %v5745_v51 = vpop.xlane.xlu0 %5744  ;;  %v5709_v56 = vpop.xlane.xlu2 %5708 }
0x17fe   : > { %v5768_v45 = vmul.f32 %v5745_v51, %v12208_v57  ;;  %v5720_v16 = vmul.f32 %v5709_v56, %v12208_v57 }
0x1800   : > { %v8268_v36 = vpop.eup %8267  ;;  %v5777_v53 = vadd.f32 1e-05, %v5768_v45  ;;  %v11623_v50 = vsub.f32 %v11563_v63, %v5720_v16 }
0x1801   : > { %v5786_v10 = vmul.f32 %v8268_v36, %v5776_v59  ;;  %vm5792_vm8 = vweird.f32 %v8268_v36 }
0x1802   : > { %8269 = vrsqrt.f32 %v5777_v53  ;;  %v5738_v62 = vmul.f32 %v11623_v50, %v11623_v50  ;;  %vm5793_vm5 = vmor %vm5791_vm3, %vm5792_vm8  ;;  %vm5801_vm7 = vweird.f32 %v5777_v53 }
0x1803   : > { %v5787_v1 = vmul.f32 %v8268_v36, %v5786_v10 }
0x1804   : > { %v5761_v48 = vsel %vm616_vm1, %v5738_v62, 0.0 }
0x1805   : > { %v5788_v33 = vmul.f32 0.5, %v5787_v1  ;;  %v5748_v3 = vpop.xlane.xlu0 %5747  ;;  %5762 = vadd.xlane.f32.xlu0 %v5761_v48 }
0x1806   : > { %v5769_v5 = vmul.f32 %v5748_v3, %v12208_v57 }
0x1807   : > { %v5789_v49 = vsub.f32 1.5, %v5788_v33 }
0x1808   : > { %v8270_v38 = vpop.eup %8269  ;;  %v5778_v18 = vadd.f32 1e-05, %v5769_v5 }
0x1809   : > { %v5790_v44 = vmul.f32 %v8268_v36, %v5789_v49  ;;  %v5796_v15 = vmul.f32 %v8270_v38, %v5777_v53  ;;  %vm5802_vm13 = vweird.f32 %v8270_v38 }
0x180a   : > { %8271 = vrsqrt.f32 %v5778_v18  ;;  %vm5803_vm4 = vmor %vm5801_vm7, %vm5802_vm13  ;;  %vm5811_vm8 = vweird.f32 %v5778_v18 }
0x180b   : > { %v5797_v42 = vmul.f32 %v8270_v38, %v5796_v15  ;;  %v5794_v55 = vsel %vm5793_vm5, %v8268_v36, %v5790_v44 }
0x180c   : > { %v5875_v7 = vmul.f32 %v5794_v55, %v11555_v26 }
0x180d   : > { %v5798_v6 = vmul.f32 0.5, %v5797_v42  ;;  %v5751_v32 = vpop.xlane.xlu1 %5750 }
0x180e   : > { %v5770_v52 = vmul.f32 %v5751_v32, %v12208_v57  ;;  %v5885_v4 = vmul.f32 %v11639_v22, %v5875_v7 }
0x180f   : > { %v5799_v46 = vsub.f32 1.5, %v5798_v6 }
0x1810   : > { %v8272_v30 = vpop.eup %8271  ;;  %v5779_v13 = vadd.f32 1e-05, %v5770_v52  ;;  %v5895_v59 = vadd.f32 %v11645_v28, %v5885_v4 }
0x1811   : > { %v5800_v2 = vmul.f32 %v8270_v38, %v5799_v46  ;;  %v5806_v17 = vmul.f32 %v8272_v30, %v5778_v18  ;;  %vm5812_vm9 = vweird.f32 %v8272_v30 }
0x1812   : > { %8273 = vrsqrt.f32 %v5779_v13  ;;  %vm5813_vm3 = vmor %vm5811_vm8, %vm5812_vm9  ;;  %vm5821_vm13 = vweird.f32 %v5779_v13 }
0x1813   : > { %v5804_v35 = vsel %vm5803_vm4, %v8270_v38, %v5800_v2  ;;  %v5807_v19 = vmul.f32 %v8272_v30, %v5806_v17 }
0x1814   : > { %v5876_v14 = vmul.f32 %v5804_v35, %v11566_v41 }
0x1815   : > { %v5808_v60 = vmul.f32 0.5, %v5807_v19  ;;  %v5754_v61 = vpop.xlane.xlu2 %5753 }
0x1816   : > { %v5886_v26 = vmul.f32 %v11639_v22, %v5876_v14  ;;  %v5771_v54 = vmul.f32 %v5754_v61, %v12208_v57 }
0x1817   : > { %v5809_v27 = vsub.f32 1.5, %v5808_v60 }
0x1818   : > { %v8274_v43 = vpop.eup %8273  ;;  %v5896_v51 = vadd.f32 %v11645_v28, %v5886_v26  ;;  %v5780_v56 = vadd.f32 1e-05, %v5771_v54 }
0x1819   : > { %v5810_v45 = vmul.f32 %v8272_v30, %v5809_v27  ;;  %v5816_v16 = vmul.f32 %v8274_v43, %v5779_v13  ;;  %vm5822_vm5 = vweird.f32 %v8274_v43 }
0x181a   : > { %v5908_v36 = vpack.c.bf16 %v5896_v51, %v5895_v59  ;;  %8275 = vrsqrt.f32 %v5780_v56  ;;  %v5421_v53 = vpop.xlane.xlu1 %5420  ;;  %vm5823_vm7 = vmor %vm5821_vm13, %vm5822_vm5  ;;  %vm5831_vm9 = vweird.f32 %v5780_v56 }
0x181b   : > { %v5817_v41 = vmul.f32 %v8274_v43, %v5816_v16  ;;  %8277 = vrcp.f32 %v5421_v53  ;;  %v5814_v10 = vsel %vm5813_vm3, %v8272_v30, %v5810_v45 }
0x181c   : > { %7645 = vmatmul.msk.bf16.vlgmr.msrb.gmra.mxu1 %vm616_vm1, %v5908_v36  ;;  %v5877_v5 = vmul.f32 %v5814_v10, %v11575_v34 }
0x181d   : > { %v5818_v62 = vmul.f32 0.5, %v5817_v41  ;;  %v5757_v1 = vpop.xlane.xlu0 %5756 }
0x181e   : > { %v5772_v48 = vmul.f32 %v5757_v1, %v12208_v57  ;;  %v5887_v6 = vmul.f32 %v11639_v22, %v5877_v5 }
0x181f   : > { %v5819_v33 = vsub.f32 1.5, %v5818_v62 }
0x1820   : > { %v8276_v3 = vpop.eup %8275  ;;  %v5781_v49 = vadd.f32 1e-05, %v5772_v48  ;;  %v5897_v46 = vadd.f32 %v11645_v28, %v5887_v6 }
0x1821   : > { %v8278_v38 = vpop.eup %8277  ;;  %v5820_v44 = vmul.f32 %v8274_v43, %v5819_v33  ;;  %v5826_v18 = vmul.f32 %v8276_v3, %v5780_v56  ;;  %vm5832_vm4 = vweird.f32 %v8276_v3 }
0x1822   : > { %v5439_v15 = vmul.f32 %v8278_v38, %v11602_v31  ;;  %8279 = vrsqrt.f32 %v5781_v49  ;;  %vm5833_vm8 = vmor %vm5831_vm9, %vm5832_vm4  ;;  %vm5841_vm3 = vweird.f32 %v5781_v49 }
0x1823   : > { %v5824_v42 = vsel %vm5823_vm7, %v8274_v43, %v5820_v44  ;;  %v5827_v37 = vmul.f32 %v8276_v3, %v5826_v18 }
0x1824   : > { %v5878_v0 = vmul.f32 %v5824_v42, %v11588_v40  ;;  %v5444_v55 = vpack.c.bf16 %v5439_v15, %v5439_v15  ;;  %v7866_v15 = vld [vmem:[%s12123_s3 + $0x350] sm:$0xff] }
0x1825   : > { %v5828_v32 = vmul.f32 0.5, %v5827_v37  ;;  %v5760_v59 = vpop.xlane.xlu2 %5759 }
0x1826   : > { %7572 = vmatmul.msk.bf16.gmra.mxu3 %vm3502_vm10, %v5444_v55  ;;  %v5888_v34 = vmul.f32 %v11639_v22, %v5878_v0 }
0x1827   : > { %v5829_v21 = vsub.f32 1.5, %v5828_v32 }
0x1828   : > { %v8280_v52 = vpop.eup %8279  ;;  %v5898_v30 = vadd.f32 %v11645_v28, %v5888_v34  ;;  %v7865_v34 = vld [vmem:[%s12123_s3 + $0x348] sm:$0xff] }
0x1829   : > { %v5830_v31 = vmul.f32 %v8276_v3, %v5829_v21  ;;  %v5836_v7 = vmul.f32 %v8280_v52, %v5781_v49  ;;  %vm5842_vm10 = vweird.f32 %v8280_v52  ;;  %v7864_v21 = vld [vmem:[%s12123_s3 + $0x340] sm:$0xff] }
0x182a   : > { %v5909_v13 = vpack.c.bf16 %v5898_v30, %v5897_v46  ;;  %vm5843_vm5 = vmor %vm5841_vm3, %vm5842_vm10  ;;  %v7863_v30 = vld [vmem:[%s12123_s3 + $0x338] sm:$0xff] }
0x182b   : > { %v5837_v40 = vmul.f32 %v8280_v52, %v5836_v7  ;;  %v5834_v2 = vsel %vm5833_vm8, %v8276_v3, %v5830_v31 }
0x182c   : > { %7646 = vmatmul.msk.bf16.gmra.mxu1 %vm616_vm1, %v5909_v13  ;;  %v5879_v19 = vmul.f32 %v5834_v2, %v11596_v12  ;;  %v5773_v12 = vmul.f32 %v5760_v59, %v12208_v57  ;;  %v7862_v13 = vld [vmem:[%s12123_s3 + $0x330] sm:$0xff] }
0x182d   : > { %v5838_v17 = vmul.f32 0.5, %v5837_v40 }
0x182e   : > { %v5889_v61 = vmul.f32 %v11639_v22, %v5879_v19  ;;  %v5782_v51 = vadd.f32 1e-05, %v5773_v12  ;;  %v7861_v19 = vld [vmem:[%s12123_s3 + $0x328] sm:$0xff] }
0x182f   : > { %v5839_v35 = vsub.f32 1.5, %v5838_v17 }
0x1830   : > { %v5899_v54 = vadd.f32 %v11645_v28, %v5889_v61  ;;  %8281 = vrsqrt.f32 %v5782_v51  ;;  %vm5851_vm7 = vweird.f32 %v5782_v51  ;;  %v7860_v61 = vld [vmem:[%s12123_s3 + $0x320] sm:$0xff] }
0x1831   : > { %v5840_v4 = vmul.f32 %v8280_v52, %v5839_v35 }
0x1833   : > { %v5844_v14 = vsel %vm5843_vm5, %v8280_v52, %v5840_v4 }
0x1834   : > { %v5880_v60 = vmul.f32 %v5844_v14, %v11605_v24  ;;  %v7867_v24 = vld [vmem:[%s12123_s3 + $0x358] sm:$0xff] }
0x1835   : > { %6126 = vmatpush.bf16.msrb.mxu3 %v7867_v24 }
0x1836   : > { %v5890_v26 = vmul.f32 %v11639_v22, %v5880_v60  ;;  %v8282_v56 = vpop.eup %8281 }
0x1837   : > { %v5846_v45 = vmul.f32 %v8282_v56, %v5782_v51  ;;  %vm5852_vm13 = vweird.f32 %v8282_v56 }
0x1838   : > { %v5900_v27 = vadd.f32 %v11645_v28, %v5890_v26  ;;  %vm5853_vm4 = vmor %vm5851_vm7, %vm5852_vm13 }
0x1839   : > { %v5847_v16 = vmul.f32 %v8282_v56, %v5846_v45  ;;  %6127 = vmatpush.bf16.msrb.mxu3 %v7866_v15 }
0x183a   : > { %v5910_v43 = vpack.c.bf16 %v5900_v27, %v5899_v54 }
0x183b   : > { %v5848_v10 = vmul.f32 0.5, %v5847_v16 }
0x183c   : > { %7647 = vmatmul.msk.bf16.gmra.mxu1 %vm616_vm1, %v5910_v43 }
0x183d   : > { %v5849_v62 = vsub.f32 1.5, %v5848_v10  ;;  %6128 = vmatpush.bf16.msrb.mxu3 %v7865_v34 }
0x183f   : > { %v5850_v48 = vmul.f32 %v8282_v56, %v5849_v62 }
0x1841   : > { %v5854_v5 = vsel %vm5853_vm4, %v8282_v56, %v5850_v48  ;;  %6129 = vmatpush.bf16.msrb.mxu3 %v7864_v21 }
0x1842   : > { %v5881_v44 = vmul.f32 %v5854_v5, %v11614_v9 }
0x1844   : > { %v5891_v0 = vmul.f32 %v11639_v22, %v5881_v44 }
0x1845   : > { %6130 = vmatpush.bf16.msrb.mxu3 %v7863_v30 }
0x1846   : > { %v5901_v6 = vadd.f32 %v11645_v28, %v5891_v0 }
0x1849   : > { %6131 = vmatpush.bf16.msrb.mxu3 %v7862_v13 }
0x184d   : > { %6132 = vmatpush.bf16.msrb.mxu3 %v7861_v19 }
0x1851   : > { %6133 = vmatpush.bf16.msrb.mxu3 %v7860_v61 }
0x1878   : > { %v5763_v36 = vpop.xlane.xlu0 %5762 }
0x1879   : > { %v5774_v53 = vmul.f32 %v5763_v36, %v12208_v57 }
0x187b   : > { %v5783_v41 = vadd.f32 1e-05, %v5774_v53 }
0x187d   : > { %8283 = vrsqrt.f32 %v5783_v41  ;;  %vm5861_vm8 = vweird.f32 %v5783_v41 }
0x1883   : > { %v8284_v1 = vpop.eup %8283 }
0x1884   : > { %v5856_v33 = vmul.f32 %v8284_v1, %v5783_v41  ;;  %vm5862_vm9 = vweird.f32 %v8284_v1 }
0x1885   : > { %vm5863_vm10 = vmor %vm5861_vm8, %vm5862_vm9 }
0x1886   : > { %v5857_v3 = vmul.f32 %v8284_v1, %v5856_v33 }
0x1888   : > { %v5858_v49 = vmul.f32 0.5, %v5857_v3 }
0x188a   : > { %v5859_v38 = vsub.f32 1.5, %v5858_v49 }
0x188c   : > { %v5860_v18 = vmul.f32 %v8284_v1, %v5859_v38 }
0x188e   : > { %v5864_v42 = vsel %vm5863_vm10, %v8284_v1, %v5860_v18 }
0x188f   : > { %v5882_v37 = vmul.f32 %v5864_v42, %v11623_v50  ;;  %v11692_v50 = vld [vmem:[%s12124_s4 + $0x6] ss:$0 sm:$0xff] }
0x1891   : > { %v5892_v55 = vmul.f32 %v11639_v22, %v5882_v37 }
0x1893   : > { %v5902_v32 = vadd.f32 %v11645_v28, %v5892_v55 }
0x1895   : > { %v5911_v9 = vpack.c.bf16 %v5902_v32, %v5901_v6 }
0x1897   : > { %7648 = vmatmul.msk.bf16.gmra.mxu1 %vm616_vm1, %v5911_v9 }
0x1899   : > { %v5950_v52 = vpop.f32.mrf.mxu1 }
0x189a   : > { %v5951_v46 = vadd.f32 %v5950_v52, %v11692_v50 }
0x189c   : > { %v5983_v31 = vmul.f32 0.044715, %v5951_v46  ;;  %v5974_v33 = vmul.f32 0.5, %v5951_v46 }
0x189e   : > { %v5992_v7 = vmul.f32 %v5983_v31, %v5951_v46 }
0x18a0   : > { %v6001_v40 = vmul.f32 %v5992_v7, %v5951_v46 }
0x18a1   : > { %v5952_v2 = vpop.f32.mrf.mxu1 }
0x18a2   : > { %v6010_v17 = vadd.f32 %v6001_v40, %v5951_v46  ;;  %v5953_v35 = vadd.f32 %v5952_v2, %v11692_v50 }
0x18a4   : > { %v5984_v4 = vmul.f32 0.044715, %v5953_v35  ;;  %v6019_v14 = vmul.f32 0.7978846, %v6010_v17  ;;  %v5975_v3 = vmul.f32 0.5, %v5953_v35 }
0x18a6   : > { %v5993_v60 = vmul.f32 %v5984_v4, %v5953_v35  ;;  %8285 = vtanh.f32 %v6019_v14 }
0x18a8   : > { %v6002_v26 = vmul.f32 %v5993_v60, %v5953_v35 }
0x18a9   : > { %v5497_v54 = vpop.f32.mrf.mxu3  ;;  %v5955_v27 = vpop.f32.mrf.mxu1 }
0x18aa   : > { %v6011_v43 = vadd.f32 %v6002_v26, %v5953_v35  ;;  %v5510_v59 = vpack.c.bf16 %v5497_v54, %v5497_v54  ;;  %v5956_v12 = vadd.f32 %v5955_v27, %v11692_v50 }
0x18ac   : > { %v6020_v51 = vmul.f32 0.7978846, %v6011_v43  ;;  %v5985_v24 = vmul.f32 0.044715, %v5956_v12  ;;  %5670 = vmatmul.bf16.gmra.mxu2 %v5510_v59  ;;  %v8286_v45 = vpop.eup %8285  ;;  %v5976_v40 = vmul.f32 0.5, %v5956_v12 }
0x18ad   : > { %v6037_v62 = vadd.f32 1.0, %v8286_v45 }
0x18ae   : > { %8287 = vtanh.f32 %v6020_v51  ;;  %v5994_v56 = vmul.f32 %v5985_v24, %v5956_v12 }
0x18af   : > { %v6046_v44 = vmul.f32 %v6037_v62, %v5974_v33 }
0x18b0   : > { %v6003_v16 = vmul.f32 %v5994_v56, %v5956_v12 }
0x18b1   : > { %v5499_v36 = vpop.f32.mrf.mxu3  ;;  %v5957_v53 = vpop.f32.mrf.mxu1 }
0x18b2   : > { %v5958_v41 = vadd.f32 %v5957_v53, %v11692_v50  ;;  %v6012_v10 = vadd.f32 %v6003_v16, %v5956_v12 }
0x18b4   : > { %v8288_v1 = vpop.eup %8287  ;;  %v5986_v48 = vmul.f32 0.044715, %v5958_v41  ;;  %v6021_v38 = vmul.f32 0.7978846, %v6012_v10  ;;  %v5977_v2 = vmul.f32 0.5, %v5958_v41 }
0x18b5   : > { %v6038_v5 = vadd.f32 1.0, %v8288_v1 }
0x18b6   : > { %v5995_v49 = vmul.f32 %v5986_v48, %v5958_v41  ;;  %8289 = vtanh.f32 %v6021_v38 }
0x18b7   : > { %v6047_v18 = vmul.f32 %v6038_v5, %v5975_v3 }
0x18b8   : > { %v6004_v15 = vmul.f32 %v5995_v49, %v5958_v41 }
0x18b9   : > { %v5960_v42 = vpop.f32.mrf.mxu1  ;;  %v6071_v37 = vpack.c.bf16 %v6047_v18, %v6046_v44 }
0x18ba   : > { %v5961_v0 = vadd.f32 %v5960_v42, %v11692_v50  ;;  %v6013_v55 = vadd.f32 %v6004_v15, %v5958_v41  ;;  %v5639_v42 = vadd.f32 %v11501_v23, %v11551_v58  ;;  %v11727_v23 = vld [vmem:[%s12125_s5 + $0x15c] ss:$0 sm:$0xff] }
0x18bb   : > { %6134 = vmatmul.bf16.vlgmr.msrb.gmra.mxu3 %v6071_v37 }
0x18bc   : > { %v5987_v6 = vmul.f32 0.044715, %v5961_v0  ;;  %v6022_v32 = vmul.f32 0.7978846, %v6013_v55  ;;  %v8290_v34 = vpop.eup %8289  ;;  %v5978_v51 = vmul.f32 0.5, %v5961_v0 }
0x18bd   : > { %v6039_v31 = vadd.f32 1.0, %v8290_v34 }
0x18be   : > { %v5996_v9 = vmul.f32 %v5987_v6, %v5961_v0  ;;  %8291 = vtanh.f32 %v6022_v32 }
0x18bf   : > { %v6048_v4 = vmul.f32 %v6039_v31, %v5976_v40 }
0x18c0   : > { %v6005_v21 = vmul.f32 %v5996_v9, %v5961_v0 }
0x18c1   : > { %v5962_v52 = vpop.f32.mrf.mxu1 }
0x18c2   : > { %v5963_v46 = vadd.f32 %v5962_v52, %v11692_v50  ;;  %v6014_v30 = vadd.f32 %v6005_v21, %v5961_v0  ;;  %v12210_v21 = vld [vmem:[#allocation22_spill] sm:$0xff] }
0x18c4   : > { %v8292_v7 = vpop.eup %8291  ;;  %v5988_v13 = vmul.f32 0.044715, %v5963_v46  ;;  %v6023_v19 = vmul.f32 0.7978846, %v6014_v30  ;;  %v5979_v24 = vmul.f32 0.5, %v5963_v46 }
0x18c5   : > { %v6040_v17 = vadd.f32 1.0, %v8292_v7 }
0x18c6   : > { %v5997_v35 = vmul.f32 %v5988_v13, %v5963_v46  ;;  %8293 = vtanh.f32 %v6023_v19 }
0x18c7   : > { %v6049_v14 = vmul.f32 %v6040_v17, %v5977_v2 }
0x18c8   : > { %v6006_v60 = vmul.f32 %v5997_v35, %v5963_v46 }
0x18c9   : > { %v6072_v61 = vpack.c.bf16 %v6049_v14, %v6048_v4 }
0x18ca   : > { %v6015_v26 = vadd.f32 %v6006_v60, %v5963_v46 }
0x18cb   : > { %6139 = vmatmul.bf16.gmra.mxu3 %v6072_v61 }
0x18cc   : > { %v6024_v54 = vmul.f32 0.7978846, %v6015_v26  ;;  %v8294_v27 = vpop.eup %8293 }
0x18cd   : > { %v6041_v43 = vadd.f32 1.0, %v8294_v27 }
0x18ce   : > { %8295 = vtanh.f32 %v6024_v54 }
0x18cf   : > { %v6050_v12 = vmul.f32 %v6041_v43, %v5978_v51 }
0x18d4   : > { %v8296_v59 = vpop.eup %8295 }
0x18d5   : > { %v6042_v56 = vadd.f32 1.0, %v8296_v59 }
0x18d7   : > { %v6051_v45 = vmul.f32 %v6042_v56, %v5979_v24 }
0x18d9   : > { %v6073_v16 = vpack.c.bf16 %v6051_v45, %v6050_v12 }
0x18db   : > { %6144 = vmatmul.bf16.gmra.mxu3 %v6073_v16 }
0x1914   : > { %v5965_v36 = vpop.f32.mrf.mxu1 }
0x1915   : > { %v5966_v53 = vadd.f32 %v5965_v36, %v11692_v50 }
0x1917   : > { %v5989_v41 = vmul.f32 0.044715, %v5966_v53  ;;  %v5980_v32 = vmul.f32 0.5, %v5966_v53 }
0x1919   : > { %v5998_v10 = vmul.f32 %v5989_v41, %v5966_v53 }
0x191b   : > { %v6007_v62 = vmul.f32 %v5998_v10, %v5966_v53 }
0x191c   : > { %v5967_v1 = vpop.f32.mrf.mxu1 }
0x191d   : > { %v5968_v48 = vadd.f32 %v5967_v1, %v11692_v50  ;;  %v6016_v33 = vadd.f32 %v6007_v62, %v5966_v53 }
0x191f   : > { %v5990_v3 = vmul.f32 0.044715, %v5968_v48  ;;  %v6025_v49 = vmul.f32 0.7978846, %v6016_v33  ;;  %v5981_v9 = vmul.f32 0.5, %v5968_v48 }
0x1921   : > { %v5999_v5 = vmul.f32 %v5990_v3, %v5968_v48  ;;  %8297 = vtanh.f32 %v6025_v49 }
0x1923   : > { %v6008_v38 = vmul.f32 %v5999_v5, %v5968_v48 }
0x1925   : > { %v6017_v44 = vadd.f32 %v6008_v38, %v5968_v48 }
0x1927   : > { %v6026_v18 = vmul.f32 0.7978846, %v6017_v44  ;;  %v8298_v15 = vpop.eup %8297 }
0x1928   : > { %v6043_v37 = vadd.f32 1.0, %v8298_v15 }
0x1929   : > { %8299 = vtanh.f32 %v6026_v18 }
0x192a   : > { %v6052_v46 = vmul.f32 %v6043_v37, %v5980_v32 }
0x192f   : > { %v8300_v0 = vpop.eup %8299  ;;  %v5671_v55 = vpop.f32.mrf.mxu2 }
0x1930   : > { %v5672_v6 = vadd.f32 %v5671_v55, %v5639_v42  ;;  %v6044_v34 = vadd.f32 1.0, %v8300_v0 }
0x1932   : > { %v11720_v52 = vadd.f32 %v5672_v6, %v12210_v21  ;;  %v6053_v30 = vmul.f32 %v6044_v34, %v5981_v9 }
0x1934   : > { %v5710_v31 = vsel %vm2925_vm6, %v11720_v52, 0.0  ;;  %v6074_v7 = vpack.c.bf16 %v6053_v30, %v6052_v46 }
0x1935   : > { %5711 = vadd.xlane.f32.xlu1 %v5710_v31 }
0x1936   : > { %6149 = vmatmul.bf16.gmra.mxu3 %v6074_v7 }
0x1937   : > { %v5673_v13 = vpop.f32.mrf.mxu2 }
0x193e   : > { %v6135_v58 = vpop.f32.mrf.mxu3 }
0x193f   : > { %v6136_v40 = vadd.f32 %v11727_v23, %v6135_v58 }
0x1941   : > { %v6159_v2 = vadd.f32 %v6136_v40, %v11505_v47 }
0x1943   : > { %v6170_v17 = vsel %vm616_vm1, %v6159_v2, 0.0 }
0x1944   : > { %6171 = vadd.xlane.f32.xlu2 %v6170_v17 }
0x1946   : > { %v6137_v35 = vpop.f32.mrf.mxu3 }
0x1947   : > { %v6138_v19 = vadd.f32 %v11727_v23, %v6137_v35 }
0x1949   : > { %v6160_v4 = vadd.f32 %v6138_v19, %v11511_v20 }
0x194b   : > { %v6173_v14 = vsel %vm616_vm1, %v6160_v4, 0.0 }
0x194c   : > { %6174 = vadd.xlane.f32.xlu0 %v6173_v14 }
0x194e   : > { %v6140_v60 = vpop.f32.mrf.mxu3 }
0x194f   : > { %v6141_v61 = vadd.f32 %v11727_v23, %v6140_v60 }
0x1951   : > { %v6161_v26 = vadd.f32 %v6141_v61, %v11517_v11 }
0x1953   : > { %v6176_v54 = vsel %vm616_vm1, %v6161_v26, 0.0 }
0x1954   : > { %6177 = vadd.xlane.f32.xlu1 %v6176_v54 }
0x1956   : > { %v6142_v47 = vpop.f32.mrf.mxu3 }
0x1957   : > { %v6143_v27 = vadd.f32 %v11727_v23, %v6142_v47 }
0x1959   : > { %v6162_v43 = vadd.f32 %v6143_v27, %v11523_v8 }
0x195b   : > { %v6179_v59 = vsel %vm616_vm1, %v6162_v43, 0.0 }
0x195c   : > { %6180 = vadd.xlane.f32.xlu2 %v6179_v59 }
0x195e   : > { %v6145_v20 = vpop.f32.mrf.mxu3 }
0x195f   : > { %v6146_v51 = vadd.f32 %v11727_v23, %v6145_v20 }
0x1961   : > { %v6163_v24 = vadd.f32 %v6146_v51, %v11533_v25 }
0x1963   : > { %v6182_v56 = vsel %vm616_vm1, %v6163_v24, 0.0 }
0x1964   : > { %6183 = vadd.xlane.f32.xlu0 %v6182_v56 }
0x1966   : > { %v6147_v11 = vpop.f32.mrf.mxu3 }
0x1967   : > { %v6148_v12 = vadd.f32 %v11727_v23, %v6147_v11 }
0x1969   : > { %v6164_v45 = vadd.f32 %v6148_v12, %v11541_v29 }
0x196b   : > { %v6185_v16 = vsel %vm616_vm1, %v6164_v45, 0.0 }
0x196c   : > { %6186 = vadd.xlane.f32.xlu1 %v6185_v16 }
0x19a8   : > { %v5712_v8 = vpop.xlane.xlu1 %5711 }
0x19a9   : > { %v5721_v36 = vmul.f32 %v5712_v8, %v12208_v57 }
0x19ab   : > { %v11749_v53 = vsub.f32 %v11720_v52, %v5721_v36 }
0x19ad   : > { %v5739_v25 = vmul.f32 %v11749_v53, %v11749_v53 }
0x19af   : > { %v5764_v41 = vsel %vm2925_vm6, %v5739_v25, 0.0 }
0x19b0   : > { %5765 = vadd.xlane.f32.xlu2 %v5764_v41 }
0x19b7   : > { %v6172_v10 = vpop.xlane.xlu2 %6171 }
0x19b8   : > { %v6197_v62 = vmul.f32 %v6172_v10, %v12208_v57 }
0x19b9   : > { %v6150_v1 = vpop.f32.mrf.mxu3 }
0x19ba   : > { %v11755_v29 = vsub.f32 %v6159_v2, %v6197_v62  ;;  %v6151_v48 = vadd.f32 %v11727_v23, %v6150_v1 }
0x19bc   : > { %v6165_v33 = vadd.f32 %v6151_v48, %v11547_v39  ;;  %v6215_v3 = vmul.f32 %v11755_v29, %v11755_v29 }
0x19be   : > { %v6188_v5 = vsel %vm616_vm1, %v6165_v33, 0.0  ;;  %v6224_v49 = vsel %vm616_vm1, %v6215_v3, 0.0 }
0x19bf   : > { %6189 = vadd.xlane.f32.xlu1 %v6188_v5  ;;  %v6175_v38 = vpop.xlane.xlu0 %6174  ;;  %6225 = vadd.xlane.f32.xlu0 %v6224_v49 }
0x19c0   : > { %v6198_v44 = vmul.f32 %v6175_v38, %v12208_v57 }
0x19c1   : > { %v6152_v18 = vpop.f32.mrf.mxu3 }
0x19c2   : > { %v11764_v15 = vsub.f32 %v6160_v4, %v6198_v44  ;;  %v6153_v42 = vadd.f32 %v11727_v23, %v6152_v18 }
0x19c4   : > { %v6166_v37 = vadd.f32 %v6153_v42, %v11563_v63  ;;  %v6216_v39 = vmul.f32 %v11764_v15, %v11764_v15 }
0x19c6   : > { %v6227_v0 = vsel %vm616_vm1, %v6216_v39, 0.0  ;;  %v6191_v55 = vsel %vm616_vm1, %v6166_v37, 0.0 }
0x19c7   : > { %v6178_v6 = vpop.xlane.xlu1 %6177  ;;  %6228 = vadd.xlane.f32.xlu2 %v6227_v0  ;;  %6192 = vadd.xlane.f32.xlu0 %v6191_v55 }
0x19c8   : > { %v6199_v32 = vmul.f32 %v6178_v6, %v12208_v57 }
0x19ca   : > { %v11773_v9 = vsub.f32 %v6161_v26, %v6199_v32 }
0x19cc   : > { %v6217_v34 = vmul.f32 %v11773_v9, %v11773_v9 }
0x19ce   : > { %v6230_v21 = vsel %vm616_vm1, %v6217_v34, 0.0 }
0x19cf   : > { %6231 = vadd.xlane.f32.xlu1 %v6230_v21  ;;  %v6181_v63 = vpop.xlane.xlu2 %6180  ;;  %v11819_v21 = vld [vmem:[%s12125_s5 + $0x15d] ss:$0 sm:$0xff] }
0x19d0   : > { %v6200_v46 = vmul.f32 %v6181_v63, %v12208_v57 }
0x19d2   : > { %v11779_v30 = vsub.f32 %v6162_v43, %v6200_v46 }
0x19d4   : > { %v6218_v31 = vmul.f32 %v11779_v30, %v11779_v30 }
0x19d6   : > { %v6233_v7 = vsel %vm616_vm1, %v6218_v31, 0.0  ;;  %v11824_v31 = vld [vmem:[%s12125_s5 + $0x15e] ss:$0 sm:$0xff] }
0x19d7   : > { %v6184_v13 = vpop.xlane.xlu0 %6183  ;;  %6234 = vadd.xlane.f32.xlu2 %v6233_v7 }
0x19d8   : > { %v6201_v58 = vmul.f32 %v6184_v13, %v12208_v57 }
0x19da   : > { %v11785_v40 = vsub.f32 %v6163_v24, %v6201_v58 }
0x19dc   : > { %v6219_v2 = vmul.f32 %v11785_v40, %v11785_v40 }
0x19de   : > { %v6236_v17 = vsel %vm616_vm1, %v6219_v2, 0.0 }
0x19df   : > { %v6187_v35 = vpop.xlane.xlu1 %6186  ;;  %6237 = vadd.xlane.f32.xlu0 %v6236_v17 }
0x19e0   : > { %v6202_v19 = vmul.f32 %v6187_v35, %v12208_v57 }
0x19e2   : > { %v11791_v4 = vsub.f32 %v6164_v45, %v6202_v19 }
0x19e4   : > { %v6220_v14 = vmul.f32 %v11791_v4, %v11791_v4 }
0x19e6   : > { %v6239_v60 = vsel %vm616_vm1, %v6220_v14, 0.0 }
0x19e7   : > { %6240 = vadd.xlane.f32.xlu1 %v6239_v60 }
0x1a23   : > { %v5766_v61 = vpop.xlane.xlu2 %5765 }
0x1a24   : > { %v5775_v26 = vmul.f32 %v5766_v61, %v12208_v57 }
0x1a26   : > { %v5784_v54 = vadd.f32 1e-05, %v5775_v26 }
0x1a28   : > { %8301 = vrsqrt.f32 %v5784_v54  ;;  %vm5871_vm5 = vweird.f32 %v5784_v54 }
0x1a2e   : > { %v8302_v47 = vpop.eup %8301 }
0x1a2f   : > { %v5866_v27 = vmul.f32 %v8302_v47, %v5784_v54  ;;  %vm5872_vm3 = vweird.f32 %v8302_v47 }
0x1a30   : > { %vm5873_vm13 = vmor %vm5871_vm5, %vm5872_vm3 }
0x1a31   : > { %v5867_v43 = vmul.f32 %v8302_v47, %v5866_v27 }
0x1a32   : > { %v6190_v59 = vpop.xlane.xlu1 %6189  ;;  %v6226_v20 = vpop.xlane.xlu0 %6225 }
0x1a33   : > { %v5868_v51 = vmul.f32 0.5, %v5867_v43  ;;  %v6203_v24 = vmul.f32 %v6190_v59, %v12208_v57  ;;  %v6251_v56 = vmul.f32 %v6226_v20, %v12208_v57 }
0x1a35   : > { %v5869_v11 = vsub.f32 1.5, %v5868_v51  ;;  %v11799_v12 = vsub.f32 %v6165_v33, %v6203_v24  ;;  %v6260_v45 = vadd.f32 1e-05, %v6251_v56 }
0x1a37   : > { %v5870_v16 = vmul.f32 %v8302_v47, %v5869_v11  ;;  %8303 = vrsqrt.f32 %v6260_v45  ;;  %v6221_v8 = vmul.f32 %v11799_v12, %v11799_v12  ;;  %vm6275_vm4 = vweird.f32 %v6260_v45 }
0x1a39   : > { %v5874_v36 = vsel %vm5873_vm13, %v8302_v47, %v5870_v16  ;;  %v6242_v25 = vsel %vm616_vm1, %v6221_v8, 0.0 }
0x1a3a   : > { %v5883_v41 = vmul.f32 %v5874_v36, %v11749_v53  ;;  %v6193_v10 = vpop.xlane.xlu0 %6192  ;;  %6243 = vadd.xlane.f32.xlu2 %v6242_v25  ;;  %v6229_v62 = vpop.xlane.xlu2 %6228 }
0x1a3b   : > { %v6204_v1 = vmul.f32 %v6193_v10, %v12208_v57  ;;  %v6252_v48 = vmul.f32 %v6229_v62, %v12208_v57 }
0x1a3c   : > { %v5893_v33 = vmul.f32 %v11639_v22, %v5883_v41 }
0x1a3d   : > { %v8304_v3 = vpop.eup %8303  ;;  %v11808_v5 = vsub.f32 %v6166_v37, %v6204_v1  ;;  %v6261_v49 = vadd.f32 1e-05, %v6252_v48 }
0x1a3e   : > { %v6270_v38 = vmul.f32 %v8304_v3, %v6260_v45  ;;  %v5903_v44 = vadd.f32 %v11645_v28, %v5893_v33  ;;  %vm6276_vm7 = vweird.f32 %v8304_v3 }
0x1a3f   : > { %8305 = vrsqrt.f32 %v6261_v49  ;;  %v6222_v53 = vmul.f32 %v11808_v5, %v11808_v5  ;;  %vm6277_vm9 = vmor %vm6275_vm4, %vm6276_vm7  ;;  %vm6285_vm10 = vweird.f32 %v6261_v49 }
0x1a40   : > { %v6271_v18 = vmul.f32 %v8304_v3, %v6270_v38  ;;  %v5912_v42 = vpack.c.bf16 %v5903_v44, %v5903_v44 }
0x1a41   : > { %v6245_v39 = vsel %vm616_vm1, %v6222_v53, 0.0 }
0x1a42   : > { %v6272_v0 = vmul.f32 0.5, %v6271_v18  ;;  %v6232_v55 = vpop.xlane.xlu1 %6231  ;;  %6246 = vadd.xlane.f32.xlu0 %v6245_v39  ;;  %7649 = vmatmul.msk.bf16.gmra.mxu1 %vm616_vm1, %v5912_v42 }
0x1a43   : > { %v6253_v22 = vmul.f32 %v6232_v55, %v12208_v57 }
0x1a44   : > { %v6273_v37 = vsub.f32 1.5, %v6272_v0 }
0x1a45   : > { %v8306_v6 = vpop.eup %8305  ;;  %v6262_v32 = vadd.f32 1e-05, %v6253_v22 }
0x1a46   : > { %v6274_v28 = vmul.f32 %v8304_v3, %v6273_v37  ;;  %v6280_v34 = vmul.f32 %v8306_v6, %v6261_v49  ;;  %vm6286_vm8 = vweird.f32 %v8306_v6 }
0x1a47   : > { %8307 = vrsqrt.f32 %v6262_v32  ;;  %vm6287_vm3 = vmor %vm6285_vm10, %vm6286_vm8  ;;  %vm6295_vm13 = vweird.f32 %v6262_v32 }
0x1a48   : > { %v6278_v63 = vsel %vm6277_vm9, %v8304_v3, %v6274_v28  ;;  %v6281_v46 = vmul.f32 %v8306_v6, %v6280_v34 }
0x1a49   : > { %v6359_v7 = vmul.f32 %v6278_v63, %v11755_v29 }
0x1a4a   : > { %v6282_v13 = vmul.f32 0.5, %v6281_v46  ;;  %v6235_v58 = vpop.xlane.xlu2 %6234 }
0x1a4b   : > { %v6369_v2 = vmul.f32 %v11819_v21, %v6359_v7  ;;  %v6254_v17 = vmul.f32 %v6235_v58, %v12208_v57 }
0x1a4c   : > { %v6283_v35 = vsub.f32 1.5, %v6282_v13 }
0x1a4d   : > { %v8308_v19 = vpop.eup %8307  ;;  %v6379_v14 = vadd.f32 %v11824_v31, %v6369_v2  ;;  %v6263_v60 = vadd.f32 1e-05, %v6254_v17 }
0x1a4e   : > { %v6284_v61 = vmul.f32 %v8306_v6, %v6283_v35  ;;  %v6290_v26 = vmul.f32 %v8308_v19, %v6262_v32  ;;  %vm6296_vm5 = vweird.f32 %v8308_v19 }
0x1a4f   : > { %8309 = vrsqrt.f32 %v6263_v60  ;;  %7698 = vmatmul.msk.f32.vlgmr.msrb.gmra.mxu0 %vm616_vm1, %v6379_v14  ;;  %vm6297_vm7 = vmor %vm6295_vm13, %vm6296_vm5  ;;  %vm6305_vm9 = vweird.f32 %v6263_v60 }
0x1a50   : > { %v6288_v29 = vsel %vm6287_vm3, %v8306_v6, %v6284_v61  ;;  %v6291_v54 = vmul.f32 %v8308_v19, %v6290_v26 }
0x1a51   : > { %v6360_v47 = vmul.f32 %v6288_v29, %v11764_v15 }
0x1a52   : > { %v6292_v27 = vmul.f32 0.5, %v6291_v54  ;;  %v6238_v43 = vpop.xlane.xlu0 %6237 }
0x1a53   : > { %v6255_v59 = vmul.f32 %v6238_v43, %v12208_v57  ;;  %v6370_v20 = vmul.f32 %v11819_v21, %v6360_v47 }
0x1a54   : > { %v6293_v51 = vsub.f32 1.5, %v6292_v27 }
0x1a55   : > { %v8310_v24 = vpop.eup %8309  ;;  %v6264_v56 = vadd.f32 1e-05, %v6255_v59  ;;  %v6380_v11 = vadd.f32 %v11824_v31, %v6370_v20 }
0x1a56   : > { %v6294_v45 = vmul.f32 %v8308_v19, %v6293_v51  ;;  %v6300_v16 = vmul.f32 %v8310_v24, %v6263_v60  ;;  %vm6306_vm4 = vweird.f32 %v8310_v24 }
0x1a57   : > { %8311 = vrsqrt.f32 %v6264_v56  ;;  %7699 = vmatmul.msk.f32.gmra.mxu0 %vm616_vm1, %v6380_v11  ;;  %vm6307_vm8 = vmor %vm6305_vm9, %vm6306_vm4  ;;  %vm6315_vm3 = vweird.f32 %v6264_v56 }
0x1a58   : > { %v6298_v15 = vsel %vm6297_vm7, %v8308_v19, %v6294_v45  ;;  %v6301_v8 = vmul.f32 %v8310_v24, %v6300_v16 }
0x1a59   : > { %v6361_v36 = vmul.f32 %v6298_v15, %v11773_v9 }
0x1a5a   : > { %v6302_v25 = vmul.f32 0.5, %v6301_v8  ;;  %v6241_v41 = vpop.xlane.xlu1 %6240 }
0x1a5b   : > { %v6256_v10 = vmul.f32 %v6241_v41, %v12208_v57  ;;  %v6371_v62 = vmul.f32 %v11819_v21, %v6361_v36 }
0x1a5c   : > { %v6303_v1 = vsub.f32 1.5, %v6302_v25 }
0x1a5d   : > { %v8312_v48 = vpop.eup %8311  ;;  %v6265_v33 = vadd.f32 1e-05, %v6256_v10  ;;  %v6381_v3 = vadd.f32 %v11824_v31, %v6371_v62 }
0x1a5e   : > { %v6304_v49 = vmul.f32 %v8310_v24, %v6303_v1  ;;  %v6310_v38 = vmul.f32 %v8312_v48, %v6264_v56  ;;  %vm6316_vm10 = vweird.f32 %v8312_v48  ;;  %v12211_v1 = vld [vmem:[#allocation3_spill] sm:$0xff] }
0x1a5f   : > { %8313 = vrsqrt.f32 %v6265_v33  ;;  %7700 = vmatmul.msk.f32.gmra.mxu0 %vm616_vm1, %v6381_v3  ;;  %vm6317_vm5 = vmor %vm6315_vm3, %vm6316_vm10  ;;  %vm6325_vm7 = vweird.f32 %v6265_v33 }
0x1a60   : > { %v6308_v9 = vsel %vm6307_vm8, %v8310_v24, %v6304_v49  ;;  %v6311_v44 = vmul.f32 %v8312_v48, %v6310_v38 }
0x1a61   : > { %v6362_v53 = vmul.f32 %v6308_v9, %v11779_v30 }
0x1a62   : > { %v6312_v18 = vmul.f32 0.5, %v6311_v44 }
0x1a63   : > { %v6372_v42 = vmul.f32 %v11819_v21, %v6362_v53 }
0x1a64   : > { %v6313_v39 = vsub.f32 1.5, %v6312_v18 }
0x1a65   : > { %v8314_v0 = vpop.eup %8313  ;;  %v6382_v55 = vadd.f32 %v11824_v31, %v6372_v42 }
0x1a66   : > { %v6314_v22 = vmul.f32 %v8312_v48, %v6313_v39  ;;  %v6320_v37 = vmul.f32 %v8314_v0, %v6265_v33  ;;  %vm6326_vm13 = vweird.f32 %v8314_v0 }
0x1a67   : > { %7701 = vmatmul.msk.f32.gmra.mxu0 %vm616_vm1, %v6382_v55  ;;  %vm6327_vm4 = vmor %vm6325_vm7, %vm6326_vm13  ;;  %vm6506_vm7 = vcmp.lt.s32.totalorder %v12211_v1, 17 }
0x1a68   : > { %v6318_v6 = vsel %vm6317_vm5, %v8312_v48, %v6314_v22  ;;  %v6321_v32 = vmul.f32 %v8314_v0, %v6320_v37 }
0x1a69   : > { %v6363_v28 = vmul.f32 %v6318_v6, %v11785_v40 }
0x1a6a   : > { %v6322_v34 = vmul.f32 0.5, %v6321_v32 }
0x1a6b   : > { %v6373_v30 = vmul.f32 %v11819_v21, %v6363_v28 }
0x1a6c   : > { %v6323_v63 = vsub.f32 1.5, %v6322_v34 }
0x1a6d   : > { %v6383_v46 = vadd.f32 %v11824_v31, %v6373_v30 }
0x1a6e   : > { %v6324_v7 = vmul.f32 %v8314_v0, %v6323_v63 }
0x1a6f   : > { %7702 = vmatmul.msk.f32.gmra.mxu0 %vm616_vm1, %v6383_v46 }
0x1a70   : > { %v6328_v13 = vsel %vm6327_vm4, %v8314_v0, %v6324_v7 }
0x1a71   : > { %v6364_v58 = vmul.f32 %v6328_v13, %v11791_v4 }
0x1a73   : > { %v6374_v2 = vmul.f32 %v11819_v21, %v6364_v58 }
0x1a75   : > { %v6384_v17 = vadd.f32 %v11824_v31, %v6374_v2 }
0x1a77   : > { %7703 = vmatmul.msk.f32.gmra.mxu0 %vm616_vm1, %v6384_v17 }
0x1aad   : > { %v6244_v40 = vpop.xlane.xlu2 %6243 }
0x1aae   : > { %v6257_v35 = vmul.f32 %v6244_v40, %v12208_v57 }
0x1ab0   : > { %v6266_v19 = vadd.f32 1e-05, %v6257_v35 }
0x1ab2   : > { %8315 = vrsqrt.f32 %v6266_v19  ;;  %vm6335_vm8 = vweird.f32 %v6266_v19 }
0x1ab5   : > { %v6247_v14 = vpop.xlane.xlu0 %6246 }
0x1ab6   : > { %v6258_v60 = vmul.f32 %v6247_v14, %v12208_v57 }
0x1ab8   : > { %v8316_v61 = vpop.eup %8315  ;;  %v6267_v26 = vadd.f32 1e-05, %v6258_v60 }
0x1ab9   : > { %v6330_v29 = vmul.f32 %v8316_v61, %v6266_v19  ;;  %vm6336_vm9 = vweird.f32 %v8316_v61 }
0x1aba   : > { %8317 = vrsqrt.f32 %v6267_v26  ;;  %vm6337_vm10 = vmor %vm6335_vm8, %vm6336_vm9  ;;  %vm6345_vm5 = vweird.f32 %v6267_v26 }
0x1abb   : > { %v6331_v54 = vmul.f32 %v8316_v61, %v6330_v29 }
0x1abd   : > { %v6332_v4 = vmul.f32 0.5, %v6331_v54 }
0x1abf   : > { %v6333_v47 = vsub.f32 1.5, %v6332_v4  ;;  %v5970_v27 = vpop.f32.mrf.mxu1 }
0x1ac0   : > { %v8318_v43 = vpop.eup %8317  ;;  %v5971_v59 = vadd.f32 %v5970_v27, %v11692_v50 }
0x1ac1   : > { %v6334_v20 = vmul.f32 %v8316_v61, %v6333_v47  ;;  %v6340_v51 = vmul.f32 %v8318_v43, %v6267_v26  ;;  %vm6346_vm3 = vweird.f32 %v8318_v43 }
0x1ac2   : > { %v5991_v24 = vmul.f32 0.044715, %v5971_v59  ;;  %vm6347_vm13 = vmor %vm6345_vm5, %vm6346_vm3  ;;  %v5982_v53 = vmul.f32 0.5, %v5971_v59 }
0x1ac3   : > { %v6338_v56 = vsel %vm6337_vm10, %v8316_v61, %v6334_v20  ;;  %v6341_v11 = vmul.f32 %v8318_v43, %v6340_v51 }
0x1ac4   : > { %v6365_v45 = vmul.f32 %v6338_v56, %v11799_v12  ;;  %v6000_v16 = vmul.f32 %v5991_v24, %v5971_v59 }
0x1ac5   : > { %v6342_v15 = vmul.f32 0.5, %v6341_v11 }
0x1ac6   : > { %v6375_v8 = vmul.f32 %v11819_v21, %v6365_v45  ;;  %v6009_v36 = vmul.f32 %v6000_v16, %v5971_v59 }
0x1ac7   : > { %v6343_v25 = vsub.f32 1.5, %v6342_v15  ;;  %v5972_v41 = vpop.f32.mrf.mxu1 }
0x1ac8   : > { %v6385_v10 = vadd.f32 %v11824_v31, %v6375_v8  ;;  %v6018_v50 = vadd.f32 %v6009_v36, %v5971_v59 }
0x1ac9   : > { %v6344_v62 = vmul.f32 %v8318_v43, %v6343_v25 }
0x1aca   : > { %7704 = vmatmul.msk.f32.gmra.mxu0 %vm616_vm1, %v6385_v10  ;;  %v6027_v48 = vmul.f32 0.7978846, %v6018_v50 }
0x1acb   : > { %v6348_v12 = vsel %vm6347_vm13, %v8318_v43, %v6344_v62 }
0x1acc   : > { %v6366_v33 = vmul.f32 %v6348_v12, %v11808_v5  ;;  %v6480_v3 = vpop.f32.mrf.mxu0  ;;  %8319 = vtanh.f32 %v6027_v48 }
0x1acd   : > { %v11864_v49 = vsel %vm6506_vm7, %v6480_v3, -1e+30 }
0x1ace   : > { %6515 = vmax.xlane.f32.xlu1 %v11864_v49  ;;  %v6376_v38 = vmul.f32 %v11819_v21, %v6366_v33 }
0x1ad0   : > { %v6386_v9 = vadd.f32 %v11824_v31, %v6376_v38 }
0x1ad2   : > { %v8320_v44 = vpop.eup %8319  ;;  %7705 = vmatmul.msk.f32.gmra.mxu0 %vm616_vm1, %v6386_v9 }
0x1ad3   : > { %v6045_v18 = vadd.f32 1.0, %v8320_v44 }
0x1ad4   : > { %v6483_v42 = vpop.f32.mrf.mxu0 }
0x1ad5   : > { %v11872_v5 = vsel %vm6506_vm7, %v6483_v42, -1e+30  ;;  %v6054_v39 = vmul.f32 %v6045_v18, %v5982_v53 }
0x1ad6   : > { %6517 = vmax.xlane.f32.xlu2 %v11872_v5 }
0x1ad7   : > { %v6075_v0 = vpack.c.bf16 %v6054_v39, %v6054_v39 }
0x1ad9   : > { %6154 = vmatmul.bf16.gmra.mxu3 %v6075_v0 }
0x1adc   : > { %v6486_v55 = vpop.f32.mrf.mxu0 }
0x1add   : > { %v11877_v22 = vsel %vm6506_vm7, %v6486_v55, -1e+30 }
0x1ade   : > { %6519 = vmax.xlane.f32.xlu0 %v11877_v22 }
0x1ae4   : > { %v6489_v37 = vpop.f32.mrf.mxu0 }
0x1ae5   : > { %v11882_v6 = vsel %vm6506_vm7, %v6489_v37, -1e+30  ;;  %v8383_v37 = vmov 0.0  }
0x1ae6   : > { %6521 = vmax.xlane.f32.xlu1 %v11882_v6 }
0x1aec   : > { %v6492_v32 = vpop.f32.mrf.mxu0 }
0x1aed   : > { %v11887_v28 = vsel %vm6506_vm7, %v6492_v32, -1e+30  ;;  %v12212_v32 = vld [vmem:[#allocation4_spill] sm:$0xff] }
0x1aee   : > { %6523 = vmax.xlane.f32.xlu2 %v11887_v28 }
0x1af4   : > { %v6495_v34 = vpop.f32.mrf.mxu0 }
0x1af5   : > { %v11892_v30 = vsel %vm6506_vm7, %v6495_v34, -1e+30  ;;  %v7268_v34 = vsel %vm2737_vm11, 1.0, %v8383_v37 }
0x1af6   : > { %6525 = vmax.xlane.f32.xlu0 %v11892_v30 }
0x1b41   : > { %v6516_v63 = vpop.xlane.xlu1 %6515 }
0x1b42   : > { %v6531_v46 = vsub.f32 %v11864_v49, %v6516_v63 }
0x1b44   : > { %v6539_v7 = vmul.f32 1.442695, %v6531_v46 }
0x1b46   : > { %8321 = vpow2.f32 %v6539_v7 }
0x1b47   : > { %v6498_v13 = vpop.f32.mrf.mxu0 }
0x1b48   : > { %v11898_v58 = vsel %vm6506_vm7, %v6498_v13, -1e+30 }
0x1b49   : > { %6527 = vmax.xlane.f32.xlu1 %v11898_v58  ;;  %v6518_v2 = vpop.xlane.xlu2 %6517 }
0x1b4a   : > { %v6532_v17 = vsub.f32 %v11872_v5, %v6518_v2 }
0x1b4c   : > { %v8322_v40 = vpop.eup %8321  ;;  %v6541_v35 = vmul.f32 1.442695, %v6532_v17 }
0x1b4d   : > { %6555 = vadd.xlane.f32.xlu0 %v8322_v40 }
0x1b4e   : > { %8323 = vpow2.f32 %v6541_v35 }
0x1b4f   : > { %v6501_v19 = vpop.f32.mrf.mxu0 }
0x1b50   : > { %v11904_v14 = vsel %vm6506_vm7, %v6501_v19, -1e+30  ;;  %v12214_v19 = vld [vmem:[#allocation6_spill] sm:$0xff] }
0x1b51   : > { %v11906_v60 = vpop.xlane.xlu0 %6519  ;;  %6529 = vmax.xlane.f32.xlu2 %v11904_v14 }
0x1b52   : > { %v6533_v61 = vsub.f32 %v11877_v22, %v11906_v60 }
0x1b54   : > { %v8324_v26 = vpop.eup %8323  ;;  %v6543_v29 = vmul.f32 1.442695, %v6533_v61  ;;  %v7270_v61 = vsel %vm2739_vm14, 1.0, %v8383_v37 }
0x1b55   : > { %6557 = vadd.xlane.f32.xlu1 %v8324_v26 }
0x1b56   : > { %8325 = vpow2.f32 %v6543_v29 }
0x1b59   : > { %v11911_v54 = vpop.xlane.xlu1 %6521 }
0x1b5a   : > { %v6534_v4 = vsub.f32 %v11882_v6, %v11911_v54 }
0x1b5c   : > { %v8326_v47 = vpop.eup %8325  ;;  %v6545_v27 = vmul.f32 1.442695, %v6534_v4  ;;  %v11915_v43 = vpop.f32.mrf.mxu3 }
0x1b5d   : > { %6559 = vadd.xlane.f32.xlu2 %v8326_v47 }
0x1b5e   : > { %8327 = vpow2.f32 %v6545_v27 }
0x1b61   : > { %v11917_v59 = vpop.xlane.xlu2 %6523 }
0x1b62   : > { %v6535_v20 = vsub.f32 %v11887_v28, %v11917_v59 }
0x1b64   : > { %v8328_v51 = vpop.eup %8327  ;;  %v6547_v24 = vmul.f32 1.442695, %v6535_v20  ;;  %v6157_v56 = vpop.f32.mrf.mxu3 }
0x1b65   : > { %6561 = vadd.xlane.f32.xlu0 %v8328_v51  ;;  %v7271_v51 = vsel %vm2740_vm15, 1.0, %v8383_v37 }
0x1b66   : > { %8329 = vpow2.f32 %v6547_v24 }
0x1b69   : > { %v11921_v11 = vpop.xlane.xlu0 %6525 }
0x1b6a   : > { %v6536_v45 = vsub.f32 %v11892_v30, %v11921_v11 }
0x1b6c   : > { %v8330_v16 = vpop.eup %8329  ;;  %v6549_v15 = vmul.f32 1.442695, %v6536_v45 }
0x1b6d   : > { %6563 = vadd.xlane.f32.xlu1 %v8330_v16 }
0x1b6e   : > { %8331 = vpow2.f32 %v6549_v15 }
0x1b74   : > { %v8332_v8 = vpop.eup %8331 }
0x1b75   : > { %6565 = vadd.xlane.f32.xlu2 %v8332_v8 }
0x1bbc   : > { %v11925_v36 = vpop.xlane.xlu1 %6527 }
0x1bbd   : > { %v6537_v25 = vsub.f32 %v11898_v58, %v11925_v36 }
0x1bbf   : > { %v6551_v41 = vmul.f32 1.442695, %v6537_v25  ;;  %v7272_v25 = vsel %vm2741_vm0, 1.0, %v8383_v37 }
0x1bc0   : > { %v6556_v10 = vpop.xlane.xlu0 %6555 }
0x1bc1   : > { %8333 = vpow2.f32 %v6551_v41 }
0x1bc2   : > { %8335 = vlog2.f32 %v6556_v10 }
0x1bc4   : > { %v11929_v50 = vpop.xlane.xlu2 %6529 }
0x1bc5   : > { %v6538_v62 = vsub.f32 %v11904_v14, %v11929_v50 }
0x1bc7   : > { %v8334_v48 = vpop.eup %8333  ;;  %v6553_v12 = vmul.f32 1.442695, %v6538_v62 }
0x1bc8   : > { %v8336_v33 = vpop.eup %8335  ;;  %6567 = vadd.xlane.f32.xlu0 %v8334_v48  ;;  %v6558_v3 = vpop.xlane.xlu1 %6557 }
0x1bc9   : > { %v6572_v38 = vmul.f32 0.6931472, %v8336_v33  ;;  %8337 = vpow2.f32 %v6553_v12 }
0x1bca   : > { %8339 = vlog2.f32 %v6558_v3  ;;  %v6156_v3 = vadd.f32 %v11727_v23, %v11915_v43  ;;  %v12218_v43 = vld [vmem:[#allocation10_spill] sm:$0xff] }
0x1bcb   : > { %v6587_v9 = vadd.f32 %v6572_v38, %v6516_v63  ;;  %v7269_v63 = vsel %vm2738_vm12, 1.0, %v8383_v37  ;;  %vm12219_vm12 = vcmp.eq.s32.totalorder %v12211_v1, %v12218_v43 }
0x1bcd   : > { %v11934_v44 = vsub.f32 %v11864_v49, %v6587_v9  ;;  %v12213_v49 = vld [vmem:[#allocation5_spill] sm:$0xff] }
0x1bcf   : > { %v8338_v53 = vpop.eup %8337  ;;  %6628 = vmax.xlane.f32.xlu2 %v11934_v44  ;;  %v6603_v7 = vmul.f32 %v7268_v34, %v11934_v44 }
0x1bd0   : > { %v8340_v18 = vpop.eup %8339  ;;  %6569 = vadd.xlane.f32.xlu1 %v8338_v53  ;;  %v6560_v42 = vpop.xlane.xlu2 %6559  ;;  %v6167_v53 = vadd.f32 %v6156_v3, %v11720_v52  ;;  %v7274_v52 = vsel %vm12219_vm12, 1.0, %v8383_v37 }
0x1bd1   : > { %v6574_v39 = vmul.f32 0.6931472, %v8340_v18  ;;  %8341 = vlog2.f32 %v6560_v42 }
0x1bd2   : > { %v6194_v18 = vsel %vm2925_vm6, %v6167_v53, 0.0 }
0x1bd3   : > { %v6588_v0 = vadd.f32 %v6574_v39, %v6518_v2 }
0x1bd5   : > { %v11938_v55 = vsub.f32 %v11872_v5, %v6588_v0 }
0x1bd7   : > { %v8342_v46 = vpop.eup %8341  ;;  %6630 = vmax.xlane.f32.xlu0 %v11938_v55  ;;  %v6604_v13 = vmul.f32 %v7269_v63, %v11938_v55 }
0x1bd8   : > { %v6576_v5 = vmul.f32 0.6931472, %v8342_v46  ;;  %v6562_v2 = vpop.xlane.xlu0 %6561 }
0x1bd9   : > { %v6611_v17 = vadd.f32 %v6604_v13, %v6603_v7  ;;  %8343 = vlog2.f32 %v6562_v2 }
0x1bda   : > { %v6589_v40 = vadd.f32 %v6576_v5, %v11906_v60 }
0x1bdc   : > { %v11953_v35 = vsub.f32 %v11877_v22, %v6589_v40  ;;  %v12215_v22 = vld [vmem:[#allocation7_spill] sm:$0xff] }
0x1bdd   : > { %v12220_v40 = vld [vmem:[#allocation11_spill] sm:$0xff] }
0x1bde   : > { %6632 = vmax.xlane.f32.xlu1 %v11953_v35  ;;  %v6605_v26 = vmul.f32 %v7270_v61, %v11953_v35  ;;  %vm12221_vm15 = vcmp.eq.s32.totalorder %v12211_v1, %v12220_v40 }
0x1bdf   : > { %v8344_v29 = vpop.eup %8343  ;;  %v7275_v61 = vsel %vm12221_vm15, 1.0, %v8383_v37 }
0x1be0   : > { %v6578_v4 = vmul.f32 0.6931472, %v8344_v29  ;;  %v6612_v47 = vadd.f32 %v6611_v17, %v6605_v26  ;;  %v6564_v27 = vpop.xlane.xlu1 %6563 }
0x1be1   : > { %8345 = vlog2.f32 %v6564_v27 }
0x1be2   : > { %v6590_v20 = vadd.f32 %v6578_v4, %v11911_v54 }
0x1be4   : > { %v11963_v60 = vsub.f32 %v11882_v6, %v6590_v20  ;;  %v12216_v6 = vld [vmem:[#allocation8_spill] sm:$0xff] }
0x1be6   : > { %v6606_v24 = vmul.f32 %v7271_v51, %v11963_v60  ;;  %6634 = vmax.xlane.f32.xlu2 %v11963_v60 }
0x1be7   : > { %v8346_v56 = vpop.eup %8345 }
0x1be8   : > { %v6580_v45 = vmul.f32 0.6931472, %v8346_v56  ;;  %v6613_v16 = vadd.f32 %v6612_v47, %v6606_v24  ;;  %v6566_v15 = vpop.xlane.xlu2 %6565 }
0x1be9   : > { %8347 = vlog2.f32 %v6566_v15 }
0x1bea   : > { %v6591_v8 = vadd.f32 %v6580_v45, %v11917_v59  ;;  %v7273_v59 = vsel %vm2742_vm2, 1.0, %v8383_v37 }
0x1bec   : > { %v11973_v54 = vsub.f32 %v11887_v28, %v6591_v8  ;;  %v12217_v28 = vld [vmem:[#allocation9_spill] sm:$0xff] }
0x1bee   : > { %6636 = vmax.xlane.f32.xlu0 %v11973_v54  ;;  %v6607_v41 = vmul.f32 %v7272_v25, %v11973_v54 }
0x1bef   : > { %v8348_v10 = vpop.eup %8347 }
0x1bf0   : > { %v6582_v62 = vmul.f32 0.6931472, %v8348_v10  ;;  %v6614_v48 = vadd.f32 %v6613_v16, %v6607_v41 }
0x1bf2   : > { %v6592_v12 = vadd.f32 %v6582_v62, %v11921_v11 }
0x1bf4   : > { %v6600_v33 = vsub.f32 %v11892_v30, %v6592_v12 }
0x1bf6   : > { %6638 = vmax.xlane.f32.xlu1 %v6600_v33  ;;  %v6608_v38 = vmul.f32 %v7273_v59, %v6600_v33 }
0x1bf8   : > { %v6615_v9 = vadd.f32 %v6614_v48, %v6608_v38 }
0x1bfe   : > { %6195 = vadd.xlane.f32.xlu1 %v6194_v18 }
0x1c3b   : > { %v6568_v42 = vpop.xlane.xlu0 %6567 }
0x1c3c   : > { %8349 = vlog2.f32 %v6568_v42 }
0x1c42   : > { %v8350_v11 = vpop.eup %8349  ;;  %v6629_v30 = vpop.xlane.xlu2 %6628 }
0x1c43   : > { %v6584_v39 = vmul.f32 0.6931472, %v8350_v11  ;;  %v6570_v0 = vpop.xlane.xlu1 %6569  ;;  %vm6644_vm11 = vcmp.ge.f32.partialorder %v11934_v44, %v6629_v30 }
0x1c44   : > { %8351 = vlog2.f32 %v6570_v0  ;;  %v11999_v63 = vsel %vm6644_vm11, %v12211_v1, 128 }
0x1c45   : > { %v6593_v34 = vadd.f32 %v6584_v39, %v11925_v36  ;;  %v6661_v5 = vshra.s32 %v11999_v63, 16 }
0x1c47   : > { %v6601_v23 = vsub.f32 %v11898_v58, %v6593_v34  ;;  %v6663_v58 = vcvt.s32.f32 %v6661_v5 }
0x1c49   : > { %6640 = vmax.xlane.f32.xlu2 %v6601_v23  ;;  %v6609_v46 = vmul.f32 %v7274_v52, %v6601_v23 }
0x1c4a   : > { %v8352_v7 = vpop.eup %8351  ;;  %v6631_v13 = vpop.xlane.xlu0 %6630 }
0x1c4b   : > { %v6586_v2 = vmul.f32 0.6931472, %v8352_v7  ;;  %v6616_v36 = vadd.f32 %v6615_v9, %v6609_v46  ;;  %vm6645_vm14 = vcmp.ge.f32.partialorder %v11938_v55, %v6631_v13 }
0x1c4c   : > { %v12010_v26 = vsel %vm6645_vm14, %v12211_v1, 128 }
0x1c4d   : > { %v6594_v44 = vadd.f32 %v6586_v2, %v11929_v50  ;;  %v6675_v50 = vshra.s32 %v12010_v26, 16  ;;  %v6674_v46 = vand.u32 65535, %v12010_v26 }
0x1c4f   : > { %v6602_v17 = vsub.f32 %v11904_v14, %v6594_v44  ;;  %v6677_v20 = vcvt.s32.f32 %v6675_v50  ;;  %v6676_v2 = vcvt.s32.f32 %v6674_v46 }
0x1c51   : > { %6642 = vmax.xlane.f32.xlu0 %v6602_v17  ;;  %v6633_v29 = vpop.xlane.xlu1 %6632  ;;  %6664 = vmin.xlane.f32.xlu2 %v6663_v58  ;;  %v6610_v4 = vmul.f32 %v7275_v61, %v6602_v17 }
0x1c52   : > { %vm6646_vm0 = vcmp.ge.f32.partialorder %v11953_v35, %v6633_v29 }
0x1c53   : > { %v6654_v55 = vsel %vm6646_vm0, %v12211_v1, 128  ;;  %v12015_v47 = vadd.f32 %v6616_v36, %v6610_v4 }
0x1c54   : > { %v6689_v14 = vshra.s32 %v6654_v55, 16  ;;  %v6688_v30 = vand.u32 65535, %v6654_v55 }
0x1c56   : > { %v6691_v27 = vcvt.s32.f32 %v6689_v14  ;;  %v6690_v52 = vcvt.s32.f32 %v6688_v30 }
0x1c58   : > { %6692 = vmin.xlane.f32.xlu1 %v6691_v27 }
0x1c59   : > { %6678 = vmin.xlane.f32.xlu0 %v6677_v20  ;;  %v6635_v51 = vpop.xlane.xlu2 %6634 }
0x1c5a   : > { %vm6647_vm2 = vcmp.ge.f32.partialorder %v11963_v60, %v6635_v51 }
0x1c5b   : > { %v6655_v24 = vsel %vm6647_vm2, %v12211_v1, 128 }
0x1c5c   : > { %v6703_v56 = vshra.s32 %v6655_v24, 16  ;;  %v6702_v5 = vand.u32 65535, %v6655_v24 }
0x1c5e   : > { %v6705_v45 = vcvt.s32.f32 %v6703_v56  ;;  %v6704_v44 = vcvt.s32.f32 %v6702_v5 }
0x1c60   : > { %6706 = vmin.xlane.f32.xlu2 %v6705_v45 }
0x1c61   : > { %v6637_v35 = vpop.xlane.xlu0 %6636 }
0x1c62   : > { %vm6648_vm4 = vcmp.ge.f32.partialorder %v11973_v54, %v6637_v35 }
0x1c63   : > { %v6656_v16 = vsel %vm6648_vm4, %v12211_v1, 128 }
0x1c64   : > { %v6717_v15 = vshra.s32 %v6656_v16, 16  ;;  %v6716_v61 = vand.u32 65535, %v6656_v16 }
0x1c66   : > { %v6719_v8 = vcvt.s32.f32 %v6717_v15  ;;  %v6718_v26 = vcvt.s32.f32 %v6716_v61 }
0x1c68   : > { %6720 = vmin.xlane.f32.xlu0 %v6719_v8 }
0x1c69   : > { %v6639_v25 = vpop.xlane.xlu1 %6638 }
0x1c6a   : > { %vm6649_vm9 = vcmp.ge.f32.partialorder %v6600_v33, %v6639_v25 }
0x1c6b   : > { %v6657_v41 = vsel %vm6649_vm9, %v12211_v1, 128  ;;  %vm6796_vm9 = vcmask 7168  }
0x1c6c   : > { %v6731_v10 = vshra.s32 %v6657_v41, 16  ;;  %v6730_v50 = vand.u32 65535, %v6657_v41 }
0x1c6e   : > { %v6733_v62 = vcvt.s32.f32 %v6731_v10  ;;  %v6732_v55 = vcvt.s32.f32 %v6730_v50 }
0x1c70   : > { %6734 = vmin.xlane.f32.xlu1 %v6733_v62 }
0x1c71   : > { %v6196_v60 = vpop.xlane.xlu1 %6195 }
0x1c72   : > { %v6205_v48 = vmul.f32 %v6196_v60, %v12208_v57 }
0x1c74   : > { %v12023_v12 = vsub.f32 %v6167_v53, %v6205_v48  ;;  %v6660_v53 = vand.u32 65535, %v11999_v63 }
0x1c76   : > { %v6223_v54 = vmul.f32 %v12023_v12, %v12023_v12  ;;  %v6662_v0 = vcvt.s32.f32 %v6660_v53 }
0x1c78   : > { %v6248_v59 = vsel %vm2925_vm6, %v6223_v54, 0.0 }
0x1c79   : > { %6249 = vadd.xlane.f32.xlu1 %v6248_v59 }
0x1cbc   : > { %v6641_v3 = vpop.xlane.xlu2 %6640 }
0x1cbd   : > { %vm6650_vm8 = vcmp.ge.f32.partialorder %v6601_v23, %v6641_v3 }
0x1cbe   : > { %v12029_v33 = vsel %vm6650_vm8, %v12211_v1, 128 }
0x1cbf   : > { %v6745_v38 = vshra.s32 %v12029_v33, 16 }
0x1cc1   : > { %v12032_v9 = vcvt.s32.f32 %v6745_v38 }
0x1cc3   : > { %6748 = vmin.xlane.f32.xlu2 %v12032_v9 }
0x1cc4   : > { %v6643_v18 = vpop.xlane.xlu0 %6642  ;;  %v12036_v42 = vpop.xlane.xlu2 %6664 }
0x1cc5   : > { %vm6651_vm10 = vcmp.ge.f32.partialorder %v6602_v17, %v6643_v18  ;;  %vm6666_vm6 = vcmp.eq.f32.partialorder %v6663_v58, %v12036_v42 }
0x1cc6   : > { %v12039_v11 = vsel %vm6651_vm10, %v12211_v1, 128  ;;  %v6667_v23 = vsel %vm6666_vm6, %v6662_v0, inf }
0x1cc7   : > { %v6759_v39 = vshra.s32 %v12039_v11, 16  ;;  %v6758_v54 = vand.u32 65535, %v12039_v11 }
0x1cc9   : > { %v12043_v34 = vcvt.s32.f32 %v6759_v39  ;;  %v6760_v59 = vcvt.s32.f32 %v6758_v54 }
0x1ccb   : > { %6762 = vmin.xlane.f32.xlu0 %v12043_v34  ;;  %v12046_v63 = vpop.xlane.xlu1 %6692  ;;  %6668 = vmin.xlane.f32.xlu2 %v6667_v23 }
0x1ccc   : > { %vm6694_vm3 = vcmp.eq.f32.partialorder %v6691_v27, %v12046_v63  ;;  %v12050_v7 = vpop.xlane.xlu0 %6678 }
0x1ccd   : > { %v6695_v13 = vsel %vm6694_vm3, %v6690_v52, inf  ;;  %vm6680_vm5 = vcmp.eq.f32.partialorder %v6677_v20, %v12050_v7  ;;  %v6685_v11 = vcvt.f32.s32 %v12050_v7 }
0x1cce   : > { %6696 = vmin.xlane.f32.xlu1 %v6695_v13  ;;  %v6681_v36 = vsel %vm6680_vm5, %v6676_v2, inf }
0x1ccf   : > { %v6686_v23 = vshll.u32 %v6685_v11, 16 }
0x1cd3   : > { %6682 = vmin.xlane.f32.xlu0 %v6681_v36  ;;  %v12053_v58 = vpop.xlane.xlu2 %6706 }
0x1cd4   : > { %vm6708_vm13 = vcmp.eq.f32.partialorder %v6705_v45, %v12053_v58  ;;  %v6713_v46 = vcvt.f32.s32 %v12053_v58 }
0x1cd5   : > { %v6709_v17 = vsel %vm6708_vm13, %v6704_v44, inf }
0x1cd6   : > { %6710 = vmin.xlane.f32.xlu2 %v6709_v17  ;;  %v6714_v44 = vshll.u32 %v6713_v46, 16 }
0x1cdb   : > { %v12056_v29 = vpop.xlane.xlu0 %6720 }
0x1cdc   : > { %vm6722_vm7 = vcmp.eq.f32.partialorder %v6719_v8, %v12056_v29 }
0x1cdd   : > { %v6723_v4 = vsel %vm6722_vm7, %v6718_v26, inf  ;;  %vm6822_vm7 = vcmp.eq.s32.totalorder %v12211_v1, 1 }
0x1cde   : > { %6724 = vmin.xlane.f32.xlu0 %v6723_v4 }
0x1ce3   : > { %v12059_v14 = vpop.xlane.xlu1 %6734 }
0x1ce4   : > { %vm6736_vm11 = vcmp.eq.f32.partialorder %v6733_v62, %v12059_v14 }
0x1ce5   : > { %v6737_v27 = vsel %vm6736_vm11, %v6732_v55, inf  ;;  %vm6821_vm11 = vcmp.eq.s32.totalorder %v12211_v1, 0 }
0x1ce6   : > { %6738 = vmin.xlane.f32.xlu1 %v6737_v27  ;;  %v6741_v27 = vcvt.f32.s32 %v12059_v14 }
0x1cec   : > { %v6250_v20 = vpop.xlane.xlu1 %6249 }
0x1ced   : > { %v6259_v51 = vmul.f32 %v6250_v20, %v12208_v57 }
0x1cee   : > { %6618 = vadd.xlane.f32.xlu1 %v12015_v47  ;;  %v6744_v47 = vand.u32 65535, %v12029_v33 }
0x1cef   : > { %v6268_v24 = vadd.f32 1e-05, %v6259_v51 }
0x1cf0   : > { %v6746_v62 = vcvt.s32.f32 %v6744_v47 }
0x1cf1   : > { %8353 = vrsqrt.f32 %v6268_v24  ;;  %vm6355_vm14 = vweird.f32 %v6268_v24 }
0x1cf7   : > { %v8354_v56 = vpop.eup %8353 }
0x1cf8   : > { %v6350_v45 = vmul.f32 %v8354_v56, %v6268_v24  ;;  %vm6356_vm12 = vweird.f32 %v8354_v56  ;;  %v6742_v24 = vshll.u32 %v6741_v27, 16 }
0x1cf9   : > { %vm6357_vm15 = vmor %vm6355_vm14, %vm6356_vm12 }
0x1cfa   : > { %v6351_v35 = vmul.f32 %v8354_v56, %v6350_v45 }
0x1cfc   : > { %v6352_v16 = vmul.f32 0.5, %v6351_v35 }
0x1cfe   : > { %v6353_v15 = vsub.f32 1.5, %v6352_v16 }
0x1d00   : > { %v6354_v8 = vmul.f32 %v8354_v56, %v6353_v15 }
0x1d02   : > { %v6358_v25 = vsel %vm6357_vm15, %v8354_v56, %v6354_v8 }
0x1d03   : > { %v6367_v41 = vmul.f32 %v6358_v25, %v12023_v12  ;;  %v6671_v12 = vcvt.f32.s32 %v12036_v42 }
0x1d05   : > { %v6377_v10 = vmul.f32 %v11819_v21, %v6367_v41  ;;  %v6699_v21 = vcvt.f32.s32 %v12046_v63  ;;  %v6672_v53 = vshll.u32 %v6671_v12, 16 }
0x1d07   : > { %v6387_v57 = vadd.f32 %v11824_v31, %v6377_v10  ;;  %v6700_v18 = vshll.u32 %v6699_v21, 16 }
0x1d09   : > { %7706 = vmatmul.msk.f32.gmra.mxu0 %vm616_vm1, %v6387_v57 }
0x1d36   : > { %v12069_v60 = vpop.xlane.xlu2 %6748 }
0x1d37   : > { %vm6750_vm0 = vcmp.eq.f32.partialorder %v12032_v9, %v12069_v60  ;;  %v6755_v12 = vcvt.f32.s32 %v12069_v60 }
0x1d38   : > { %v6751_v48 = vsel %vm6750_vm0, %v6746_v62, inf }
0x1d39   : > { %6752 = vmin.xlane.f32.xlu2 %v6751_v48  ;;  %v6756_v21 = vshll.u32 %v6755_v12, 16 }
0x1d3e   : > { %v12076_v31 = vpop.xlane.xlu0 %6762  ;;  %v6669_v3 = vpop.xlane.xlu2 %6668 }
0x1d3f   : > { %vm6764_vm1 = vcmp.eq.f32.partialorder %v12043_v34, %v12076_v31  ;;  %v6670_v33 = vcvt.f32.s32 %v6669_v3 }
0x1d40   : > { %v6765_v38 = vsel %vm6764_vm1, %v6760_v59, inf }
0x1d41   : > { %6766 = vmin.xlane.f32.xlu0 %v6765_v38  ;;  %v6697_v9 = vpop.xlane.xlu1 %6696  ;;  %v6673_v39 = vadd.s32 %v6672_v53, %v6670_v33  ;;  %v6769_v33 = vcvt.f32.s32 %v12076_v31 }
0x1d42   : > { %v6698_v30 = vcvt.f32.s32 %v6697_v9 }
0x1d43   : > { %vm6772_vm2 = vcmp.eq.s32.totalorder %v6673_v39, %v12212_v32 }
0x1d44   : > { %v6701_v42 = vadd.s32 %v6700_v18, %v6698_v30  ;;  %v7707_v13 = vsel %vm6772_vm2, 1.0, %v8383_v37  ;;  %v6770_v30 = vshll.u32 %v6769_v33, 16 }
0x1d45   : > { %v6797_v36 = vsel %vm6796_vm9, %v7707_v13, 0.0 }
0x1d46   : > { %v6683_v0 = vpop.xlane.xlu0 %6682  ;;  %vm6774_vm4 = vcmp.eq.s32.totalorder %v6701_v42, %v12214_v19  ;;  %v6727_v19 = vcvt.f32.s32 %v12056_v29 }
0x1d47   : > { %v6684_v52 = vcvt.f32.s32 %v6683_v0  ;;  %v7709_v7 = vsel %vm6774_vm4, 1.0, %v8383_v37 }
0x1d48   : > { %v6800_v58 = vsel %vm6796_vm9, %v7709_v7, 0.0  ;;  %v6728_v50 = vshll.u32 %v6727_v19, 16 }
0x1d49   : > { %v6687_v63 = vadd.s32 %v6686_v23, %v6684_v52  ;;  %v6711_v34 = vpop.xlane.xlu2 %6710 }
0x1d4a   : > { %v6712_v2 = vcvt.f32.s32 %v6711_v34 }
0x1d4b   : > { %vm6773_vm8 = vcmp.eq.s32.totalorder %v6687_v63, %v12213_v49 }
0x1d4c   : > { %v7708_v5 = vsel %vm6773_vm8, 1.0, %v8383_v37  ;;  %v6715_v26 = vadd.s32 %v6714_v44, %v6712_v2 }
0x1d4d   : > { %v6798_v32 = vsel %vm6796_vm9, %v7708_v5, 0.0 }
0x1d4e   : > { %v6799_v17 = vadd.f32 %v6798_v32, %v6797_v36  ;;  %vm6775_vm10 = vcmp.eq.s32.totalorder %v6715_v26, %v12215_v22 }
0x1d4f   : > { %v7710_v20 = vsel %vm6775_vm10, 1.0, %v8383_v37 }
0x1d50   : > { %v6801_v61 = vadd.f32 %v6800_v58, %v6799_v17  ;;  %v6802_v56 = vsel %vm6796_vm9, %v7710_v20, 0.0 }
0x1d51   : > { %v6725_v4 = vpop.xlane.xlu0 %6724 }
0x1d52   : > { %v6726_v49 = vcvt.f32.s32 %v6725_v4  ;;  %v6803_v15 = vadd.f32 %v6802_v56, %v6801_v61 }
0x1d54   : > { %v6729_v55 = vadd.s32 %v6728_v50, %v6726_v49 }
0x1d56   : > { %vm6776_vm6 = vcmp.eq.s32.totalorder %v6729_v55, %v12216_v6 }
0x1d57   : > { %v7711_v51 = vsel %vm6776_vm6, 1.0, %v8383_v37 }
0x1d58   : > { %v6804_v35 = vsel %vm6796_vm9, %v7711_v51, 0.0 }
0x1d59   : > { %v6739_v29 = vpop.xlane.xlu1 %6738  ;;  %v6805_v22 = vadd.f32 %v6804_v35, %v6803_v15 }
0x1d5a   : > { %v6740_v45 = vcvt.f32.s32 %v6739_v29 }
0x1d5c   : > { %v6743_v16 = vadd.s32 %v6742_v24, %v6740_v45 }
0x1d5e   : > { %vm6777_vm3 = vcmp.eq.s32.totalorder %v6743_v16, %v12217_v28 }
0x1d5f   : > { %v7712_v14 = vsel %vm6777_vm3, 1.0, %v8383_v37 }
0x1d60   : > { %v6806_v6 = vsel %vm6796_vm9, %v7712_v14, 0.0 }
0x1d61   : > { %v6807_v8 = vadd.f32 %v6806_v6, %v6805_v22  ;;  %v6619_v25 = vpop.xlane.xlu1 %6618 }
0x1d62   : > { %v6620_v41 = vrot.slane %v6619_v25, 4 }
0x1d64   : > { %v6621_v10 = vadd.f32 %v6620_v41, %v6619_v25 }
0x1d66   : > { %v6622_v57 = vrot.slane %v6621_v10, 2 }
0x1d68   : > { %v6623_v47 = vadd.f32 %v6622_v57, %v6621_v10 }
0x1d6a   : > { %v6624_v62 = vrot.slane %v6623_v47, 1 }
0x1d6c   : > { %v6625_v48 = vadd.f32 %v6624_v62, %v6623_v47 }
0x1d6e   : > { %7870 = vpush %v6625_v48 }
0x1d86   : > { %v6504_v54 = vpop.f32.mrf.mxu0 }
0x1d9f   : > { %s7871_s26 = spop %7870 }
0x1da0   : > { %s6627_s27 = ssub.f32 0.0, %s7871_s26 }
0x1dac   : > { %v6753_v59 = vpop.xlane.xlu2 %6752 }
0x1dad   : > { %v6754_v28 = vcvt.f32.s32 %v6753_v59 }
0x1daf   : > { %v6757_v3 = vadd.s32 %v6756_v21, %v6754_v28 }
0x1db1   : > { %vm6778_vm5 = vcmp.eq.s32.totalorder %v6757_v3, %v12218_v43 }
0x1db2   : > { %v7713_v38 = vsel %vm6778_vm5, 1.0, %v8383_v37 }
0x1db3   : > { %v6808_v53 = vsel %vm6796_vm9, %v7713_v38, 0.0 }
0x1db4   : > { %v6767_v9 = vpop.xlane.xlu0 %6766  ;;  %v6809_v18 = vadd.f32 %v6808_v53, %v6807_v8 }
0x1db5   : > { %v6768_v11 = vcvt.f32.s32 %v6767_v9 }
0x1db7   : > { %v6771_v39 = vadd.s32 %v6770_v30, %v6768_v11 }
0x1db9   : > { %vm6779_vm13 = vcmp.eq.s32.totalorder %v6771_v39, %v12220_v40  ;;  %v6825_v40 = vstv %s6627_s27 }
0x1dba   : > { %v7714_v60 = vsel %vm6779_vm13, 1.0, %v8383_v37 }
0x1dbb   : > { %v6810_v42 = vsel %vm6796_vm9, %v7714_v60, 0.0 }
0x1dbc   : > { %v6811_v0 = vadd.f32 %v6810_v42, %v6809_v18 }
0x1dbe   : > { %6812 = vadd.xlane.f32.xlu2 %v6811_v0 }
0x1e31   : > { %v6813_v31 = vpop.xlane.xlu2 %6812 }
0x1e32   : > { %v6814_v43 = vrot.slane %v6813_v31, 4 }
0x1e34   : > { %v6815_v23 = vadd.f32 %v6814_v43, %v6813_v31 }
0x1e36   : > { %v6816_v52 = vrot.slane %v6815_v23, 2 }
0x1e38   : > { %v6817_v63 = vadd.f32 %v6816_v52, %v6815_v23 }
0x1e3a   : > { %v6818_v34 = vrot.slane %v6817_v63, 1 }
0x1e3c   : > { %v6819_v46 = vadd.f32 %v6818_v34, %v6817_v63 }
0x1e3e   : > { %7872 = vpush %v6819_v46 }
0x1e6f   : > { %s7873_s28 = spop %7872 }
0x1e70   : > { %v6823_v37 = vstv %s7873_s28 }
0x1e71   : > { %v6824_v13 = vsel %vm6822_vm7, %v6823_v37, 0.0 }
0x1e72   : > { %v6826_v7 = vsel %vm6821_vm11, %v6825_v40, %v6824_v13 }
0x1e73   : > { %6827 = vst [vmem:[%s271_s7] sm:$0xff] %v6826_v7 }
0x1e74 PF: > { %s16_s21 = sadd.s32 1, %s8377_s21  }
0x1e75   : > { %p13_p5 = scmp.ge.s32.totalorder %s16_s21, 4  }
0x1e77   :  { %15 = sbr.rel (!%p13_p5) target bundleno = 1 (0x1), region = 80 }

</bundles_post_ra>
